<compile_context>
chip_gen: v7x
topology: tpu7x:2x2x1
jax: 0.10.0
libtpu: 0.0.40
codegen_flags: <defaults>
</compile_context>

<pallas_src>
import functools

import numpy as np
import jax
import jax.numpy as jnp
from jax import lax
from jax.experimental import pallas as pl
from jax.experimental.pallas import tpu as pltpu


# ----------------------------------------------------------------------------
# Fused Pallas kernel: reflect-padded 3x3 conv (im2col fused as 9 shifted MXU
# matmuls) + bias + ReLU, optional fused Haar-LL pool->unpool epilogue.
# ----------------------------------------------------------------------------
def _conv3x3_kernel(x_ref, w_ref, b_ref, o_ref, *, apply_relu, fuse_pool):
    # x_ref: (1, 1, th+2, W+2, Cin)  bf16 halo tile (already reflection padded)
    # w_ref: (9, Cin, Cout)          bf16, tap-major (t = dy*3 + dx)
    # b_ref: (1, Cout)               f32
    # o_ref: (1, th, W, Cout)
    th = o_ref.shape[1]
    w = o_ref.shape[2]
    cout = o_ref.shape[3]
    cin = x_ref.shape[4]

    acc = jnp.zeros((th * w, cout), jnp.float32)
    for t in range(9):                              # static unroll: 9 shifted matmuls
        dy, dx = t // 3, t % 3
        xs = x_ref[0, 0, dy:dy + th, dx:dx + w, :].reshape(th * w, cin)
        acc = acc + jnp.dot(xs, w_ref[t], preferred_element_type=jnp.float32)
    acc = acc + b_ref[...]
    if apply_relu:
        acc = jnp.maximum(acc, 0.0)
    y = acc.reshape(th, w, cout)

    if fuse_pool:
        # Haar LL analyse+synthesize == 0.25 * (2x2 block sum) broadcast back.
        y4 = y.reshape(th // 2, 2, w, cout)         # leading-dim split only
        hs = y4[:, 0] + y4[:, 1]                    # H-pair sums: (th//2, w, cout)
        col = lax.broadcasted_iota(jnp.int32, hs.shape, 1)
        swap = jnp.where(col % 2 == 0,
                         jnp.roll(hs, -1, axis=1),  # even col -> partner col+1
                         jnp.roll(hs, 1, axis=1))   # odd  col -> partner col-1
        ws = 0.25 * (hs + swap)                     # block sum * 0.25, bcast over W-pair
        y = jnp.broadcast_to(ws[:, None], (th // 2, 2, w, cout)).reshape(th, w, cout)

    o_ref[0] = y.astype(o_ref.dtype)


def _pick_tile_h(H, W, target_rows=4096):
    """Largest even divisor of H with tile_h * W <= target_rows (bounded VMEM)."""
    cap = max(2, min(H, target_rows // max(W, 1)))
    best = 2
    for th in range(2, H + 1, 2):
        if H % th == 0 and th <= cap:
            best = th
    return best


def fused_conv3x3(x, w_taps, bias, *, apply_relu, fuse_pool, out_dtype):
    """y = relu(conv3x3(reflect_pad1(x)) + b), optionally followed by the fused
    Haar-LL pool->unpool (per-2x2-block mean broadcast).  x: (B, H, W, Cin)."""
    B, H, W, Cin = x.shape
    Cout = w_taps.shape[-1]
    assert H % 2 == 0 and W % 2 == 0

    # Pad the contraction (channel) dim up to a multiple of 8 (sublane friendly K).
    cpad = (-Cin) % 8
    if cpad:
        x = jnp.pad(x, ((0, 0), (0, 0), (0, 0), (0, cpad)))
        w_taps = jnp.pad(w_taps, ((0, 0), (0, cpad), (0, 0)))
        Cin += cpad

    tile_h = _pick_tile_h(H, W)
    nT = H // tile_h

    # Reflection-padded halo row-tiles, built once (one extra pass over x versus
    # 9x for an explicit im2col patch matrix).  bf16 halves HBM traffic.
    xp = jnp.pad(x.astype(jnp.bfloat16), ((0, 0), (1, 1), (1, 1), (0, 0)),
                 mode="reflect")
    xw = jnp.stack(
        [lax.slice_in_dim(xp, i * tile_h, i * tile_h + tile_h + 2, axis=1)
         for i in range(nT)], axis=1)               # (B, nT, th+2, W+2, Cin)

    kernel = functools.partial(_conv3x3_kernel, apply_relu=apply_relu,
                               fuse_pool=fuse_pool)
    return pl.pallas_call(
        kernel,
        out_shape=jax.ShapeDtypeStruct((B, H, W, Cout), out_dtype),
        grid=(B, nT),
        in_specs=[
            pl.BlockSpec((1, 1, tile_h + 2, W + 2, Cin),
                         lambda b, i: (b, i, 0, 0, 0)),
            pl.BlockSpec((9, Cin, Cout), lambda b, i: (0, 0, 0)),
            pl.BlockSpec((1, Cout), lambda b, i: (0, 0)),
        ],
        out_specs=pl.BlockSpec((1, tile_h, W, Cout), lambda b, i: (b, i, 0, 0)),
        compiler_params=pltpu.CompilerParams(
            dimension_semantics=("parallel", "parallel")),
    )(xw, w_taps.astype(jnp.bfloat16), bias.reshape(1, Cout).astype(jnp.float32))


# ----------------------------------------------------------------------------
# Parameters (deterministic synthetic init; PyTorch weight shapes).
# ----------------------------------------------------------------------------
def init_params(key):
    ks = jax.random.split(key, 6)
    return dict(
        w0_t=jax.random.normal(ks[0], (3, 3, 1, 1), jnp.float32) / np.sqrt(3.0),
        b0=0.01 * jax.random.normal(ks[1], (3,), jnp.float32),
        w1_t=jax.random.normal(ks[2], (64, 3, 3, 3), jnp.float32) / np.sqrt(27.0),
        b1=0.01 * jax.random.normal(ks[3], (64,), jnp.float32),
        w2_t=jax.random.normal(ks[4], (64, 64, 3, 3), jnp.float32) / np.sqrt(576.0),
        b2=0.01 * jax.random.normal(ks[5], (64,), jnp.float32),
    )


def _torch_conv_to_taps(w_t):
    # (O, I, kh, kw) -> (kh*kw, I, O), tap-major (dy, dx) matching the kernel loop.
    O, I, kh, kw = w_t.shape
    return jnp.transpose(w_t, (2, 3, 1, 0)).reshape(kh * kw, I, O)


# ----------------------------------------------------------------------------
# Full WCT2Features forward.
# ----------------------------------------------------------------------------
def wct2_features_forward(x_nchw, params, filters=None):
    x = jnp.transpose(x_nchw, (0, 2, 3, 1)).astype(jnp.float32)   # NCHW -> NHWC

    # Fold conv0 (1x1, 3->3) into conv1_1's taps: reflection pad commutes with a
    # pointwise conv, so w1'_tap = W0 @ w1_tap and b1' = b1 + b0 @ sum_t w1_tap.
    w0 = params["w0_t"][:, :, 0, 0].T                 # (in=3, out=3)
    w1_taps = _torch_conv_to_taps(params["w1_t"])     # (9, 3, 64)
    w1_fold = jnp.einsum("ij,tjo->tio", w0, w1_taps)  # (9, 3, 64)
    b1_fold = params["b1"] + params["b0"] @ jnp.sum(w1_taps, axis=0)
    w2_taps = _torch_conv_to_taps(params["w2_t"])     # (9, 64, 64)

    # conv0 + relu(conv1_1(reflpad(.)))  -- single fused kernel, bf16 intermediate.
    h1 = fused_conv3x3(x, w1_fold, b1_fold, apply_relu=True,
                       fuse_pool=False, out_dtype=jnp.bfloat16)
    # relu(conv1_2(reflpad(.))) == skips['conv1_2'], fused with the surviving
    # WavePool-LL -> WaveUnpool-LL branch of cat5 (out[:, :64]) in the epilogue.
    out = fused_conv3x3(h1, w2_taps, params["b2"], apply_relu=True,
                        fuse_pool=True, out_dtype=jnp.float32)

    out_nchw = jnp.transpose(out, (0, 3, 1, 2))       # NHWC -> NCHW, (B, 64, H, W)
    if filters is not None:                           # torch.index_select(dim=1)
        out_nchw = jnp.take(out_nchw, jnp.asarray(filters, jnp.int32), axis=1)
    return out_nchw


# ----------------------------------------------------------------------------
# Pure-JAX reference (XLA convs, f32, unfolded weights) for validation.
# ----------------------------------------------------------------------------
def reference_forward(x_nchw, params):
    x = jnp.transpose(x_nchw, (0, 2, 3, 1)).astype(jnp.float32)

    def conv(h, w_t, b):
        w = jnp.transpose(w_t, (2, 3, 1, 0))  # HWIO
        y = lax.conv_general_dilated(h, w, (1, 1), "VALID",
                                     dimension_numbers=("NHWC", "HWIO", "NHWC"))
        return y + b

    def pad(h):
        return jnp.pad(h, ((0, 0), (1, 1), (1, 1), (0, 0)), mode="reflect")

    h = conv(x, params["w0_t"], params["b0"])
    h = jnp.maximum(conv(pad(h), params["w1_t"], params["b1"]), 0.0)
    h = jnp.maximum(conv(pad(h), params["w2_t"], params["b2"]), 0.0)
    ll = 0.5 * (h[:, 0::2, 0::2] + h[:, 0::2, 1::2] + h[:, 1::2, 0::2] + h[:, 1::2, 1::2])
    up = 0.5 * jnp.repeat(jnp.repeat(ll, 2, axis=1), 2, axis=2)
    return jnp.transpose(up, (0, 3, 1, 2))


if __name__ == "__main__":
    key = jax.random.PRNGKey(0)
    kx, kp = jax.random.split(key)
    x = jax.random.normal(kx, (2, 3, 16, 16), jnp.float32)   # NCHW, like the PyTorch module
    params = init_params(kp)

    fwd = jax.jit(wct2_features_forward)
    out = jax.block_until_ready(fwd(x, params))

    assert out.shape == (2, 64, 16, 16), out.shape
    assert bool(jnp.all(jnp.isfinite(out)))

    ref = jax.block_until_ready(reference_forward(x, params))
    np.testing.assert_allclose(np.asarray(out), np.asarray(ref), rtol=1e-1, atol=5e-2)

    print("KERNEL_OK")
</pallas_src>

<mosaic_0001>
module attributes {stable_mosaic.version = 11 : i64} {
  func.func @_conv3x3_kernel(%arg0: i32, %arg1: i32, %arg2: memref<1x1x18x18x8xbf16, #tpu.memory_space<vmem>>, %arg3: memref<9x8x64xbf16, #tpu.memory_space<vmem>>, %arg4: memref<1x64xf32, #tpu.memory_space<vmem>>, %arg5: memref<1x16x16x64xbf16, #tpu.memory_space<vmem>>) attributes {dimension_semantics = [#tpu.dimension_semantics<parallel>, #tpu.dimension_semantics<parallel>], iteration_bounds = array<i64: 2, 1>, scalar_prefetch = 0 : i64, scratch_operands = 0 : i64, tpu.core_type = #tpu.core_type<tc>, window_params = [{transform_indices = @transform_0, window_bounds = array<i64: 1, 1, 18, 18, 8>}, {pipeline_mode = #tpu.pipeline_mode<synchronous>, transform_indices = @transform_1, window_bounds = array<i64: 9, 8, 64>}, {pipeline_mode = #tpu.pipeline_mode<synchronous>, transform_indices = @transform_2, window_bounds = array<i64: 1, 64>}, {transform_indices = @transform_3, window_bounds = array<i64: 1, 16, 16, 64>}]} {
    %cst = arith.constant 0.000000e+00 : f32
    %0 = vector.broadcast %cst : f32 to vector<256x64xf32>
    %c0 = arith.constant 0 : index
    %c0_0 = arith.constant 0 : index
    %c0_1 = arith.constant 0 : index
    %c0_2 = arith.constant 0 : index
    %c0_3 = arith.constant 0 : index
    %1 = vector.load %arg2[%c0, %c0_0, %c0_1, %c0_2, %c0_3] : memref<1x1x18x18x8xbf16, #tpu.memory_space<vmem>>, vector<1x1x16x16x8xbf16>
    %2 = vector.shape_cast %1 : vector<1x1x16x16x8xbf16> to vector<16x16x8xbf16>
    %3 = vector.shape_cast %2 : vector<16x16x8xbf16> to vector<256x8xbf16>
    %c0_4 = arith.constant 0 : index
    %c0_5 = arith.constant 0 : index
    %c0_6 = arith.constant 0 : index
    %4 = vector.load %arg3[%c0_4, %c0_5, %c0_6] : memref<9x8x64xbf16, #tpu.memory_space<vmem>>, vector<1x8x64xbf16>
    %5 = vector.shape_cast %4 : vector<1x8x64xbf16> to vector<8x64xbf16>
    %cst_7 = arith.constant dense<0.000000e+00> : vector<256x64xf32>
    %6 = tpu.matmul %3, %5, %cst_7 {dimension_numbers = #tpu.dot_dimension_numbers<[1], [0], [0], [1], [0, 0, 1, 1], [], []>} : vector<256x8xbf16>, vector<8x64xbf16>, vector<256x64xf32> -> vector<256x64xf32>
    %7 = arith.addf %0, %6 : vector<256x64xf32>
    %c0_8 = arith.constant 0 : index
    %c0_9 = arith.constant 0 : index
    %c0_10 = arith.constant 0 : index
    %c1 = arith.constant 1 : index
    %c0_11 = arith.constant 0 : index
    %8 = vector.load %arg2[%c0_8, %c0_9, %c0_10, %c1, %c0_11] : memref<1x1x18x18x8xbf16, #tpu.memory_space<vmem>>, vector<1x1x16x16x8xbf16>
    %9 = vector.shape_cast %8 : vector<1x1x16x16x8xbf16> to vector<16x16x8xbf16>
    %10 = vector.shape_cast %9 : vector<16x16x8xbf16> to vector<256x8xbf16>
    %c1_12 = arith.constant 1 : index
    %c0_13 = arith.constant 0 : index
    %c0_14 = arith.constant 0 : index
    %11 = vector.load %arg3[%c1_12, %c0_13, %c0_14] : memref<9x8x64xbf16, #tpu.memory_space<vmem>>, vector<1x8x64xbf16>
    %12 = vector.shape_cast %11 : vector<1x8x64xbf16> to vector<8x64xbf16>
    %cst_15 = arith.constant dense<0.000000e+00> : vector<256x64xf32>
    %13 = tpu.matmul %10, %12, %cst_15 {dimension_numbers = #tpu.dot_dimension_numbers<[1], [0], [0], [1], [0, 0, 1, 1], [], []>} : vector<256x8xbf16>, vector<8x64xbf16>, vector<256x64xf32> -> vector<256x64xf32>
    %14 = arith.addf %7, %13 : vector<256x64xf32>
    %c0_16 = arith.constant 0 : index
    %c0_17 = arith.constant 0 : index
    %c0_18 = arith.constant 0 : index
    %c2 = arith.constant 2 : index
    %c0_19 = arith.constant 0 : index
    %15 = vector.load %arg2[%c0_16, %c0_17, %c0_18, %c2, %c0_19] : memref<1x1x18x18x8xbf16, #tpu.memory_space<vmem>>, vector<1x1x16x16x8xbf16>
    %16 = vector.shape_cast %15 : vector<1x1x16x16x8xbf16> to vector<16x16x8xbf16>
    %17 = vector.shape_cast %16 : vector<16x16x8xbf16> to vector<256x8xbf16>
    %c2_20 = arith.constant 2 : index
    %c0_21 = arith.constant 0 : index
    %c0_22 = arith.constant 0 : index
    %18 = vector.load %arg3[%c2_20, %c0_21, %c0_22] : memref<9x8x64xbf16, #tpu.memory_space<vmem>>, vector<1x8x64xbf16>
    %19 = vector.shape_cast %18 : vector<1x8x64xbf16> to vector<8x64xbf16>
    %cst_23 = arith.constant dense<0.000000e+00> : vector<256x64xf32>
    %20 = tpu.matmul %17, %19, %cst_23 {dimension_numbers = #tpu.dot_dimension_numbers<[1], [0], [0], [1], [0, 0, 1, 1], [], []>} : vector<256x8xbf16>, vector<8x64xbf16>, vector<256x64xf32> -> vector<256x64xf32>
    %21 = arith.addf %14, %20 : vector<256x64xf32>
    %c0_24 = arith.constant 0 : index
    %c0_25 = arith.constant 0 : index
    %c1_26 = arith.constant 1 : index
    %c0_27 = arith.constant 0 : index
    %c0_28 = arith.constant 0 : index
    %22 = vector.load %arg2[%c0_24, %c0_25, %c1_26, %c0_27, %c0_28] : memref<1x1x18x18x8xbf16, #tpu.memory_space<vmem>>, vector<1x1x16x16x8xbf16>
    %23 = vector.shape_cast %22 : vector<1x1x16x16x8xbf16> to vector<16x16x8xbf16>
    %24 = vector.shape_cast %23 : vector<16x16x8xbf16> to vector<256x8xbf16>
    %c3 = arith.constant 3 : index
    %c0_29 = arith.constant 0 : index
    %c0_30 = arith.constant 0 : index
    %25 = vector.load %arg3[%c3, %c0_29, %c0_30] : memref<9x8x64xbf16, #tpu.memory_space<vmem>>, vector<1x8x64xbf16>
    %26 = vector.shape_cast %25 : vector<1x8x64xbf16> to vector<8x64xbf16>
    %cst_31 = arith.constant dense<0.000000e+00> : vector<256x64xf32>
    %27 = tpu.matmul %24, %26, %cst_31 {dimension_numbers = #tpu.dot_dimension_numbers<[1], [0], [0], [1], [0, 0, 1, 1], [], []>} : vector<256x8xbf16>, vector<8x64xbf16>, vector<256x64xf32> -> vector<256x64xf32>
    %28 = arith.addf %21, %27 : vector<256x64xf32>
    %c0_32 = arith.constant 0 : index
    %c0_33 = arith.constant 0 : index
    %c1_34 = arith.constant 1 : index
    %c1_35 = arith.constant 1 : index
    %c0_36 = arith.constant 0 : index
    %29 = vector.load %arg2[%c0_32, %c0_33, %c1_34, %c1_35, %c0_36] : memref<1x1x18x18x8xbf16, #tpu.memory_space<vmem>>, vector<1x1x16x16x8xbf16>
    %30 = vector.shape_cast %29 : vector<1x1x16x16x8xbf16> to vector<16x16x8xbf16>
    %31 = vector.shape_cast %30 : vector<16x16x8xbf16> to vector<256x8xbf16>
    %c4 = arith.constant 4 : index
    %c0_37 = arith.constant 0 : index
    %c0_38 = arith.constant 0 : index
    %32 = vector.load %arg3[%c4, %c0_37, %c0_38] : memref<9x8x64xbf16, #tpu.memory_space<vmem>>, vector<1x8x64xbf16>
    %33 = vector.shape_cast %32 : vector<1x8x64xbf16> to vector<8x64xbf16>
    %cst_39 = arith.constant dense<0.000000e+00> : vector<256x64xf32>
    %34 = tpu.matmul %31, %33, %cst_39 {dimension_numbers = #tpu.dot_dimension_numbers<[1], [0], [0], [1], [0, 0, 1, 1], [], []>} : vector<256x8xbf16>, vector<8x64xbf16>, vector<256x64xf32> -> vector<256x64xf32>
    %35 = arith.addf %28, %34 : vector<256x64xf32>
    %c0_40 = arith.constant 0 : index
    %c0_41 = arith.constant 0 : index
    %c1_42 = arith.constant 1 : index
    %c2_43 = arith.constant 2 : index
    %c0_44 = arith.constant 0 : index
    %36 = vector.load %arg2[%c0_40, %c0_41, %c1_42, %c2_43, %c0_44] : memref<1x1x18x18x8xbf16, #tpu.memory_space<vmem>>, vector<1x1x16x16x8xbf16>
    %37 = vector.shape_cast %36 : vector<1x1x16x16x8xbf16> to vector<16x16x8xbf16>
    %38 = vector.shape_cast %37 : vector<16x16x8xbf16> to vector<256x8xbf16>
    %c5 = arith.constant 5 : index
    %c0_45 = arith.constant 0 : index
    %c0_46 = arith.constant 0 : index
    %39 = vector.load %arg3[%c5, %c0_45, %c0_46] : memref<9x8x64xbf16, #tpu.memory_space<vmem>>, vector<1x8x64xbf16>
    %40 = vector.shape_cast %39 : vector<1x8x64xbf16> to vector<8x64xbf16>
    %cst_47 = arith.constant dense<0.000000e+00> : vector<256x64xf32>
    %41 = tpu.matmul %38, %40, %cst_47 {dimension_numbers = #tpu.dot_dimension_numbers<[1], [0], [0], [1], [0, 0, 1, 1], [], []>} : vector<256x8xbf16>, vector<8x64xbf16>, vector<256x64xf32> -> vector<256x64xf32>
    %42 = arith.addf %35, %41 : vector<256x64xf32>
    %c0_48 = arith.constant 0 : index
    %c0_49 = arith.constant 0 : index
    %c2_50 = arith.constant 2 : index
    %c0_51 = arith.constant 0 : index
    %c0_52 = arith.constant 0 : index
    %43 = vector.load %arg2[%c0_48, %c0_49, %c2_50, %c0_51, %c0_52] : memref<1x1x18x18x8xbf16, #tpu.memory_space<vmem>>, vector<1x1x16x16x8xbf16>
    %44 = vector.shape_cast %43 : vector<1x1x16x16x8xbf16> to vector<16x16x8xbf16>
    %45 = vector.shape_cast %44 : vector<16x16x8xbf16> to vector<256x8xbf16>
    %c6 = arith.constant 6 : index
    %c0_53 = arith.constant 0 : index
    %c0_54 = arith.constant 0 : index
    %46 = vector.load %arg3[%c6, %c0_53, %c0_54] : memref<9x8x64xbf16, #tpu.memory_space<vmem>>, vector<1x8x64xbf16>
    %47 = vector.shape_cast %46 : vector<1x8x64xbf16> to vector<8x64xbf16>
    %cst_55 = arith.constant dense<0.000000e+00> : vector<256x64xf32>
    %48 = tpu.matmul %45, %47, %cst_55 {dimension_numbers = #tpu.dot_dimension_numbers<[1], [0], [0], [1], [0, 0, 1, 1], [], []>} : vector<256x8xbf16>, vector<8x64xbf16>, vector<256x64xf32> -> vector<256x64xf32>
    %49 = arith.addf %42, %48 : vector<256x64xf32>
    %c0_56 = arith.constant 0 : index
    %c0_57 = arith.constant 0 : index
    %c2_58 = arith.constant 2 : index
    %c1_59 = arith.constant 1 : index
    %c0_60 = arith.constant 0 : index
    %50 = vector.load %arg2[%c0_56, %c0_57, %c2_58, %c1_59, %c0_60] : memref<1x1x18x18x8xbf16, #tpu.memory_space<vmem>>, vector<1x1x16x16x8xbf16>
    %51 = vector.shape_cast %50 : vector<1x1x16x16x8xbf16> to vector<16x16x8xbf16>
    %52 = vector.shape_cast %51 : vector<16x16x8xbf16> to vector<256x8xbf16>
    %c7 = arith.constant 7 : index
    %c0_61 = arith.constant 0 : index
    %c0_62 = arith.constant 0 : index
    %53 = vector.load %arg3[%c7, %c0_61, %c0_62] : memref<9x8x64xbf16, #tpu.memory_space<vmem>>, vector<1x8x64xbf16>
    %54 = vector.shape_cast %53 : vector<1x8x64xbf16> to vector<8x64xbf16>
    %cst_63 = arith.constant dense<0.000000e+00> : vector<256x64xf32>
    %55 = tpu.matmul %52, %54, %cst_63 {dimension_numbers = #tpu.dot_dimension_numbers<[1], [0], [0], [1], [0, 0, 1, 1], [], []>} : vector<256x8xbf16>, vector<8x64xbf16>, vector<256x64xf32> -> vector<256x64xf32>
    %56 = arith.addf %49, %55 : vector<256x64xf32>
    %c0_64 = arith.constant 0 : index
    %c0_65 = arith.constant 0 : index
    %c2_66 = arith.constant 2 : index
    %c2_67 = arith.constant 2 : index
    %c0_68 = arith.constant 0 : index
    %57 = vector.load %arg2[%c0_64, %c0_65, %c2_66, %c2_67, %c0_68] : memref<1x1x18x18x8xbf16, #tpu.memory_space<vmem>>, vector<1x1x16x16x8xbf16>
    %58 = vector.shape_cast %57 : vector<1x1x16x16x8xbf16> to vector<16x16x8xbf16>
    %59 = vector.shape_cast %58 : vector<16x16x8xbf16> to vector<256x8xbf16>
    %c8 = arith.constant 8 : index
    %c0_69 = arith.constant 0 : index
    %c0_70 = arith.constant 0 : index
    %60 = vector.load %arg3[%c8, %c0_69, %c0_70] : memref<9x8x64xbf16, #tpu.memory_space<vmem>>, vector<1x8x64xbf16>
    %61 = vector.shape_cast %60 : vector<1x8x64xbf16> to vector<8x64xbf16>
    %cst_71 = arith.constant dense<0.000000e+00> : vector<256x64xf32>
    %62 = tpu.matmul %59, %61, %cst_71 {dimension_numbers = #tpu.dot_dimension_numbers<[1], [0], [0], [1], [0, 0, 1, 1], [], []>} : vector<256x8xbf16>, vector<8x64xbf16>, vector<256x64xf32> -> vector<256x64xf32>
    %63 = arith.addf %56, %62 : vector<256x64xf32>
    %c0_72 = arith.constant 0 : index
    %c0_73 = arith.constant 0 : index
    %64 = vector.load %arg4[%c0_72, %c0_73] : memref<1x64xf32, #tpu.memory_space<vmem>>, vector<1x64xf32>
    %65 = vector.broadcast %64 : vector<1x64xf32> to vector<256x64xf32>
    %66 = arith.addf %63, %65 : vector<256x64xf32>
    %cst_74 = arith.constant 0.000000e+00 : f32
    %67 = vector.broadcast %cst_74 : f32 to vector<256x64xf32>
    %68 = arith.maximumf %66, %67 : vector<256x64xf32>
    %69 = vector.shape_cast %68 : vector<256x64xf32> to vector<16x16x64xf32>
    %70 = arith.truncf %69 : vector<16x16x64xf32> to vector<16x16x64xbf16>
    %c0_75 = arith.constant 0 : index
    %c0_76 = arith.constant 0 : index
    %c0_77 = arith.constant 0 : index
    %c0_78 = arith.constant 0 : index
    %71 = vector.load %arg5[%c0_75, %c0_76, %c0_77, %c0_78] : memref<1x16x16x64xbf16, #tpu.memory_space<vmem>>, vector<1x16x16x64xbf16>
    %72 = vector.shape_cast %71 : vector<1x16x16x64xbf16> to vector<16x16x64xbf16>
    %73 = vector.shape_cast %70 : vector<16x16x64xbf16> to vector<1x16x16x64xbf16>
    tpu.vector_store %arg5[%c0_75, %c0_76, %c0_77, %c0_78], %73 {strides = array<i32>} : memref<1x16x16x64xbf16, #tpu.memory_space<vmem>>, vector<1x16x16x64xbf16>,
    return
  }
  func.func @transform_0(%arg0: i32, %arg1: i32) -> (i32, i32, i32, i32, i32) {
    %c0_i32 = arith.constant 0 : i32
    %c0_i32_0 = arith.constant 0 : i32
    %c0_i32_1 = arith.constant 0 : i32
    %c0_i32_2 = arith.constant 0 : i32
    return %arg0, %arg1, %c0_i32, %c0_i32_0, %c0_i32_1 : i32, i32, i32, i32, i32
  }
  func.func @transform_1(%arg0: i32, %arg1: i32) -> (i32, i32, i32) {
    %c0_i32 = arith.constant 0 : i32
    %c0_i32_0 = arith.constant 0 : i32
    %c0_i32_1 = arith.constant 0 : i32
    %c0_i32_2 = arith.constant 0 : i32
    return %c0_i32, %c0_i32_0, %c0_i32_1 : i32, i32, i32
  }
  func.func @transform_2(%arg0: i32, %arg1: i32) -> (i32, i32) {
    %c0_i32 = arith.constant 0 : i32
    %c0_i32_0 = arith.constant 0 : i32
    %c0_i32_1 = arith.constant 0 : i32
    return %c0_i32, %c0_i32_0 : i32, i32
  }
  func.func @transform_3(%arg0: i32, %arg1: i32) -> (i32, i32, i32, i32) {
    %c0_i32 = arith.constant 0 : i32
    %c0_i32_0 = arith.constant 0 : i32
    %c0_i32_1 = arith.constant 0 : i32
    return %arg0, %arg1, %c0_i32, %c0_i32_0 : i32, i32, i32, i32
  }
}

module attributes {stable_mosaic.version = 11 : i64} {
  func.func @_conv3x3_kernel(%arg0: i32, %arg1: i32, %arg2: memref<1x1x18x18x64xbf16, #tpu.memory_space<vmem>>, %arg3: memref<9x64x64xbf16, #tpu.memory_space<vmem>>, %arg4: memref<1x64xf32, #tpu.memory_space<vmem>>, %arg5: memref<1x16x16x64xf32, #tpu.memory_space<vmem>>) attributes {dimension_semantics = [#tpu.dimension_semantics<parallel>, #tpu.dimension_semantics<parallel>], iteration_bounds = array<i64: 2, 1>, scalar_prefetch = 0 : i64, scratch_operands = 0 : i64, tpu.core_type = #tpu.core_type<tc>, window_params = [{transform_indices = @transform_0, window_bounds = array<i64: 1, 1, 18, 18, 64>}, {pipeline_mode = #tpu.pipeline_mode<synchronous>, transform_indices = @transform_1, window_bounds = array<i64: 9, 64, 64>}, {pipeline_mode = #tpu.pipeline_mode<synchronous>, transform_indices = @transform_2, window_bounds = array<i64: 1, 64>}, {transform_indices = @transform_3, window_bounds = array<i64: 1, 16, 16, 64>}]} {
    %cst = arith.constant 0.000000e+00 : f32
    %0 = vector.broadcast %cst : f32 to vector<256x64xf32>
    %c0 = arith.constant 0 : index
    %c0_0 = arith.constant 0 : index
    %c0_1 = arith.constant 0 : index
    %c0_2 = arith.constant 0 : index
    %c0_3 = arith.constant 0 : index
    %1 = vector.load %arg2[%c0, %c0_0, %c0_1, %c0_2, %c0_3] : memref<1x1x18x18x64xbf16, #tpu.memory_space<vmem>>, vector<1x1x16x16x64xbf16>
    %2 = vector.shape_cast %1 : vector<1x1x16x16x64xbf16> to vector<16x16x64xbf16>
    %3 = vector.shape_cast %2 : vector<16x16x64xbf16> to vector<256x64xbf16>
    %c0_4 = arith.constant 0 : index
    %c0_5 = arith.constant 0 : index
    %c0_6 = arith.constant 0 : index
    %4 = vector.load %arg3[%c0_4, %c0_5, %c0_6] : memref<9x64x64xbf16, #tpu.memory_space<vmem>>, vector<1x64x64xbf16>
    %5 = vector.shape_cast %4 : vector<1x64x64xbf16> to vector<64x64xbf16>
    %cst_7 = arith.constant dense<0.000000e+00> : vector<256x64xf32>
    %6 = tpu.matmul %3, %5, %cst_7 {dimension_numbers = #tpu.dot_dimension_numbers<[1], [0], [0], [1], [0, 0, 1, 1], [], []>} : vector<256x64xbf16>, vector<64x64xbf16>, vector<256x64xf32> -> vector<256x64xf32>
    %7 = arith.addf %0, %6 : vector<256x64xf32>
    %c0_8 = arith.constant 0 : index
    %c0_9 = arith.constant 0 : index
    %c0_10 = arith.constant 0 : index
    %c1 = arith.constant 1 : index
    %c0_11 = arith.constant 0 : index
    %8 = vector.load %arg2[%c0_8, %c0_9, %c0_10, %c1, %c0_11] : memref<1x1x18x18x64xbf16, #tpu.memory_space<vmem>>, vector<1x1x16x16x64xbf16>
    %9 = vector.shape_cast %8 : vector<1x1x16x16x64xbf16> to vector<16x16x64xbf16>
    %10 = vector.shape_cast %9 : vector<16x16x64xbf16> to vector<256x64xbf16>
    %c1_12 = arith.constant 1 : index
    %c0_13 = arith.constant 0 : index
    %c0_14 = arith.constant 0 : index
    %11 = vector.load %arg3[%c1_12, %c0_13, %c0_14] : memref<9x64x64xbf16, #tpu.memory_space<vmem>>, vector<1x64x64xbf16>
    %12 = vector.shape_cast %11 : vector<1x64x64xbf16> to vector<64x64xbf16>
    %cst_15 = arith.constant dense<0.000000e+00> : vector<256x64xf32>
    %13 = tpu.matmul %10, %12, %cst_15 {dimension_numbers = #tpu.dot_dimension_numbers<[1], [0], [0], [1], [0, 0, 1, 1], [], []>} : vector<256x64xbf16>, vector<64x64xbf16>, vector<256x64xf32> -> vector<256x64xf32>
    %14 = arith.addf %7, %13 : vector<256x64xf32>
    %c0_16 = arith.constant 0 : index
    %c0_17 = arith.constant 0 : index
    %c0_18 = arith.constant 0 : index
    %c2 = arith.constant 2 : index
    %c0_19 = arith.constant 0 : index
    %15 = vector.load %arg2[%c0_16, %c0_17, %c0_18, %c2, %c0_19] : memref<1x1x18x18x64xbf16, #tpu.memory_space<vmem>>, vector<1x1x16x16x64xbf16>
    %16 = vector.shape_cast %15 : vector<1x1x16x16x64xbf16> to vector<16x16x64xbf16>
    %17 = vector.shape_cast %16 : vector<16x16x64xbf16> to vector<256x64xbf16>
    %c2_20 = arith.constant 2 : index
    %c0_21 = arith.constant 0 : index
    %c0_22 = arith.constant 0 : index
    %18 = vector.load %arg3[%c2_20, %c0_21, %c0_22] : memref<9x64x64xbf16, #tpu.memory_space<vmem>>, vector<1x64x64xbf16>
    %19 = vector.shape_cast %18 : vector<1x64x64xbf16> to vector<64x64xbf16>
    %cst_23 = arith.constant dense<0.000000e+00> : vector<256x64xf32>
    %20 = tpu.matmul %17, %19, %cst_23 {dimension_numbers = #tpu.dot_dimension_numbers<[1], [0], [0], [1], [0, 0, 1, 1], [], []>} : vector<256x64xbf16>, vector<64x64xbf16>, vector<256x64xf32> -> vector<256x64xf32>
    %21 = arith.addf %14, %20 : vector<256x64xf32>
    %c0_24 = arith.constant 0 : index
    %c0_25 = arith.constant 0 : index
    %c1_26 = arith.constant 1 : index
    %c0_27 = arith.constant 0 : index
    %c0_28 = arith.constant 0 : index
    %22 = vector.load %arg2[%c0_24, %c0_25, %c1_26, %c0_27, %c0_28] : memref<1x1x18x18x64xbf16, #tpu.memory_space<vmem>>, vector<1x1x16x16x64xbf16>
    %23 = vector.shape_cast %22 : vector<1x1x16x16x64xbf16> to vector<16x16x64xbf16>
    %24 = vector.shape_cast %23 : vector<16x16x64xbf16> to vector<256x64xbf16>
    %c3 = arith.constant 3 : index
    %c0_29 = arith.constant 0 : index
    %c0_30 = arith.constant 0 : index
    %25 = vector.load %arg3[%c3, %c0_29, %c0_30] : memref<9x64x64xbf16, #tpu.memory_space<vmem>>, vector<1x64x64xbf16>
    %26 = vector.shape_cast %25 : vector<1x64x64xbf16> to vector<64x64xbf16>
    %cst_31 = arith.constant dense<0.000000e+00> : vector<256x64xf32>
    %27 = tpu.matmul %24, %26, %cst_31 {dimension_numbers = #tpu.dot_dimension_numbers<[1], [0], [0], [1], [0, 0, 1, 1], [], []>} : vector<256x64xbf16>, vector<64x64xbf16>, vector<256x64xf32> -> vector<256x64xf32>
    %28 = arith.addf %21, %27 : vector<256x64xf32>
    %c0_32 = arith.constant 0 : index
    %c0_33 = arith.constant 0 : index
    %c1_34 = arith.constant 1 : index
    %c1_35 = arith.constant 1 : index
    %c0_36 = arith.constant 0 : index
    %29 = vector.load %arg2[%c0_32, %c0_33, %c1_34, %c1_35, %c0_36] : memref<1x1x18x18x64xbf16, #tpu.memory_space<vmem>>, vector<1x1x16x16x64xbf16>
    %30 = vector.shape_cast %29 : vector<1x1x16x16x64xbf16> to vector<16x16x64xbf16>
    %31 = vector.shape_cast %30 : vector<16x16x64xbf16> to vector<256x64xbf16>
    %c4 = arith.constant 4 : index
    %c0_37 = arith.constant 0 : index
    %c0_38 = arith.constant 0 : index
    %32 = vector.load %arg3[%c4, %c0_37, %c0_38] : memref<9x64x64xbf16, #tpu.memory_space<vmem>>, vector<1x64x64xbf16>
    %33 = vector.shape_cast %32 : vector<1x64x64xbf16> to vector<64x64xbf16>
    %cst_39 = arith.constant dense<0.000000e+00> : vector<256x64xf32>
    %34 = tpu.matmul %31, %33, %cst_39 {dimension_numbers = #tpu.dot_dimension_numbers<[1], [0], [0], [1], [0, 0, 1, 1], [], []>} : vector<256x64xbf16>, vector<64x64xbf16>, vector<256x64xf32> -> vector<256x64xf32>
    %35 = arith.addf %28, %34 : vector<256x64xf32>
    %c0_40 = arith.constant 0 : index
    %c0_41 = arith.constant 0 : index
    %c1_42 = arith.constant 1 : index
    %c2_43 = arith.constant 2 : index
    %c0_44 = arith.constant 0 : index
    %36 = vector.load %arg2[%c0_40, %c0_41, %c1_42, %c2_43, %c0_44] : memref<1x1x18x18x64xbf16, #tpu.memory_space<vmem>>, vector<1x1x16x16x64xbf16>
    %37 = vector.shape_cast %36 : vector<1x1x16x16x64xbf16> to vector<16x16x64xbf16>
    %38 = vector.shape_cast %37 : vector<16x16x64xbf16> to vector<256x64xbf16>
    %c5 = arith.constant 5 : index
    %c0_45 = arith.constant 0 : index
    %c0_46 = arith.constant 0 : index
    %39 = vector.load %arg3[%c5, %c0_45, %c0_46] : memref<9x64x64xbf16, #tpu.memory_space<vmem>>, vector<1x64x64xbf16>
    %40 = vector.shape_cast %39 : vector<1x64x64xbf16> to vector<64x64xbf16>
    %cst_47 = arith.constant dense<0.000000e+00> : vector<256x64xf32>
    %41 = tpu.matmul %38, %40, %cst_47 {dimension_numbers = #tpu.dot_dimension_numbers<[1], [0], [0], [1], [0, 0, 1, 1], [], []>} : vector<256x64xbf16>, vector<64x64xbf16>, vector<256x64xf32> -> vector<256x64xf32>
    %42 = arith.addf %35, %41 : vector<256x64xf32>
    %c0_48 = arith.constant 0 : index
    %c0_49 = arith.constant 0 : index
    %c2_50 = arith.constant 2 : index
    %c0_51 = arith.constant 0 : index
    %c0_52 = arith.constant 0 : index
    %43 = vector.load %arg2[%c0_48, %c0_49, %c2_50, %c0_51, %c0_52] : memref<1x1x18x18x64xbf16, #tpu.memory_space<vmem>>, vector<1x1x16x16x64xbf16>
    %44 = vector.shape_cast %43 : vector<1x1x16x16x64xbf16> to vector<16x16x64xbf16>
    %45 = vector.shape_cast %44 : vector<16x16x64xbf16> to vector<256x64xbf16>
    %c6 = arith.constant 6 : index
    %c0_53 = arith.constant 0 : index
    %c0_54 = arith.constant 0 : index
    %46 = vector.load %arg3[%c6, %c0_53, %c0_54] : memref<9x64x64xbf16, #tpu.memory_space<vmem>>, vector<1x64x64xbf16>
    %47 = vector.shape_cast %46 : vector<1x64x64xbf16> to vector<64x64xbf16>
    %cst_55 = arith.constant dense<0.000000e+00> : vector<256x64xf32>
    %48 = tpu.matmul %45, %47, %cst_55 {dimension_numbers = #tpu.dot_dimension_numbers<[1], [0], [0], [1], [0, 0, 1, 1], [], []>} : vector<256x64xbf16>, vector<64x64xbf16>, vector<256x64xf32> -> vector<256x64xf32>
    %49 = arith.addf %42, %48 : vector<256x64xf32>
    %c0_56 = arith.constant 0 : index
    %c0_57 = arith.constant 0 : index
    %c2_58 = arith.constant 2 : index
    %c1_59 = arith.constant 1 : index
    %c0_60 = arith.constant 0 : index
    %50 = vector.load %arg2[%c0_56, %c0_57, %c2_58, %c1_59, %c0_60] : memref<1x1x18x18x64xbf16, #tpu.memory_space<vmem>>, vector<1x1x16x16x64xbf16>
    %51 = vector.shape_cast %50 : vector<1x1x16x16x64xbf16> to vector<16x16x64xbf16>
    %52 = vector.shape_cast %51 : vector<16x16x64xbf16> to vector<256x64xbf16>
    %c7 = arith.constant 7 : index
    %c0_61 = arith.constant 0 : index
    %c0_62 = arith.constant 0 : index
    %53 = vector.load %arg3[%c7, %c0_61, %c0_62] : memref<9x64x64xbf16, #tpu.memory_space<vmem>>, vector<1x64x64xbf16>
    %54 = vector.shape_cast %53 : vector<1x64x64xbf16> to vector<64x64xbf16>
    %cst_63 = arith.constant dense<0.000000e+00> : vector<256x64xf32>
    %55 = tpu.matmul %52, %54, %cst_63 {dimension_numbers = #tpu.dot_dimension_numbers<[1], [0], [0], [1], [0, 0, 1, 1], [], []>} : vector<256x64xbf16>, vector<64x64xbf16>, vector<256x64xf32> -> vector<256x64xf32>
    %56 = arith.addf %49, %55 : vector<256x64xf32>
    %c0_64 = arith.constant 0 : index
    %c0_65 = arith.constant 0 : index
    %c2_66 = arith.constant 2 : index
    %c2_67 = arith.constant 2 : index
    %c0_68 = arith.constant 0 : index
    %57 = vector.load %arg2[%c0_64, %c0_65, %c2_66, %c2_67, %c0_68] : memref<1x1x18x18x64xbf16, #tpu.memory_space<vmem>>, vector<1x1x16x16x64xbf16>
    %58 = vector.shape_cast %57 : vector<1x1x16x16x64xbf16> to vector<16x16x64xbf16>
    %59 = vector.shape_cast %58 : vector<16x16x64xbf16> to vector<256x64xbf16>
    %c8 = arith.constant 8 : index
    %c0_69 = arith.constant 0 : index
    %c0_70 = arith.constant 0 : index
    %60 = vector.load %arg3[%c8, %c0_69, %c0_70] : memref<9x64x64xbf16, #tpu.memory_space<vmem>>, vector<1x64x64xbf16>
    %61 = vector.shape_cast %60 : vector<1x64x64xbf16> to vector<64x64xbf16>
    %cst_71 = arith.constant dense<0.000000e+00> : vector<256x64xf32>
    %62 = tpu.matmul %59, %61, %cst_71 {dimension_numbers = #tpu.dot_dimension_numbers<[1], [0], [0], [1], [0, 0, 1, 1], [], []>} : vector<256x64xbf16>, vector<64x64xbf16>, vector<256x64xf32> -> vector<256x64xf32>
    %63 = arith.addf %56, %62 : vector<256x64xf32>
    %c0_72 = arith.constant 0 : index
    %c0_73 = arith.constant 0 : index
    %64 = vector.load %arg4[%c0_72, %c0_73] : memref<1x64xf32, #tpu.memory_space<vmem>>, vector<1x64xf32>
    %65 = vector.broadcast %64 : vector<1x64xf32> to vector<256x64xf32>
    %66 = arith.addf %63, %65 : vector<256x64xf32>
    %cst_74 = arith.constant 0.000000e+00 : f32
    %67 = vector.broadcast %cst_74 : f32 to vector<256x64xf32>
    %68 = arith.maximumf %66, %67 : vector<256x64xf32>
    %69 = vector.shape_cast %68 : vector<256x64xf32> to vector<16x16x64xf32>
    %70 = vector.shape_cast %69 : vector<16x16x64xf32> to vector<8x2x16x64xf32>
    %71 = vector.extract_strided_slice %70 {offsets = [0, 0, 0, 0], sizes = [8, 1, 16, 64], strides = [1, 1, 1, 1]} : vector<8x2x16x64xf32> to vector<8x1x16x64xf32>
    %72 = vector.shape_cast %71 : vector<8x1x16x64xf32> to vector<8x16x64xf32>
    %73 = vector.extract_strided_slice %70 {offsets = [0, 1, 0, 0], sizes = [8, 1, 16, 64], strides = [1, 1, 1, 1]} : vector<8x2x16x64xf32> to vector<8x1x16x64xf32>
    %74 = vector.shape_cast %73 : vector<8x1x16x64xf32> to vector<8x16x64xf32>
    %75 = arith.addf %72, %74 : vector<8x16x64xf32>
    %76 = tpu.iota {dimensions = array<i32: 1>} : vector<8x16x64xi32>
    %c2_i32 = arith.constant 2 : i32
    %c0_i32 = arith.constant 0 : i32
    %77 = arith.cmpi eq, %c2_i32, %c0_i32 : i32
    %c1_i32 = arith.constant 1 : i32
    %78 = arith.select %77, %c1_i32, %c2_i32 : i32
    %79 = vector.broadcast %78 : i32 to vector<8x16x64xi32>
    %80 = arith.remsi %76, %79 : vector<8x16x64xi32>
    %c0_i32_75 = arith.constant 0 : i32
    %81 = vector.broadcast %c0_i32_75 : i32 to vector<8x16x64xi32>
    %82 = arith.cmpi ne, %80, %81 : vector<8x16x64xi32>
    %c0_i32_76 = arith.constant 0 : i32
    %83 = vector.broadcast %c0_i32_76 : i32 to vector<8x16x64xi32>
    %84 = arith.cmpi slt, %80, %83 : vector<8x16x64xi32>
    %c0_i32_77 = arith.constant 0 : i32
    %85 = arith.cmpi slt, %78, %c0_i32_77 : i32
    %86 = vector.broadcast %85 : i1 to vector<8x16x64xi1>
    %87 = vector.broadcast %86 : vector<8x16x64xi1> to vector<8x16x64xi1>
    %88 = arith.xori %84, %87 : vector<8x16x64xi1>
    %89 = arith.andi %88, %82 : vector<8x16x64xi1>
    %90 = vector.broadcast %78 : i32 to vector<8x16x64xi32>
    %91 = arith.addi %80, %90 : vector<8x16x64xi32>
    %92 = arith.select %89, %91, %80 : vector<8x16x64xi1>, vector<8x16x64xi32>
    %c0_i32_78 = arith.constant 0 : i32
    %93 = vector.broadcast %c0_i32_78 : i32 to vector<8x16x64xi32>
    %94 = arith.cmpi eq, %92, %93 : vector<8x16x64xi32>
    %95 = vector.extract_strided_slice %75 {offsets = [0, 1, 0], sizes = [8, 15, 64], strides = [1, 1, 1]} : vector<8x16x64xf32> to vector<8x15x64xf32>
    %96 = vector.extract_strided_slice %75 {offsets = [0, 0, 0], sizes = [8, 1, 64], strides = [1, 1, 1]} : vector<8x16x64xf32> to vector<8x1x64xf32>
    %97 = tpu.concatenate %95, %96 in 1 : vector<8x15x64xf32>, vector<8x1x64xf32> -> vector<8x16x64xf32>
    %98 = vector.extract_strided_slice %75 {offsets = [0, 15, 0], sizes = [8, 1, 64], strides = [1, 1, 1]} : vector<8x16x64xf32> to vector<8x1x64xf32>
    %99 = vector.extract_strided_slice %75 {offsets = [0, 0, 0], sizes = [8, 15, 64], strides = [1, 1, 1]} : vector<8x16x64xf32> to vector<8x15x64xf32>
    %100 = tpu.concatenate %98, %99 in 1 : vector<8x1x64xf32>, vector<8x15x64xf32> -> vector<8x16x64xf32>
    %101 = arith.select %94, %97, %100 : vector<8x16x64xi1>, vector<8x16x64xf32>
    %102 = arith.addf %75, %101 : vector<8x16x64xf32>
    %cst_79 = arith.constant 2.500000e-01 : f32
    %103 = vector.broadcast %cst_79 : f32 to vector<8x16x64xf32>
    %104 = arith.mulf %103, %102 : vector<8x16x64xf32>
    %105 = vector.shape_cast %104 : vector<8x16x64xf32> to vector<8x1x16x64xf32>
    %106 = vector.shape_cast %105 : vector<8x1x16x64xf32> to vector<8x1x16x64xf32>
    %107 = vector.broadcast %106 : vector<8x1x16x64xf32> to vector<8x2x16x64xf32>
    %108 = vector.shape_cast %107 : vector<8x2x16x64xf32> to vector<16x16x64xf32>
    %c0_80 = arith.constant 0 : index
    %c0_81 = arith.constant 0 : index
    %c0_82 = arith.constant 0 : index
    %c0_83 = arith.constant 0 : index
    %109 = vector.load %arg5[%c0_80, %c0_81, %c0_82, %c0_83] : memref<1x16x16x64xf32, #tpu.memory_space<vmem>>, vector<1x16x16x64xf32>
    %110 = vector.shape_cast %109 : vector<1x16x16x64xf32> to vector<16x16x64xf32>
    %111 = vector.shape_cast %108 : vector<16x16x64xf32> to vector<1x16x16x64xf32>
    tpu.vector_store %arg5[%c0_80, %c0_81, %c0_82, %c0_83], %111 {strides = array<i32>} : memref<1x16x16x64xf32, #tpu.memory_space<vmem>>, vector<1x16x16x64xf32>,
    return
  }
  func.func @transform_0(%arg0: i32, %arg1: i32) -> (i32, i32, i32, i32, i32) {
    %c0_i32 = arith.constant 0 : i32
    %c0_i32_0 = arith.constant 0 : i32
    %c0_i32_1 = arith.constant 0 : i32
    %c0_i32_2 = arith.constant 0 : i32
    return %arg0, %arg1, %c0_i32, %c0_i32_0, %c0_i32_1 : i32, i32, i32, i32, i32
  }
  func.func @transform_1(%arg0: i32, %arg1: i32) -> (i32, i32, i32) {
    %c0_i32 = arith.constant 0 : i32
    %c0_i32_0 = arith.constant 0 : i32
    %c0_i32_1 = arith.constant 0 : i32
    %c0_i32_2 = arith.constant 0 : i32
    return %c0_i32, %c0_i32_0, %c0_i32_1 : i32, i32, i32
  }
  func.func @transform_2(%arg0: i32, %arg1: i32) -> (i32, i32) {
    %c0_i32 = arith.constant 0 : i32
    %c0_i32_0 = arith.constant 0 : i32
    %c0_i32_1 = arith.constant 0 : i32
    return %c0_i32, %c0_i32_0 : i32, i32
  }
  func.func @transform_3(%arg0: i32, %arg1: i32) -> (i32, i32, i32, i32) {
    %c0_i32 = arith.constant 0 : i32
    %c0_i32_0 = arith.constant 0 : i32
    %c0_i32_1 = arith.constant 0 : i32
    return %arg0, %arg1, %c0_i32, %c0_i32_0 : i32, i32, i32, i32
  }
}

</mosaic_0001>

<bundles_post_ra>
// kernel: wct2_features_forward.2
= control target key start
LH: loop header
LB: loop body
LE: loop exit
PB: predicated region body
PF: predicated region fallthrough
CT: control target
= control target key end

     0   :  { %s6611_s12 = smov 0   ;;  %s6613_s13 = smov 0   ;;  %s8466_s0 = inlined_call_operand.vmem [shape: bf16[2,1,18,18,8], index: 0, kind: input, shape index: {}]   ;;  %s8467_s1 = inlined_call_operand.vmem [shape: bf16[9,8,64], index: 1, kind: input, shape index: {}]   ;;  %s8468_s2 = inlined_call_operand.vmem [shape: f32[1,64], index: 2, kind: input, shape index: {}]   ;;  %s8469_s3 = inlined_call_operand.vmem [shape: bf16[2,16,16,64], index: 3, kind: output, shape index: {}]  }
   0x1   :  { %s6615_s14 = smov 0  }
   0x2 LB: > { %s25_s15 = sadd.s32 1, %s6585_s13  ;;  %p5102_p0 = scmp.ge.s32.totalorder %s6589_s14, 1  ;;  %s6589_s14 = sphi %s6615_s14, %s13_s14   ;;  %s6585_s13 = sphi %s6613_s13, %s8538_s13   ;;  %s6581_s12 = sphi %s6611_s12, %s8537_s12  }
   0x3   : > { %p27_p1 = scmp.ge.s32.totalorder %s25_s15, 2  ;;  %p157_p2 = scmp.lt.s32.totalorder %s6589_s14, 3 }
   0x5   : > { %s8540_s15 = smov (%p27_p1, %s25_s15), 0  ;;  %p158_p3 = pnand %p5102_p0, %p157_p2 }
   0x7   : > { %161 = sbr.rel (%p158_p3) target bundleno = 590 (0x24e), region = 32 }
   0xe   : > { %v5106_v0 = vld [vmem:[%s8467_s1 + $0x4] sm:$0xf]  ;;  %vm746_vm0 = vcmask 1043456   ;;  %v5333_v1 = vld [vmem:[%s8467_s1 + $0x10] sm:$0xf]  ;;  %p190_p4 = scmp.lt.s32.totalorder %s6581_s12, 1 }
   0xf   : > { %6427 = vmatprep.subr.msk.bf16.mxu1 %vm746_vm0, %v5106_v0  ;;  %6431 = vmatprep.subr.msk.bf16.mxu0 %vm746_vm0, %v5333_v1  ;;  %v748_v2 = vsel %vm746_vm0, %v5106_v0, 0  ;;  %v6639_v3 = vsel %vm746_vm0, %v5333_v1, 0  ;;  %v243_v4 = vld [vmem:[%s8467_s1] sm:$0xf]  ;;  %v5398_v5 = vld [vmem:[%s8467_s1 + $0x14] sm:$0xf] }
  0x10   : > { %8483 = vst [vmem:[#allocation2_spill] sm:$0xff] %v6639_v3  ;;  %5864 = vmatpush3.bf16.msra.mxu1 %v748_v2  ;;  %6000 = vmatpush3.bf16.msra.mxu0 %v6639_v3  ;;  %s8542_s12 = smov (!%p190_p4, %s6581_s12), 1  ;;  %vm260_vm1 = vsmask.f32 3328  ;;  %vm261_vm2 = vsmask.f32 7440 }
  0x11   : > { %6428 = vmatprep.subr.msk.bf16.mxu1 %vm746_vm0, %v243_v4  ;;  %6433 = vmatprep.subr.msk.bf16.mxu0 %vm746_vm0, %v5398_v5  ;;  %s6437_s24 = smul.u32 216, %s8542_s12  ;;  %vm697_vm3 = vcmask 64512   ;;  %v6669_v17 = vsel %vm746_vm0, %v243_v4, 0  ;;  %v6675_v26 = vld [vmem:[%s8467_s1 + $0x18] sm:$0xf]  ;;  %vm6682_vm4 = vmor %vm260_vm1, %vm261_vm2  ;;  %v6688_v37 = vsel %vm746_vm0, %v5398_v5, 0 }
  0x12   : > { %v6692_v41 = vsel %vm746_vm0, %v6675_v26, 0  ;;  %vm1251_vm5 = vcmask 1042432   ;;  %vm1252_vm6 = vcmask 1046532   ;;  %s5677_s21 = sshll.u32 %s8542_s12, 7  ;;  %vm4969_vm8 = vcmask 519168  }
  0x13   : > { %s6656_s27 = scalar_lea.vmem %s8466_s0, %s6437_s24  ;;  %vm6908_vm7 = vmor %vm1251_vm5, %vm1252_vm6  ;;  %s8356_s24 = scalar_lea.vmem %s8469_s3, %s5677_s21 }
  0x14   : > { %v211_v6 = vld [vmem:[%s6656_s27] sm:$0xf]  ;;  %v212_v7 = vld [vmem:[%s6656_s27 + $0x4] sm:$0xf]  ;;  %v244_v8 = vld [vmem:[%s6656_s27 + $0x8] sm:$0x1] }
  0x15   : > { %v264_v9 = vshrl.u32 %v211_v6, 16  ;;  %v267_v10 = vshll.u32 %v211_v6, 16  ;;  %v273_v11 = vshll.u32 %v212_v7, 16  ;;  %v277_v12 = vshrl.u32 %v212_v7, 16  ;;  %v5285_v13 = vld [vmem:[%s6656_s27 + $0xc] sm:$0xf] }
  0x16   : > { %v283_v14 = vshll.u32 %v244_v8, 16  ;;  %v6663_v15 = vld [vmem:[%s6656_s27 + $0x10] sm:$0xf]  ;;  %v6666_v16 = vld [vmem:[%s6656_s27 + $0x14] sm:$0x1]  ;;  %v2068_v23 = vshrl.u32 %v5285_v13, 16 }
  0x17   : > { %v266_v18 = vrot.slane %v264_v9, 4  ;;  %v269_v19 = vrot.slane %v267_v10, 5  ;;  %v275_v20 = vrot.slane %v273_v11, 5  ;;  %v279_v21 = vrot.slane %v277_v12, 4  ;;  %v213_v31 = vld [vmem:[%s6656_s27 + $0xc] sm:$0xf] }
  0x18   : > { %v285_v22 = vrot.slane %v283_v14, 5  ;;  %v2071_v24 = vshll.u32 %v5285_v13, 16  ;;  %v2077_v25 = vshll.u32 %v6663_v15, 16  ;;  %v2081_v29 = vshrl.u32 %v6663_v15, 16  ;;  %v214_v36 = vld [vmem:[%s6656_s27 + $0x10] sm:$0xf] }
  0x19   : > { %v270_v27 = vor.u32 %v269_v19, %v266_v18  ;;  %v280_v28 = vor.u32 %v279_v21, %v275_v20  ;;  %v2087_v30 = vshll.u32 %v6666_v16, 16  ;;  %v2070_v33 = vrot.slane %v2068_v23, 4  ;;  %v245_v44 = vld [vmem:[%s6656_s27 + $0x14] sm:$0x1]  ;;  %v5288_v55 = vld [vmem:[%s6656_s27 + $0x18] sm:$0xf] }
  0x1a   : > { %v2073_v34 = vrot.slane %v2071_v24, 5  ;;  %v2079_v35 = vrot.slane %v2077_v25, 5  ;;  %v2083_v40 = vrot.slane %v2081_v29, 4  ;;  %v288_v45 = vshrl.u32 %v213_v31, 16  ;;  %v6701_v60 = vld [vmem:[%s6656_s27 + $0x1c] sm:$0xf] }
  0x1b   : > { %v271_v38 = vrot.slane %v270_v27, 4  ;;  %v281_v39 = vrot.slane %v280_v28, 4  ;;  %v2089_v43 = vrot.slane %v2087_v30, 5  ;;  %v291_v46 = vshll.u32 %v213_v31, 16  ;;  %v6709_v1 = vld [vmem:[%s6656_s27 + $0x20] sm:$0x1] }
  0x1c   : > { %v2074_v42 = vor.u32 %v2073_v34, %v2070_v33  ;;  %v2084_v49 = vor.u32 %v2083_v40, %v2079_v35  ;;  %v297_v50 = vshll.u32 %v214_v36, 16  ;;  %v290_v53 = vrot.slane %v288_v45, 4  ;;  %v215_v18 = vld [vmem:[%s6656_s27 + $0x18] sm:$0xf]  ;;  %v216_v23 = vld [vmem:[%s6656_s27 + $0x1c] sm:$0xf] }
  0x1d   : > { %v276_v47 = vsel %vm6682_vm4, %v271_v38, %v275_v20  ;;  %v286_v48 = vsel %vm6682_vm4, %v281_v39, %v285_v22  ;;  %v293_v54 = vrot.slane %v291_v46, 5  ;;  %v301_v58 = vshrl.u32 %v214_v36, 16  ;;  %v246_v31 = vld [vmem:[%s6656_s27 + $0x20] sm:$0x1]  ;;  %v5291_v40 = vld [vmem:[%s6656_s27 + $0x24] sm:$0xf] }
  0x1e   : > { %v5107_v51 = vcombine.low %v276_v47, %v286_v48  ;;  %v2075_v52 = vrot.slane %v2074_v42, 4  ;;  %v2085_v56 = vrot.slane %v2084_v49, 4  ;;  %v299_v57 = vrot.slane %v297_v50, 5  ;;  %v6732_v46 = vld [vmem:[%s6656_s27 + $0x28] sm:$0xf] }
  0x1f   : > { %v307_v59 = vshll.u32 %v245_v44, 16  ;;  %v2811_v62 = vrot.slane %v6663_v15, 5  ;;  %v2814_v63 = vrot.slane %v6666_v16, 5  ;;  %v294_v0 = vor.u32 %v293_v54, %v290_v53  ;;  %v6741_v54 = vld [vmem:[%s6656_s27 + $0x2c] sm:$0x1] }
  0x20   : > { %5865 = vmatprep.mubr.msk.bf16.mxu1 %vm697_vm3, %v5107_v51  ;;  %v2080_v61 = vsel %vm6682_vm4, %v2075_v52, %v2079_v35  ;;  %v2090_v2 = vsel %vm6682_vm4, %v2085_v56, %v2089_v43  ;;  %v303_v4 = vrot.slane %v301_v58, 4  ;;  %v2092_v6 = vshrl.u32 %v5288_v55, 16  ;;  %v5187_v51 = vld [vmem:[%s8467_s1 + $0x8] sm:$0xf]  ;;  %v6941_v16 = vld [vmem:[%s6656_s27 + $0x7c] sm:$0xf] }
  0x21   : > { %v309_v5 = vrot.slane %v307_v59, 5  ;;  %v5334_v7 = vcombine.low %v2080_v61, %v2090_v2  ;;  %v295_v8 = vrot.slane %v294_v0, 4  ;;  %v2095_v9 = vshll.u32 %v5288_v55, 16  ;;  %v217_v0 = vld [vmem:[%s6656_s27 + $0x24] sm:$0xf] }
  0x22   : > { %v2101_v10 = vshll.u32 %v6701_v60, 16  ;;  %v304_v11 = vor.u32 %v303_v4, %v299_v57  ;;  %v2094_v12 = vrot.slane %v2092_v6, 4  ;;  %v2105_v13 = vshrl.u32 %v6701_v60, 16 }
  0x23   : > { %v2111_v14 = vshll.u32 %v6709_v1, 16  ;;  %6001 = vmatprep.mubr.msk.bf16.mxu0 %vm697_vm3, %v5334_v7  ;;  %v300_v19 = vsel %vm6682_vm4, %v295_v8, %v299_v57  ;;  %v2097_v20 = vrot.slane %v2095_v9, 5  ;;  %v2818_v22 = vrot.slane %v6701_v60, 5  ;;  %v218_v7 = vld [vmem:[%s6656_s27 + $0x28] sm:$0xf] }
  0x24   : > { %v2103_v21 = vrot.slane %v2101_v10, 5  ;;  %v305_v24 = vrot.slane %v304_v11, 4  ;;  %v2107_v25 = vrot.slane %v2105_v13, 4  ;;  %v2821_v28 = vrot.slane %v6709_v1, 5  ;;  %v247_v13 = vld [vmem:[%s6656_s27 + $0x2c] sm:$0x1] }
  0x25   : > { %v2113_v27 = vrot.slane %v2111_v14, 5  ;;  %v2098_v29 = vor.u32 %v2097_v20, %v2094_v12  ;;  %v6725_v30 = vrot.slane %v2818_v22, 4  ;;  %v312_v33 = vshrl.u32 %v215_v18, 16 }
  0x26   : > { %v315_v34 = vshll.u32 %v215_v18, 16  ;;  %v310_v35 = vsel %vm6682_vm4, %v305_v24, %v309_v5  ;;  %v2108_v36 = vor.u32 %v2107_v25, %v2103_v21  ;;  %v321_v38 = vshll.u32 %v216_v23, 16  ;;  %v5294_v24 = vld [vmem:[%s6656_s27 + $0x30] sm:$0xf] }
  0x27   : > { %v325_v39 = vshrl.u32 %v216_v23, 16  ;;  %v5108_v42 = vcombine.low %v300_v19, %v310_v35  ;;  %v2099_v43 = vrot.slane %v2098_v29, 4  ;;  %v314_v44 = vrot.slane %v312_v33, 4  ;;  %v6761_v33 = vld [vmem:[%s6656_s27 + $0x34] sm:$0xf] }
  0x28   : > { %v317_v45 = vrot.slane %v315_v34, 5  ;;  %v2109_v47 = vrot.slane %v2108_v36, 4  ;;  %v323_v48 = vrot.slane %v321_v38, 5  ;;  %v331_v50 = vshll.u32 %v246_v31, 16 }
  0x29   : > { %v327_v49 = vrot.slane %v325_v39, 4  ;;  %5866 = vmatmul.mubr.msk.bf16.vlgmr.msra.gmra.mrb[0].mxu1 %vm697_vm3, %v5108_v42  ;;  %v2104_v52 = vsel %vm6682_vm4, %v2099_v43, %v2103_v21  ;;  %v2116_v55 = vshrl.u32 %v5291_v40, 16  ;;  %v2119_v56 = vshll.u32 %v5291_v40, 16  ;;  %v6769_v40 = vld [vmem:[%s6656_s27 + $0x38] sm:$0x1] }
  0x2a   : > { %v318_v53 = vor.u32 %v317_v45, %v314_v44  ;;  %5898 = vmatpush3.bf16.msra.mxu1 %v6669_v17  ;;  %v2114_v57 = vsel %vm6682_vm4, %v2109_v47, %v2113_v27  ;;  %v333_v59 = vrot.slane %v331_v50, 5  ;;  %v2125_v61 = vshll.u32 %v6732_v46, 16 }
  0x2b   : > { %v328_v58 = vor.u32 %v327_v49, %v323_v48  ;;  %v5335_v2 = vcombine.low %v2104_v52, %v2114_v57  ;;  %v2118_v5 = vrot.slane %v2116_v55, 4  ;;  %v2121_v6 = vrot.slane %v2119_v56, 5  ;;  %6429 = vmatprep.subr.msk.bf16.mxu1 %vm746_vm0, %v5187_v51  ;;  %v219_v52 = vld [vmem:[%s6656_s27 + $0x30] sm:$0xf] }
  0x2c   : > { %v319_v4 = vrot.slane %v318_v53, 4  ;;  %v2127_v9 = vrot.slane %v2125_v61, 5  ;;  %v2129_v17 = vshrl.u32 %v6732_v46, 16  ;;  %v2135_v10 = vshll.u32 %v6741_v54, 16 }
  0x2d   : > { %v329_v8 = vrot.slane %v328_v58, 4  ;;  %6002 = vmatmul.mubr.msk.bf16.vlgmr.msra.gmra.mrb[0].mxu0 %vm697_vm3, %v5335_v2  ;;  %v2122_v12 = vor.u32 %v2121_v6, %v2118_v5  ;;  %v336_v14 = vshrl.u32 %v217_v0, 16  ;;  %v339_v18 = vshll.u32 %v217_v0, 16  ;;  %v220_v58 = vld [vmem:[%s6656_s27 + $0x34] sm:$0xf] }
  0x2e   : > { %v324_v11 = vsel %vm6682_vm4, %v319_v4, %v323_v48  ;;  %6034 = vmatpush3.bf16.msra.mxu0 %v6688_v37  ;;  %v2131_v20 = vrot.slane %v2129_v17, 4  ;;  %v2137_v21 = vrot.slane %v2135_v10, 5  ;;  %v345_v23 = vshll.u32 %v218_v7, 16  ;;  %v248_v4 = vld [vmem:[%s6656_s27 + $0x38] sm:$0x1] }
  0x2f   : > { %v334_v19 = vsel %vm6682_vm4, %v329_v8, %v333_v59  ;;  %v2123_v27 = vrot.slane %v2122_v12, 4  ;;  %v338_v29 = vrot.slane %v336_v14, 4  ;;  %v341_v31 = vrot.slane %v339_v18, 5  ;;  %6434 = vmatprep.subr.msk.bf16.mxu0 %vm746_vm0, %v6675_v26  ;;  %v5297_v12 = vld [vmem:[%s6656_s27 + $0x3c] sm:$0xf] }
  0x30   : > { %v5109_v25 = vcombine.low %v324_v11, %v334_v19  ;;  %v2132_v34 = vor.u32 %v2131_v20, %v2127_v9  ;;  %v347_v35 = vrot.slane %v345_v23, 5  ;;  %v349_v37 = vshrl.u32 %v218_v7, 16  ;;  %v6786_v20 = vld [vmem:[%s6656_s27 + $0x40] sm:$0xf] }
  0x31   : > { %v355_v36 = vshll.u32 %v247_v13, 16  ;;  %v2128_v38 = vsel %vm6682_vm4, %v2123_v27, %v2127_v9  ;;  %v342_v39 = vor.u32 %v341_v31, %v338_v29  ;;  %v2140_v42 = vshrl.u32 %v5294_v24, 16 }
  0x32   : > { %5869 = vmatprep.mubr.msk.bf16.mxu1 %vm697_vm3, %v5109_v25  ;;  %v2143_v43 = vshll.u32 %v5294_v24, 16  ;;  %v2133_v44 = vrot.slane %v2132_v34, 4  ;;  %v351_v45 = vrot.slane %v349_v37, 4  ;;  %v2149_v26 = vshll.u32 %v6761_v33, 16  ;;  %v6791_v34 = vld [vmem:[%s6656_s27 + $0x44] sm:$0x1] }
  0x33   : > { %v357_v47 = vrot.slane %v355_v36, 5  ;;  %v343_v48 = vrot.slane %v342_v39, 4  ;;  %v2142_v49 = vrot.slane %v2140_v42, 4  ;;  %v2153_v51 = vshrl.u32 %v6761_v33, 16  ;;  %v221_v42 = vld [vmem:[%s6656_s27 + $0x3c] sm:$0xf] }
  0x34   : > { %v2145_v50 = vrot.slane %v2143_v43, 5  ;;  %v2138_v53 = vsel %vm6682_vm4, %v2133_v44, %v2137_v21  ;;  %v352_v55 = vor.u32 %v351_v45, %v347_v35  ;;  %v2151_v56 = vrot.slane %v2149_v26, 5  ;;  %v222_v26 = vld [vmem:[%s6656_s27 + $0x40] sm:$0xf] }
  0x35   : > { %v2159_v57 = vshll.u32 %v6769_v40, 16  ;;  %v5336_v59 = vcombine.low %v2128_v38, %v2138_v53  ;;  %v348_v61 = vsel %vm6682_vm4, %v343_v48, %v347_v35  ;;  %v2155_v2 = vrot.slane %v2153_v51, 4 }
  0x36   : > { %v2146_v0 = vor.u32 %v2145_v50, %v2142_v49  ;;  %v353_v5 = vrot.slane %v352_v55, 4  ;;  %v360_v7 = vshrl.u32 %v219_v52, 16  ;;  %v363_v8 = vshll.u32 %v219_v52, 16 }
  0x37   : > { %v2161_v6 = vrot.slane %v2159_v57, 5  ;;  %6005 = vmatprep.mubr.msk.bf16.mxu0 %vm697_vm3, %v5336_v59  ;;  %v2156_v17 = vor.u32 %v2155_v2, %v2151_v56  ;;  %v369_v10 = vshll.u32 %v220_v58, 16  ;;  %v373_v11 = vshrl.u32 %v220_v58, 16  ;;  %v5300_v2 = vld [vmem:[%s6656_s27 + $0x48] sm:$0xf] }
  0x38   : > { %v2147_v9 = vrot.slane %v2146_v0, 4  ;;  %v358_v13 = vsel %vm6682_vm4, %v353_v5, %v357_v47  ;;  %v362_v14 = vrot.slane %v360_v7, 4  ;;  %v365_v18 = vrot.slane %v363_v8, 5  ;;  %v6809_v8 = vld [vmem:[%s6656_s27 + $0x4c] sm:$0xf] }
  0x39   : > { %v379_v19 = vshll.u32 %v248_v4, 16  ;;  %v5110_v21 = vcombine.low %v348_v61, %v358_v13  ;;  %v2157_v24 = vrot.slane %v2156_v17, 4  ;;  %v371_v25 = vrot.slane %v369_v10, 5  ;;  %v249_v61 = vld [vmem:[%s6656_s27 + $0x44] sm:$0x1] }
  0x3a   : > { %v2152_v23 = vsel %vm6682_vm4, %v2147_v9, %v2151_v56  ;;  %v366_v27 = vor.u32 %v365_v18, %v362_v14  ;;  %v375_v29 = vrot.slane %v373_v11, 4  ;;  %v2164_v35 = vshrl.u32 %v5297_v12, 16 }
  0x3b   : > { %v381_v31 = vrot.slane %v379_v19, 5  ;;  %5870 = vmatmul.mubr.msk.bf16.gmra.mrb[4].mxu1 %vm697_vm3, %v5110_v21  ;;  %v2162_v37 = vsel %vm6682_vm4, %v2157_v24, %v2161_v6  ;;  %v2167_v36 = vshll.u32 %v5297_v12, 16  ;;  %v2173_v38 = vshll.u32 %v6786_v20, 16 }
  0x3c   : > { %v2177_v39 = vshrl.u32 %v6786_v20, 16  ;;  %v5337_v43 = vcombine.low %v2152_v23, %v2162_v37  ;;  %v367_v44 = vrot.slane %v366_v27, 4  ;;  %v376_v45 = vor.u32 %v375_v29, %v371_v25  ;;  %v6817_v23 = vld [vmem:[%s6656_s27 + $0x50] sm:$0x1]  ;;  %v6821_v27 = vld [vmem:[%s6656_s27 + $0x48] sm:$0xf] }
  0x3d   : > { %v2166_v47 = vrot.slane %v2164_v35, 4  ;;  %v2169_v48 = vrot.slane %v2167_v36, 5  ;;  %v2175_v49 = vrot.slane %v2173_v38, 5  ;;  %v2183_v51 = vshll.u32 %v6791_v34, 16  ;;  %v6824_v36 = vld [vmem:[%s6656_s27 + $0x4c] sm:$0xf] }
  0x3e   : > { %v2179_v50 = vrot.slane %v2177_v39, 4  ;;  %6006 = vmatmul.mubr.msk.bf16.gmra.mrb[4].mxu0 %vm697_vm3, %v5337_v43  ;;  %v372_v52 = vsel %vm6682_vm4, %v367_v44, %v371_v25  ;;  %v377_v53 = vrot.slane %v376_v45, 4  ;;  %v384_v55 = vshrl.u32 %v221_v42, 16 }
  0x3f   : > { %v387_v56 = vshll.u32 %v221_v42, 16  ;;  %v2170_v57 = vor.u32 %v2169_v48, %v2166_v47  ;;  %v2185_v59 = vrot.slane %v2183_v51, 5  ;;  %v393_v0 = vshll.u32 %v222_v26, 16 }
  0x40   : > { %v2180_v58 = vor.u32 %v2179_v50, %v2175_v49  ;;  %v382_v4 = vsel %vm6682_vm4, %v377_v53, %v381_v31  ;;  %v386_v5 = vrot.slane %v384_v55, 4  ;;  %v397_v7 = vshrl.u32 %v222_v26, 16  ;;  %v250_v26 = vld [vmem:[%s6656_s27 + $0x50] sm:$0x1]  ;;  %v5303_v53 = vld [vmem:[%s6656_s27 + $0x54] sm:$0xf] }
  0x41   : > { %v389_v6 = vrot.slane %v387_v56, 5  ;;  %v5111_v9 = vcombine.low %v372_v52, %v382_v4  ;;  %v2171_v17 = vrot.slane %v2170_v57, 4  ;;  %v395_v11 = vrot.slane %v393_v0, 5  ;;  %v6840_v4 = vld [vmem:[%s6656_s27 + $0x58] sm:$0xf] }
  0x42   : > { %v2181_v10 = vrot.slane %v2180_v58, 4  ;;  %v399_v13 = vrot.slane %v397_v7, 4  ;;  %v403_v14 = vshll.u32 %v249_v61, 16  ;;  %v2188_v18 = vshrl.u32 %v5300_v2, 16 }
  0x43   : > { %v390_v12 = vor.u32 %v389_v6, %v386_v5  ;;  %5873 = vmatprep.mubr.msk.bf16.mxu1 %vm697_vm3, %v5111_v9  ;;  %v2176_v19 = vsel %vm6682_vm4, %v2171_v17, %v2175_v49  ;;  %v2191_v24 = vshll.u32 %v5300_v2, 16  ;;  %v2197_v25 = vshll.u32 %v6809_v8, 16 }
  0x44   : > { %v2186_v21 = vsel %vm6682_vm4, %v2181_v10, %v2185_v59  ;;  %v400_v35 = vor.u32 %v399_v13, %v395_v11  ;;  %v405_v37 = vrot.slane %v403_v14, 5  ;;  %v2190_v38 = vrot.slane %v2188_v18, 4 }
  0x45   : > { %v5338_v29 = vcombine.low %v2176_v19, %v2186_v21  ;;  %v391_v31 = vrot.slane %v390_v12, 4  ;;  %v2193_v39 = vrot.slane %v2191_v24, 5  ;;  %v2199_v42 = vrot.slane %v2197_v25, 5  ;;  %v6846_v12 = vld [vmem:[%s6656_s27 + $0x5c] sm:$0x1] }
  0x46   : > { %v2201_v43 = vshrl.u32 %v6809_v8, 16  ;;  %v401_v45 = vrot.slane %v400_v35, 4  ;;  %v2207_v47 = vshll.u32 %v6817_v23, 16  ;;  %v408_v48 = vshrl.u32 %v6821_v27, 16  ;;  %v6850_v24 = vld [vmem:[%s6656_s27 + $0x54] sm:$0xf] }
  0x47   : > { %6009 = vmatprep.mubr.msk.bf16.mxu0 %vm697_vm3, %v5338_v29  ;;  %v396_v44 = vsel %vm6682_vm4, %v391_v31, %v395_v11  ;;  %v2194_v49 = vor.u32 %v2193_v39, %v2190_v38  ;;  %v411_v51 = vshll.u32 %v6821_v27, 16  ;;  %v417_v52 = vshll.u32 %v6824_v36, 16 }
  0x48   : > { %v2203_v50 = vrot.slane %v2201_v43, 4  ;;  %v406_v55 = vsel %vm6682_vm4, %v401_v45, %v405_v37  ;;  %v2209_v56 = vrot.slane %v2207_v47, 5  ;;  %v410_v57 = vrot.slane %v408_v48, 4  ;;  %v6856_v37 = vld [vmem:[%s6656_s27 + $0x58] sm:$0xf] }
  0x49   : > { %v421_v58 = vshrl.u32 %v6824_v36, 16  ;;  %v5112_v59 = vcombine.low %v396_v44, %v406_v55  ;;  %v2195_v61 = vrot.slane %v2194_v49, 4  ;;  %v413_v2 = vrot.slane %v411_v51, 5 }
  0x4a   : > { %v2204_v0 = vor.u32 %v2203_v50, %v2199_v42  ;;  %v419_v5 = vrot.slane %v417_v52, 5  ;;  %v427_v7 = vshll.u32 %v250_v26, 16  ;;  %v2212_v9 = vshrl.u32 %v5303_v53, 16  ;;  %v251_v26 = vld [vmem:[%s6656_s27 + $0x5c] sm:$0x1] }
  0x4b   : > { %v423_v6 = vrot.slane %v421_v58, 4  ;;  %5874 = vmatmul.mubr.msk.bf16.gmra.mrb[8].mxu1 %vm697_vm3, %v5112_v59  ;;  %v2200_v17 = vsel %vm6682_vm4, %v2195_v61, %v2199_v42  ;;  %v414_v11 = vor.u32 %v413_v2, %v410_v57  ;;  %v2215_v13 = vshll.u32 %v5303_v53, 16  ;;  %v5306_v53 = vld [vmem:[%s6656_s27 + $0x60] sm:$0xf]  ;;  %v6870_v59 = vld [vmem:[%s6656_s27 + $0x64] sm:$0xf] }
  0x4c   : > { %v2205_v10 = vrot.slane %v2204_v0, 4  ;;  %v429_v18 = vrot.slane %v427_v7, 5  ;;  %v2214_v19 = vrot.slane %v2212_v9, 4  ;;  %v2221_v21 = vshll.u32 %v6840_v4, 16  ;;  %v6877_v9 = vld [vmem:[%s6656_s27 + $0x68] sm:$0x1] }
  0x4d   : > { %v424_v14 = vor.u32 %v423_v6, %v419_v5  ;;  %v415_v29 = vrot.slane %v414_v11, 4  ;;  %v2217_v31 = vrot.slane %v2215_v13, 5  ;;  %v2225_v35 = vshrl.u32 %v6840_v4, 16 }
  0x4e   : > { %v2210_v25 = vsel %vm6682_vm4, %v2205_v10, %v2209_v56  ;;  %v2223_v42 = vrot.slane %v2221_v21, 5  ;;  %v2231_v43 = vshll.u32 %v6846_v12, 16  ;;  %v432_v48 = vshrl.u32 %v6850_v24, 16 }
  0x4f   : > { %v5339_v38 = vcombine.low %v2200_v17, %v2210_v25  ;;  %v425_v39 = vrot.slane %v424_v14, 4  ;;  %v420_v44 = vsel %vm6682_vm4, %v415_v29, %v419_v5  ;;  %v2218_v45 = vor.u32 %v2217_v31, %v2214_v19  ;;  %v6881_v19 = vld [vmem:[%s6656_s27 + $0x60] sm:$0xf] }
  0x50   : > { %v2227_v47 = vrot.slane %v2225_v35, 4  ;;  %v2233_v50 = vrot.slane %v2231_v43, 5  ;;  %v435_v51 = vshll.u32 %v6850_v24, 16  ;;  %v441_v52 = vshll.u32 %v6856_v37, 16  ;;  %v6887_v35 = vld [vmem:[%s6656_s27 + $0x64] sm:$0xf] }
  0x51   : > { %6010 = vmatmul.mubr.msk.bf16.gmra.mrb[8].mxu0 %vm697_vm3, %v5339_v38  ;;  %v430_v49 = vsel %vm6682_vm4, %v425_v39, %v429_v18  ;;  %v2219_v56 = vrot.slane %v2218_v45, 4  ;;  %v434_v58 = vrot.slane %v432_v48, 4  ;;  %v445_v2 = vshrl.u32 %v6856_v37, 16 }
  0x52   : > { %v5113_v55 = vcombine.low %v420_v44, %v430_v49  ;;  %v2228_v57 = vor.u32 %v2227_v47, %v2223_v42  ;;  %v437_v61 = vrot.slane %v435_v51, 5  ;;  %v443_v0 = vrot.slane %v441_v52, 5 }
  0x53   : > { %v451_v5 = vshll.u32 %v251_v26, 16  ;;  %v2224_v6 = vsel %vm6682_vm4, %v2219_v56, %v2223_v42  ;;  %v2236_v17 = vshrl.u32 %v5306_v53, 16  ;;  %v2239_v10 = vshll.u32 %v5306_v53, 16 }
  0x54   : > { %5877 = vmatprep.mubr.msk.bf16.mxu1 %vm697_vm3, %v5113_v55  ;;  %v2229_v7 = vrot.slane %v2228_v57, 4  ;;  %v438_v11 = vor.u32 %v437_v61, %v434_v58  ;;  %v447_v13 = vrot.slane %v445_v2, 4  ;;  %v2245_v18 = vshll.u32 %v6870_v59, 16  ;;  %v5366_v58 = vld [vmem:[%s6656_s27 + $0xc] sm:$0xe] }
  0x55   : > { %v453_v14 = vrot.slane %v451_v5, 5  ;;  %v2238_v25 = vrot.slane %v2236_v17, 4  ;;  %v2241_v29 = vrot.slane %v2239_v10, 5  ;;  %v2249_v31 = vshrl.u32 %v6870_v59, 16 }
  0x56   : > { %v2234_v21 = vsel %vm6682_vm4, %v2229_v7, %v2233_v50  ;;  %v439_v39 = vrot.slane %v438_v11, 4  ;;  %v448_v42 = vor.u32 %v447_v13, %v443_v0  ;;  %v2247_v43 = vrot.slane %v2245_v18, 5  ;;  %v252_v50 = vld [vmem:[%s6656_s27 + $0x68] sm:$0x1] }
  0x57   : > { %v5340_v38 = vcombine.low %v2224_v6, %v2234_v21  ;;  %v2242_v44 = vor.u32 %v2241_v29, %v2238_v25  ;;  %v2251_v45 = vrot.slane %v2249_v31, 4  ;;  %v2255_v47 = vshll.u32 %v6877_v9, 16  ;;  %v6915_v29 = vld [vmem:[%s6656_s27 + $0x70] sm:$0xf] }
  0x58   : > { %v456_v26 = vshrl.u32 %v6881_v19, 16  ;;  %v444_v48 = vsel %vm6682_vm4, %v439_v39, %v443_v0  ;;  %v449_v49 = vrot.slane %v448_v42, 4  ;;  %v459_v51 = vshll.u32 %v6881_v19, 16  ;;  %v6902_v0 = vld [vmem:[%s6656_s27 + $0x6c] sm:$0xf] }
  0x59   : > { %6013 = vmatprep.mubr.msk.bf16.mxu0 %vm697_vm3, %v5340_v38  ;;  %v465_v52 = vshll.u32 %v6887_v35, 16  ;;  %v2243_v53 = vrot.slane %v2242_v44, 4  ;;  %v2252_v55 = vor.u32 %v2251_v45, %v2247_v43  ;;  %v2257_v56 = vrot.slane %v2255_v47, 5 }
  0x5a   : > { %v458_v57 = vrot.slane %v456_v26, 4  ;;  %v454_v61 = vsel %vm6682_vm4, %v449_v49, %v453_v14  ;;  %v461_v2 = vrot.slane %v459_v51, 5  ;;  %v469_v6 = vshrl.u32 %v6887_v35, 16  ;;  %v253_v26 = vld [vmem:[%s6656_s27 + $0x74] sm:$0x1] }
  0x5b   : > { %v467_v5 = vrot.slane %v465_v52, 5  ;;  %v5114_v7 = vcombine.low %v444_v48, %v454_v61  ;;  %v2248_v17 = vsel %vm6682_vm4, %v2243_v53, %v2247_v43  ;;  %v2253_v10 = vrot.slane %v2252_v55, 4  ;;  %v5367_v48 = vld [vmem:[%s6656_s27 + $0x18] sm:$0xe] }
  0x5c   : > { %v475_v11 = vshll.u32 %v252_v50, 16  ;;  %v462_v14 = vor.u32 %v461_v2, %v458_v57  ;;  %v471_v18 = vrot.slane %v469_v6, 4  ;;  %v5382_v21 = vrot.slane %v5366_v58, 9  ;;  %v6934_v53 = vld [vmem:[%s6656_s27 + $0x78] sm:$0xf] }
  0x5d   : > { %v2813_v25 = vrot.slane %v2811_v62, 4  ;;  %5878 = vmatmul.mubr.msk.bf16.gmra.mrb[12].mxu1 %vm697_vm3, %v5114_v7  ;;  %v2258_v31 = vsel %vm6682_vm4, %v2253_v10, %v2257_v56  ;;  %v480_v39 = vshrl.u32 %v6902_v0, 16  ;;  %v483_v42 = vshll.u32 %v6902_v0, 16  ;;  %v254_v57 = vld [vmem:[%s6656_s27 + $0x80] sm:$0x1] }
  0x5e   : > { %v477_v38 = vrot.slane %v475_v11, 5  ;;  %v5341_v43 = vcombine.low %v2248_v17, %v2258_v31  ;;  %v463_v44 = vrot.slane %v462_v14, 4  ;;  %v472_v45 = vor.u32 %v471_v18, %v467_v5  ;;  %v5368_v10 = vld [vmem:[%s6656_s27 + $0x24] sm:$0xe] }
  0x5f   : > { %v2812_v47 = vsel %vm6908_vm7, %v5382_v21, %v2811_v62  ;;  %v2815_v49 = vsel %vm6908_vm7, %v2813_v25, %v2814_v63  ;;  %v482_v50 = vrot.slane %v480_v39, 4  ;;  %v485_v51 = vrot.slane %v483_v42, 5  ;;  %v6960_v39 = vld [vmem:[%s6656_s27 + $0x84] sm:$0xf] }
  0x60   : > { %v489_v52 = vshll.u32 %v6915_v29, 16  ;;  %6014 = vmatmul.mubr.msk.bf16.gmra.mrb[12].mxu0 %vm697_vm3, %v5341_v43  ;;  %v468_v15 = vsel %vm6682_vm4, %v463_v44, %v467_v5  ;;  %v473_v62 = vrot.slane %v472_v45, 4  ;;  %v5399_v55 = vcombine.low %v2812_v47, %v2815_v49  ;;  %v6968_v43 = vld [vmem:[%s6656_s27 + $0x88] sm:$0xf] }
  0x61   : > { %v493_v56 = vshrl.u32 %v6915_v29, 16  ;;  %v486_v63 = vor.u32 %v485_v51, %v482_v50  ;;  %v499_v61 = vshll.u32 %v253_v26, 16  ;;  %v5383_v2 = vrot.slane %v5367_v48, 9 }
  0x62   : > { %v491_v58 = vrot.slane %v489_v52, 5  ;;  %v478_v6 = vsel %vm6682_vm4, %v473_v62, %v477_v38  ;;  %6035 = vmatprep.mubr.msk.bf16.mxu0 %vm697_vm3, %v5399_v55  ;;  %v2822_v5 = vsel %vm6908_vm7, %v6725_v30, %v2821_v28  ;;  %v504_v17 = vshrl.u32 %v6934_v53, 16  ;;  %v255_v52 = vld [vmem:[%s6656_s27 + $0x8c] sm:$0x1] }
  0x63   : > { %v495_v7 = vrot.slane %v493_v56, 4  ;;  %v5115_v11 = vcombine.low %v468_v15, %v478_v6  ;;  %v487_v14 = vrot.slane %v486_v63, 4  ;;  %v501_v18 = vrot.slane %v499_v61, 5 }
  0x64   : > { %v2819_v21 = vsel %vm6908_vm7, %v5383_v2, %v2818_v22  ;;  %v506_v38 = vrot.slane %v504_v17, 4  ;;  %v507_v1 = vshll.u32 %v6934_v53, 16  ;;  %v513_v30 = vshll.u32 %v6941_v16, 16  ;;  %v6973_v22 = vld [vmem:[%s8467_s1 + $0x1c] sm:$0xf] }
  0x65   : > { %v496_v25 = vor.u32 %v495_v7, %v491_v58  ;;  %v5400_v31 = vcombine.low %v2819_v21, %v2822_v5  ;;  %5881 = vmatprep.mubr.msk.bf16.mxu1 %vm697_vm3, %v5115_v11  ;;  %v492_v28 = vsel %vm6682_vm4, %v487_v14, %v491_v58  ;;  %v517_v60 = vshrl.u32 %v6941_v16, 16  ;;  %v6992_v5 = vld [vmem:[%s6656_s27 + $0x90] sm:$0xf] }
  0x66   : > { %v523_v42 = vshll.u32 %v254_v57, 16  ;;  %v509_v45 = vrot.slane %v507_v1, 5  ;;  %v5384_v47 = vrot.slane %v5368_v10, 9  ;;  %v2825_v26 = vrot.slane %v6732_v46, 5  ;;  %v5369_v57 = vld [vmem:[%s6656_s27 + $0x30] sm:$0xe] }
  0x67   : > { %v497_v44 = vrot.slane %v496_v25, 4  ;;  %v515_v48 = vrot.slane %v513_v30, 5  ;;  %v519_v49 = vrot.slane %v517_v60, 4  ;;  %v2828_v51 = vrot.slane %v6741_v54, 5  ;;  %v7004_v30 = vld [vmem:[%s6656_s27 + $0x94] sm:$0xf] }
  0x68   : > { %v525_v50 = vrot.slane %v523_v42, 5  ;;  %6036 = vmatmul.mubr.msk.bf16.vlgmr.msra.gmra.mrb[0].mxu0 %vm697_vm3, %v5400_v31  ;;  %v510_v62 = vor.u32 %v509_v45, %v506_v38  ;;  %v2826_v55 = vsel %vm6908_vm7, %v5384_v47, %v2825_v26  ;;  %v2827_v56 = vrot.slane %v2825_v26, 4  ;;  %v256_v60 = vld [vmem:[%s6656_s27 + $0x98] sm:$0x1]  ;;  %v5370_v26 = vld [vmem:[%s6656_s27 + $0x3c] sm:$0xe] }
  0x69   : > { %v502_v15 = vsel %vm6682_vm4, %v497_v44, %v501_v18  ;;  %6068 = vmatpush3.bf16.msra.mxu0 %v6692_v41  ;;  %v520_v46 = vor.u32 %v519_v49, %v515_v48  ;;  %v528_v58 = vshrl.u32 %v6960_v39, 16  ;;  %v531_v54 = vshll.u32 %v6960_v39, 16 }
  0x6a   : > { %v5116_v63 = vcombine.low %v492_v28, %v502_v15  ;;  %v511_v61 = vrot.slane %v510_v62, 4  ;;  %v2829_v2 = vsel %vm6908_vm7, %v2827_v56, %v2828_v51  ;;  %v537_v6 = vshll.u32 %v6968_v43, 16  ;;  %6435 = vmatprep.subr.msk.bf16.mxu0 %vm746_vm0, %v6973_v22 }
  0x6b   : > { %v541_v7 = vshrl.u32 %v6968_v43, 16  ;;  %v521_v41 = vrot.slane %v520_v46, 4  ;;  %v5401_v17 = vcombine.low %v2826_v55, %v2829_v2  ;;  %v530_v10 = vrot.slane %v528_v58, 4  ;;  %v7024_v46 = vld [vmem:[%s6656_s27 + $0xa0] sm:$0xf] }
  0x6c   : > { %5882 = vmatmul.mubr.msk.bf16.gmra.mrb[16].mxu1 %vm697_vm3, %v5116_v63  ;;  %v533_v11 = vrot.slane %v531_v54, 5  ;;  %v516_v14 = vsel %vm6682_vm4, %v511_v61, %v515_v48  ;;  %v539_v18 = vrot.slane %v537_v6, 5  ;;  %v547_v25 = vshll.u32 %v255_v52, 16  ;;  %v7013_v52 = vld [vmem:[%s6656_s27 + $0x9c] sm:$0xf] }
  0x6d   : > { %v543_v21 = vrot.slane %v541_v7, 4  ;;  %v526_v31 = vsel %vm6682_vm4, %v521_v41, %v525_v50  ;;  %6039 = vmatprep.mubr.msk.bf16.mxu0 %vm697_vm3, %v5401_v17  ;;  %v5385_v1 = vrot.slane %v5369_v57, 9  ;;  %v2832_v28 = vrot.slane %v6761_v33, 5 }
  0x6e   : > { %v534_v38 = vor.u32 %v533_v11, %v530_v10  ;;  %v5117_v42 = vcombine.low %v516_v14, %v526_v31  ;;  %v549_v45 = vrot.slane %v547_v25, 5  ;;  %v2835_v47 = vrot.slane %v6769_v40, 5  ;;  %v257_v10 = vld [vmem:[%s6656_s27 + $0xa4] sm:$0x1]  ;;  %v5371_v11 = vld [vmem:[%s6656_s27 + $0x48] sm:$0xe] }
  0x6f   : > { %v544_v44 = vor.u32 %v543_v21, %v539_v18  ;;  %v2833_v49 = vsel %vm6908_vm7, %v5385_v1, %v2832_v28  ;;  %v2834_v50 = vrot.slane %v2832_v28, 4  ;;  %v552_v51 = vshrl.u32 %v6992_v5, 16 }
  0x70   : > { %v535_v48 = vrot.slane %v534_v38, 4  ;;  %5885 = vmatprep.mubr.msk.bf16.mxu1 %vm697_vm3, %v5117_v42  ;;  %v555_v15 = vshll.u32 %v6992_v5, 16  ;;  %v561_v62 = vshll.u32 %v7004_v30, 16  ;;  %v565_v40 = vshrl.u32 %v7004_v30, 16 }
  0x71   : > { %v545_v33 = vrot.slane %v544_v44, 4  ;;  %v2836_v56 = vsel %vm6908_vm7, %v2834_v50, %v2835_v47  ;;  %v554_v57 = vrot.slane %v552_v51, 4  ;;  %v571_v63 = vshll.u32 %v256_v60, 16 }
  0x72   : > { %v540_v55 = vsel %vm6682_vm4, %v535_v48, %v539_v18  ;;  %v5402_v54 = vcombine.low %v2833_v49, %v2836_v56  ;;  %v557_v61 = vrot.slane %v555_v15, 5  ;;  %v563_v2 = vrot.slane %v561_v62, 5  ;;  %v7050_v56 = vld [vmem:[%s6656_s27 + $0xac] sm:$0xf] }
  0x73   : > { %v550_v58 = vsel %vm6682_vm4, %v545_v33, %v549_v45  ;;  %v567_v7 = vrot.slane %v565_v40, 4  ;;  %v573_v41 = vrot.slane %v571_v63, 5  ;;  %v5386_v17 = vrot.slane %v5370_v26, 9  ;;  %v7045_v33 = vld [vmem:[%s6656_s27 + $0xa8] sm:$0xf] }
  0x74   : > { %v5118_v6 = vcombine.low %v540_v55, %v550_v58  ;;  %6040 = vmatmul.mubr.msk.bf16.gmra.mrb[4].mxu0 %vm697_vm3, %v5402_v54  ;;  %v558_v14 = vor.u32 %v557_v61, %v554_v57  ;;  %v2839_v18 = vrot.slane %v6786_v20, 5  ;;  %v2842_v21 = vrot.slane %v6791_v34, 5  ;;  %v258_v61 = vld [vmem:[%s6656_s27 + $0xb0] sm:$0x1] }
  0x75   : > { %v576_v25 = vshrl.u32 %v7013_v52, 16  ;;  %v568_v31 = vor.u32 %v567_v7, %v563_v2  ;;  %v579_v38 = vshll.u32 %v7013_v52, 16  ;;  %v585_v1 = vshll.u32 %v7024_v46, 16 }
  0x76   : > { %5886 = vmatmul.mubr.msk.bf16.gmra.mrb[20].mxu1 %vm697_vm3, %v5118_v6  ;;  %v589_v28 = vshrl.u32 %v7024_v46, 16  ;;  %v559_v60 = vrot.slane %v558_v14, 4  ;;  %v2840_v42 = vsel %vm6908_vm7, %v5386_v17, %v2839_v18  ;;  %v2841_v20 = vrot.slane %v2839_v18, 4  ;;  %v7065_v14 = vld [vmem:[%s6656_s27 + $0xb4] sm:$0xf] }
  0x77   : > { %v578_v44 = vrot.slane %v576_v25, 4  ;;  %v569_v34 = vrot.slane %v568_v31, 4  ;;  %v581_v45 = vrot.slane %v579_v38, 5  ;;  %v587_v47 = vrot.slane %v585_v1, 5 }
  0x78   : > { %v591_v26 = vrot.slane %v589_v28, 4  ;;  %v564_v48 = vsel %vm6682_vm4, %v559_v60, %v563_v2  ;;  %v2843_v49 = vsel %vm6908_vm7, %v2841_v20, %v2842_v21  ;;  %v595_v50 = vshll.u32 %v257_v10, 16  ;;  %v5372_v2 = vld [vmem:[%s6656_s27 + $0x54] sm:$0xe] }
  0x79   : > { %v5387_v51 = vrot.slane %v5371_v11, 9  ;;  %v574_v15 = vsel %vm6682_vm4, %v569_v34, %v573_v41  ;;  %v5403_v62 = vcombine.low %v2840_v42, %v2843_v49  ;;  %v582_v40 = vor.u32 %v581_v45, %v578_v44  ;;  %v7074_v42 = vld [vmem:[%s6656_s27 + $0xb8] sm:$0xf]  ;;  %v259_v49 = vld [vmem:[%s6656_s27 + $0xbc] sm:$0x1] }
  0x7a   : > { %v592_v55 = vor.u32 %v591_v26, %v587_v47  ;;  %v5119_v57 = vcombine.low %v564_v48, %v574_v15  ;;  %v597_v63 = vrot.slane %v595_v50, 5  ;;  %v2846_v58 = vrot.slane %v6809_v8, 5 }
  0x7b   : > { %v2849_v54 = vrot.slane %v6817_v23, 5  ;;  %6043 = vmatprep.mubr.msk.bf16.mxu0 %vm697_vm3, %v5403_v62  ;;  %v583_v6 = vrot.slane %v582_v40, 4  ;;  %v600_v41 = vshrl.u32 %v7045_v33, 16  ;;  %v603_v17 = vshll.u32 %v7045_v33, 16 }
  0x7c   : > { %v593_v7 = vrot.slane %v592_v55, 4  ;;  %5889 = vmatprep.mubr.msk.bf16.mxu1 %vm697_vm3, %v5119_v57  ;;  %v2847_v10 = vsel %vm6908_vm7, %v5387_v51, %v2846_v58  ;;  %v2848_v11 = vrot.slane %v2846_v58, 4  ;;  %v609_v8 = vshll.u32 %v7050_v56, 16  ;;  %v5373_v55 = vld [vmem:[%s6656_s27 + $0x60] sm:$0xe] }
  0x7d   : > { %v613_v23 = vshrl.u32 %v7050_v56, 16  ;;  %v588_v18 = vsel %vm6682_vm4, %v583_v6, %v587_v47  ;;  %v602_v25 = vrot.slane %v600_v41, 4  ;;  %v605_v31 = vrot.slane %v603_v17, 5  ;;  %v5374_v6 = vld [vmem:[%s6656_s27 + $0x6c] sm:$0xe] }
  0x7e   : > { %v598_v21 = vsel %vm6682_vm4, %v593_v7, %v597_v63  ;;  %v2850_v1 = vsel %vm6908_vm7, %v2848_v11, %v2849_v54  ;;  %v611_v28 = vrot.slane %v609_v8, 5  ;;  %v619_v34 = vshll.u32 %v258_v61, 16  ;;  %v5310_v11 = vld [vmem:[%s6656_s27 + $0x70] sm:$0xf]  ;;  %v5311_v8 = vld [vmem:[%s6656_s27 + $0x74] sm:$0x1] }
  0x7f   : > { %v5120_v38 = vcombine.low %v588_v18, %v598_v21  ;;  %v615_v60 = vrot.slane %v613_v23, 4  ;;  %v5404_v20 = vcombine.low %v2847_v10, %v2850_v1  ;;  %v606_v44 = vor.u32 %v605_v31, %v602_v25 }
  0x80   : > { %v5388_v45 = vrot.slane %v5372_v2, 9  ;;  %v2853_v26 = vrot.slane %v6840_v4, 5  ;;  %v2856_v48 = vrot.slane %v6846_v12, 5  ;;  %v624_v50 = vshrl.u32 %v7065_v14, 16 }
  0x81   : > { %5890 = vmatmul.mubr.msk.bf16.gmra.mrb[24].mxu1 %vm697_vm3, %v5120_v38  ;;  %v616_v47 = vor.u32 %v615_v60, %v611_v28  ;;  %6044 = vmatmul.mubr.msk.bf16.gmra.mrb[8].mxu0 %vm697_vm3, %v5404_v20  ;;  %v607_v51 = vrot.slane %v606_v44, 4  ;;  %v621_v15 = vrot.slane %v619_v34, 5  ;;  %v627_v62 = vshll.u32 %v7065_v14, 16 }
  0x82   : > { %v633_v40 = vshll.u32 %v7074_v42, 16  ;;  %v2854_v4 = vsel %vm6908_vm7, %v5388_v45, %v2853_v26  ;;  %v2855_v12 = vrot.slane %v2853_v26, 4  ;;  %v626_v63 = vrot.slane %v624_v50, 4 }
  0x83   : > { %v617_v57 = vrot.slane %v616_v47, 4  ;;  %v612_v58 = vsel %vm6682_vm4, %v607_v51, %v611_v28  ;;  %v629_v54 = vrot.slane %v627_v62, 5  ;;  %v637_v2 = vshrl.u32 %v7074_v42, 16  ;;  %v5375_v47 = vld [vmem:[%s6656_s27 + $0x78] sm:$0xe] }
  0x84   : > { %v635_v61 = vrot.slane %v633_v40, 5  ;;  %v2857_v41 = vsel %vm6908_vm7, %v2855_v12, %v2856_v48  ;;  %v643_v17 = vshll.u32 %v259_v49, 16  ;;  %v5389_v10 = vrot.slane %v5373_v55, 9  ;;  %v6510_v51 = vld [vmem:[%s6656_s27] sm:$0xf] }
  0x85   : > { %v622_v7 = vsel %vm6682_vm4, %v617_v57, %v621_v15  ;;  %v5405_v18 = vcombine.low %v2854_v4, %v2857_v41  ;;  %v630_v21 = vor.u32 %v629_v54, %v626_v63  ;;  %v639_v25 = vrot.slane %v637_v2, 4  ;;  %v7112_v15 = vld [vmem:[%s6656_s27 + $0x4] sm:$0xf]  ;;  %v7116_v40 = vld [vmem:[%s6656_s27 + $0x7c] sm:$0xf] }
  0x86   : > { %v5121_v23 = vcombine.low %v612_v58, %v622_v7  ;;  %v645_v31 = vrot.slane %v643_v17, 5  ;;  %v2860_v38 = vrot.slane %v6870_v59, 5  ;;  %v2863_v1 = vrot.slane %v6877_v9, 5  ;;  %v7119_v55 = vld [vmem:[%s6656_s27 + $0x80] sm:$0x1] }
  0x87   : > { %v5390_v28 = vrot.slane %v5374_v6, 9  ;;  %6047 = vmatprep.mubr.msk.bf16.mxu0 %vm697_vm3, %v5405_v18  ;;  %v631_v60 = vrot.slane %v630_v21, 4  ;;  %v640_v20 = vor.u32 %v639_v25, %v635_v61  ;;  %v2867_v44 = vrot.slane %v5310_v11, 5  ;;  %v5316_v57 = vld [vmem:[%s6656_s27 + $0x88] sm:$0xf] }
  0x88   : > { %5893 = vmatprep.mubr.msk.bf16.mxu1 %vm697_vm3, %v5121_v23  ;;  %v2870_v34 = vrot.slane %v5311_v8, 5  ;;  %v2861_v45 = vsel %vm6908_vm7, %v5389_v10, %v2860_v38  ;;  %v2862_v59 = vrot.slane %v2860_v38, 4  ;;  %v5139_v62 = vcombine.low %v6510_v51, %v7112_v15  ;;  %v5317_v54 = vld [vmem:[%s6656_s27 + $0x8c] sm:$0x1]  ;;  %v5319_v17 = vld [vmem:[%s6656_s27 + $0x94] sm:$0xf] }
  0x89   : > { %v636_v9 = vsel %vm6682_vm4, %v631_v60, %v635_v61  ;;  %v641_v26 = vrot.slane %v640_v20, 4  ;;  %v2868_v48 = vsel %vm6908_vm7, %v5390_v28, %v2867_v44  ;;  %v2869_v49 = vrot.slane %v2867_v44, 4  ;;  %v5376_v61 = vld [vmem:[%s6656_s27 + $0x84] sm:$0xe]  ;;  %v5377_v23 = vld [vmem:[%s6656_s27 + $0x90] sm:$0xe] }
  0x8a   : > { %v2864_v50 = vsel %vm6908_vm7, %v2862_v59, %v2863_v1  ;;  %v5391_v58 = vrot.slane %v5375_v47, 9  ;;  %v2874_v7 = vrot.slane %v7116_v40, 5  ;;  %v2877_v41 = vrot.slane %v7119_v55, 5  ;;  %v5320_v25 = vld [vmem:[%s6656_s27 + $0x98] sm:$0x1] }
  0x8b   : > { %v646_v4 = vsel %vm6682_vm4, %v641_v26, %v645_v31  ;;  %v5406_v12 = vcombine.low %v2861_v45, %v2864_v50  ;;  %v2871_v63 = vsel %vm6908_vm7, %v2869_v49, %v2870_v34  ;;  %v5392_v10 = vrot.slane %v5376_v61, 9  ;;  %v5322_v31 = vld [vmem:[%s6656_s27 + $0xa0] sm:$0xf]  ;;  %v5323_v60 = vld [vmem:[%s6656_s27 + $0xa4] sm:$0x1] }
  0x8c   : > { %v5122_v2 = vcombine.low %v636_v9, %v646_v4  ;;  %v5407_v6 = vcombine.low %v2868_v48, %v2871_v63  ;;  %v2881_v11 = vrot.slane %v5316_v57, 5  ;;  %v2884_v8 = vrot.slane %v5317_v54, 5  ;;  %v5378_v20 = vld [vmem:[%s6656_s27 + $0x9c] sm:$0xe]  ;;  %v6512_v44 = vld [vmem:[%s6656_s27 + $0xc] sm:$0xf] }
  0x8d   : > { %6048 = vmatmul.mubr.msk.bf16.gmra.mrb[12].mxu0 %vm697_vm3, %v5406_v12  ;;  %v2875_v18 = vsel %vm6908_vm7, %v5391_v58, %v2874_v7  ;;  %v2876_v21 = vrot.slane %v2874_v7, 4  ;;  %v2888_v28 = vrot.slane %v5319_v17, 5  ;;  %v7146_v34 = vld [vmem:[%s6656_s27 + $0x10] sm:$0xf]  ;;  %v6514_v47 = vld [vmem:[%s6656_s27 + $0x18] sm:$0xf] }
  0x8e   : > { %5894 = vmatmul.mubr.msk.bf16.gmra.mrb[28].mxu1 %vm697_vm3, %v5122_v2  ;;  %6051 = vmatprep.mubr.msk.bf16.mxu0 %vm697_vm3, %v5407_v6  ;;  %v2882_v38 = vsel %vm6908_vm7, %v5392_v10, %v2881_v11  ;;  %v2883_v1 = vrot.slane %v2881_v11, 4  ;;  %v5140_v45 = vcombine.low %v6512_v44, %v7146_v34  ;;  %v7153_v9 = vld [vmem:[%s6656_s27 + $0x1c] sm:$0xf]  ;;  %v5393_v48 = vrot.slane %v5377_v23, 9  ;;  %v5325_v57 = vld [vmem:[%s6656_s27 + $0xac] sm:$0xf] }
  0x8f   : > { %5899 = vmatprep.mubr.msk.bf16.mxu1 %vm697_vm3, %v5139_v62  ;;  %v2878_v59 = vsel %vm6908_vm7, %v2876_v21, %v2877_v41  ;;  %v5141_v26 = vcombine.low %v6514_v47, %v7153_v9  ;;  %v2890_v51 = vrot.slane %v2888_v28, 4  ;;  %v2891_v62 = vrot.slane %v5320_v25, 5  ;;  %v6516_v54 = vld [vmem:[%s8467_s1 + $0x8] sm:$0xf]  ;;  %v5328_v2 = vld [vmem:[%s6656_s27 + $0xb8] sm:$0xf] }
  0x90   : > { %v5408_v49 = vcombine.low %v2875_v18, %v2878_v59  ;;  %v2885_v50 = vsel %vm6908_vm7, %v2883_v1, %v2884_v8  ;;  %v5394_v12 = vrot.slane %v5378_v20, 9  ;;  %v2895_v63 = vrot.slane %v5322_v31, 5  ;;  %v7168_v7 = vld [vmem:[%s8467_s1 + $0xc] sm:$0xf]  ;;  %v5326_v10 = vld [vmem:[%s6656_s27 + $0xb0] sm:$0x1] }
  0x91   : > { %v5409_v4 = vcombine.low %v2882_v38, %v2885_v50  ;;  %v2898_v58 = vrot.slane %v5323_v60, 5  ;;  %v1465_v61 = vsel %vm746_vm0, %v6516_v54, 0  ;;  %v2889_v41 = vsel %vm6908_vm7, %v5393_v48, %v2888_v28  ;;  %v5379_v11 = vld [vmem:[%s6656_s27 + $0xa8] sm:$0xe]  ;;  %v5329_v25 = vld [vmem:[%s6656_s27 + $0xbc] sm:$0x1] }
  0x92   : > { %v2897_v6 = vrot.slane %v2895_v63, 4  ;;  %v2892_v17 = vsel %vm6908_vm7, %v2890_v51, %v2891_v62  ;;  %v2902_v8 = vrot.slane %v5325_v57, 5  ;;  %v2896_v23 = vsel %vm6908_vm7, %v5394_v12, %v2895_v63  ;;  %v5380_v31 = vld [vmem:[%s6656_s27 + $0xb4] sm:$0xe]  ;;  %v6517_v38 = vld [vmem:[%s6656_s27 + $0x24] sm:$0xf] }
  0x93   : > { %v2909_v21 = vrot.slane %v5328_v2, 5  ;;  %v7189_v1 = vld [vmem:[%s6656_s27 + $0x28] sm:$0xf]  ;;  %v5410_v60 = vcombine.low %v2889_v41, %v2892_v17  ;;  %v5395_v44 = vrot.slane %v5379_v11, 9  ;;  %v2905_v59 = vrot.slane %v5326_v10, 5 }
  0x94   : > { %v2899_v18 = vsel %vm6908_vm7, %v2897_v6, %v2898_v58  ;;  %v5142_v28 = vcombine.low %v6517_v38, %v7189_v1  ;;  %v6519_v47 = vld [vmem:[%s6656_s27 + $0x30] sm:$0xf]  ;;  %v2912_v51 = vrot.slane %v5329_v25, 5  ;;  %v5331_v62 = vld [vmem:[%s6656_s27 + $0xc4] sm:$0xf]  ;;  %v2297_v25 = vshrl.u32 %v7116_v40, 16 }
  0x95   : > { %6052 = vmatmul.mubr.msk.bf16.gmra.mrb[16].mxu0 %vm697_vm3, %v5408_v49  ;;  %v5411_v20 = vcombine.low %v2896_v23, %v2899_v18  ;;  %v5396_v49 = vrot.slane %v5380_v31, 9  ;;  %v2911_v50 = vrot.slane %v2909_v21, 4  ;;  %v2903_v57 = vsel %vm6908_vm7, %v5395_v44, %v2902_v8  ;;  %v5381_v12 = vld [vmem:[%s6656_s27 + $0xc0] sm:$0xe]  ;;  %v6521_v41 = vld [vmem:[%s6656_s27 + $0x3c] sm:$0xf] }
  0x96   : > { %5900 = vmatmul.mubr.msk.bf16.vlgmr.msra.gmra.mrb[0].mxu1 %vm697_vm3, %v5140_v45  ;;  %6055 = vmatprep.mubr.msk.bf16.mxu0 %vm697_vm3, %v5409_v4  ;;  %v2904_v45 = vrot.slane %v2902_v8, 4  ;;  %v2916_v63 = vrot.slane %v5331_v62, 5  ;;  %v5397_v6 = vrot.slane %v5381_v12, 9  ;;  %v7214_v17 = vld [vmem:[%s6656_s27 + $0x40] sm:$0xf]  ;;  %v5145_v18 = vcombine.low %v6821_v27, %v6824_v36  ;;  %v6473_v62 = vld [vmem:[%s6656_s27 + $0x24] sm:$0xff]  }
  0x97   : > { %5932 = vmatpush3.bf16.msra.mxu1 %v1465_v61  ;;  %5903 = vmatprep.mubr.msk.bf16.mxu1 %vm697_vm3, %v5141_v26  ;;  %v7194_v26 = vld [vmem:[%s6656_s27 + $0x34] sm:$0xf]  ;;  %v2910_v58 = vsel %vm6908_vm7, %v5396_v49, %v2909_v21  ;;  %v2913_v54 = vsel %vm6908_vm7, %v2911_v50, %v2912_v51  ;;  %v5332_v61 = vld [vmem:[%s6656_s27 + $0xc8] sm:$0x1]  ;;  %v5144_v10 = vcombine.low %v6521_v41, %v7214_v17  ;;  %v2293_v21 = vshll.u32 %v7116_v40, 16 }
  0x98   : > { %6430 = vmatprep.subr.msk.bf16.mxu1 %vm746_vm0, %v7168_v7  ;;  %v5143_v48 = vcombine.low %v6519_v47, %v7194_v26  ;;  %v2906_v4 = vsel %vm6908_vm7, %v2904_v45, %v2905_v59  ;;  %v5413_v11 = vcombine.low %v2910_v58, %v2913_v54  ;;  %v2918_v8 = vrot.slane %v2916_v63, 4  ;;  %v1203_v45 = vld [vmem:[%s6656_s27] sm:$0xe]  ;;  %v1204_v59 = vld [vmem:[%s6656_s27 + $0xc] sm:$0xe] }
  0x99   : > { %v5412_v2 = vcombine.low %v2903_v57, %v2906_v4  ;;  %v2919_v23 = vrot.slane %v5332_v61, 5  ;;  %v2917_v31 = vsel %vm6908_vm7, %v5397_v6, %v2916_v63  ;;  %v7229_v27 = vrot.slane %v2293_v21, 5  ;;  %v1207_v41 = vld [vmem:[%s6656_s27 + $0x30] sm:$0xe] }
  0x9a   : > { %v2299_v36 = vrot.slane %v2297_v25, 4  ;;  %v5147_v44 = vcombine.low %v6881_v19, %v6887_v35  ;;  %v2303_v47 = vshll.u32 %v7119_v55, 16  ;;  %v5171_v19 = vrot.slane %v1203_v45, 9 }
  0x9b   : > { %v2920_v38 = vsel %vm6908_vm7, %v2918_v8, %v2919_v23  ;;  %8488 = vst [vmem:[#allocation3_spill] sm:$0xff] %v7229_v27  ;;  %v5172_v35 = vrot.slane %v1204_v59, 9  ;;  %v1270_v4 = vrot.slane %v7153_v9, 5  ;;  %v1277_v12 = vrot.slane %v7189_v1, 5  ;;  %v1208_v8 = vld [vmem:[%s6656_s27 + $0x3c] sm:$0xe] }
  0x9c   : > { %v5414_v40 = vcombine.low %v2917_v31, %v2920_v38  ;;  %v2300_v49 = vor.u32 %v2299_v36, %v7229_v27  ;;  %v7249_v51 = vrot.slane %v2303_v47, 5  ;;  %v5148_v58 = vcombine.low %v6902_v0, %v6915_v29  ;;  %v1209_v31 = vld [vmem:[%s6656_s27 + $0x48] sm:$0xe]  ;;  %v6527_v59 = vld [vmem:[%s6656_s27 + $0x38] sm:$0x1] }
  0x9d   : > { %6056 = vmatmul.mubr.msk.bf16.gmra.mrb[20].mxu0 %vm697_vm3, %v5410_v60  ;;  %v5146_v60 = vcombine.low %v6850_v24, %v6856_v37  ;;  %v6524_v24 = vld [vmem:[%s6656_s27 + $0x14] sm:$0x1]  ;;  %v4105_v54 = vsel %vm746_vm0, %v6973_v22, 0  ;;  %v5149_v61 = vcombine.low %v6934_v53, %v6941_v16  ;;  %v5150_v6 = vcombine.low %v6960_v39, %v6968_v43  ;;  %v6525_v16 = vld [vmem:[%s6656_s27 + $0x20] sm:$0x1] }
  0x9e   : > { %5904 = vmatmul.mubr.msk.bf16.gmra.mrb[4].mxu1 %vm697_vm3, %v5142_v28  ;;  %6059 = vmatprep.mubr.msk.bf16.mxu0 %vm697_vm3, %v5411_v20  ;;  %v1263_v28 = vrot.slane %v7146_v34, 5  ;;  %v6471_v20 = vld [vmem:[%s6656_s27 + $0x18] sm:$0xff]   ;;  %v6523_v34 = vld [vmem:[%s6656_s27 + $0x8] sm:$0x1]  ;;  %v1266_v37 = vrot.slane %v6524_v24, 5  ;;  %8489 = vst [vmem:[#allocation4_spill] sm:$0xff] %v7249_v51  ;;  %v5151_v9 = vcombine.low %v6992_v5, %v7004_v30 }
  0x9f   : > { %5907 = vmatprep.mubr.msk.bf16.mxu1 %vm697_vm3, %v5143_v48  ;;  %v1256_v48 = vrot.slane %v7112_v15, 5  ;;  %v1259_v50 = vrot.slane %v6523_v34, 5  ;;  %v1205_v15 = vld [vmem:[%s6656_s27 + $0x18] sm:$0xe]  ;;  %v7254_v63 = vrot.slane %v2300_v49, 4  ;;  %v1273_v22 = vrot.slane %v6525_v16, 5 }
  0xa0   : > { %v1265_v55 = vrot.slane %v1263_v28, 4  ;;  %v5173_v1 = vrot.slane %v1205_v15, 9  ;;  %v7276_v29 = vsel %vm6908_vm7, %v5172_v35, %v1263_v28  ;;  %v1279_v25 = vrot.slane %v1277_v12, 4  ;;  %v5496_v24 = vld [vmem:[%s6656_s27 + $0x18] sm:$0xf] }
  0xa1   : > { %v1258_v57 = vrot.slane %v1256_v48, 4  ;;  %8490 = vst [vmem:[#allocation5_spill] sm:$0xff] %v7254_v63  ;;  %v7272_v0 = vsel %vm6908_vm7, %v5171_v19, %v1256_v48  ;;  %v1287_v47 = vrot.slane %v6527_v59, 5  ;;  %v7313_v49 = vsel %vm746_vm0, %v7168_v7, 0  ;;  %v5497_v7 = vld [vmem:[%s6656_s27 + $0x1c] sm:$0xf] }
  0xa2   : > { %v7280_v53 = vsel %vm6908_vm7, %v1265_v55, %v1266_v37  ;;  %v7317_v34 = vsel %vm6908_vm7, %v5173_v1, %v1270_v4  ;;  %v6477_v37 = vld [vmem:[%s6656_s27 + $0x3c] sm:$0xff]   ;;  %v5176_v35 = vrot.slane %v1208_v8, 9  ;;  %v6528_v55 = vld [vmem:[%s6656_s27 + $0x44] sm:$0x1]  ;;  %v3626_v8 = vshll.u32 %v5496_v24, 16 }
  0xa3   : > { %v7291_v23 = vsel %vm6908_vm7, %v1258_v57, %v1259_v50  ;;  %v1210_v50 = vld [vmem:[%s6656_s27 + $0x54] sm:$0xe]  ;;  %v1294_v15 = vrot.slane %v6528_v55, 5  ;;  %v5500_v39 = vld [vmem:[%s6656_s27 + $0x28] sm:$0xf] }
  0xa4   : > { %v6535_v5 = vld [vmem:[%s6656_s27 + $0x70] sm:$0xf] }
  0xa5   : > { %6060 = vmatmul.mubr.msk.bf16.gmra.mrb[24].mxu0 %vm697_vm3, %v5412_v2  ;;  %v1206_v2 = vld [vmem:[%s6656_s27 + $0x24] sm:$0xe]  ;;  %v1319_v30 = vrot.slane %v6535_v5, 5 }
  0xa6   : > { %5908 = vmatmul.mubr.msk.bf16.gmra.mrb[8].mxu1 %vm697_vm3, %v5144_v10  ;;  %6063 = vmatprep.mubr.msk.bf16.mxu0 %vm697_vm3, %v5413_v11  ;;  %v1284_v10 = vrot.slane %v7194_v26, 5  ;;  %v6475_v11 = vld [vmem:[%s6656_s27 + $0x30] sm:$0xff]   ;;  %v7287_v26 = vld [vmem:[%s8467_s1 + $0x20] sm:$0xf]  ;;  %v5174_v21 = vrot.slane %v1206_v2, 9 }
  0xa7   : > { %5911 = vmatprep.mubr.msk.bf16.mxu1 %vm697_vm3, %v5145_v18  ;;  %v1272_v18 = vrot.slane %v1270_v4, 4  ;;  %v1321_v48 = vrot.slane %v1319_v30, 4 }
  0xa8   : > { %v1286_v45 = vrot.slane %v1284_v10, 4  ;;  %v7324_v19 = vsel %vm6908_vm7, %v5174_v21, %v1277_v12  ;;  %v3636_v21 = vshrl.u32 %v5497_v7, 16 }
  0xa9   : > { %v7333_v4 = vsel %vm6908_vm7, %v1272_v18, %v1273_v22  ;;  %v3623_v22 = vshrl.u32 %v5496_v24, 16  ;;  %v3632_v18 = vshll.u32 %v5497_v7, 16  ;;  %v5499_v24 = vld [vmem:[%s6656_s27 + $0x24] sm:$0xf] }
  0xaa   : > { %v7346_v1 = vsel %vm6908_vm7, %v1286_v45, %v1287_v47 }
  0xab   : > { %v3625_v43 = vrot.slane %v3623_v22, 4  ;;  %v7388_v7 = vrot.slane %v3632_v18, 5  ;;  %v3650_v22 = vshll.u32 %v5499_v24, 16  ;;  %v3660_v18 = vshrl.u32 %v5500_v39, 16 }
  0xad   : > { %6064 = vmatmul.mubr.msk.bf16.gmra.mrb[28].mxu0 %vm697_vm3, %v5414_v40  ;;  %v6526_v40 = vld [vmem:[%s6656_s27 + $0x2c] sm:$0x1]  ;;  %v3652_v27 = vrot.slane %v3650_v22, 5 }
  0xae   : > { %5912 = vmatmul.mubr.msk.bf16.gmra.mrb[12].mxu1 %vm697_vm3, %v5146_v60  ;;  %6069 = vmatprep.mubr.msk.bf16.mxu0 %vm697_vm3, %v6471_v20  ;;  %v1280_v28 = vrot.slane %v6526_v40, 5  ;;  %v1291_v60 = vrot.slane %v7214_v17, 5  ;;  %v6531_v40 = vld [vmem:[%s6656_s27 + $0x50] sm:$0x1]  ;;  %v6536_v17 = vld [vmem:[%s6656_s27 + $0x74] sm:$0x1] }
  0xaf   : > { %5915 = vmatprep.mubr.msk.bf16.mxu1 %vm697_vm3, %v5147_v44  ;;  %v5175_v44 = vrot.slane %v1207_v41, 9  ;;  %v5178_v41 = vrot.slane %v1210_v50, 9  ;;  %v1211_v50 = vld [vmem:[%s6656_s27 + $0x60] sm:$0xe]  ;;  %v5501_v20 = vld [vmem:[%s6656_s27 + $0x2c] sm:$0x1] }
  0xb0   : > { %v1293_v12 = vrot.slane %v1291_v60, 4  ;;  %v7359_v45 = vsel %vm6908_vm7, %v5176_v35, %v1291_v60  ;;  %v6532_v35 = vld [vmem:[%s6656_s27 + $0x5c] sm:$0x1] }
  0xb1   : > { %v7342_v2 = vsel %vm6908_vm7, %v5175_v44, %v1284_v10  ;;  %v1308_v55 = vrot.slane %v6532_v35, 5  ;;  %v1212_v35 = vld [vmem:[%s6656_s27 + $0x6c] sm:$0xe] }
  0xb2   : > { %v7363_v59 = vsel %vm6908_vm7, %v1293_v12, %v1294_v15  ;;  %v6533_v15 = vld [vmem:[%s6656_s27 + $0x64] sm:$0xf]  ;;  %v3638_v12 = vrot.slane %v3636_v21, 4  ;;  %v5180_v5 = vrot.slane %v1212_v35, 9 }
  0xb3   : > { %v6483_v21 = vld [vmem:[%s6656_s27 + $0x60] sm:$0xff]  }
  0xb5   : > { %6070 = vmatmul.mubr.msk.bf16.vlgmr.msra.gmra.mrb[0].mxu0 %vm697_vm3, %v6473_v62  ;;  %v6529_v62 = vld [vmem:[%s6656_s27 + $0x4c] sm:$0xf] }
  0xb6   : > { %5916 = vmatmul.mubr.msk.bf16.gmra.mrb[16].mxu1 %vm697_vm3, %v5148_v58  ;;  %6102 = vmatpush3.bf16.msra.mxu0 %v4105_v54  ;;  %v1298_v57 = vrot.slane %v6529_v62, 5  ;;  %v7337_v58 = vsel %vm6908_vm7, %v1279_v25, %v1280_v28  ;;  %v5177_v54 = vrot.slane %v1209_v31, 9  ;;  %v1301_v28 = vrot.slane %v6531_v40, 5 }
  0xb7   : > { %5919 = vmatprep.mubr.msk.bf16.mxu1 %vm697_vm3, %v5149_v61  ;;  %6073 = vmatprep.mubr.msk.bf16.mxu0 %vm697_vm3, %v6475_v11  ;;  %v6479_v61 = vld [vmem:[%s6656_s27 + $0x48] sm:$0xff]   ;;  %v6530_v11 = vld [vmem:[%s6656_s27 + $0x58] sm:$0xf]  ;;  %v1312_v62 = vrot.slane %v6533_v15, 5  ;;  %v5503_v15 = vld [vmem:[%s6656_s27 + $0x34] sm:$0xf] }
  0xb8   : > { %6436 = vmatprep.subr.msk.bf16.mxu0 %vm746_vm0, %v7287_v26  ;;  %v1305_v16 = vrot.slane %v6530_v11, 5  ;;  %v1300_v31 = vrot.slane %v1298_v57, 4  ;;  %v7367_v47 = vsel %vm6908_vm7, %v5177_v54, %v1298_v57  ;;  %v5498_v57 = vld [vmem:[%s6656_s27 + $0x20] sm:$0x1]  ;;  %v5502_v54 = vld [vmem:[%s6656_s27 + $0x30] sm:$0xf] }
  0xb9   : > { %v5179_v11 = vrot.slane %v1211_v50, 9  ;;  %v3674_v50 = vshll.u32 %v5502_v54, 16  ;;  %v3642_v25 = vshll.u32 %v5498_v57, 16  ;;  %v3680_v36 = vshll.u32 %v5503_v15, 16 }
  0xba   : > { %v7378_v60 = vsel %vm6908_vm7, %v5178_v41, %v1305_v16  ;;  %v7394_v41 = vsel %vm6908_vm7, %v1300_v31, %v1301_v28  ;;  %v1314_v31 = vrot.slane %v1312_v62, 4  ;;  %v3671_v28 = vshrl.u32 %v5502_v54, 16 }
  0xbb   : > { %v7436_v35 = vrot.slane %v3680_v36, 5 }
  0xbd   : > { %6074 = vmatmul.mubr.msk.bf16.gmra.mrb[4].mxu0 %vm697_vm3, %v6477_v37  ;;  %v1307_v37 = vrot.slane %v1305_v16, 4  ;;  %v6534_v16 = vld [vmem:[%s6656_s27 + $0x68] sm:$0x1] }
  0xbe   : > { %5920 = vmatmul.mubr.msk.bf16.gmra.mrb[20].mxu1 %vm697_vm3, %v5150_v6  ;;  %6077 = vmatprep.mubr.msk.bf16.mxu0 %vm697_vm3, %v6479_v61  ;;  %v3628_v6 = vrot.slane %v3626_v8, 5  ;;  %v6481_v61 = vld [vmem:[%s6656_s27 + $0x54] sm:$0xff]   ;;  %v1315_v40 = vrot.slane %v6534_v16, 5  ;;  %v3656_v8 = vshll.u32 %v5500_v39, 16  ;;  %v3639_v16 = vor.u32 %v3638_v12, %v7388_v7 }
  0xbf   : > { %5923 = vmatprep.mubr.msk.bf16.mxu1 %vm697_vm3, %v5151_v9  ;;  %v3647_v9 = vshrl.u32 %v5499_v24, 16  ;;  %v7403_v44 = vsel %vm6908_vm7, %v1307_v37, %v1308_v55  ;;  %v1322_v24 = vrot.slane %v6536_v17, 5  ;;  %v3684_v39 = vshrl.u32 %v5503_v15, 16 }
  0xc0   : > { %v3629_v10 = vor.u32 %v3628_v6, %v3625_v43  ;;  %v7409_v37 = vrot.slane %v3656_v8, 5  ;;  %v3662_v55 = vrot.slane %v3660_v18, 4  ;;  %v8491_v43 = vcombine.low %v7013_v52, %v7024_v46  ;;  %v6537_v8 = vld [vmem:[%s6656_s27 + $0x7c] sm:$0xf]  ;;  %v7445_v18 = vld [vmem:[%s6656_s27 + $0x38] sm:$0x1] }
  0xc1   : > { %v3649_v38 = vrot.slane %v3647_v9, 4  ;;  %v7418_v17 = vsel %vm6908_vm7, %v5179_v11, %v1312_v62  ;;  %v7422_v57 = vsel %vm6908_vm7, %v1314_v31, %v1315_v40  ;;  %v3673_v6 = vrot.slane %v3671_v28, 4  ;;  %8493 = vst [vmem:[#allocation6_spill] sm:$0xff] %v7445_v18 }
  0xc2   : > { %v3676_v12 = vrot.slane %v3674_v50, 5  ;;  %v8492_v52 = vcombine.low %v7045_v33, %v7050_v56  ;;  %v3630_v46 = vrot.slane %v3629_v10, 4  ;;  %v3640_v54 = vrot.slane %v3639_v16, 4  ;;  %v6485_v33 = vld [vmem:[%s6656_s27 + $0x6c] sm:$0xff]   ;;  %v1214_v16 = vld [vmem:[%s6656_s27 + $0x84] sm:$0xe] }
  0xc3   : > { %v3666_v62 = vshll.u32 %v5501_v20, 16  ;;  %v7430_v11 = vsel %vm6908_vm7, %v5180_v5, %v1319_v30  ;;  %v7434_v40 = vsel %vm6908_vm7, %v1321_v48, %v1322_v24  ;;  %v3686_v9 = vrot.slane %v3684_v39, 4  ;;  %v6486_v48 = vld [vmem:[%s6656_s27 + $0x78] sm:$0xff]  }
  0xc4   : > { %v3653_v10 = vor.u32 %v3652_v27, %v3649_v38  ;;  %v3663_v20 = vor.u32 %v3662_v55, %v7409_v37  ;;  %v1326_v30 = vrot.slane %v6537_v8, 5  ;;  %v3677_v38 = vor.u32 %v3676_v12, %v3673_v6  ;;  %v5505_v5 = vld [vmem:[%s6656_s27 + $0x3c] sm:$0xf] }
  0xc5   : > { %6078 = vmatmul.mubr.msk.bf16.gmra.mrb[8].mxu0 %vm697_vm3, %v6481_v61  ;;  %v3644_v61 = vrot.slane %v3642_v25, 5  ;;  %v1213_v25 = vld [vmem:[%s6656_s27 + $0x78] sm:$0xe]  ;;  %v7461_v50 = vrot.slane %v3666_v62, 5  ;;  %v3687_v39 = vor.u32 %v3686_v9, %v7436_v35  ;;  %v3690_v55 = vshll.u32 %v7445_v18, 16 }
  0xc6   : > { %5924 = vmatmul.mubr.msk.bf16.gmra.mrb[24].mxu1 %vm697_vm3, %v8491_v43  ;;  %6081 = vmatprep.mubr.msk.bf16.mxu0 %vm697_vm3, %v6483_v21  ;;  %v3635_v21 = vsel %vm6682_vm4, %v3630_v46, %v7388_v7  ;;  %v5181_v24 = vrot.slane %v1213_v25, 9  ;;  %v6538_v43 = vld [vmem:[%s6656_s27 + $0x88] sm:$0xf]  ;;  %v7469_v7 = vld [vmem:[%s6656_s27 + $0x40] sm:$0xf]  ;;  %v3654_v12 = vrot.slane %v3653_v10, 4  ;;  %v8495_v62 = vcombine.low %v7065_v14, %v7074_v42 }
  0xc7   : > { %5927 = vmatprep.mubr.msk.bf16.mxu1 %vm697_vm3, %v8492_v52  ;;  %v3645_v31 = vsel %vm6682_vm4, %v3640_v54, %v3644_v61  ;;  %v1333_v6 = vrot.slane %v6538_v43, 5  ;;  %8494 = vst [vmem:[#allocation7_spill] sm:$0xff] %v7469_v7  ;;  %v3664_v52 = vrot.slane %v3663_v20, 4  ;;  %v1328_v46 = vrot.slane %v1326_v30, 4  ;;  %v6539_v54 = vld [vmem:[%s6656_s27 + $0x80] sm:$0x1] }
  0xc8   : > { %v1329_v61 = vrot.slane %v6539_v54, 5  ;;  %v3678_v9 = vrot.slane %v3677_v38, 4  ;;  %v5182_v25 = vrot.slane %v1214_v16, 9  ;;  %v3695_v8 = vshrl.u32 %v5505_v5, 16  ;;  %v6487_v10 = vld [vmem:[%s6656_s27 + $0x84] sm:$0xff]  }
  0xc9   : > { %v3698_v43 = vshll.u32 %v5505_v5, 16  ;;  %v7483_v20 = vcombine.low %v3635_v21, %v3645_v31  ;;  %v7487_v14 = vsel %vm746_vm0, %v7287_v26, 0  ;;  %v3708_v38 = vshrl.u32 %v7469_v7, 16  ;;  %v6488_v21 = vld [vmem:[%s6656_s27 + $0x90] sm:$0xff]   ;;  %v6544_v18 = vld [vmem:[%s6656_s27 + $0xa0] sm:$0xf] }
  0xca   : > { %v3688_v16 = vrot.slane %v3687_v39, 4  ;;  %v3692_v5 = vrot.slane %v3690_v55, 5  ;;  %v1335_v54 = vrot.slane %v1333_v6, 4  ;;  %v3659_v31 = vsel %vm6682_vm4, %v3654_v12, %v7409_v37 }
  0xcb   : > { %v3669_v26 = vsel %vm6682_vm4, %v3664_v52, %v7461_v50  ;;  %v7502_v39 = vsel %vm6908_vm7, %v5181_v24, %v1326_v30  ;;  %v7506_v55 = vsel %vm6908_vm7, %v1328_v46, %v1329_v61  ;;  %v3683_v37 = vsel %vm6682_vm4, %v3678_v9, %v7436_v35  ;;  %v5511_v30 = vld [vmem:[%s6656_s27 + $0x54] sm:$0xf]  ;;  %v7523_v24 = vld [vmem:[%s6656_s27 + $0x58] sm:$0xf]  ;;  %v7528_v61 = vld [vmem:[%s6656_s27 + $0x90] sm:$0xe] }
  0xcc   : > { %v7519_v12 = vsel %vm6908_vm7, %v5182_v25, %v1333_v6  ;;  %v3697_v50 = vrot.slane %v3695_v8, 4  ;;  %v3700_v52 = vrot.slane %v3698_v43, 5  ;;  %v3710_v46 = vrot.slane %v3708_v38, 4 }
  0xcd   : > { %6082 = vmatmul.mubr.msk.bf16.gmra.mrb[12].mxu0 %vm697_vm3, %v6485_v33  ;;  %v8496_v33 = vcombine.low %v7272_v0, %v7291_v23  ;;  %v6540_v0 = vld [vmem:[%s6656_s27 + $0x8c] sm:$0x1]  ;;  %v3693_v36 = vsel %vm6682_vm4, %v3688_v16, %v3692_v5  ;;  %v3743_v25 = vshrl.u32 %v5511_v30, 16  ;;  %v3746_v8 = vshll.u32 %v5511_v30, 16 }
  0xce   : > { %5928 = vmatmul.mubr.msk.bf16.gmra.mrb[28].mxu1 %vm697_vm3, %v8495_v62  ;;  %6085 = vmatprep.mubr.msk.bf16.mxu0 %vm697_vm3, %v6486_v48  ;;  %v3704_v48 = vshll.u32 %v7469_v7, 16  ;;  %v1336_v23 = vrot.slane %v6540_v0, 5  ;;  %v5508_v62 = vld [vmem:[%s6656_s27 + $0x48] sm:$0xf]  ;;  %v7512_v0 = vld [vmem:[%s6656_s27 + $0x4c] sm:$0xf]  ;;  %v8498_v38 = vcombine.low %v7276_v29, %v7280_v53  ;;  %v7546_v16 = vcombine.low %v3659_v31, %v3669_v26 }
  0xcf   : > { %5933 = vmatprep.mubr.msk.bf16.mxu1 %vm697_vm3, %v8496_v33  ;;  %v7509_v33 = vld [vmem:[%s6656_s27 + $0x44] sm:$0x1]  ;;  %v3719_v27 = vshrl.u32 %v5508_v62, 16  ;;  %v3722_v15 = vshll.u32 %v5508_v62, 16  ;;  %v3728_v6 = vshll.u32 %v7512_v0, 16  ;;  %v3732_v9 = vshrl.u32 %v7512_v0, 16 }
  0xd0   : > { %8497 = vst [vmem:[#allocation8_spill] sm:$0xff] %v7509_v33  ;;  %v7525_v28 = vrot.slane %v3704_v48, 5  ;;  %v7534_v35 = vsel %vm6908_vm7, %v1335_v54, %v1336_v23  ;;  %v3752_v43 = vshll.u32 %v7523_v24, 16  ;;  %v3756_v48 = vshrl.u32 %v7523_v24, 16  ;;  %v5514_v31 = vld [vmem:[%s6656_s27 + $0x60] sm:$0xf] }
  0xd1   : > { %v3714_v5 = vshll.u32 %v7509_v33, 16  ;;  %v5183_v54 = vrot.slane %v7528_v61, 9  ;;  %v8499_v23 = vcombine.low %v7317_v34, %v7333_v4  ;;  %v7557_v29 = vcombine.low %v3683_v37, %v3693_v36  ;;  %v6489_v26 = vld [vmem:[%s6656_s27 + $0x9c] sm:$0xff]   ;;  %v6490_v30 = vld [vmem:[%s6656_s27 + $0xa8] sm:$0xff]   ;;  %v6541_v36 = vld [vmem:[%s8467_s1 + $0x10] sm:$0xf] }
  0xd2   : > { %v3701_v53 = vor.u32 %v3700_v52, %v3697_v50  ;;  %v3721_v62 = vrot.slane %v3719_v27, 4  ;;  %v7568_v34 = vrot.slane %v3728_v6, 5  ;;  %v3734_v4 = vrot.slane %v3732_v9, 4  ;;  %v6542_v6 = vld [vmem:[%s6656_s27 + $0x94] sm:$0xf] }
  0xd3   : > { %v3745_v27 = vrot.slane %v3743_v25, 4  ;;  %v3748_v37 = vrot.slane %v3746_v8, 5  ;;  %v7577_v50 = vrot.slane %v3752_v43, 5  ;;  %v3758_v52 = vrot.slane %v3756_v48, 4  ;;  %v7583_v9 = vld [vmem:[%s6656_s27 + $0x64] sm:$0xf] }
  0xd4   : > { %8500 = vst [vmem:[#allocation9_spill] sm:$0xff] %v7583_v9  ;;  %v3767_v61 = vshrl.u32 %v5514_v31, 16  ;;  %v7585_v22 = vrot.slane %v3701_v53, 4  ;;  %v1347_v25 = vrot.slane %v6544_v18, 5  ;;  %v3735_v43 = vor.u32 %v3734_v4, %v7568_v34 }
  0xd5   : > { %6086 = vmatmul.mubr.msk.bf16.gmra.mrb[16].mxu0 %vm697_vm3, %v6487_v10  ;;  %v3770_v10 = vshll.u32 %v5514_v31, 16  ;;  %v3749_v31 = vor.u32 %v3748_v37, %v3745_v27  ;;  %v3759_v53 = vor.u32 %v3758_v52, %v7577_v50  ;;  %v8501_v18 = vcombine.low %v7324_v19, %v7337_v58  ;;  %v6491_v37 = vld [vmem:[%s6656_s27 + $0xb4] sm:$0xff]  }
  0xd6   : > { %5934 = vmatmul.mubr.msk.bf16.vlgmr.msra.gmra.mrb[0].mxu1 %vm697_vm3, %v8498_v38  ;;  %6089 = vmatprep.mubr.msk.bf16.mxu0 %vm697_vm3, %v6488_v21  ;;  %v3724_v21 = vrot.slane %v3722_v15, 5  ;;  %v7566_v38 = vld [vmem:[%s6656_s27 + $0x50] sm:$0x1]  ;;  %v7575_v15 = vld [vmem:[%s6656_s27 + $0x5c] sm:$0x1]  ;;  %v8502_v27 = vcombine.low %v7342_v2, %v7346_v1  ;;  %v1349_v52 = vrot.slane %v1347_v25, 4 }
  0xd7   : > { %5966 = vmatpush3.bf16.msra.mxu1 %v7313_v49  ;;  %5937 = vmatprep.mubr.msk.bf16.mxu1 %vm697_vm3, %v8499_v23  ;;  %v3711_v49 = vor.u32 %v3710_v46, %v7525_v28  ;;  %v7579_v46 = vrot.slane %v3714_v5, 5  ;;  %v1340_v23 = vrot.slane %v6542_v6, 5  ;;  %v3738_v48 = vshll.u32 %v7566_v38, 16  ;;  %v1216_v5 = vld [vmem:[%s6656_s27 + $0x9c] sm:$0xe] }
  0xd8   : > { %6432 = vmatprep.subr.msk.bf16.mxu1 %vm746_vm0, %v6541_v36  ;;  %v6543_v36 = vld [vmem:[%s6656_s27 + $0x98] sm:$0x1]  ;;  %v3725_v7 = vor.u32 %v3724_v21, %v3721_v62  ;;  %v3762_v6 = vshll.u32 %v7575_v15, 16  ;;  %v3780_v62 = vshrl.u32 %v7583_v9, 16  ;;  %v3772_v4 = vrot.slane %v3770_v10, 5 }
  0xd9   : > { %v1343_v33 = vrot.slane %v6543_v36, 5  ;;  %v3712_v8 = vrot.slane %v3711_v49, 4  ;;  %v3776_v36 = vshll.u32 %v7583_v9, 16  ;;  %v7604_v21 = vsel %vm6908_vm7, %v5183_v54, %v1340_v23  ;;  %v7615_v2 = vld [vmem:[%s6656_s27 + $0x68] sm:$0x1] }
  0xda   : > { %v3769_v49 = vrot.slane %v3767_v61, 4  ;;  %v3726_v19 = vrot.slane %v3725_v7, 4  ;;  %v5184_v58 = vrot.slane %v1216_v5, 9  ;;  %v3736_v3 = vrot.slane %v3735_v43, 4  ;;  %8503 = vst [vmem:[#allocation10_spill] sm:$0xff] %v7615_v2  ;;  %v6492_v5 = vld [vmem:[%s6656_s27 + $0xc0] sm:$0xff]  }
  0xdb   : > { %v3740_v54 = vrot.slane %v3738_v48, 5  ;;  %v3764_v63 = vrot.slane %v3762_v6, 5  ;;  %v1354_v61 = vrot.slane %v7050_v56, 5  ;;  %v3750_v10 = vrot.slane %v3749_v31, 4  ;;  %v1218_v31 = vld [vmem:[%s6656_s27 + $0xb4] sm:$0xe] }
  0xdc   : > { %v3760_v51 = vrot.slane %v3759_v53, 4  ;;  %v7617_v1 = vrot.slane %v3776_v36, 5  ;;  %v3782_v7 = vrot.slane %v3780_v62, 4  ;;  %v3707_v43 = vsel %vm6682_vm4, %v7585_v22, %v7525_v28  ;;  %v6546_v62 = vld [vmem:[%s6656_s27 + $0xb0] sm:$0x1] }
  0xdd   : > { %6090 = vmatmul.mubr.msk.bf16.gmra.mrb[20].mxu0 %vm697_vm3, %v6489_v26  ;;  %v1342_v26 = vrot.slane %v1340_v23, 4  ;;  %v1217_v23 = vld [vmem:[%s6656_s27 + $0xa8] sm:$0xe]  ;;  %v3717_v48 = vsel %vm6682_vm4, %v3712_v8, %v7579_v46  ;;  %v3773_v6 = vor.u32 %v3772_v4, %v3769_v49  ;;  %v3731_v53 = vsel %vm6682_vm4, %v3726_v19, %v7568_v34  ;;  %v5517_v46 = vld [vmem:[%s6656_s27 + $0x6c] sm:$0xf] }
  0xde   : > { %5938 = vmatmul.mubr.msk.bf16.gmra.mrb[4].mxu1 %vm697_vm3, %v8501_v18  ;;  %6093 = vmatprep.mubr.msk.bf16.mxu0 %vm697_vm3, %v6490_v30  ;;  %v6545_v18 = vld [vmem:[%s6656_s27 + $0xa4] sm:$0x1]  ;;  %v7637_v36 = vsel %vm6908_vm7, %v5184_v58, %v1347_v25  ;;  %v5185_v28 = vrot.slane %v1217_v23, 9  ;;  %v1356_v8 = vrot.slane %v1354_v61, 4  ;;  %v3786_v49 = vshll.u32 %v7615_v2, 16 }
  0xdf   : > { %5941 = vmatprep.mubr.msk.bf16.mxu1 %vm697_vm3, %v8502_v27  ;;  %v1350_v30 = vrot.slane %v6545_v18, 5  ;;  %v7629_v56 = vsel %vm6908_vm7, %v1342_v26, %v1343_v33  ;;  %v3741_v33 = vsel %vm6682_vm4, %v3736_v3, %v3740_v54  ;;  %v1357_v26 = vrot.slane %v6546_v62, 5  ;;  %v5520_v18 = vld [vmem:[%s6656_s27 + $0x78] sm:$0xf]  ;;  %v7692_v54 = vld [vmem:[%s6656_s27 + $0xbc] sm:$0x1] }
  0xe0   : > { %v3755_v34 = vsel %vm6682_vm4, %v3750_v10, %v7577_v50  ;;  %v3765_v25 = vsel %vm6682_vm4, %v3760_v51, %v3764_v63  ;;  %v3783_v4 = vor.u32 %v3782_v7, %v7617_v1  ;;  %v5186_v27 = vrot.slane %v1218_v31, 9  ;;  %v7666_v51 = vld [vmem:[%s6656_s27 + $0x70] sm:$0xf]  ;;  %v7696_v10 = vld [vmem:[%s6656_s27 + $0x7c] sm:$0xf] }
  0xe1   : > { %v7641_v22 = vsel %vm6908_vm7, %v1349_v52, %v1350_v30  ;;  %v8505_v3 = vcombine.low %v7359_v45, %v7363_v59  ;;  %v7662_v19 = vrot.slane %v3773_v6, 4  ;;  %v1361_v50 = vrot.slane %v7074_v42, 5  ;;  %8506 = vst [vmem:[#allocation12_spill] sm:$0xff] %v7666_v51  ;;  %8508 = vst [vmem:[#allocation13_spill] sm:$0xff] %v7696_v10  ;;  %v5523_v7 = vld [vmem:[%s6656_s27 + $0x84] sm:$0xf] }
  0xe2   : > { %8504 = vst [vmem:[#allocation11_spill] sm:$0xff] %v7641_v22  ;;  %v3791_v63 = vshrl.u32 %v5517_v46, 16  ;;  %v8507_v45 = vcombine.low %v7367_v47, %v7394_v41  ;;  %v7674_v58 = vcombine.low %v3731_v53, %v3741_v33  ;;  %v7680_v42 = vsel %vm6908_vm7, %v5185_v28, %v1354_v61  ;;  %v6493_v61 = vld [vmem:[%s6656_s27 + $0xcc] sm:$0xff]   ;;  %v7708_v31 = vld [vmem:[%s6656_s27 + $0x88] sm:$0xf] }
  0xe3   : > { %v7683_v30 = vcombine.low %v3755_v34, %v3765_v25  ;;  %v7687_v47 = vsel %vm6908_vm7, %v1356_v8, %v1357_v26  ;;  %v7689_v41 = vrot.slane %v3786_v49, 5  ;;  %v3800_v6 = vshll.u32 %v7666_v51, 16  ;;  %8509 = vst [vmem:[#allocation14_spill] sm:$0xff] %v7708_v31  ;;  %v5526_v62 = vld [vmem:[%s6656_s27 + $0x90] sm:$0xf] }
  0xe4   : > { %v7714_v28 = vrot.slane %v1361_v50, 4  ;;  %v7716_v33 = vrot.slane %v3791_v63, 4  ;;  %v3804_v8 = vshrl.u32 %v7666_v51, 16  ;;  %v3815_v26 = vshrl.u32 %v5520_v18, 16  ;;  %v7723_v25 = vld [vmem:[%s6656_s27 + $0x94] sm:$0xf] }
  0xe5   : > { %6094 = vmatmul.mubr.msk.bf16.gmra.mrb[24].mxu0 %vm697_vm3, %v6491_v37  ;;  %v7660_v37 = vcombine.low %v3707_v43, %v3717_v48  ;;  %v7704_v43 = vsel %vm6908_vm7, %v5186_v27, %v1361_v50  ;;  %v3794_v48 = vshll.u32 %v5517_v46, 16  ;;  %v3818_v49 = vshll.u32 %v5520_v18, 16  ;;  %8510 = vst [vmem:[#allocation15_spill] sm:$0xff] %v7723_v25  ;;  %v7761_v2 = vld [vmem:[%s6656_s27 + $0x8c] sm:$0x1] }
  0xe6   : > { %5942 = vmatmul.mubr.msk.bf16.gmra.mrb[8].mxu1 %vm697_vm3, %v8505_v3  ;;  %6097 = vmatprep.mubr.msk.bf16.mxu0 %vm697_vm3, %v6492_v5  ;;  %v7700_v5 = vrot.slane %v3783_v4, 4  ;;  %v3824_v46 = vshll.u32 %v7696_v10, 16  ;;  %v3828_v34 = vshrl.u32 %v7696_v10, 16  ;;  %v3839_v4 = vshrl.u32 %v5523_v7, 16 }
  0xe7   : > { %5945 = vmatprep.mubr.msk.bf16.mxu1 %vm697_vm3, %v8507_v45  ;;  %v3842_v27 = vshll.u32 %v5523_v7, 16  ;;  %v3848_v3 = vshll.u32 %v7708_v31, 16  ;;  %v3852_v50 = vshrl.u32 %v7708_v31, 16  ;;  %v7733_v45 = vld [vmem:[%s6656_s27 + $0x74] sm:$0x1]  ;;  %v3796_v18 = vrot.slane %v3794_v48, 5 }
  0xe8   : > { %v3863_v52 = vshrl.u32 %v5526_v62, 16  ;;  %v3866_v53 = vshll.u32 %v5526_v62, 16  ;;  %v8511_v7 = vcombine.low %v7378_v60, %v7403_v44  ;;  %v3806_v59 = vrot.slane %v3804_v8, 4  ;;  %v5529_v48 = vld [vmem:[%s6656_s27 + $0x9c] sm:$0xf] }
  0xe9   : > { %v3872_v63 = vshll.u32 %v7723_v25, 16  ;;  %v3876_v23 = vshrl.u32 %v7723_v25, 16  ;;  %v8512_v62 = vcombine.low %v7418_v17, %v7422_v57  ;;  %v7751_v44 = vld [vmem:[%s6656_s27 + $0x80] sm:$0x1]  ;;  %v3817_v60 = vrot.slane %v3815_v26, 4 }
  0xea   : > { %8513 = vst [vmem:[#allocation16_spill] sm:$0xff] %v7751_v44  ;;  %v3841_v31 = vrot.slane %v3839_v4, 4  ;;  %v3844_v8 = vrot.slane %v3842_v27, 5  ;;  %v7755_v10 = vrot.slane %v3848_v3, 5  ;;  %v3854_v51 = vrot.slane %v3852_v50, 4 }
  0xeb   : > { %v7758_v25 = vld [vmem:[%s6656_s27 + $0xa0] sm:$0xf]  ;;  %v3865_v17 = vrot.slane %v3863_v52, 4  ;;  %v3868_v57 = vrot.slane %v3866_v53, 5  ;;  %v3890_v9 = vshll.u32 %v5529_v48, 16  ;;  %v3797_v26 = vor.u32 %v3796_v18, %v7716_v33 }
  0xec   : > { %v3834_v27 = vshll.u32 %v7751_v44, 16  ;;  %v7770_v3 = vld [vmem:[%s6656_s27 + $0x98] sm:$0x1]  ;;  %v3896_v50 = vshll.u32 %v7758_v25, 16  ;;  %v3900_v52 = vshrl.u32 %v7758_v25, 16  ;;  %v3845_v22 = vor.u32 %v3844_v8, %v3841_v31 }
  0xed   : > { %6098 = vmatmul.mubr.msk.bf16.gmra.mrb[28].mxu0 %vm697_vm3, %v6493_v61  ;;  %v7741_v61 = vrot.slane %v3800_v6, 5  ;;  %v3830_v6 = vrot.slane %v3828_v34, 4  ;;  %v3878_v34 = vrot.slane %v3876_v23, 4  ;;  %v3858_v33 = vshll.u32 %v7761_v2, 16 }
  0xee   : > { %5946 = vmatmul.mubr.msk.bf16.gmra.mrb[12].mxu1 %vm697_vm3, %v8511_v7  ;;  %6103 = vmatprep.mubr.msk.bf16.mxu0 %vm697_vm3, %v7483_v20  ;;  %v3820_v7 = vrot.slane %v3818_v49, 5  ;;  %v7753_v20 = vrot.slane %v3824_v46, 5  ;;  %v3810_v49 = vshll.u32 %v7733_v45, 16  ;;  %v7765_v46 = vrot.slane %v3872_v63, 5 }
  0xef   : > { %5949 = vmatprep.mubr.msk.bf16.mxu1 %vm697_vm3, %v8512_v62  ;;  %v3887_v62 = vshrl.u32 %v5529_v48, 16  ;;  %v3807_v4 = vor.u32 %v3806_v59, %v7741_v61  ;;  %v3855_v23 = vor.u32 %v3854_v51, %v7755_v10  ;;  %v3869_v59 = vor.u32 %v3868_v57, %v3865_v17  ;;  %v7803_v57 = vld [vmem:[%s6656_s27 + $0xa4] sm:$0x1] }
  0xf0   : > { %v3821_v53 = vor.u32 %v3820_v7, %v3817_v60  ;;  %v3831_v48 = vor.u32 %v3830_v6, %v7753_v20  ;;  %v3892_v18 = vrot.slane %v3890_v9, 5  ;;  %v8514_v44 = vcombine.low %v7430_v11, %v7434_v40 }
  0xf1   : > { %v3889_v63 = vrot.slane %v3887_v62, 4  ;;  %v8515_v31 = vrot.slane %v7692_v54, 5  ;;  %v3812_v51 = vrot.slane %v3810_v49, 5  ;;  %v3879_v60 = vor.u32 %v3878_v34, %v7765_v46  ;;  %v7806_v34 = vld [vmem:[%s6656_s27 + $0xac] sm:$0xf] }
  0xf2   : > { %v3882_v9 = vshll.u32 %v7770_v3, 16  ;;  %v8516_v11 = vcombine.low %v7502_v39, %v7506_v55  ;;  %v3798_v40 = vrot.slane %v3797_v26, 4  ;;  %v7799_v54 = vrot.slane %v3896_v50, 5 }
  0xf3   : > { %v3822_v7 = vrot.slane %v3821_v53, 4  ;;  %v3832_v6 = vrot.slane %v3831_v48, 4  ;;  %v3836_v8 = vrot.slane %v3834_v27, 5  ;;  %v3860_v17 = vrot.slane %v3858_v33, 5  ;;  %v7816_v48 = vld [vmem:[%s6656_s27 + $0xb0] sm:$0x1] }
  0xf4   : > { %v3846_v39 = vrot.slane %v3845_v22, 4  ;;  %v3856_v55 = vrot.slane %v3855_v23, 4  ;;  %v3870_v62 = vrot.slane %v3869_v59, 4  ;;  %v3893_v49 = vor.u32 %v3892_v18, %v3889_v63 }
  0xf5   : > { %6104 = vmatmul.mubr.msk.bf16.vlgmr.msra.gmra.mrb[0].mxu0 %vm697_vm3, %v7546_v16  ;;  %v7789_v16 = vsel %vm6908_vm7, %v7714_v28, %v8515_v31  ;;  %v3902_v28 = vrot.slane %v3900_v52, 4  ;;  %v3884_v26 = vrot.slane %v3882_v9, 5  ;;  %v3803_v52 = vsel %vm6682_vm4, %v3798_v40, %v7741_v61 }
  0xf6   : > { %5950 = vmatmul.mubr.msk.bf16.gmra.mrb[16].mxu1 %vm697_vm3, %v8514_v44  ;;  %6136 = vmatpush3.bf16.msra.mxu0 %v7487_v14  ;;  %v3808_v14 = vrot.slane %v3807_v4, 4  ;;  %v5532_v44 = vld [vmem:[%s6656_s27 + $0xa8] sm:$0xf]  ;;  %v3906_v22 = vshll.u32 %v7803_v57, 16  ;;  %v3827_v33 = vsel %vm6682_vm4, %v3822_v7, %v7753_v20  ;;  %v3837_v23 = vsel %vm6682_vm4, %v3832_v6, %v3836_v8 }
  0xf7   : > { %5953 = vmatprep.mubr.msk.bf16.mxu1 %vm697_vm3, %v8516_v11  ;;  %6107 = vmatprep.mubr.msk.bf16.mxu0 %vm697_vm3, %v7557_v29  ;;  %v3880_v29 = vrot.slane %v3879_v60, 4  ;;  %v3911_v4 = vshrl.u32 %v5532_v44, 16  ;;  %v3914_v50 = vshll.u32 %v5532_v44, 16  ;;  %v3903_v53 = vor.u32 %v3902_v28, %v7799_v54  ;;  %v5581_v11 = vld [vmem:[%s6656_s27 + $0x48] sm:$0xe] }
  0xf8   : > { %v3813_v27 = vsel %vm6682_vm4, %v3808_v14, %v3812_v51  ;;  %v3920_v59 = vshll.u32 %v7806_v34, 16  ;;  %v3924_v61 = vshrl.u32 %v7806_v34, 16  ;;  %v3851_v63 = vsel %vm6682_vm4, %v3846_v39, %v7755_v10  ;;  %v7881_v39 = vld [vmem:[%s6656_s27 + $0xb8] sm:$0xf] }
  0xf9   : > { %v3861_v18 = vsel %vm6682_vm4, %v3856_v55, %v3860_v17  ;;  %v3875_v20 = vsel %vm6682_vm4, %v3870_v62, %v7765_v46  ;;  %v3894_v31 = vrot.slane %v3893_v49, 4  ;;  %v8517_v51 = vcombine.low %v7519_v12, %v7534_v35 }
  0xfa   : > { %v3913_v10 = vrot.slane %v3911_v4, 4  ;;  %v3916_v60 = vrot.slane %v3914_v50, 5  ;;  %v3930_v9 = vshll.u32 %v7816_v48, 16  ;;  %v8518_v46 = vcombine.low %v7604_v21, %v7629_v56  ;;  %v5535_v21 = vld [vmem:[%s6656_s27 + $0xb4] sm:$0xf] }
  0xfb   : > { %v5202_v12 = vcombine.low %v7680_v42, %v7687_v47  ;;  %v8519_v35 = vsel %vm6682_vm4, %v7700_v5, %v7689_v41  ;;  %v3904_v14 = vrot.slane %v3903_v53, 4  ;;  %v3908_v28 = vrot.slane %v3906_v22, 5  ;;  %v5583_v4 = vld [vmem:[%s6656_s27 + $0x60] sm:$0xe]  ;;  %v5584_v53 = vld [vmem:[%s6656_s27 + $0x6c] sm:$0xe] }
  0xfc   : > { %v5203_v56 = vcombine.low %v7704_v43, %v7789_v16  ;;  %v7864_v44 = vcombine.low %v3803_v52, %v3813_v27  ;;  %v7866_v42 = vrot.slane %v3920_v59, 5  ;;  %v3926_v47 = vrot.slane %v3924_v61, 4  ;;  %v8528_v16 = vld [vmem:[#allocation4_spill] sm:$0xff] }
  0xfd   : > { %6108 = vmatmul.mubr.msk.bf16.gmra.mrb[4].mxu0 %vm697_vm3, %v7660_v37  ;;  %v3885_v37 = vsel %vm6682_vm4, %v3880_v29, %v3884_v26  ;;  %v7868_v41 = vcombine.low %v3827_v33, %v3837_v23  ;;  %v7870_v5 = vcombine.low %v3851_v63, %v3861_v18  ;;  %v3899_v6 = vsel %vm6682_vm4, %v3894_v31, %v7799_v54  ;;  %v8521_v23 = vld [vmem:[#allocation11_spill] sm:$0xff]  ;;  %v5538_v63 = vld [vmem:[%s6656_s27 + $0xc0] sm:$0xf]  ;;  %v8523_v18 = vld [vmem:[#allocation9_spill] sm:$0xff] }
  0xfe   : > { %5954 = vmatmul.mubr.msk.bf16.gmra.mrb[20].mxu1 %vm697_vm3, %v8517_v51  ;;  %6111 = vmatprep.mubr.msk.bf16.mxu0 %vm697_vm3, %v7674_v58  ;;  %v8520_v58 = vsel %vm6682_vm4, %v7662_v19, %v7617_v1  ;;  %v7872_v7 = vcombine.low %v3875_v20, %v3885_v37  ;;  %v5597_v1 = vrot.slane %v5581_v11, 9  ;;  %v5582_v19 = vld [vmem:[%s6656_s27 + $0x54] sm:$0xe]  ;;  %v3917_v8 = vor.u32 %v3916_v60, %v3913_v10  ;;  %v8524_v31 = vld [vmem:[#allocation10_spill] sm:$0xff] }
  0xff   : > { %5957 = vmatprep.mubr.msk.bf16.mxu1 %vm697_vm3, %v8518_v46  ;;  %v5551_v40 = vcombine.low %v8520_v58, %v8519_v35  ;;  %v7878_v17 = vrot.slane %v3930_v9, 5  ;;  %v3935_v55 = vshrl.u32 %v5535_v21, 16  ;;  %v3909_v62 = vsel %vm6682_vm4, %v3904_v14, %v3908_v28  ;;  %v8525_v9 = vld [vmem:[#allocation12_spill] sm:$0xff]  ;;  %v7930_v35 = vld [vmem:[%s6656_s27 + $0xbc] sm:$0x1] }
 0x100   : > { %v3938_v49 = vshll.u32 %v5535_v21, 16  ;;  %v4394_v29 = vrot.slane %v7512_v0, 5  ;;  %v4397_v26 = vrot.slane %v7566_v38, 5  ;;  %v3927_v50 = vor.u32 %v3926_v47, %v7866_v42  ;;  %v7933_v58 = vld [vmem:[%s6656_s27 + $0xc4] sm:$0xf] }
 0x101   : > { %v5598_v52 = vrot.slane %v5582_v19, 9  ;;  %v4401_v54 = vrot.slane %v7523_v24, 5  ;;  %v4404_v27 = vrot.slane %v7575_v15, 5  ;;  %v3944_v22 = vshll.u32 %v7881_v39, 16  ;;  %v5585_v19 = vld [vmem:[%s6656_s27 + $0x78] sm:$0xe] }
 0x102   : > { %v3948_v33 = vshrl.u32 %v7881_v39, 16  ;;  %v7898_v0 = vsel %vm6908_vm7, %v5597_v1, %v4394_v29  ;;  %v4396_v38 = vrot.slane %v4394_v29, 4  ;;  %v8522_v59 = vcombine.low %v7637_v36, %v8521_v23  ;;  %v8526_v23 = vld [vmem:[#allocation13_spill] sm:$0xff] }
 0x103   : > { %v7905_v24 = vcombine.low %v3899_v6, %v3909_v62  ;;  %v7909_v15 = vsel %vm6908_vm7, %v5598_v52, %v4401_v54  ;;  %v5599_v61 = vrot.slane %v5583_v4, 9  ;;  %v4408_v20 = vrot.slane %v8523_v18, 5  ;;  %v6494_v6 = vld [vmem:[%s6656_s27 + $0xc] sm:$0xff]  }
 0x104   : > { %v7915_v36 = vsel %vm6908_vm7, %v4396_v38, %v4397_v26  ;;  %v4411_v51 = vrot.slane %v8524_v31, 5  ;;  %v5600_v37 = vrot.slane %v5584_v53, 9  ;;  %v4415_v11 = vrot.slane %v8525_v9, 5 }
 0x105   : > { %6112 = vmatmul.mubr.msk.bf16.gmra.mrb[8].mxu0 %vm697_vm3, %v7683_v30  ;;  %v4403_v30 = vrot.slane %v4401_v54, 4  ;;  %v5614_v10 = vcombine.low %v7898_v0, %v7915_v36  ;;  %v4418_v46 = vrot.slane %v7733_v45, 5  ;;  %v7939_v14 = vsel %vm6908_vm7, %v5599_v61, %v4408_v20 }
 0x106   : > { %5958 = vmatmul.mubr.msk.bf16.gmra.mrb[24].mxu1 %vm697_vm3, %v8522_v59  ;;  %6115 = vmatprep.mubr.msk.bf16.mxu0 %vm697_vm3, %v5551_v40  ;;  %v4410_v28 = vrot.slane %v4408_v20, 4  ;;  %v7941_v21 = vrot.slane %v3935_v55, 4  ;;  %v3959_v47 = vshrl.u32 %v5538_v63, 16  ;;  %v7945_v45 = vsel %vm6908_vm7, %v5600_v37, %v4415_v11  ;;  %v5312_v55 = vld [vmem:[%s6656_s27 + $0x78] sm:$0xf]  ;;  %v8527_v59 = vld [vmem:[#allocation16_spill] sm:$0xff] }
 0x107   : > { %5961 = vmatprep.mubr.msk.bf16.mxu1 %vm697_vm3, %v5202_v12  ;;  %v7923_v60 = vsel %vm6908_vm7, %v4403_v30, %v4404_v27  ;;  %v7927_v12 = vrot.slane %v3917_v8, 4  ;;  %v4417_v1 = vrot.slane %v4415_v11, 4  ;;  %v7949_v8 = vrot.slane %v3927_v50, 4 }
 0x108   : > { %v5615_v40 = vcombine.low %v7909_v15, %v7923_v60  ;;  %v7951_v62 = vrot.slane %v3938_v49, 5  ;;  %v3962_v29 = vshll.u32 %v5538_v63, 16  ;;  %v7955_v26 = vsel %vm6908_vm7, %v4410_v28, %v4411_v51  ;;  %v8530_v28 = vld [vmem:[#allocation14_spill] sm:$0xff] }
 0x109   : > { %v7958_v4 = vrot.slane %v3944_v22, 5  ;;  %v7960_v52 = vrot.slane %v3948_v33, 4  ;;  %v5616_v54 = vcombine.low %v7939_v14, %v7955_v26  ;;  %v7966_v27 = vsel %vm6908_vm7, %v4417_v1, %v4418_v46  ;;  %v5586_v33 = vld [vmem:[%s6656_s27 + $0x84] sm:$0xe]  ;;  %v6495_v1 = vld [vmem:[%s6656_s27 + $0x18] sm:$0xff]  }
 0x10a   : > { %v3954_v49 = vshll.u32 %v7930_v35, 16  ;;  %v3968_v50 = vshll.u32 %v7933_v58, 16  ;;  %v5617_v53 = vcombine.low %v7945_v45, %v7966_v27  ;;  %v5601_v22 = vrot.slane %v5585_v19, 9  ;;  %v6557_v60 = vld [vmem:[%s6656_s27 + $0xa0] sm:$0xf] }
 0x10b   : > { %v3961_v38 = vrot.slane %v3959_v47, 4  ;;  %v4425_v30 = vrot.slane %v8527_v59, 5  ;;  %v2284_v61 = vshrl.u32 %v5312_v55, 16  ;;  %v3964_v63 = vrot.slane %v3962_v29, 5  ;;  %v5541_v29 = vld [vmem:[%s6656_s27 + $0xcc] sm:$0xf] }
 0x10c   : > { %v3972_v18 = vshrl.u32 %v7933_v58, 16  ;;  %v2287_v43 = vshll.u32 %v5312_v55, 16  ;;  %v5602_v37 = vrot.slane %v5586_v33, 9  ;;  %v3923_v9 = vsel %vm6682_vm4, %v7927_v12, %v7866_v42  ;;  %v8009_v55 = vld [vmem:[%s6656_s27 + $0xd0] sm:$0xf] }
 0x10d   : > { %6116 = vmatmul.mubr.msk.bf16.gmra.mrb[12].mxu0 %vm697_vm3, %v7864_v44  ;;  %v4422_v44 = vrot.slane %v8526_v23, 5  ;;  %v2286_v51 = vrot.slane %v2284_v61, 4  ;;  %v3941_v11 = vor.u32 %v7951_v62, %v7941_v21  ;;  %v4429_v47 = vrot.slane %v8530_v28, 5  ;;  %v6496_v21 = vld [vmem:[%s6656_s27 + $0x24] sm:$0xff]   ;;  %v6561_v27 = vld [vmem:[%s6656_s27 + $0xac] sm:$0xf] }
 0x10e   : > { %5962 = vmatmul.mubr.msk.bf16.gmra.mrb[28].mxu1 %vm697_vm3, %v5203_v56  ;;  %6119 = vmatprep.mubr.msk.bf16.mxu0 %vm697_vm3, %v7868_v41  ;;  %v8529_v56 = vld [vmem:[#allocation5_spill] sm:$0xff]  ;;  %v2289_v46 = vrot.slane %v2287_v43, 5  ;;  %v3933_v19 = vsel %vm6682_vm4, %v7949_v8, %v7878_v17  ;;  %v4432_v12 = vrot.slane %v7761_v2, 5  ;;  %v8017_v62 = vrot.slane %v3968_v50, 5  ;;  %v5587_v8 = vld [vmem:[%s6656_s27 + $0x90] sm:$0xe] }
 0x10f   : > { %5967 = vmatprep.mubr.msk.bf16.mxu1 %vm697_vm3, %v6494_v6  ;;  %v2306_v41 = vsel %vm6682_vm4, %v8529_v56, %v8528_v16  ;;  %v7991_v20 = vsel %vm6908_vm7, %v5601_v22, %v4422_v44  ;;  %v4424_v31 = vrot.slane %v4422_v44, 4  ;;  %v3951_v6 = vor.u32 %v7960_v52, %v7958_v4  ;;  %v8023_v52 = vld [vmem:[%s6656_s27 + $0xc8] sm:$0x1]  ;;  %v8532_v16 = vld [vmem:[#allocation2_spill] sm:$0xff] }
 0x110   : > { %v3974_v22 = vrot.slane %v3972_v18, 4  ;;  %v2290_v17 = vor.u32 %v2289_v46, %v2286_v51  ;;  %v3956_v23 = vrot.slane %v3954_v49, 5  ;;  %v3965_v44 = vor.u32 %v3964_v63, %v3961_v38  ;;  %v8533_v51 = vld [vmem:[#allocation3_spill] sm:$0xff] }
 0x111   : > { %v8013_v42 = vsel %vm6908_vm7, %v4424_v31, %v4425_v30  ;;  %v8027_v59 = vsel %vm6908_vm7, %v5602_v37, %v4429_v47  ;;  %v4431_v30 = vrot.slane %v4429_v47, 4  ;;  %v3983_v2 = vshrl.u32 %v5541_v29, 16 }
 0x112   : > { %v5618_v33 = vcombine.low %v7991_v20, %v8013_v42  ;;  %v3986_v50 = vshll.u32 %v5541_v29, 16  ;;  %v3992_v61 = vshll.u32 %v8009_v55, 16  ;;  %v2291_v18 = vrot.slane %v2290_v17, 4  ;;  %v6497_v29 = vld [vmem:[%s6656_s27 + $0x30] sm:$0xff]  }
 0x113   : > { %v3996_v49 = vshrl.u32 %v8009_v55, 16  ;;  %v8038_v38 = vsel %vm6908_vm7, %v4431_v30, %v4432_v12  ;;  %v5603_v63 = vrot.slane %v5587_v8, 9  ;;  %v3975_v56 = vor.u32 %v3974_v22, %v8017_v62 }
 0x114   : > { %v3978_v31 = vshll.u32 %v8023_v52, 16  ;;  %v5619_v37 = vcombine.low %v8027_v59, %v8038_v38  ;;  %v5557_v46 = vcombine.low %v3923_v9, %v3933_v19  ;;  %v3942_v28 = vrot.slane %v3941_v11, 4  ;;  %v5588_v11 = vld [vmem:[%s6656_s27 + $0x9c] sm:$0xe] }
 0x115   : > { %6120 = vmatmul.mubr.msk.bf16.gmra.mrb[16].mxu0 %vm697_vm3, %v7870_v5  ;;  %v8531_v5 = vld [vmem:[#allocation15_spill] sm:$0xff]  ;;  %v3952_v47 = vrot.slane %v3951_v6, 4  ;;  %v3966_v12 = vrot.slane %v3965_v44, 4  ;;  %v4439_v8 = vrot.slane %v7770_v3, 5  ;;  %v3985_v30 = vrot.slane %v3983_v2, 4  ;;  %v6498_v19 = vld [vmem:[%s6656_s27 + $0x3c] sm:$0xff]  }
 0x116   : > { %5968 = vmatmul.mubr.msk.bf16.vlgmr.msra.gmra.mrb[0].mxu1 %vm697_vm3, %v6495_v1  ;;  %6123 = vmatprep.mubr.msk.bf16.mxu0 %vm697_vm3, %v7872_v7  ;;  %v4436_v43 = vrot.slane %v8531_v5, 5  ;;  %v2296_v7 = vsel %vm6682_vm4, %v2291_v18, %v8533_v51  ;;  %v3988_v18 = vrot.slane %v3986_v50, 5  ;;  %v8061_v5 = vrot.slane %v3992_v61, 5 }
 0x117   : > { %6170 = vmatpush3.bf16.msra.mxu1 %v8532_v16  ;;  %5971 = vmatprep.mubr.msk.bf16.mxu1 %vm697_vm3, %v6496_v21  ;;  %v8050_v1 = vcombine.low %v2296_v7, %v2306_v41  ;;  %v8054_v21 = vld [vmem:[%s6656_s27 + $0xd4] sm:$0x1]  ;;  %v3998_v9 = vrot.slane %v3996_v49, 4  ;;  %v3976_v41 = vrot.slane %v3975_v56, 4  ;;  %v3980_v6 = vrot.slane %v3978_v31, 5 }
 0x118   : > { %v8058_v22 = vsel %vm6908_vm7, %v5603_v63, %v4436_v43  ;;  %v4438_v17 = vrot.slane %v4436_v43, 4  ;;  %v3947_v63 = vsel %vm6682_vm4, %v3942_v28, %v7958_v4  ;;  %v3957_v2 = vsel %vm6682_vm4, %v3952_v47, %v3956_v23  ;;  %v6548_v16 = vld [vmem:[%s6656_s27 + $0x1c] sm:$0xf]  ;;  %v5589_v28 = vld [vmem:[%s6656_s27 + $0xa8] sm:$0xe] }
 0x119   : > { %v4002_v50 = vshll.u32 %v8054_v21, 16  ;;  %v5604_v61 = vrot.slane %v5588_v11, 9  ;;  %v4443_v49 = vrot.slane %v7758_v25, 5  ;;  %v3971_v4 = vsel %vm6682_vm4, %v3966_v12, %v8017_v62  ;;  %v5577_v62 = vld [vmem:[%s6656_s27 + $0x18] sm:$0xe]  ;;  %v6499_v47 = vld [vmem:[%s6656_s27 + $0x48] sm:$0xff]  }
 0x11a   : > { %v8067_v44 = vsel %vm6908_vm7, %v4438_v17, %v4439_v8  ;;  %v3999_v43 = vor.u32 %v3998_v9, %v8061_v5  ;;  %v4446_v23 = vrot.slane %v7803_v57, 5  ;;  %v3981_v25 = vsel %vm6682_vm4, %v3976_v41, %v3980_v6  ;;  %v6549_v11 = vld [vmem:[%s6656_s27 + $0x20] sm:$0x1] }
 0x11b   : > { %v5620_v3 = vcombine.low %v8058_v22, %v8067_v44  ;;  %v4366_v56 = vrot.slane %v6548_v16, 5  ;;  %v8093_v31 = vsel %vm6908_vm7, %v5604_v61, %v4443_v49  ;;  %v4445_v51 = vrot.slane %v4443_v49, 4  ;;  %v5590_v49 = vld [vmem:[%s6656_s27 + $0xb4] sm:$0xe] }
 0x11c   : > { %v5558_v7 = vcombine.low %v3947_v63, %v3957_v2  ;;  %v4000_v17 = vrot.slane %v3999_v43, 4  ;;  %v5605_v41 = vrot.slane %v5589_v28, 9  ;;  %v4450_v6 = vrot.slane %v7806_v34, 5  ;;  %v5578_v2 = vld [vmem:[%s6656_s27 + $0x24] sm:$0xe] }
 0x11d   : > { %6124 = vmatmul.mubr.msk.bf16.gmra.mrb[20].mxu0 %vm697_vm3, %v7905_v24  ;;  %v3989_v24 = vor.u32 %v3988_v18, %v3985_v30  ;;  %v8098_v57 = vsel %vm6908_vm7, %v4445_v51, %v4446_v23  ;;  %v6500_v30 = vld [vmem:[%s6656_s27 + $0x54] sm:$0xff]   ;;  %v5593_v18 = vrot.slane %v5577_v62, 9  ;;  %v4368_v9 = vrot.slane %v4366_v56, 4  ;;  %v6552_v28 = vld [vmem:[%s6656_s27 + $0x2c] sm:$0x1] }
 0x11e   : > { %5972 = vmatmul.mubr.msk.bf16.gmra.mrb[4].mxu1 %vm697_vm3, %v6497_v29  ;;  %6127 = vmatprep.mubr.msk.bf16.mxu0 %vm697_vm3, %v5557_v46  ;;  %v4004_v46 = vrot.slane %v4002_v50, 5  ;;  %v5559_v29 = vcombine.low %v3971_v4, %v3981_v25  ;;  %v5621_v8 = vcombine.low %v8093_v31, %v8098_v57  ;;  %v4453_v63 = vrot.slane %v7816_v48, 5  ;;  %v6550_v50 = vld [vmem:[%s6656_s27 + $0x28] sm:$0xf]  ;;  %v5579_v25 = vld [vmem:[%s6656_s27 + $0x30] sm:$0xe] }
 0x11f   : > { %5975 = vmatprep.mubr.msk.bf16.mxu1 %vm697_vm3, %v6498_v19  ;;  %v3990_v12 = vrot.slane %v3989_v24, 4  ;;  %v4369_v19 = vrot.slane %v6549_v11, 5  ;;  %v4373_v61 = vrot.slane %v6550_v50, 5  ;;  %v8121_v48 = vsel %vm6908_vm7, %v5605_v41, %v4450_v6  ;;  %v6502_v11 = vld [vmem:[%s6656_s27 + $0x6c] sm:$0xff]   ;;  %v8534_v41 = vld [vmem:[#allocation6_spill] sm:$0xff] }
 0x120   : > { %v4005_v34 = vsel %vm6682_vm4, %v4000_v17, %v4004_v46  ;;  %v4452_v24 = vrot.slane %v4450_v6, 4  ;;  %v4367_v43 = vsel %vm6908_vm7, %v5593_v18, %v4366_v56  ;;  %v5594_v51 = vrot.slane %v5578_v2, 9  ;;  %v5591_v50 = vld [vmem:[%s6656_s27 + $0xc0] sm:$0xe]  ;;  %v6566_v31 = vld [vmem:[%s6656_s27 + $0xc8] sm:$0x1] }
 0x121   : > { %v3995_v4 = vsel %vm6682_vm4, %v3990_v12, %v8061_v5  ;;  %v4370_v23 = vsel %vm6908_vm7, %v4368_v9, %v4369_v19  ;;  %v6551_v5 = vld [vmem:[%s6656_s27 + $0x34] sm:$0xf]  ;;  %v6501_v12 = vld [vmem:[%s6656_s27 + $0x60] sm:$0xff]   ;;  %v5595_v18 = vrot.slane %v5579_v25, 9  ;;  %v4460_v9 = vrot.slane %v7930_v35, 5 }
 0x122   : > { %v4380_v16 = vrot.slane %v6551_v5, 5  ;;  %v8132_v62 = vsel %vm6908_vm7, %v4452_v24, %v4453_v63  ;;  %v5560_v46 = vcombine.low %v3995_v4, %v4005_v34  ;;  %v5610_v17 = vcombine.low %v4367_v43, %v4370_v23  ;;  %v5580_v24 = vld [vmem:[%s6656_s27 + $0x3c] sm:$0xe] }
 0x123   : > { %v5622_v56 = vcombine.low %v8121_v48, %v8132_v62  ;;  %v4383_v6 = vrot.slane %v8534_v41, 5  ;;  %v4374_v35 = vsel %vm6908_vm7, %v5594_v51, %v4373_v61  ;;  %v5607_v5 = vrot.slane %v5591_v50, 9 }
 0x124   : > { %v4382_v19 = vrot.slane %v4380_v16, 4  ;;  %v4381_v23 = vsel %vm6908_vm7, %v5595_v18, %v4380_v16  ;;  %v4467_v51 = vrot.slane %v8023_v52, 5  ;;  %v2447_v57 = vshll.u32 %v6566_v31, 16 }
 0x125   : > { %6128 = vmatmul.mubr.msk.bf16.gmra.mrb[24].mxu0 %vm697_vm3, %v5558_v7  ;;  %v5606_v7 = vrot.slane %v5590_v49, 9 }
 0x126   : > { %5976 = vmatmul.mubr.msk.bf16.gmra.mrb[8].mxu1 %vm697_vm3, %v6499_v47  ;;  %6131 = vmatprep.mubr.msk.bf16.mxu0 %vm697_vm3, %v5559_v29  ;;  %v4376_v47 = vrot.slane %v6552_v28, 5  ;;  %v4457_v29 = vrot.slane %v7881_v39, 5  ;;  %v8535_v39 = vld [vmem:[#allocation7_spill] sm:$0xff]  ;;  %v4384_v25 = vsel %vm6908_vm7, %v4382_v19, %v4383_v6  ;;  %v5596_v28 = vrot.slane %v5580_v24, 9 }
 0x127   : > { %5979 = vmatprep.mubr.msk.bf16.mxu1 %vm697_vm3, %v6500_v30  ;;  %v4375_v30 = vrot.slane %v4373_v61, 4  ;;  %v4387_v49 = vrot.slane %v8535_v39, 5  ;;  %v4464_v61 = vrot.slane %v7933_v58, 5  ;;  %v6553_v39 = vld [vmem:[%s6656_s27 + $0x70] sm:$0xf]  ;;  %v4471_v24 = vrot.slane %v8009_v55, 5 }
 0x128   : > { %v8144_v63 = vsel %vm6908_vm7, %v5606_v7, %v4457_v29  ;;  %v4459_v2 = vrot.slane %v4457_v29, 4  ;;  %v5309_v7 = vld [vmem:[%s6656_s27 + $0x6c] sm:$0xf]  ;;  %v8536_v29 = vld [vmem:[#allocation8_spill] sm:$0xff] }
 0x129   : > { %v4377_v34 = vsel %vm6908_vm7, %v4375_v30, %v4376_v47  ;;  %v4389_v47 = vrot.slane %v4387_v49, 4  ;;  %v6503_v30 = vld [vmem:[%s6656_s27 + $0x78] sm:$0xff]   ;;  %v8175_v16 = vsel %vm6908_vm7, %v5607_v5, %v4464_v61  ;;  %v4466_v18 = vrot.slane %v4464_v61, 4 }
 0x12a   : > { %v8151_v4 = vsel %vm6908_vm7, %v4459_v2, %v4460_v9  ;;  %v5612_v9 = vcombine.low %v4381_v23, %v4384_v25  ;;  %v2260_v19 = vshrl.u32 %v5309_v7, 16  ;;  %v2263_v41 = vshll.u32 %v5309_v7, 16 }
 0x12b   : > { %v5623_v43 = vcombine.low %v8144_v63, %v8151_v4  ;;  %v8180_v58 = vsel %vm6908_vm7, %v4466_v18, %v4467_v51  ;;  %v4388_v6 = vsel %vm6908_vm7, %v5596_v28, %v4387_v49  ;;  %v4474_v49 = vrot.slane %v8054_v21, 5  ;;  %v6505_v51 = vld [vmem:[%s6656_s27 + $0x90] sm:$0xff]   ;;  %v6506_v21 = vld [vmem:[%s6656_s27 + $0x9c] sm:$0xff]  }
 0x12c   : > { %v5624_v50 = vcombine.low %v8175_v16, %v8180_v58  ;;  %v2262_v23 = vrot.slane %v2260_v19, 4  ;;  %v2265_v25 = vrot.slane %v2263_v41, 5  ;;  %v4473_v7 = vrot.slane %v4471_v24, 4 }
 0x12d   : > { %6132 = vmatmul.mubr.msk.bf16.gmra.mrb[28].mxu0 %vm697_vm3, %v5560_v46  ;;  %v5611_v46 = vcombine.low %v4374_v35, %v4377_v34  ;;  %v2269_v35 = vshll.u32 %v6553_v39, 16  ;;  %v2273_v34 = vshrl.u32 %v6553_v39, 16 }
 0x12e   : > { %5980 = vmatmul.mubr.msk.bf16.gmra.mrb[12].mxu1 %vm697_vm3, %v6501_v12  ;;  %6137 = vmatprep.mubr.msk.bf16.mxu0 %vm697_vm3, %v5610_v17  ;;  %v4390_v12 = vrot.slane %v8536_v29, 5  ;;  %v5592_v17 = vld [vmem:[%s6656_s27 + $0xcc] sm:$0xe]  ;;  %v8202_v55 = vsel %vm6908_vm7, %v4473_v7, %v4474_v49 }
 0x12f   : > { %5983 = vmatprep.mubr.msk.bf16.mxu1 %vm697_vm3, %v6502_v11  ;;  %v6504_v11 = vld [vmem:[%s6656_s27 + $0x84] sm:$0xff]   ;;  %v5608_v52 = vrot.slane %v5592_v17, 9  ;;  %v2275_v28 = vrot.slane %v2273_v34, 4  ;;  %v6554_v17 = vld [vmem:[%s6656_s27 + $0x74] sm:$0x1] }
 0x130   : > { %v4391_v2 = vsel %vm6908_vm7, %v4389_v47, %v4390_v12  ;;  %v5315_v47 = vld [vmem:[%s6656_s27 + $0x84] sm:$0xf]  ;;  %v2266_v12 = vor.u32 %v2265_v25, %v2262_v23  ;;  %v6508_v34 = vld [vmem:[%s6656_s27 + $0xb4] sm:$0xff]  }
 0x131   : > { %v8197_v5 = vsel %vm6908_vm7, %v5608_v52, %v4471_v24  ;;  %v5613_v61 = vcombine.low %v4388_v6, %v4391_v2  ;;  %v2311_v18 = vshll.u32 %v5315_v47, 16  ;;  %v5318_v6 = vld [vmem:[%s6656_s27 + $0x90] sm:$0xf]  ;;  %v6507_v2 = vld [vmem:[%s6656_s27 + $0xa8] sm:$0xff]  }
 0x132   : > { %v5625_v29 = vcombine.low %v8197_v5, %v8202_v55  ;;  %v2267_v52 = vrot.slane %v2266_v12, 4  ;;  %v2332_v23 = vshrl.u32 %v5318_v6, 16  ;;  %v2335_v25 = vshll.u32 %v5318_v6, 16 }
 0x133   : > { %v2365_v12 = vshll.u32 %v6557_v60, 16 }
 0x134   : > { %v2337_v14 = vrot.slane %v2335_v25, 5  ;;  %v6560_v25 = vld [vmem:[%s6656_s27 + $0xa4] sm:$0x1] }
 0x135   : > { %6138 = vmatmul.mubr.msk.bf16.vlgmr.msra.gmra.mrb[0].mxu0 %vm697_vm3, %v5611_v46  ;;  %v2271_v46 = vrot.slane %v2269_v35, 5  ;;  %v5321_v35 = vld [vmem:[%s6656_s27 + $0x9c] sm:$0xf]  ;;  %v8244_v6 = vrot.slane %v2365_v12, 5 }
 0x136   : > { %5984 = vmatmul.mubr.msk.bf16.gmra.mrb[16].mxu1 %vm697_vm3, %v6503_v30  ;;  %6141 = vmatprep.mubr.msk.bf16.mxu0 %vm697_vm3, %v5612_v9  ;;  %v2279_v30 = vshll.u32 %v6554_v17, 16  ;;  %v2308_v9 = vshrl.u32 %v5315_v47, 16  ;;  %v2359_v47 = vshll.u32 %v5321_v35, 16  ;;  %v6558_v17 = vld [vmem:[%s6656_s27 + $0x8c] sm:$0x1] }
 0x137   : > { %5987 = vmatprep.mubr.msk.bf16.mxu1 %vm697_vm3, %v6504_v11  ;;  %v2276_v13 = vor.u32 %v2275_v28, %v2271_v46  ;;  %v6555_v11 = vld [vmem:[%s6656_s27 + $0x88] sm:$0xf]  ;;  %v2272_v7 = vsel %vm6682_vm4, %v2267_v52, %v2271_v46 }
 0x138   : > { %v2317_v19 = vshll.u32 %v6555_v11, 16  ;;  %v2321_v41 = vshrl.u32 %v6555_v11, 16  ;;  %v2281_v0 = vrot.slane %v2279_v30, 5  ;;  %v2310_v36 = vrot.slane %v2308_v9, 4 }
 0x139   : > { %v2277_v39 = vrot.slane %v2276_v13, 4  ;;  %v2327_v30 = vshll.u32 %v6558_v17, 16  ;;  %v2334_v9 = vrot.slane %v2332_v23, 4  ;;  %v2361_v11 = vrot.slane %v2359_v47, 5 }
 0x13a   : > { %v8221_v24 = vrot.slane %v2317_v19, 5  ;;  %v2323_v49 = vrot.slane %v2321_v41, 4  ;;  %v6509_v19 = vld [vmem:[%s6656_s27 + $0xc0] sm:$0xff]  }
 0x13b   : > { %v2282_v46 = vsel %vm6682_vm4, %v2277_v39, %v2281_v0  ;;  %v5324_v39 = vld [vmem:[%s6656_s27 + $0xa8] sm:$0xf] }
 0x13c   : > { %v2324_v13 = vor.u32 %v2323_v49, %v8221_v24  ;;  %v5342_v41 = vcombine.low %v2272_v7, %v2282_v46  ;;  %v2375_v7 = vshll.u32 %v6560_v25, 16  ;;  %v2383_v45 = vshll.u32 %v5324_v39, 16 }
 0x13d   : > { %6142 = vmatmul.mubr.msk.bf16.gmra.mrb[4].mxu0 %vm697_vm3, %v5613_v61  ;;  %v6556_v61 = vld [vmem:[%s6656_s27 + $0x94] sm:$0xf] }
 0x13e   : > { %5988 = vmatmul.mubr.msk.bf16.gmra.mrb[20].mxu1 %vm697_vm3, %v6505_v51  ;;  %6145 = vmatprep.mubr.msk.bf16.mxu0 %vm697_vm3, %v5614_v10  ;;  %v2313_v10 = vrot.slane %v2311_v18, 5  ;;  %v2341_v51 = vshll.u32 %v6556_v61, 16  ;;  %v2345_v28 = vshrl.u32 %v6556_v61, 16  ;;  %v2325_v0 = vrot.slane %v2324_v13, 4 }
 0x13f   : > { %5991 = vmatprep.mubr.msk.bf16.mxu1 %vm697_vm3, %v6506_v21  ;;  %v2356_v21 = vshrl.u32 %v5321_v35, 16  ;;  %v6559_v35 = vld [vmem:[%s6656_s27 + $0x98] sm:$0x1]  ;;  %v2380_v61 = vshrl.u32 %v5324_v39, 16  ;;  %v5330_v39 = vld [vmem:[%s6656_s27 + $0xc0] sm:$0xf] }
 0x140   : > { %v2314_v15 = vor.u32 %v2313_v10, %v2310_v36  ;;  %v8241_v26 = vrot.slane %v2341_v51, 5  ;;  %v2329_v36 = vrot.slane %v2327_v30, 5  ;;  %v2338_v10 = vor.u32 %v2337_v14, %v2334_v9  ;;  %v5327_v51 = vld [vmem:[%s6656_s27 + $0xb4] sm:$0xf] }
 0x141   : > { %v2358_v18 = vrot.slane %v2356_v21, 4  ;;  %v2393_v21 = vshrl.u32 %v6561_v27, 16  ;;  %v2404_v20 = vshrl.u32 %v5327_v51, 16  ;;  %v2407_v42 = vshll.u32 %v5327_v51, 16 }
 0x142   : > { %v2315_v52 = vrot.slane %v2314_v15, 4  ;;  %v2330_v46 = vsel %vm6682_vm4, %v2325_v0, %v2329_v36  ;;  %v2339_v15 = vrot.slane %v2338_v10, 4  ;;  %v2377_v30 = vrot.slane %v2375_v7, 5 }
 0x143   : > { %v2362_v23 = vor.u32 %v2361_v11, %v2358_v18  ;;  %v2382_v9 = vrot.slane %v2380_v61, 4  ;;  %v2395_v11 = vrot.slane %v2393_v21, 4  ;;  %v6565_v61 = vld [vmem:[%s6656_s27 + $0xbc] sm:$0x1] }
 0x144   : > { %v2320_v47 = vsel %vm6682_vm4, %v2315_v52, %v8221_v24  ;;  %v2344_v0 = vsel %vm6682_vm4, %v2339_v15, %v8241_v26  ;;  %v2423_v22 = vshll.u32 %v6565_v61, 16 }
 0x145   : > { %6146 = vmatmul.mubr.msk.bf16.gmra.mrb[8].mxu0 %vm697_vm3, %v5615_v40  ;;  %v2369_v40 = vshrl.u32 %v6557_v60, 16  ;;  %v2363_v17 = vrot.slane %v2362_v23, 4  ;;  %v5344_v24 = vcombine.low %v2320_v47, %v2330_v46 }
 0x146   : > { %5992 = vmatmul.mubr.msk.bf16.gmra.mrb[24].mxu1 %vm697_vm3, %v6507_v2  ;;  %6149 = vmatprep.mubr.msk.bf16.mxu0 %vm697_vm3, %v5616_v54  ;;  %v2347_v54 = vrot.slane %v2345_v28, 4 }
 0x147   : > { %5995 = vmatprep.mubr.msk.bf16.mxu1 %vm697_vm3, %v6508_v34  ;;  %v2371_v2 = vrot.slane %v2369_v40, 4  ;;  %v2351_v34 = vshll.u32 %v6559_v35, 16  ;;  %v2368_v10 = vsel %vm6682_vm4, %v2363_v17, %v8244_v6  ;;  %v2449_v17 = vrot.slane %v2447_v57, 5 }
 0x148   : > { %v2348_v49 = vor.u32 %v2347_v54, %v8241_v26  ;;  %v2385_v54 = vrot.slane %v2383_v45, 5  ;;  %v6563_v26 = vld [vmem:[%s6656_s27 + $0xb0] sm:$0x1] }
 0x149   : > { %v2372_v28 = vor.u32 %v2371_v2, %v8244_v6  ;;  %v2353_v60 = vrot.slane %v2351_v34, 5  ;;  %v2399_v35 = vshll.u32 %v6563_v26, 16  ;;  %v2428_v34 = vshrl.u32 %v5330_v39, 16 }
 0x14a   : > { %v2349_v13 = vrot.slane %v2348_v49, 4  ;;  %v2386_v38 = vor.u32 %v2385_v54, %v2382_v9  ;;  %v2431_v6 = vshll.u32 %v5330_v39, 16  ;;  %v6564_v49 = vld [vmem:[%s6656_s27 + $0xc4] sm:$0xf] }
 0x14b   : > { %v2373_v14 = vrot.slane %v2372_v28, 4  ;;  %v2437_v23 = vshll.u32 %v6564_v49, 16  ;;  %v2441_v25 = vshrl.u32 %v6564_v49, 16  ;;  %v2401_v45 = vrot.slane %v2399_v35, 5 }
 0x14c   : > { %v2354_v36 = vsel %vm6682_vm4, %v2349_v13, %v2353_v60  ;;  %v2387_v51 = vrot.slane %v2386_v38, 4  ;;  %v2425_v60 = vrot.slane %v2423_v22, 5 }
 0x14d   : > { %6150 = vmatmul.mubr.msk.bf16.gmra.mrb[12].mxu0 %vm697_vm3, %v5617_v53  ;;  %v2389_v53 = vshll.u32 %v6561_v27, 16  ;;  %v2378_v59 = vsel %vm6682_vm4, %v2373_v14, %v2377_v30  ;;  %v5345_v44 = vcombine.low %v2344_v0, %v2354_v36  ;;  %v2430_v27 = vrot.slane %v2428_v34, 4 }
 0x14e   : > { %5996 = vmatmul.mubr.msk.bf16.gmra.mrb[28].mxu1 %vm697_vm3, %v6509_v19  ;;  %6153 = vmatprep.mubr.msk.bf16.mxu0 %vm697_vm3, %v5618_v33  ;;  %v6562_v33 = vld [vmem:[%s6656_s27 + $0xb8] sm:$0xf]  ;;  %v2406_v19 = vrot.slane %v2404_v20, 4  ;;  %v2439_v21 = vrot.slane %v2437_v23, 5  ;;  %v2443_v47 = vrot.slane %v2441_v25, 4 }
 0x14f   : > { %6017 = vmatprep.mubr.msk.bf16.mxu1 %vm697_vm3, %v5342_v41  ;;  %v2413_v12 = vshll.u32 %v6562_v33, 16  ;;  %v2417_v40 = vshrl.u32 %v6562_v33, 16  ;;  %v2391_v18 = vrot.slane %v2389_v53, 5  ;;  %v2409_v41 = vrot.slane %v2407_v42, 5 }
 0x150   : > { %v2433_v53 = vrot.slane %v2431_v6, 5 }
 0x151   : > { %v2415_v52 = vrot.slane %v2413_v12, 5  ;;  %v2419_v2 = vrot.slane %v2417_v40, 4  ;;  %v2392_v20 = vsel %vm6682_vm4, %v2387_v51, %v2391_v18  ;;  %v2444_v12 = vor.u32 %v2443_v47, %v2439_v21 }
 0x152   : > { %v2434_v33 = vor.u32 %v2433_v53, %v2430_v27 }
 0x153   : > { %v2420_v7 = vor.u32 %v2419_v2, %v2415_v52  ;;  %v2445_v13 = vrot.slane %v2444_v12, 4  ;;  %v8347_v2 = vld [vmem:[%s8468_s2] ss:$0 sm:$0xff] }
 0x154   : > { %v2435_v40 = vrot.slane %v2434_v33, 4 }
 0x155   : > { %6154 = vmatmul.mubr.msk.bf16.gmra.mrb[16].mxu0 %vm697_vm3, %v5619_v37  ;;  %v2396_v37 = vor.u32 %v2395_v11, %v2391_v18  ;;  %v2421_v15 = vrot.slane %v2420_v7, 4  ;;  %v2450_v9 = vsel %vm6682_vm4, %v2445_v13, %v2449_v17 }
 0x156   : > { %6018 = vmatmul.mubr.msk.bf16.vlgmr.msra.gmra.mrb[16].mxu1 %vm697_vm3, %v8050_v1  ;;  %6157 = vmatprep.mubr.msk.bf16.mxu0 %vm697_vm3, %v5620_v3  ;;  %v2410_v1 = vor.u32 %v2409_v41, %v2406_v19  ;;  %v5346_v3 = vcombine.low %v2368_v10, %v2378_v59  ;;  %v2440_v30 = vsel %vm6682_vm4, %v2435_v40, %v2439_v21 }
 0x157   : > { %6021 = vmatprep.mubr.msk.bf16.mxu1 %vm697_vm3, %v5344_v24  ;;  %v2397_v28 = vrot.slane %v2396_v37, 4  ;;  %v2426_v48 = vsel %vm6682_vm4, %v2421_v15, %v2425_v60  ;;  %v5349_v14 = vcombine.low %v2440_v30, %v2450_v9 }
 0x158   : > { %v2411_v46 = vrot.slane %v2410_v1, 4 }
 0x159   : > { %v2402_v42 = vsel %vm6682_vm4, %v2397_v28, %v2401_v45 }
 0x15a   : > { %v5347_v62 = vcombine.low %v2392_v20, %v2402_v42 }
 0x15d   : > { %6158 = vmatmul.mubr.msk.bf16.gmra.mrb[20].mxu0 %vm697_vm3, %v5621_v8  ;;  %v2416_v8 = vsel %vm6682_vm4, %v2411_v46, %v2415_v52 }
 0x15e   : > { %6022 = vmatmul.mubr.msk.bf16.gmra.mrb[20].mxu1 %vm697_vm3, %v5345_v44  ;;  %6161 = vmatprep.mubr.msk.bf16.mxu0 %vm697_vm3, %v5622_v56  ;;  %v5348_v56 = vcombine.low %v2416_v8, %v2426_v48 }
 0x15f   : > { %6025 = vmatprep.mubr.msk.bf16.mxu1 %vm697_vm3, %v5346_v3 }
 0x165   : > { %6162 = vmatmul.mubr.msk.bf16.gmra.mrb[24].mxu0 %vm697_vm3, %v5623_v43 }
 0x166   : > { %6026 = vmatmul.mubr.msk.bf16.gmra.mrb[24].mxu1 %vm697_vm3, %v5347_v62  ;;  %6165 = vmatprep.mubr.msk.bf16.mxu0 %vm697_vm3, %v5624_v50 }
 0x167   : > { %6029 = vmatprep.mubr.msk.bf16.mxu1 %vm697_vm3, %v5348_v56 }
 0x16d   : > { %6166 = vmatmul.mubr.msk.bf16.gmra.mrb[28].mxu0 %vm697_vm3, %v5625_v29 }
 0x16e   : > { %6030 = vmatmul.mubr.msk.bf16.gmra.mrb[28].mxu1 %vm697_vm3, %v5349_v14 }
 0x1e9   : > { %v5969_v63 = vpop.f32.mrb[0].mxu1 }
 0x1ea   : > { %v1860_v4 = vpop.f32.mrb[1].mxu1 }
 0x1eb   : > { %v5970_v43 = vpop.f32.mrb[2].mxu1 }
 0x1ec   : > { %v1863_v16 = vpop.f32.mrb[3].mxu1 }
 0x1f1   : > { %v5973_v58 = vpop.f32.mrb[4].mxu1 }
 0x1f2   : > { %v1876_v50 = vpop.f32.mrb[5].mxu1 }
 0x1f3   : > { %v5974_v54 = vpop.f32.mrb[6].mxu1 }
 0x1f4   : > { %v1879_v18 = vpop.f32.mrb[7].mxu1 }
 0x1f9   : > { %v5977_v11 = vpop.f32.mrb[8].mxu1 }
 0x1fa   : > { %v1892_v32 = vpop.f32.mrb[9].mxu1 }
 0x1fb   : > { %v8332_v24 = vpop.f32.mrb[10].mxu1 }
 0x1fc   : > { %v8334_v19 = vpop.f32.mrb[11].mxu1 }
 0x201   : > { %v8336_v5 = vpop.f32.mrb[12].mxu1 }
 0x202   : > { %v8338_v55 = vpop.f32.mrb[13].mxu1 }
 0x203   : > { %v8340_v29 = vpop.f32.mrb[14].mxu1 }
 0x204   : > { %v8342_v41 = vpop.f32.mrb[15].mxu1 }
 0x208   : > { %v6139_v52 = vpop.f32.mrb[0].mxu0 }
 0x209   : > { %v6171_v39 = vadd.f32 %v6139_v52, %v5969_v63  ;;  %v4611_v0 = vpop.f32.mrb[1].mxu0 }
 0x20a   : > { %v6172_v36 = vadd.f32 %v4611_v0, %v1860_v4  ;;  %v6140_v10 = vpop.f32.mrb[2].mxu0 }
 0x20b   : > { %v4779_v59 = vadd.f32 %v6171_v39, %v8347_v2  ;;  %v6173_v38 = vadd.f32 %v6140_v10, %v5970_v43  ;;  %v4614_v37 = vpop.f32.mrb[3].mxu0 }
 0x20c   : > { %v4777_v26 = vadd.f32 %v6172_v36, %v8347_v2  ;;  %v6174_v35 = vadd.f32 %v4614_v37, %v1863_v16 }
 0x20d   : > { %v4811_v34 = vmax.f32 %v4779_v59, 0.0  ;;  %v4780_v6 = vadd.f32 %v6173_v38, %v8347_v2 }
 0x20e   : > { %v4809_v49 = vmax.f32 %v4777_v26, 0.0  ;;  %v4778_v23 = vadd.f32 %v6174_v35, %v8347_v2 }
 0x20f   : > { %v5680_v25 = vpack.c.bf16 %v4811_v34, %v4811_v34  ;;  %v4812_v1 = vmax.f32 %v4780_v6, 0.0 }
 0x210   : > { %v5678_v7 = vpack.c.bf16 %v4809_v49, %v4809_v49  ;;  %v4810_v61 = vmax.f32 %v4778_v23, 0.0  ;;  %v6143_v22 = vpop.f32.mrb[4].mxu0 }
 0x211   : > { %4972 = vst.msk [vmem:[%s8356_s24 + $0x8] sm:$0xf] %vm4969_vm8, %v5680_v25  ;;  %v5681_v44 = vpack.c.bf16 %v4812_v1, %v4812_v1  ;;  %v6175_v3 = vadd.f32 %v6143_v22, %v5973_v58  ;;  %v4627_v51 = vpop.f32.mrb[5].mxu0 }
 0x212   : > { %4970 = vst.msk [vmem:[%s8356_s24] sm:$0xf] %vm4969_vm8, %v5678_v7  ;;  %v5679_v28 = vpack.c.bf16 %v4810_v61, %v4810_v61  ;;  %v6176_v45 = vadd.f32 %v4627_v51, %v1876_v50  ;;  %v6144_v27 = vpop.f32.mrb[6].mxu0 }
 0x213   : > { %4973 = vst.msk [vmem:[%s8356_s24 + $0xc] sm:$0xf] %vm4969_vm8, %v5681_v44  ;;  %v4783_v53 = vadd.f32 %v6175_v3, %v8347_v2  ;;  %v6177_v21 = vadd.f32 %v6144_v27, %v5974_v54  ;;  %v4630_v47 = vpop.f32.mrb[7].mxu0 }
 0x214   : > { %4971 = vst.msk [vmem:[%s8356_s24 + $0x4] sm:$0xf] %vm4969_vm8, %v5679_v28  ;;  %v4781_v46 = vadd.f32 %v6176_v45, %v8347_v2  ;;  %v6178_v15 = vadd.f32 %v4630_v47, %v1879_v18 }
 0x215   : > { %v4815_v60 = vmax.f32 %v4783_v53, 0.0  ;;  %v4784_v20 = vadd.f32 %v6177_v21, %v8347_v2 }
 0x216   : > { %v4813_v42 = vmax.f32 %v4781_v46, 0.0  ;;  %v4782_v33 = vadd.f32 %v6178_v15, %v8347_v2 }
 0x217   : > { %v5684_v12 = vpack.c.bf16 %v4815_v60, %v4815_v60  ;;  %v4816_v31 = vmax.f32 %v4784_v20, 0.0 }
 0x218   : > { %v5682_v57 = vpack.c.bf16 %v4813_v42, %v4813_v42  ;;  %v4814_v8 = vmax.f32 %v4782_v33, 0.0  ;;  %v6147_v48 = vpop.f32.mrb[8].mxu0 }
 0x219   : > { %4976 = vst.msk [vmem:[%s8356_s24 + $0x18] sm:$0xf] %vm4969_vm8, %v5684_v12  ;;  %v5685_v62 = vpack.c.bf16 %v4816_v31, %v4816_v31  ;;  %v6179_v56 = vadd.f32 %v6147_v48, %v5977_v11  ;;  %v4643_v40 = vpop.f32.mrb[9].mxu0 }
 0x21a   : > { %4974 = vst.msk [vmem:[%s8356_s24 + $0x10] sm:$0xf] %vm4969_vm8, %v5682_v57  ;;  %v5683_v13 = vpack.c.bf16 %v4814_v8, %v4814_v8  ;;  %v6180_v17 = vadd.f32 %v4643_v40, %v1892_v32  ;;  %v6148_v30 = vpop.f32.mrb[10].mxu0 }
 0x21b   : > { %4977 = vst.msk [vmem:[%s8356_s24 + $0x1c] sm:$0xf] %vm4969_vm8, %v5685_v62  ;;  %v4787_v9 = vadd.f32 %v6179_v56, %v8347_v2  ;;  %v6181_v14 = vadd.f32 %v6148_v30, %v8332_v24  ;;  %v4646_v63 = vpop.f32.mrb[11].mxu0 }
 0x21c   : > { %4975 = vst.msk [vmem:[%s8356_s24 + $0x14] sm:$0xf] %vm4969_vm8, %v5683_v13  ;;  %v4785_v4 = vadd.f32 %v6180_v17, %v8347_v2  ;;  %v6182_v43 = vadd.f32 %v4646_v63, %v8334_v19 }
 0x21d   : > { %v4819_v16 = vmax.f32 %v4787_v9, 0.0  ;;  %v4788_v58 = vadd.f32 %v6181_v14, %v8347_v2 }
 0x21e   : > { %v4817_v50 = vmax.f32 %v4785_v4, 0.0  ;;  %v4786_v54 = vadd.f32 %v6182_v43, %v8347_v2 }
 0x21f   : > { %v5688_v18 = vpack.c.bf16 %v4819_v16, %v4819_v16  ;;  %v4820_v11 = vmax.f32 %v4788_v58, 0.0 }
 0x220   : > { %v5686_v32 = vpack.c.bf16 %v4817_v50, %v4817_v50  ;;  %v4818_v24 = vmax.f32 %v4786_v54, 0.0  ;;  %v6151_v52 = vpop.f32.mrb[12].mxu0 }
 0x221   : > { %4980 = vst.msk [vmem:[%s8356_s24 + $0x28] sm:$0xf] %vm4969_vm8, %v5688_v18  ;;  %v5689_v39 = vpack.c.bf16 %v4820_v11, %v4820_v11  ;;  %v6183_v0 = vadd.f32 %v6151_v52, %v8336_v5  ;;  %v4659_v36 = vpop.f32.mrb[13].mxu0 }
 0x222   : > { %4978 = vst.msk [vmem:[%s8356_s24 + $0x20] sm:$0xf] %vm4969_vm8, %v5686_v32  ;;  %v5687_v19 = vpack.c.bf16 %v4818_v24, %v4818_v24  ;;  %v6184_v10 = vadd.f32 %v4659_v36, %v8338_v55  ;;  %v6152_v59 = vpop.f32.mrb[14].mxu0 }
 0x223   : > { %4981 = vst.msk [vmem:[%s8356_s24 + $0x2c] sm:$0xf] %vm4969_vm8, %v5689_v39  ;;  %v4791_v38 = vadd.f32 %v6183_v0, %v8347_v2  ;;  %v6185_v37 = vadd.f32 %v6152_v59, %v8340_v29  ;;  %v4662_v26 = vpop.f32.mrb[15].mxu0 }
 0x224   : > { %4979 = vst.msk [vmem:[%s8356_s24 + $0x24] sm:$0xf] %vm4969_vm8, %v5687_v19  ;;  %v4789_v5 = vadd.f32 %v6184_v10, %v8347_v2  ;;  %v6186_v35 = vadd.f32 %v4662_v26, %v8342_v41 }
 0x225   : > { %v4823_v34 = vmax.f32 %v4791_v38, 0.0  ;;  %v4792_v6 = vadd.f32 %v6185_v37, %v8347_v2 }
 0x226   : > { %v4821_v55 = vmax.f32 %v4789_v5, 0.0  ;;  %v4790_v49 = vadd.f32 %v6186_v35, %v8347_v2 }
 0x227   : > { %v5692_v23 = vpack.c.bf16 %v4823_v34, %v4823_v34  ;;  %v4824_v25 = vmax.f32 %v4792_v6, 0.0 }
 0x228   : > { %v5690_v1 = vpack.c.bf16 %v4821_v55, %v4821_v55  ;;  %v4822_v29 = vmax.f32 %v4790_v49, 0.0  ;;  %v6155_v7 = vpop.f32.mrb[16].mxu0 }
 0x229   : > { %4984 = vst.msk [vmem:[%s8356_s24 + $0x38] sm:$0xf] %vm4969_vm8, %v5692_v23  ;;  %v5693_v61 = vpack.c.bf16 %v4824_v25, %v4824_v25  ;;  %v6019_v22 = vpop.f32.mrb[16].mxu1  ;;  %v4675_v44 = vpop.f32.mrb[17].mxu0 }
 0x22a   : > { %4982 = vst.msk [vmem:[%s8356_s24 + $0x30] sm:$0xf] %vm4969_vm8, %v5690_v1  ;;  %v5691_v41 = vpack.c.bf16 %v4822_v29, %v4822_v29  ;;  %v6187_v3 = vadd.f32 %v6155_v7, %v6019_v22  ;;  %v2650_v51 = vpop.f32.mrb[17].mxu1  ;;  %v6156_v28 = vpop.f32.mrb[18].mxu0 }
 0x22b   : > { %4985 = vst.msk [vmem:[%s8356_s24 + $0x3c] sm:$0xf] %vm4969_vm8, %v5693_v61  ;;  %v6188_v45 = vadd.f32 %v4675_v44, %v2650_v51  ;;  %v6020_v27 = vpop.f32.mrb[18].mxu1  ;;  %v4678_v53 = vpop.f32.mrb[19].mxu0 }
 0x22c   : > { %4983 = vst.msk [vmem:[%s8356_s24 + $0x34] sm:$0xf] %vm4969_vm8, %v5691_v41  ;;  %v4795_v21 = vadd.f32 %v6187_v3, %v8347_v2  ;;  %v6189_v47 = vadd.f32 %v6156_v28, %v6020_v27  ;;  %v2653_v46 = vpop.f32.mrb[19].mxu1 }
 0x22d   : > { %v4793_v15 = vadd.f32 %v6188_v45, %v8347_v2  ;;  %v6190_v60 = vadd.f32 %v4678_v53, %v2653_v46 }
 0x22e   : > { %v4827_v20 = vmax.f32 %v4795_v21, 0.0  ;;  %v4796_v42 = vadd.f32 %v6189_v47, %v8347_v2 }
 0x22f   : > { %v4825_v33 = vmax.f32 %v4793_v15, 0.0  ;;  %v4794_v12 = vadd.f32 %v6190_v60, %v8347_v2 }
 0x230   : > { %v5696_v31 = vpack.c.bf16 %v4827_v20, %v4827_v20  ;;  %v4828_v57 = vmax.f32 %v4796_v42, 0.0  ;;  %v6159_v8 = vpop.f32.mrb[20].mxu0 }
 0x231   : > { %v5694_v48 = vpack.c.bf16 %v4825_v33, %v4825_v33  ;;  %v4826_v62 = vmax.f32 %v4794_v12, 0.0  ;;  %v6023_v56 = vpop.f32.mrb[20].mxu1  ;;  %v4691_v40 = vpop.f32.mrb[21].mxu0 }
 0x232   : > { %4988 = vst.msk [vmem:[%s8356_s24 + $0x48] sm:$0xf] %vm4969_vm8, %v5696_v31  ;;  %v5697_v13 = vpack.c.bf16 %v4828_v57, %v4828_v57  ;;  %v6191_v17 = vadd.f32 %v6159_v8, %v6023_v56  ;;  %v2666_v30 = vpop.f32.mrb[21].mxu1  ;;  %v6160_v9 = vpop.f32.mrb[22].mxu0 }
 0x233   : > { %4986 = vst.msk [vmem:[%s8356_s24 + $0x40] sm:$0xf] %vm4969_vm8, %v5694_v48  ;;  %v5695_v14 = vpack.c.bf16 %v4826_v62, %v4826_v62  ;;  %v6192_v63 = vadd.f32 %v4691_v40, %v2666_v30  ;;  %v6024_v4 = vpop.f32.mrb[22].mxu1  ;;  %v4694_v43 = vpop.f32.mrb[23].mxu0 }
 0x234   : > { %4989 = vst.msk [vmem:[%s8356_s24 + $0x4c] sm:$0xf] %vm4969_vm8, %v5697_v13  ;;  %v4799_v16 = vadd.f32 %v6191_v17, %v8347_v2  ;;  %v6193_v58 = vadd.f32 %v6160_v9, %v6024_v4  ;;  %v2669_v50 = vpop.f32.mrb[23].mxu1 }
 0x235   : > { %4987 = vst.msk [vmem:[%s8356_s24 + $0x44] sm:$0xf] %vm4969_vm8, %v5695_v14  ;;  %v4797_v54 = vadd.f32 %v6192_v63, %v8347_v2  ;;  %v6194_v18 = vadd.f32 %v4694_v43, %v2669_v50 }
 0x236   : > { %v4831_v11 = vmax.f32 %v4799_v16, 0.0  ;;  %v4800_v32 = vadd.f32 %v6193_v58, %v8347_v2 }
 0x237   : > { %v4829_v24 = vmax.f32 %v4797_v54, 0.0  ;;  %v4798_v52 = vadd.f32 %v6194_v18, %v8347_v2 }
 0x238   : > { %v5700_v39 = vpack.c.bf16 %v4831_v11, %v4831_v11  ;;  %v4832_v0 = vmax.f32 %v4800_v32, 0.0  ;;  %v6163_v36 = vpop.f32.mrb[24].mxu0 }
 0x239   : > { %v5698_v19 = vpack.c.bf16 %v4829_v24, %v4829_v24  ;;  %v4830_v10 = vmax.f32 %v4798_v52, 0.0  ;;  %v6027_v59 = vpop.f32.mrb[24].mxu1  ;;  %v4707_v38 = vpop.f32.mrb[25].mxu0 }
 0x23a   : > { %4992 = vst.msk [vmem:[%s8356_s24 + $0x58] sm:$0xf] %vm4969_vm8, %v5700_v39  ;;  %v5701_v37 = vpack.c.bf16 %v4832_v0, %v4832_v0  ;;  %v6195_v26 = vadd.f32 %v6163_v36, %v6027_v59  ;;  %v2682_v5 = vpop.f32.mrb[25].mxu1  ;;  %v6164_v35 = vpop.f32.mrb[26].mxu0 }
 0x23b   : > { %4990 = vst.msk [vmem:[%s8356_s24 + $0x50] sm:$0xf] %vm4969_vm8, %v5698_v19  ;;  %v5699_v34 = vpack.c.bf16 %v4830_v10, %v4830_v10  ;;  %v6196_v6 = vadd.f32 %v4707_v38, %v2682_v5  ;;  %v6028_v55 = vpop.f32.mrb[26].mxu1  ;;  %v4710_v49 = vpop.f32.mrb[27].mxu0 }
 0x23c   : > { %4993 = vst.msk [vmem:[%s8356_s24 + $0x5c] sm:$0xf] %vm4969_vm8, %v5701_v37  ;;  %v4803_v23 = vadd.f32 %v6195_v26, %v8347_v2  ;;  %v6197_v25 = vadd.f32 %v6164_v35, %v6028_v55  ;;  %v2685_v1 = vpop.f32.mrb[27].mxu1 }
 0x23d   : > { %4991 = vst.msk [vmem:[%s8356_s24 + $0x54] sm:$0xf] %vm4969_vm8, %v5699_v34  ;;  %v4801_v29 = vadd.f32 %v6196_v6, %v8347_v2  ;;  %v6198_v7 = vadd.f32 %v4710_v49, %v2685_v1 }
 0x23e   : > { %v4835_v61 = vmax.f32 %v4803_v23, 0.0  ;;  %v4804_v22 = vadd.f32 %v6197_v25, %v8347_v2 }
 0x23f   : > { %v4833_v44 = vmax.f32 %v4801_v29, 0.0  ;;  %v4802_v41 = vadd.f32 %v6198_v7, %v8347_v2 }
 0x240   : > { %v5704_v3 = vpack.c.bf16 %v4835_v61, %v4835_v61  ;;  %v4836_v51 = vmax.f32 %v4804_v22, 0.0  ;;  %v6167_v28 = vpop.f32.mrb[28].mxu0 }
 0x241   : > { %v5702_v45 = vpack.c.bf16 %v4833_v44, %v4833_v44  ;;  %v4834_v27 = vmax.f32 %v4802_v41, 0.0  ;;  %v6031_v53 = vpop.f32.mrb[28].mxu1  ;;  %v4723_v21 = vpop.f32.mrb[29].mxu0 }
 0x242   : > { %4996 = vst.msk [vmem:[%s8356_s24 + $0x68] sm:$0xf] %vm4969_vm8, %v5704_v3  ;;  %v5705_v47 = vpack.c.bf16 %v4836_v51, %v4836_v51  ;;  %v6199_v46 = vadd.f32 %v6167_v28, %v6031_v53  ;;  %v2698_v15 = vpop.f32.mrb[29].mxu1  ;;  %v6168_v60 = vpop.f32.mrb[30].mxu0 }
 0x243   : > { %4994 = vst.msk [vmem:[%s8356_s24 + $0x60] sm:$0xf] %vm4969_vm8, %v5702_v45  ;;  %v5703_v20 = vpack.c.bf16 %v4834_v27, %v4834_v27  ;;  %v6200_v42 = vadd.f32 %v4723_v21, %v2698_v15  ;;  %v6032_v33 = vpop.f32.mrb[30].mxu1  ;;  %v4726_v12 = vpop.f32.mrb[31].mxu0 }
 0x244   : > { %4997 = vst.msk [vmem:[%s8356_s24 + $0x6c] sm:$0xf] %vm4969_vm8, %v5705_v47  ;;  %v4807_v31 = vadd.f32 %v6199_v46, %v8347_v2  ;;  %v6201_v57 = vadd.f32 %v6168_v60, %v6032_v33  ;;  %v2701_v8 = vpop.f32.mrb[31].mxu1 }
 0x245   : > { %4995 = vst.msk [vmem:[%s8356_s24 + $0x64] sm:$0xf] %vm4969_vm8, %v5703_v20  ;;  %v4805_v48 = vadd.f32 %v6200_v42, %v8347_v2  ;;  %v6202_v62 = vadd.f32 %v4726_v12, %v2701_v8 }
 0x246   : > { %v4839_v56 = vmax.f32 %v4807_v31, 0.0  ;;  %v4808_v40 = vadd.f32 %v6201_v57, %v8347_v2 }
 0x247   : > { %v4837_v13 = vmax.f32 %v4805_v48, 0.0  ;;  %v4806_v17 = vadd.f32 %v6202_v62, %v8347_v2 }
 0x248   : > { %v5708_v30 = vpack.c.bf16 %v4839_v56, %v4839_v56  ;;  %v4840_v9 = vmax.f32 %v4808_v40, 0.0 }
 0x249   : > { %v5706_v14 = vpack.c.bf16 %v4837_v13, %v4837_v13  ;;  %v4838_v63 = vmax.f32 %v4806_v17, 0.0 }
 0x24a   : > { %5000 = vst.msk [vmem:[%s8356_s24 + $0x78] sm:$0xf] %vm4969_vm8, %v5708_v30  ;;  %v5709_v4 = vpack.c.bf16 %v4840_v9, %v4840_v9 }
 0x24b   : > { %4998 = vst.msk [vmem:[%s8356_s24 + $0x70] sm:$0xf] %vm4969_vm8, %v5706_v14  ;;  %v5707_v43 = vpack.c.bf16 %v4838_v63, %v4838_v63 }
 0x24c   : > { %5001 = vst.msk [vmem:[%s8356_s24 + $0x7c] sm:$0xf] %vm4969_vm8, %v5709_v4 }
 0x24d   : > { %4999 = vst.msk [vmem:[%s8356_s24 + $0x74] sm:$0xf] %vm4969_vm8, %v5707_v43 }
 0x24e PF: > { %s13_s14 = sadd.s32 1, %s6589_s14   ;;  %s8537_s12 = smov %s6585_s13 }
 0x24f   : > { %p10_p5 = scmp.ge.s32.totalorder %s13_s14, 4   ;;  %s8538_s13 = smov %s8540_s15 }
 0x251   :  { %12 = sbr.rel (!%p10_p5) target bundleno = 2 (0x2), region = 72 }

// kernel: wct2_features_forward.3
= control target key start
LH: loop header
LB: loop body
LE: loop exit
PB: predicated region body
PF: predicated region fallthrough
CT: control target
= control target key end

     0   :  { %8 = vsyncpa [#allocation3], 0  ;;  %s9277_s0 = inlined_call_operand.vmem [shape: bf16[2,1,18,18,64], index: 0, kind: input, shape index: {}]   ;;  %s9278_s1 = inlined_call_operand.vmem [shape: bf16[9,64,64], index: 1, kind: input, shape index: {}]   ;;  %s9279_s2 = inlined_call_operand.vmem [shape: f32[1,64], index: 2, kind: input, shape index: {}]   ;;  %s9280_s3 = inlined_call_operand.hbm [shape: f32[2,16,16,64], index: 3, kind: output, shape index: {}]  }
   0x1   :  { %10 = vsyncpa [#allocation3 + $0x1], 0  ;;  %s7191_s12 = smov 0   ;;  %s7193_s13 = smov 0  }
   0x2   :  { %s7195_s14 = smov 0   ;;  %s7197_s15 = smov 0  }
   0x3   :  { %s7199_s16 = smov 0   ;;  %s7201_s17 = smov 0  }
   0x4 LB: > { %s5434_s18 = sadd.s32 4294967295, %s7166_s17   ;;  %s5435_s19 = sadd.s32 4294967294, %s7166_s17   ;;  %s7166_s17 = sphi %s7201_s17, %s16_s17   ;;  %s7162_s16 = sphi %s7199_s16, %s9353_s16   ;;  %s7158_s15 = sphi %s7197_s15, %s9352_s15   ;;  %s7154_s14 = sphi %s7195_s14, %s9351_s14   ;;  %s7150_s13 = sphi %s7193_s13, %s9350_s13   ;;  %s7146_s12 = sphi %s7191_s12, %s9349_s12  }
   0x5   : > { %s28_s20 = sadd.s32 1, %s7162_s16  ;;  %s107_s21 = sadd.s32 1, %s7154_s14 }
   0x6   : > { %p30_p0 = scmp.ge.s32.totalorder %s28_s20, 2  ;;  %p117_p1 = scmp.ne.s32.totalorder %s7154_s14, %s7150_s13 }
   0x7   : > { %p118_p2 = scmp.eq.s32.totalorder %s5434_s18, 1  ;;  %p123_p3 = scmp.ne.s32.totalorder %s7150_s13, %s7146_s12 }
   0x8   : > { %s9355_s20 = smov (%p30_p0, %s28_s20), 0  ;;  %p124_p5 = scmp.eq.s32.totalorder %s5435_s19, 1 }
   0x9   : > { %p7231_p4 = por %p118_p2, %p117_p1  ;;  %s102_s23 = ssub.s32 %s7162_s16, %s9355_s20 }
   0xa   : > { %p5438_p6 = scmp.ge.s32.totalorder %s7166_s17, 1  ;;  %p105_p7 = scmp.eq.s32.totalorder %s102_s23, 0 }
   0xb   : > { %p7238_p8 = por %p124_p5, %p123_p3  ;;  %p160_p9 = scmp.lt.s32.totalorder %s7166_s17, 3 }
   0xc   : > { %s7244_s25 = scalar_select %p105_p7, %s7154_s14, %s107_s21  }
   0xd   : > { %p161_p10 = pnand %p5438_p6, %p160_p9 }
   0xf   : > { %164 = sbr.rel (%p161_p10) target bundleno = 622 (0x26e), region = 32 }
  0x16   : > { %v6938_v0 = vld [vmem:[%s9278_s1 + $0x20] sm:$0xff]   ;;  %p188_p11 = scmp.lt.s32.totalorder %s7158_s15, 1  ;;  %v6940_v2 = vld [vmem:[%s9278_s1 + $0x28] sm:$0xff]   ;;  %v6942_v4 = vld [vmem:[%s9278_s1 + $0x30] sm:$0xff]   ;;  %vm255_vm0 = vsmask.f32 3328 }
  0x17   : > { %v6939_v1 = vld [vmem:[%s9278_s1 + $0x80] sm:$0xff]   ;;  %6256 = vmatprep.subr.bf16.mxu1 %v6938_v0  ;;  %v6941_v3 = vld [vmem:[%s9278_s1 + $0x88] sm:$0xff]   ;;  %v6943_v5 = vld [vmem:[%s9278_s1 + $0x90] sm:$0xff]   ;;  %vm256_vm1 = vsmask.f32 7440  ;;  %vm723_vm3 = vcmask 523264  }
  0x18   : > { %s189_s5 = scalar_select %p188_p11, %s7158_s15, 1  ;;  %6416 = vmatprep.subr.bf16.mxu0 %v6939_v1  ;;  %6257 = vmatpush3.bf16.msra.mxu1 %v6938_v0  ;;  %v6944_v6 = vld [vmem:[%s9278_s1 + $0x38] sm:$0xff]   ;;  %v7283_v18 = vld [vmem:[%s9278_s1] sm:$0xff]   ;;  %vm7299_vm2 = vmor %vm255_vm0, %vm256_vm1  ;;  %vm1294_vm4 = vcmask 1042432   ;;  %vm1295_vm5 = vcmask 1046532   ;;  %vm5141_vm8 = vcmask 1046528  }
  0x19   : > { %6417 = vmatpush3.bf16.msra.mxu0 %v6939_v1  ;;  %6258 = vmatprep.subr.bf16.mxu1 %v6940_v2  ;;  %v6945_v7 = vld [vmem:[%s9278_s1 + $0x98] sm:$0xff]   ;;  %v7289_v23 = vld [vmem:[%s9278_s1 + $0xa0] sm:$0xff]   ;;  %vm7532_vm6 = vmor %vm1294_vm4, %vm1295_vm5  ;;  %vm5214_vm10 = vcmask 1040384   ;;  %s185_s6 = sand.u32 1, %s7150_s13   ;;  %s6075_s9 = sshll.u32 %s7158_s15, 12 }
  0x1a   : > { %s6880_s10 = smul.u32 216, %s189_s5  ;;  %6418 = vmatprep.subr.bf16.mxu0 %v6941_v3  ;;  %s5439_s7 = sshll.u32 %s185_s6, 8 }
  0x1b   : > { %s9070_s8 = scalar_lea.vmem [#allocation2], %s5439_s7  ;;  %s9217_s19 = scalar_lea.hbm %s9280_s3, %s6075_s9 }
  0x1c   : > { %s7272_s27 = scalar_lea.vmem %s9277_s0, %s6880_s10  ;;  %6259 = vmatpush3.bf16.msra.mxu1 %v6940_v2  ;;  %s5352_s10 = sshll.u32 %s9070_s8, 4  ;;  %s9219_s10 = int_to_ptr.vmem [resolvable:$true] %s5352_s10 }
  0x1d   : > { %6419 = vmatpush3.bf16.msra.mxu0 %v6941_v3  ;;  %6260 = vmatprep.subr.bf16.mxu1 %v6942_v4  ;;  %v199_v8 = vld [vmem:[%s7272_s27] sm:$0xf]  ;;  %v200_v9 = vld [vmem:[%s7272_s27 + $0x4] sm:$0xf]  ;;  %v239_v10 = vld [vmem:[%s7272_s27 + $0x8] sm:$0x1] }
  0x1e   : > { %6420 = vmatprep.subr.bf16.mxu0 %v6943_v5  ;;  %v259_v11 = vshrl.u32 %v199_v8, 16  ;;  %v262_v12 = vshll.u32 %v199_v8, 16  ;;  %v268_v13 = vshll.u32 %v200_v9, 16  ;;  %v272_v14 = vshrl.u32 %v200_v9, 16  ;;  %v5657_v22 = vld [vmem:[%s7272_s27 + $0xc] sm:$0xf] }
  0x1f   : > { %v278_v15 = vshll.u32 %v239_v10, 16  ;;  %v7292_v25 = vld [vmem:[%s7272_s27 + $0x10] sm:$0xf]  ;;  %v7295_v26 = vld [vmem:[%s7272_s27 + $0x14] sm:$0x1]  ;;  %v2167_v27 = vshrl.u32 %v5657_v22, 16 }
  0x20   : > { %6261 = vmatpush3.bf16.msra.mxu1 %v6942_v4  ;;  %v261_v16 = vrot.slane %v259_v11, 4  ;;  %v264_v17 = vrot.slane %v262_v12, 5  ;;  %v270_v19 = vrot.slane %v268_v13, 5  ;;  %v274_v20 = vrot.slane %v272_v14, 4  ;;  %v201_v40 = vld [vmem:[%s7272_s27 + $0xc] sm:$0xf] }
  0x21   : > { %6421 = vmatpush3.bf16.msra.mxu0 %v6943_v5  ;;  %6262 = vmatprep.subr.bf16.mxu1 %v6944_v6  ;;  %v280_v21 = vrot.slane %v278_v15, 5  ;;  %v2170_v28 = vshll.u32 %v5657_v22, 16  ;;  %v2176_v31 = vshll.u32 %v7292_v25, 16  ;;  %v2180_v32 = vshrl.u32 %v7292_v25, 16  ;;  %v202_v44 = vld [vmem:[%s7272_s27 + $0x10] sm:$0xf] }
  0x22   : > { %6422 = vmatprep.subr.bf16.mxu0 %v6945_v7  ;;  %v265_v24 = vor.u32 %v264_v17, %v261_v16  ;;  %v275_v30 = vor.u32 %v274_v20, %v270_v19  ;;  %v2186_v33 = vshll.u32 %v7295_v26, 16  ;;  %v2169_v35 = vrot.slane %v2167_v27, 4  ;;  %v240_v45 = vld [vmem:[%s7272_s27 + $0x14] sm:$0x1]  ;;  %v5660_v55 = vld [vmem:[%s7272_s27 + $0x18] sm:$0xf] }
  0x23   : > { %v2172_v36 = vrot.slane %v2170_v28, 5  ;;  %v2178_v38 = vrot.slane %v2176_v31, 5  ;;  %v2182_v39 = vrot.slane %v2180_v32, 4  ;;  %v283_v46 = vshrl.u32 %v201_v40, 16  ;;  %v7317_v60 = vld [vmem:[%s7272_s27 + $0x1c] sm:$0xf] }
  0x24   : > { %6263 = vmatpush3.bf16.msra.mxu1 %v6944_v6  ;;  %v266_v34 = vrot.slane %v265_v24, 4  ;;  %v276_v37 = vrot.slane %v275_v30, 4  ;;  %v2188_v43 = vrot.slane %v2186_v33, 5  ;;  %v286_v49 = vshll.u32 %v201_v40, 16  ;;  %v7325_v1 = vld [vmem:[%s7272_s27 + $0x20] sm:$0x1] }
  0x25   : > { %6423 = vmatpush3.bf16.msra.mxu0 %v6945_v7  ;;  %6296 = vmatprep.subr.bf16.mxu1 %v7283_v18  ;;  %v2173_v42 = vor.u32 %v2172_v36, %v2169_v35  ;;  %v2183_v48 = vor.u32 %v2182_v39, %v2178_v38  ;;  %v292_v50 = vshll.u32 %v202_v44, 16  ;;  %v285_v53 = vrot.slane %v283_v46, 4  ;;  %v203_v10 = vld [vmem:[%s7272_s27 + $0x18] sm:$0xf]  ;;  %v204_v11 = vld [vmem:[%s7272_s27 + $0x1c] sm:$0xf] }
  0x26   : > { %v271_v41 = vsel %vm7299_vm2, %v266_v34, %v270_v19  ;;  %6456 = vmatprep.subr.bf16.mxu0 %v7289_v23  ;;  %v281_v47 = vsel %vm7299_vm2, %v276_v37, %v280_v21  ;;  %v296_v54 = vshrl.u32 %v202_v44, 16  ;;  %v288_v57 = vrot.slane %v286_v49, 5  ;;  %v241_v28 = vld [vmem:[%s7272_s27 + $0x20] sm:$0x1]  ;;  %v5663_v34 = vld [vmem:[%s7272_s27 + $0x24] sm:$0xf] }
  0x27   : > { %v5449_v51 = vcombine.low %v271_v41, %v281_v47  ;;  %v2174_v52 = vrot.slane %v2173_v42, 4  ;;  %v2184_v56 = vrot.slane %v2183_v48, 4  ;;  %v294_v58 = vrot.slane %v292_v50, 5  ;;  %v6949_v39 = vld [vmem:[%s9278_s1 + $0x8] sm:$0xff]   ;;  %s9231_s15 = scalar_lea.sflag [#allocation3], %s185_s6  ;;  %s7088_s21 = scalar_lea.vmem %s9219_s10, 4096 }
  0x28   : > { %v302_v59 = vshll.u32 %v240_v45, 16  ;;  %v2938_v62 = vrot.slane %v7292_v25, 5  ;;  %v2941_v63 = vrot.slane %v7295_v26, 5  ;;  %v298_v0 = vrot.slane %v296_v54, 4  ;;  %v7351_v44 = vld [vmem:[%s7272_s27 + $0x28] sm:$0xf]  ;;  %p7089_p12 = scmp.ne.s32.totalorder %s9219_s10, %s7088_s21 }
  0x29   : > { %6264 = vmatprep.mubr.msk.bf16.mxu1 %vm723_vm3, %v5449_v51  ;;  %v2179_v61 = vsel %vm7299_vm2, %v2174_v52, %v2178_v38  ;;  %v2189_v2 = vsel %vm7299_vm2, %v2184_v56, %v2188_v43  ;;  %v289_v3 = vor.u32 %v288_v57, %v285_v53  ;;  %v2191_v5 = vshrl.u32 %v5660_v55, 16  ;;  %v7355_v48 = vld [vmem:[%s7272_s27 + $0x2c] sm:$0x1]  ;;  %v6952_v56 = vld [vmem:[%s9278_s1 + $0x10] sm:$0xff]   ;;  %s7168_s23 = smov [#allocation2]  }
  0x2a   : > { %v304_v4 = vrot.slane %v302_v59, 5  ;;  %v5713_v6 = vcombine.low %v2179_v61, %v2189_v2  ;;  %v299_v7 = vor.u32 %v298_v0, %v294_v58  ;;  %v2194_v8 = vshll.u32 %v5660_v55, 16  ;;  %v6948_v54 = vld [vmem:[%s9278_s1 + $0xa8] sm:$0xff]   ;;  %v205_v55 = vld [vmem:[%s7272_s27 + $0x24] sm:$0xf]  ;;  %p7090_p13 = pnand %p7089_p12, %p7231_p4  ;;  %s7092_s26 = sshll.u32 %s7168_s23, 4  ;;  %s7093_s26 = int_to_ptr.vmem [resolvable:$false] %s7092_s26 }
  0x2b   : > { %v2200_v9 = vshll.u32 %v7317_v60, 16  ;;  %v290_v12 = vrot.slane %v289_v3, 4  ;;  %v2193_v13 = vrot.slane %v2191_v5, 4  ;;  %v2204_v14 = vshrl.u32 %v7317_v60, 16  ;;  %v206_v61 = vld [vmem:[%s7272_s27 + $0x28] sm:$0xf]  ;;  %p7095_p1 = scmp.lt.s32.totalorder %s9219_s10, %s7093_s26 }
  0x2c   : > { %v2210_v15 = vshll.u32 %v7325_v1, 16  ;;  %6424 = vmatprep.mubr.msk.bf16.mxu0 %vm723_vm3, %v5713_v6  ;;  %v300_v16 = vrot.slane %v299_v7, 4  ;;  %v2196_v17 = vrot.slane %v2194_v8, 5  ;;  %v2945_v20 = vrot.slane %v7317_v60, 5  ;;  %v242_v5 = vld [vmem:[%s7272_s27 + $0x2c] sm:$0x1]  ;;  %p7091_p0 = pneg %p7090_p13 }
  0x2d   : > { %v2202_v19 = vrot.slane %v2200_v9, 5  ;;  %v295_v21 = vsel %vm7299_vm2, %v290_v12, %v294_v58  ;;  %v2206_v22 = vrot.slane %v2204_v14, 4  ;;  %v2948_v27 = vrot.slane %v7325_v1, 5  ;;  %s7094_s28 = scalar_lea.vmem %s7093_s26, 8192 }
  0x2e   : > { %v2212_v24 = vrot.slane %v2210_v15, 5  ;;  %v305_v30 = vsel %vm7299_vm2, %v300_v16, %v304_v4  ;;  %v2197_v31 = vor.u32 %v2196_v17, %v2193_v13  ;;  %v7344_v32 = vrot.slane %v2945_v20, 4  ;;  %v7377_v15 = vld [vmem:[%s7272_s27 + $0x34] sm:$0xf]  ;;  %p7096_p2 = scmp.lt.s32.totalorder %s7094_s28, %s7088_s21 }
  0x2f   : > { %v307_v33 = vshrl.u32 %v203_v10, 16  ;;  %v5450_v35 = vcombine.low %v295_v21, %v305_v30  ;;  %v2207_v36 = vor.u32 %v2206_v22, %v2202_v19  ;;  %v310_v37 = vshll.u32 %v203_v10, 16  ;;  %v5666_v10 = vld [vmem:[%s7272_s27 + $0x30] sm:$0xf] }
  0x30   : > { %v316_v38 = vshll.u32 %v204_v11, 16  ;;  %v2198_v40 = vrot.slane %v2197_v31, 4  ;;  %v320_v42 = vshrl.u32 %v204_v11, 16  ;;  %v326_v43 = vshll.u32 %v241_v28, 16  ;;  %v6950_v31 = vld [vmem:[%s9278_s1 + $0xb0] sm:$0xff]   ;;  %p7097_p3 = por %p7096_p2, %p7095_p1 }
  0x31   : > { %v309_v41 = vrot.slane %v307_v33, 4  ;;  %6265 = vmatmul.mubr.msk.bf16.vlgmr.msra.gmra.mrb[0].mxu1 %vm723_vm3, %v5450_v35  ;;  %v2208_v45 = vrot.slane %v2207_v36, 4  ;;  %v312_v46 = vrot.slane %v310_v37, 5  ;;  %v2215_v49 = vshrl.u32 %v5663_v34, 16 }
  0x32   : > { %v318_v47 = vrot.slane %v316_v38, 5  ;;  %6297 = vmatpush3.bf16.msra.mxu1 %v7283_v18  ;;  %v2203_v50 = vsel %vm7299_vm2, %v2198_v40, %v2202_v19  ;;  %v322_v51 = vrot.slane %v320_v42, 4  ;;  %v328_v52 = vrot.slane %v326_v43, 5  ;;  %v7393_v40 = vld [vmem:[%s7272_s27 + $0x38] sm:$0x1]  ;;  %p7098_p5 = pnand %p7097_p3, %p7091_p0 }
  0x33   : > { %v2218_v53 = vshll.u32 %v5663_v34, 16  ;;  %v2213_v18 = vsel %vm7299_vm2, %v2208_v45, %v2212_v24  ;;  %v313_v57 = vor.u32 %v312_v46, %v309_v41  ;;  %v2217_v58 = vrot.slane %v2215_v49, 4  ;;  %6298 = vmatprep.subr.bf16.mxu1 %v6949_v39  ;;  %v6951_v42 = vld [vmem:[%s9278_s1 + $0xb8] sm:$0xff]   ;;  %v207_v49 = vld [vmem:[%s7272_s27 + $0x30] sm:$0xf] }
  0x34   : > { %v2224_v59 = vshll.u32 %v7351_v44, 16  ;;  %v5714_v0 = vcombine.low %v2203_v50, %v2213_v18  ;;  %v323_v2 = vor.u32 %v322_v51, %v318_v47  ;;  %v2228_v4 = vshrl.u32 %v7351_v44, 16 }
  0x35   : > { %v2220_v3 = vrot.slane %v2218_v53, 5  ;;  %v314_v6 = vrot.slane %v313_v57, 4  ;;  %v2234_v8 = vshll.u32 %v7355_v48, 16  ;;  %v331_v9 = vshrl.u32 %v205_v55, 16 }
  0x36   : > { %v2226_v7 = vrot.slane %v2224_v59, 5  ;;  %6425 = vmatmul.mubr.msk.bf16.vlgmr.msra.gmra.mrb[0].mxu0 %vm723_vm3, %v5714_v0  ;;  %v324_v11 = vrot.slane %v323_v2, 4  ;;  %v2230_v13 = vrot.slane %v2228_v4, 4  ;;  %v334_v14 = vshll.u32 %v205_v55, 16  ;;  %6299 = vmatpush3.bf16.msra.mxu1 %v6949_v39  ;;  %v208_v55 = vld [vmem:[%s7272_s27 + $0x34] sm:$0xf] }
  0x37   : > { %v2221_v12 = vor.u32 %v2220_v3, %v2217_v58  ;;  %6457 = vmatpush3.bf16.msra.mxu0 %v7289_v23  ;;  %v319_v16 = vsel %vm7299_vm2, %v314_v6, %v318_v47  ;;  %v2236_v17 = vrot.slane %v2234_v8, 5  ;;  %v333_v19 = vrot.slane %v331_v9, 4  ;;  %6300 = vmatprep.subr.bf16.mxu1 %v6952_v56  ;;  %v6954_v23 = vld [vmem:[%s9278_s1 + $0x18] sm:$0xff]  }
  0x38   : > { %v340_v21 = vshll.u32 %v206_v61, 16  ;;  %v329_v22 = vsel %vm7299_vm2, %v324_v11, %v328_v52  ;;  %v2231_v28 = vor.u32 %v2230_v13, %v2226_v7  ;;  %6458 = vmatprep.subr.bf16.mxu0 %v6948_v54  ;;  %v336_v30 = vrot.slane %v334_v14, 5  ;;  %v7417_v13 = vld [vmem:[%s9278_s1 + $0xc0] sm:$0xff]  }
  0x39   : > { %v2222_v24 = vrot.slane %v2221_v12, 4  ;;  %v5451_v33 = vcombine.low %v319_v16, %v329_v22  ;;  %v344_v35 = vshrl.u32 %v206_v61, 16  ;;  %v350_v36 = vshll.u32 %v242_v5, 16  ;;  %v243_v5 = vld [vmem:[%s7272_s27 + $0x38] sm:$0x1] }
  0x3a   : > { %v342_v34 = vrot.slane %v340_v21, 5  ;;  %v2232_v38 = vrot.slane %v2231_v28, 4  ;;  %v337_v39 = vor.u32 %v336_v30, %v333_v19  ;;  %v2239_v41 = vshrl.u32 %v5666_v10, 16  ;;  %6301 = vmatpush3.bf16.msra.mxu1 %v6952_v56  ;;  %v6957_v56 = vld [vmem:[%s9278_s1 + $0x40] sm:$0xff]   ;;  %v5669_v12 = vld [vmem:[%s7272_s27 + $0x3c] sm:$0xf] }
  0x3b   : > { %v2227_v37 = vsel %vm7299_vm2, %v2222_v24, %v2226_v7  ;;  %6268 = vmatprep.mubr.msk.bf16.mxu1 %vm723_vm3, %v5451_v33  ;;  %v346_v43 = vrot.slane %v344_v35, 4  ;;  %v352_v45 = vrot.slane %v350_v36, 5  ;;  %v2242_v46 = vshll.u32 %v5666_v10, 16  ;;  %6459 = vmatpush3.bf16.msra.mxu0 %v6948_v54  ;;  %v7422_v21 = vld [vmem:[%s7272_s27 + $0x40] sm:$0xf] }
  0x3c   : > { %v2248_v47 = vshll.u32 %v7377_v15, 16  ;;  %v2237_v50 = vsel %vm7299_vm2, %v2232_v38, %v2236_v17  ;;  %v338_v51 = vrot.slane %v337_v39, 4  ;;  %v2241_v52 = vrot.slane %v2239_v41, 4  ;;  %6460 = vmatprep.subr.bf16.mxu0 %v6950_v31  ;;  %6302 = vmatprep.subr.bf16.mxu1 %v6954_v23  ;;  %v7427_v33 = vld [vmem:[%s7272_s27 + $0x44] sm:$0x1] }
  0x3d   : > { %v2252_v53 = vshrl.u32 %v7377_v15, 16  ;;  %v5715_v18 = vcombine.low %v2227_v37, %v2237_v50  ;;  %v347_v57 = vor.u32 %v346_v43, %v342_v34  ;;  %v2244_v58 = vrot.slane %v2242_v46, 5  ;;  %v209_v41 = vld [vmem:[%s7272_s27 + $0x3c] sm:$0xf] }
  0x3e   : > { %v2250_v54 = vrot.slane %v2248_v47, 5  ;;  %v343_v59 = vsel %vm7299_vm2, %v338_v51, %v342_v34  ;;  %v2258_v0 = vshll.u32 %v7393_v40, 16  ;;  %v355_v2 = vshrl.u32 %v207_v49, 16  ;;  %6303 = vmatpush3.bf16.msra.mxu1 %v6954_v23 }
  0x3f   : > { %v2254_v61 = vrot.slane %v2252_v53, 4  ;;  %6428 = vmatprep.mubr.msk.bf16.mxu0 %vm723_vm3, %v5715_v18  ;;  %v348_v3 = vrot.slane %v347_v57, 4  ;;  %v2245_v4 = vor.u32 %v2244_v58, %v2241_v52  ;;  %v358_v6 = vshll.u32 %v207_v49, 16  ;;  %6461 = vmatpush3.bf16.msra.mxu0 %v6950_v31  ;;  %v210_v49 = vld [vmem:[%s7272_s27 + $0x40] sm:$0xf] }
  0x40   : > { %v364_v7 = vshll.u32 %v208_v55, 16  ;;  %v2260_v9 = vrot.slane %v2258_v0, 5  ;;  %v357_v10 = vrot.slane %v355_v2, 4  ;;  %v368_v11 = vshrl.u32 %v208_v55, 16  ;;  %6462 = vmatprep.subr.bf16.mxu0 %v6951_v42  ;;  %6336 = vmatprep.subr.bf16.mxu1 %v6957_v56  ;;  %v244_v56 = vld [vmem:[%s7272_s27 + $0x44] sm:$0x1] }
  0x41   : > { %v2255_v8 = vor.u32 %v2254_v61, %v2250_v54  ;;  %v353_v14 = vsel %vm7299_vm2, %v348_v3, %v352_v45  ;;  %v2246_v16 = vrot.slane %v2245_v4, 4  ;;  %v360_v17 = vrot.slane %v358_v6, 5  ;;  %v5672_v58 = vld [vmem:[%s7272_s27 + $0x48] sm:$0xf]  ;;  %v7446_v2 = vld [vmem:[%s7272_s27 + $0x4c] sm:$0xf] }
  0x42   : > { %v366_v19 = vrot.slane %v364_v7, 5  ;;  %v5452_v22 = vcombine.low %v343_v59, %v353_v14  ;;  %v370_v28 = vrot.slane %v368_v11, 4  ;;  %v374_v30 = vshll.u32 %v243_v5, 16  ;;  %v7449_v7 = vld [vmem:[%s7272_s27 + $0x50] sm:$0x1] }
  0x43   : > { %v2256_v24 = vrot.slane %v2255_v8, 4  ;;  %v2251_v31 = vsel %vm7299_vm2, %v2246_v16, %v2250_v54  ;;  %v361_v23 = vor.u32 %v360_v17, %v357_v10  ;;  %v2263_v34 = vshrl.u32 %v5669_v12, 16  ;;  %6463 = vmatpush3.bf16.msra.mxu0 %v6951_v42 }
  0x44   : > { %v2266_v35 = vshll.u32 %v5669_v12, 16  ;;  %6269 = vmatmul.mubr.msk.bf16.gmra.mrb[4].mxu1 %vm723_vm3, %v5452_v22  ;;  %v371_v37 = vor.u32 %v370_v28, %v366_v19  ;;  %v376_v38 = vrot.slane %v374_v30, 5  ;;  %v2272_v39 = vshll.u32 %v7422_v21, 16  ;;  %6496 = vmatprep.subr.bf16.mxu0 %v7417_v13 }
  0x45   : > { %v2261_v36 = vsel %vm7299_vm2, %v2256_v24, %v2260_v9  ;;  %v362_v45 = vrot.slane %v361_v23, 4  ;;  %v2265_v46 = vrot.slane %v2263_v34, 4  ;;  %v2276_v51 = vshrl.u32 %v7422_v21, 16 }
  0x46   : > { %v5716_v43 = vcombine.low %v2251_v31, %v2261_v36  ;;  %v2268_v47 = vrot.slane %v2266_v35, 5  ;;  %v372_v42 = vrot.slane %v371_v37, 4  ;;  %v2274_v50 = vrot.slane %v2272_v39, 5 }
  0x47   : > { %v2282_v52 = vshll.u32 %v7427_v33, 16  ;;  %v367_v53 = vsel %vm7299_vm2, %v362_v45, %v366_v19  ;;  %v379_v18 = vshrl.u32 %v209_v41, 16  ;;  %v382_v57 = vshll.u32 %v209_v41, 16  ;;  %v211_v19 = vld [vmem:[%s7272_s27 + $0x48] sm:$0xf] }
  0x48   : > { %6429 = vmatmul.mubr.msk.bf16.gmra.mrb[4].mxu0 %vm723_vm3, %v5716_v43  ;;  %v2269_v55 = vor.u32 %v2268_v47, %v2265_v46  ;;  %v377_v54 = vsel %vm7299_vm2, %v372_v42, %v376_v38  ;;  %v2278_v59 = vrot.slane %v2276_v51, 4  ;;  %v388_v0 = vshll.u32 %v210_v49, 16  ;;  %v212_v41 = vld [vmem:[%s7272_s27 + $0x4c] sm:$0xf] }
  0x49   : > { %v2284_v61 = vrot.slane %v2282_v52, 5  ;;  %v5453_v3 = vcombine.low %v367_v53, %v377_v54  ;;  %v381_v5 = vrot.slane %v379_v18, 4  ;;  %v384_v6 = vrot.slane %v382_v57, 5  ;;  %v5675_v57 = vld [vmem:[%s7272_s27 + $0x54] sm:$0xf] }
  0x4a   : > { %v2270_v4 = vrot.slane %v2269_v55, 4  ;;  %v2279_v8 = vor.u32 %v2278_v59, %v2274_v50  ;;  %v390_v9 = vrot.slane %v388_v0, 5  ;;  %v392_v10 = vshrl.u32 %v210_v49, 16  ;;  %v245_v49 = vld [vmem:[%s7272_s27 + $0x50] sm:$0x1] }
  0x4b   : > { %v398_v11 = vshll.u32 %v244_v56, 16  ;;  %6272 = vmatprep.mubr.msk.bf16.mxu1 %vm723_vm3, %v5453_v3  ;;  %v385_v14 = vor.u32 %v384_v6, %v381_v5  ;;  %v2287_v16 = vshrl.u32 %v5672_v58, 16  ;;  %v2290_v17 = vshll.u32 %v5672_v58, 16  ;;  %v7469_v0 = vld [vmem:[%s7272_s27 + $0x58] sm:$0xf] }
  0x4c   : > { %v2275_v12 = vsel %vm7299_vm2, %v2270_v4, %v2274_v50  ;;  %v2280_v22 = vrot.slane %v2279_v8, 4  ;;  %v394_v24 = vrot.slane %v392_v10, 4  ;;  %v2296_v30 = vshll.u32 %v7446_v2, 16 }
  0x4d   : > { %v400_v28 = vrot.slane %v398_v11, 5  ;;  %v386_v31 = vrot.slane %v385_v14, 4  ;;  %v2289_v23 = vrot.slane %v2287_v16, 4  ;;  %v2292_v34 = vrot.slane %v2290_v17, 5  ;;  %v7474_v11 = vld [vmem:[%s7272_s27 + $0x5c] sm:$0x1] }
  0x4e   : > { %v2300_v35 = vshrl.u32 %v7446_v2, 16  ;;  %v2285_v36 = vsel %vm7299_vm2, %v2280_v22, %v2284_v61  ;;  %v395_v37 = vor.u32 %v394_v24, %v390_v9  ;;  %v2298_v38 = vrot.slane %v2296_v30, 5  ;;  %v7482_v22 = vld [vmem:[%s7272_s27 + $0x54] sm:$0xf] }
  0x4f   : > { %v2306_v39 = vshll.u32 %v7449_v7, 16  ;;  %v5717_v43 = vcombine.low %v2275_v12, %v2285_v36  ;;  %v391_v45 = vsel %vm7299_vm2, %v386_v31, %v390_v9  ;;  %v2293_v46 = vor.u32 %v2292_v34, %v2289_v23  ;;  %v7485_v23 = vld [vmem:[%s7272_s27 + $0x58] sm:$0xf] }
  0x50   : > { %v2302_v47 = vrot.slane %v2300_v35, 4  ;;  %v396_v42 = vrot.slane %v395_v37, 4  ;;  %v403_v51 = vshrl.u32 %v211_v19, 16  ;;  %v406_v52 = vshll.u32 %v211_v19, 16 }
  0x51   : > { %v2308_v50 = vrot.slane %v2306_v39, 5  ;;  %6432 = vmatprep.mubr.msk.bf16.mxu0 %vm723_vm3, %v5717_v43  ;;  %v2294_v53 = vrot.slane %v2293_v46, 4  ;;  %v412_v56 = vshll.u32 %v212_v41, 16  ;;  %v416_v18 = vshrl.u32 %v212_v41, 16  ;;  %v5678_v46 = vld [vmem:[%s7272_s27 + $0x60] sm:$0xf] }
  0x52   : > { %v2303_v55 = vor.u32 %v2302_v47, %v2298_v38  ;;  %v401_v58 = vsel %vm7299_vm2, %v396_v42, %v400_v28  ;;  %v405_v54 = vrot.slane %v403_v51, 4  ;;  %v408_v59 = vrot.slane %v406_v52, 5 }
  0x53   : > { %v422_v61 = vshll.u32 %v245_v49, 16  ;;  %v5454_v3 = vcombine.low %v391_v45, %v401_v58  ;;  %v2299_v4 = vsel %vm7299_vm2, %v2294_v53, %v2298_v38  ;;  %v414_v6 = vrot.slane %v412_v56, 5  ;;  %v246_v38 = vld [vmem:[%s7272_s27 + $0x5c] sm:$0x1]  ;;  %v7500_v56 = vld [vmem:[%s7272_s27 + $0x64] sm:$0xf] }
  0x54   : > { %v2304_v5 = vrot.slane %v2303_v55, 4  ;;  %v409_v8 = vor.u32 %v408_v59, %v405_v54  ;;  %v418_v9 = vrot.slane %v416_v18, 4  ;;  %v2311_v12 = vshrl.u32 %v5675_v57, 16 }
  0x55   : > { %v424_v10 = vrot.slane %v422_v61, 5  ;;  %6273 = vmatmul.mubr.msk.bf16.gmra.mrb[8].mxu1 %vm723_vm3, %v5454_v3  ;;  %v2314_v16 = vshll.u32 %v5675_v57, 16  ;;  %v2320_v17 = vshll.u32 %v7469_v0, 16  ;;  %v2324_v19 = vshrl.u32 %v7469_v0, 16 }
  0x56   : > { %v2309_v14 = vsel %vm7299_vm2, %v2304_v5, %v2308_v50  ;;  %v410_v28 = vrot.slane %v409_v8, 4  ;;  %v419_v30 = vor.u32 %v418_v9, %v414_v6  ;;  %v2313_v31 = vrot.slane %v2311_v12, 4  ;;  %v7508_v8 = vld [vmem:[%s7272_s27 + $0x68] sm:$0x1]  ;;  %v7512_v12 = vld [vmem:[%s7272_s27 + $0x60] sm:$0xf] }
  0x57   : > { %v5718_v24 = vcombine.low %v2299_v4, %v2309_v14  ;;  %v2316_v34 = vrot.slane %v2314_v16, 5  ;;  %v2322_v35 = vrot.slane %v2320_v17, 5  ;;  %v2326_v36 = vrot.slane %v2324_v19, 4 }
  0x58   : > { %v2330_v37 = vshll.u32 %v7474_v11, 16  ;;  %v415_v39 = vsel %vm7299_vm2, %v410_v28, %v414_v6  ;;  %v420_v41 = vrot.slane %v419_v30, 4  ;;  %v427_v43 = vshrl.u32 %v7482_v22, 16 }
  0x59   : > { %6433 = vmatmul.mubr.msk.bf16.gmra.mrb[8].mxu0 %vm723_vm3, %v5718_v24  ;;  %v430_v45 = vshll.u32 %v7482_v22, 16  ;;  %v2317_v47 = vor.u32 %v2316_v34, %v2313_v31  ;;  %v2327_v49 = vor.u32 %v2326_v36, %v2322_v35  ;;  %v436_v50 = vshll.u32 %v7485_v23, 16  ;;  %v7515_v24 = vld [vmem:[%s7272_s27 + $0x64] sm:$0xf] }
  0x5a   : > { %v2332_v42 = vrot.slane %v2330_v37, 5  ;;  %v425_v51 = vsel %vm7299_vm2, %v420_v41, %v424_v10  ;;  %v429_v52 = vrot.slane %v427_v43, 4  ;;  %v440_v55 = vshrl.u32 %v7485_v23, 16 }
  0x5b   : > { %v432_v53 = vrot.slane %v430_v45, 5  ;;  %v5455_v18 = vcombine.low %v415_v39, %v425_v51  ;;  %v2318_v57 = vrot.slane %v2317_v47, 4  ;;  %v2328_v58 = vrot.slane %v2327_v49, 4  ;;  %v5749_v47 = vld [vmem:[%s7272_s27 + $0xc] sm:$0xe] }
  0x5c   : > { %v438_v54 = vrot.slane %v436_v50, 5  ;;  %v442_v61 = vrot.slane %v440_v55, 4  ;;  %v446_v3 = vshll.u32 %v246_v38, 16  ;;  %v2335_v4 = vshrl.u32 %v5678_v46, 16  ;;  %v247_v38 = vld [vmem:[%s7272_s27 + $0x68] sm:$0x1] }
  0x5d   : > { %v433_v59 = vor.u32 %v432_v53, %v429_v52  ;;  %6276 = vmatprep.mubr.msk.bf16.mxu1 %vm723_vm3, %v5455_v18  ;;  %v2323_v5 = vsel %vm7299_vm2, %v2318_v57, %v2322_v35  ;;  %v2333_v6 = vsel %vm7299_vm2, %v2328_v58, %v2332_v42  ;;  %v2338_v9 = vshll.u32 %v5678_v46, 16  ;;  %v7537_v58 = vld [vmem:[%s7272_s27 + $0x6c] sm:$0xf] }
  0x5e   : > { %v2344_v10 = vshll.u32 %v7500_v56, 16  ;;  %v5719_v14 = vcombine.low %v2323_v5, %v2333_v6  ;;  %v443_v17 = vor.u32 %v442_v61, %v438_v54  ;;  %v448_v19 = vrot.slane %v446_v3, 5 }
  0x5f   : > { %v434_v16 = vrot.slane %v433_v59, 4  ;;  %v2337_v28 = vrot.slane %v2335_v4, 4  ;;  %v2340_v30 = vrot.slane %v2338_v9, 5  ;;  %v2348_v34 = vshrl.u32 %v7500_v56, 16 }
  0x60   : > { %v2346_v31 = vrot.slane %v2344_v10, 5  ;;  %6436 = vmatprep.mubr.msk.bf16.mxu0 %vm723_vm3, %v5719_v14  ;;  %v444_v36 = vrot.slane %v443_v17, 4  ;;  %v2354_v37 = vshll.u32 %v7508_v8, 16  ;;  %v451_v39 = vshrl.u32 %v7512_v12, 16  ;;  %v7549_v17 = vld [vmem:[%s7272_s27 + $0x70] sm:$0xf] }
  0x61   : > { %v439_v35 = vsel %vm7299_vm2, %v434_v16, %v438_v54  ;;  %v2341_v41 = vor.u32 %v2340_v30, %v2337_v28  ;;  %v2350_v43 = vrot.slane %v2348_v34, 4  ;;  %v454_v45 = vshll.u32 %v7512_v12, 16  ;;  %v248_v34 = vld [vmem:[%s7272_s27 + $0x74] sm:$0x1] }
  0x62   : > { %v460_v46 = vshll.u32 %v7515_v24, 16  ;;  %v449_v49 = vsel %vm7299_vm2, %v444_v36, %v448_v19  ;;  %v2356_v42 = vrot.slane %v2354_v37, 5  ;;  %v453_v50 = vrot.slane %v451_v39, 4 }
  0x63   : > { %v464_v51 = vshrl.u32 %v7515_v24, 16  ;;  %v5456_v52 = vcombine.low %v439_v35, %v449_v49  ;;  %v2342_v53 = vrot.slane %v2341_v41, 4  ;;  %v2351_v55 = vor.u32 %v2350_v43, %v2346_v31  ;;  %v5750_v35 = vld [vmem:[%s7272_s27 + $0x18] sm:$0xe] }
  0x64   : > { %v456_v18 = vrot.slane %v454_v45, 5  ;;  %v462_v54 = vrot.slane %v460_v46, 5  ;;  %v470_v61 = vshll.u32 %v247_v38, 16  ;;  %v5765_v3 = vrot.slane %v5749_v47, 9  ;;  %v7566_v45 = vld [vmem:[%s7272_s27 + $0x78] sm:$0xf] }
  0x65   : > { %v466_v59 = vrot.slane %v464_v51, 4  ;;  %6277 = vmatmul.mubr.msk.bf16.gmra.mrb[12].mxu1 %vm723_vm3, %v5456_v52  ;;  %v2347_v4 = vsel %vm7299_vm2, %v2342_v53, %v2346_v31  ;;  %v2352_v5 = vrot.slane %v2351_v55, 4  ;;  %v2940_v9 = vrot.slane %v2938_v62, 4  ;;  %v249_v55 = vld [vmem:[%s7272_s27 + $0x80] sm:$0x1] }
  0x66   : > { %v457_v6 = vor.u32 %v456_v18, %v453_v50  ;;  %v472_v14 = vrot.slane %v470_v61, 5  ;;  %v2939_v16 = vsel %vm7532_vm6, %v5765_v3, %v2938_v62  ;;  %v475_v19 = vshrl.u32 %v7537_v58, 16 }
  0x67   : > { %v467_v10 = vor.u32 %v466_v59, %v462_v54  ;;  %v2357_v28 = vsel %vm7299_vm2, %v2352_v5, %v2356_v42  ;;  %v2942_v31 = vsel %vm7532_vm6, %v2940_v9, %v2941_v63  ;;  %v478_v25 = vshll.u32 %v7537_v58, 16  ;;  %v7577_v42 = vld [vmem:[%s7272_s27 + $0x7c] sm:$0xf]  ;;  %v7591_v5 = vld [vmem:[%s7272_s27 + $0x84] sm:$0xf] }
  0x68   : > { %v458_v30 = vrot.slane %v457_v6, 4  ;;  %v5720_v62 = vcombine.low %v2347_v4, %v2357_v28  ;;  %v5789_v37 = vcombine.low %v2939_v16, %v2942_v31  ;;  %v477_v38 = vrot.slane %v475_v19, 4 }
  0x69   : > { %v468_v36 = vrot.slane %v467_v10, 4  ;;  %v480_v41 = vrot.slane %v478_v25, 5  ;;  %v484_v43 = vshll.u32 %v7549_v17, 16  ;;  %v488_v26 = vshrl.u32 %v7549_v17, 16  ;;  %v7595_v10 = vld [vmem:[%s7272_s27 + $0x88] sm:$0xf] }
  0x6a   : > { %v463_v39 = vsel %vm7299_vm2, %v458_v30, %v462_v54  ;;  %6437 = vmatmul.mubr.msk.bf16.gmra.mrb[12].mxu0 %vm723_vm3, %v5720_v62  ;;  %v494_v46 = vshll.u32 %v248_v34, 16  ;;  %v5766_v47 = vrot.slane %v5750_v35, 9  ;;  %v2949_v49 = vsel %vm7532_vm6, %v7344_v32, %v2948_v27  ;;  %v5751_v32 = vld [vmem:[%s7272_s27 + $0x24] sm:$0xe]  ;;  %v6955_v35 = vld [vmem:[%s9278_s1 + $0xc8] sm:$0xff]  }
  0x6b   : > { %v473_v63 = vsel %vm7299_vm2, %v468_v36, %v472_v14  ;;  %6464 = vmatprep.mubr.msk.bf16.mxu0 %vm723_vm3, %v5789_v37  ;;  %v481_v51 = vor.u32 %v480_v41, %v477_v38  ;;  %v486_v52 = vrot.slane %v484_v43, 5  ;;  %v490_v53 = vrot.slane %v488_v26, 4  ;;  %v250_v37 = vld [vmem:[%s7272_s27 + $0x8c] sm:$0x1] }
  0x6c   : > { %v5457_v50 = vcombine.low %v463_v39, %v473_v63  ;;  %v496_v18 = vrot.slane %v494_v46, 5  ;;  %v2946_v1 = vsel %vm7532_vm6, %v5766_v47, %v2945_v20  ;;  %v499_v54 = vshrl.u32 %v7566_v45, 16  ;;  %v5752_v63 = vld [vmem:[%s7272_s27 + $0x30] sm:$0xe] }
  0x6d   : > { %v502_v27 = vshll.u32 %v7566_v45, 16  ;;  %v482_v59 = vrot.slane %v481_v51, 4  ;;  %v491_v61 = vor.u32 %v490_v53, %v486_v52  ;;  %v5790_v3 = vcombine.low %v2946_v1, %v2949_v49 }
  0x6e   : > { %6280 = vmatprep.mubr.msk.bf16.mxu1 %vm723_vm3, %v5457_v50  ;;  %v508_v4 = vshll.u32 %v7577_v42, 16  ;;  %v501_v6 = vrot.slane %v499_v54, 4  ;;  %v512_v9 = vshrl.u32 %v7577_v42, 16  ;;  %v518_v20 = vshll.u32 %v249_v55, 16 }
  0x6f   : > { %v504_v60 = vrot.slane %v502_v27, 5  ;;  %v487_v14 = vsel %vm7299_vm2, %v482_v59, %v486_v52  ;;  %v492_v16 = vrot.slane %v491_v61, 4  ;;  %v5767_v28 = vrot.slane %v5751_v32, 9  ;;  %v7625_v27 = vld [vmem:[%s7272_s27 + $0x90] sm:$0xf] }
  0x70   : > { %v510_v19 = vrot.slane %v508_v4, 5  ;;  %v514_v31 = vrot.slane %v512_v9, 4  ;;  %v520_v34 = vrot.slane %v518_v20, 5  ;;  %v2952_v25 = vrot.slane %v7351_v44, 5  ;;  %v7628_v32 = vld [vmem:[%s7272_s27 + $0x94] sm:$0xf] }
  0x71   : > { %v505_v30 = vor.u32 %v504_v60, %v501_v6  ;;  %v497_v62 = vsel %vm7299_vm2, %v492_v16, %v496_v18  ;;  %v2955_v36 = vrot.slane %v7355_v48, 5  ;;  %v523_v38 = vshrl.u32 %v7591_v5, 16 }
  0x72   : > { %v526_v39 = vshll.u32 %v7591_v5, 16  ;;  %v5458_v41 = vcombine.low %v487_v14, %v497_v62  ;;  %6465 = vmatmul.mubr.msk.bf16.vlgmr.msra.gmra.mrb[0].mxu0 %vm723_vm3, %v5790_v3  ;;  %v515_v26 = vor.u32 %v514_v31, %v510_v19  ;;  %v2953_v44 = vsel %vm7532_vm6, %v5767_v28, %v2952_v25  ;;  %v251_v14 = vld [vmem:[%s7272_s27 + $0x98] sm:$0x1]  ;;  %v5753_v31 = vld [vmem:[%s7272_s27 + $0x3c] sm:$0xe] }
  0x73   : > { %v506_v43 = vrot.slane %v505_v30, 4  ;;  %6497 = vmatpush3.bf16.msra.mxu0 %v7417_v13  ;;  %v2954_v46 = vrot.slane %v2952_v25, 4  ;;  %v525_v48 = vrot.slane %v523_v38, 4  ;;  %v532_v49 = vshll.u32 %v7595_v10, 16  ;;  %v6958_v13 = vld [vmem:[%s9278_s1 + $0xd0] sm:$0xff]  }
  0x74   : > { %v528_v47 = vrot.slane %v526_v39, 5  ;;  %6281 = vmatmul.mubr.msk.bf16.gmra.mrb[16].mxu1 %vm723_vm3, %v5458_v41  ;;  %v516_v51 = vrot.slane %v515_v26, 4  ;;  %v536_v52 = vshrl.u32 %v7595_v10, 16  ;;  %v542_v53 = vshll.u32 %v250_v37, 16  ;;  %6498 = vmatprep.subr.bf16.mxu0 %v6955_v35  ;;  %v7650_v62 = vld [vmem:[%s7272_s27 + $0x9c] sm:$0xf] }
  0x75   : > { %v511_v50 = vsel %vm7299_vm2, %v506_v43, %v510_v19  ;;  %v2956_v55 = vsel %vm7532_vm6, %v2954_v46, %v2955_v36  ;;  %v534_v1 = vrot.slane %v532_v49, 5  ;;  %v5768_v54 = vrot.slane %v5752_v63, 9  ;;  %v7653_v41 = vld [vmem:[%s7272_s27 + $0xa0] sm:$0xf]  ;;  %v252_v46 = vld [vmem:[%s7272_s27 + $0xa4] sm:$0x1] }
  0x76   : > { %v529_v18 = vor.u32 %v528_v47, %v525_v48  ;;  %v521_v59 = vsel %vm7299_vm2, %v516_v51, %v520_v34  ;;  %v5791_v61 = vcombine.low %v2953_v44, %v2956_v55  ;;  %v538_v3 = vrot.slane %v536_v52, 4  ;;  %v7664_v51 = vld [vmem:[%s9278_s1 + $0xe0] sm:$0xff]  }
  0x77   : > { %v544_v4 = vrot.slane %v542_v53, 5  ;;  %v5459_v6 = vcombine.low %v511_v50, %v521_v59  ;;  %v2959_v9 = vrot.slane %v7377_v15, 5  ;;  %v2962_v20 = vrot.slane %v7393_v40, 5  ;;  %6499 = vmatpush3.bf16.msra.mxu0 %v6955_v35  ;;  %v6964_v15 = vld [vmem:[%s9278_s1 + $0xd8] sm:$0xff]  }
  0x78   : > { %v530_v60 = vrot.slane %v529_v18, 4  ;;  %6468 = vmatprep.mubr.msk.bf16.mxu0 %vm723_vm3, %v5791_v61  ;;  %v539_v16 = vor.u32 %v538_v3, %v534_v1  ;;  %v547_v19 = vshrl.u32 %v7625_v27, 16  ;;  %v550_v28 = vshll.u32 %v7625_v27, 16  ;;  %6500 = vmatprep.subr.bf16.mxu0 %v6958_v13  ;;  %v5754_v18 = vld [vmem:[%s7272_s27 + $0x48] sm:$0xe] }
  0x79   : > { %v556_v30 = vshll.u32 %v7628_v32, 16  ;;  %6284 = vmatprep.mubr.msk.bf16.mxu1 %vm723_vm3, %v5459_v6  ;;  %v2960_v34 = vsel %vm7532_vm6, %v5768_v54, %v2959_v9  ;;  %v2961_v25 = vrot.slane %v2959_v9, 4  ;;  %v560_v35 = vshrl.u32 %v7628_v32, 16  ;;  %v7673_v61 = vld [vmem:[%s7272_s27 + $0xa8] sm:$0xf] }
  0x7a   : > { %v535_v40 = vsel %vm7299_vm2, %v530_v60, %v534_v1  ;;  %v540_v36 = vrot.slane %v539_v16, 4  ;;  %v549_v37 = vrot.slane %v547_v19, 4  ;;  %v552_v38 = vrot.slane %v550_v28, 5  ;;  %v7680_v60 = vld [vmem:[%s7272_s27 + $0xac] sm:$0xf] }
  0x7b   : > { %v558_v39 = vrot.slane %v556_v30, 5  ;;  %v2963_v43 = vsel %vm7532_vm6, %v2961_v25, %v2962_v20  ;;  %v562_v26 = vrot.slane %v560_v35, 4  ;;  %v566_v44 = vshll.u32 %v251_v14, 16  ;;  %6501 = vmatpush3.bf16.msra.mxu0 %v6958_v13  ;;  %v253_v35 = vld [vmem:[%s7272_s27 + $0xb0] sm:$0x1] }
  0x7c   : > { %v5769_v63 = vrot.slane %v5753_v31, 9  ;;  %v545_v48 = vsel %vm7299_vm2, %v540_v36, %v544_v4  ;;  %v5792_v47 = vcombine.low %v2960_v34, %v2963_v43  ;;  %v553_v49 = vor.u32 %v552_v38, %v549_v37  ;;  %6502 = vmatprep.subr.bf16.mxu0 %v6964_v15  ;;  %v5755_v36 = vld [vmem:[%s7272_s27 + $0x54] sm:$0xe] }
  0x7d   : > { %v2966_v50 = vrot.slane %v7422_v21, 5  ;;  %v5460_v52 = vcombine.low %v535_v40, %v545_v48  ;;  %v563_v53 = vor.u32 %v562_v26, %v558_v39  ;;  %v568_v55 = vrot.slane %v566_v44, 5 }
  0x7e   : > { %v2969_v13 = vrot.slane %v7427_v33, 5  ;;  %6469 = vmatmul.mubr.msk.bf16.gmra.mrb[4].mxu0 %vm723_vm3, %v5792_v47  ;;  %v554_v1 = vrot.slane %v553_v49, 4  ;;  %v571_v59 = vshrl.u32 %v7650_v62, 16  ;;  %v574_v4 = vshll.u32 %v7650_v62, 16 }
  0x7f   : > { %v2967_v54 = vsel %vm7532_vm6, %v5769_v63, %v2966_v50  ;;  %v2968_v21 = vrot.slane %v2966_v50, 4  ;;  %6285 = vmatmul.mubr.msk.bf16.gmra.mrb[20].mxu1 %vm723_vm3, %v5460_v52  ;;  %v564_v3 = vrot.slane %v563_v53, 4  ;;  %v580_v6 = vshll.u32 %v7653_v41, 16  ;;  %6503 = vmatpush3.bf16.msra.mxu0 %v6964_v15  ;;  %v7702_v50 = vld [vmem:[%s7272_s27 + $0xb4] sm:$0xf] }
  0x80   : > { %v584_v33 = vshrl.u32 %v7653_v41, 16  ;;  %v559_v9 = vsel %vm7299_vm2, %v554_v1, %v558_v39  ;;  %v573_v14 = vrot.slane %v571_v59, 4  ;;  %v590_v16 = vshll.u32 %v252_v46, 16  ;;  %6536 = vmatprep.subr.bf16.mxu0 %v7664_v51 }
  0x81   : > { %v2970_v20 = vsel %vm7532_vm6, %v2968_v21, %v2969_v13  ;;  %v569_v19 = vsel %vm7299_vm2, %v564_v3, %v568_v55  ;;  %v576_v30 = vrot.slane %v574_v4, 5  ;;  %v582_v31 = vrot.slane %v580_v6, 5  ;;  %v7705_v13 = vld [vmem:[%s7272_s27 + $0xb8] sm:$0xf] }
  0x82   : > { %v5793_v28 = vcombine.low %v2967_v54, %v2970_v20  ;;  %v5461_v40 = vcombine.low %v559_v9, %v569_v19  ;;  %v586_v34 = vrot.slane %v584_v33, 4  ;;  %v592_v25 = vrot.slane %v590_v16, 5  ;;  %v254_v16 = vld [vmem:[%s7272_s27 + $0xbc] sm:$0x1]  ;;  %v5756_v19 = vld [vmem:[%s7272_s27 + $0x60] sm:$0xe] }
  0x83   : > { %v5770_v15 = vrot.slane %v5754_v18, 9  ;;  %v577_v37 = vor.u32 %v576_v30, %v573_v14  ;;  %v2973_v38 = vrot.slane %v7446_v2, 5  ;;  %v2976_v39 = vrot.slane %v7449_v7, 5 }
  0x84   : > { %6472 = vmatprep.mubr.msk.bf16.mxu0 %vm723_vm3, %v5793_v28  ;;  %v595_v43 = vshrl.u32 %v7673_v61, 16  ;;  %6288 = vmatprep.mubr.msk.bf16.mxu1 %vm723_vm3, %v5461_v40  ;;  %v587_v26 = vor.u32 %v586_v34, %v582_v31  ;;  %v598_v44 = vshll.u32 %v7673_v61, 16  ;;  %v604_v63 = vshll.u32 %v7680_v60, 16 }
  0x85   : > { %v608_v46 = vshrl.u32 %v7680_v60, 16  ;;  %v578_v48 = vrot.slane %v577_v37, 4  ;;  %v2974_v47 = vsel %vm7532_vm6, %v5770_v15, %v2973_v38  ;;  %v2975_v49 = vrot.slane %v2973_v38, 4  ;;  %v5682_v15 = vld [vmem:[%s7272_s27 + $0x70] sm:$0xf] }
  0x86   : > { %v597_v2 = vrot.slane %v595_v43, 4  ;;  %v588_v7 = vrot.slane %v587_v26, 4  ;;  %v600_v52 = vrot.slane %v598_v44, 5  ;;  %v606_v53 = vrot.slane %v604_v63, 5  ;;  %v5757_v43 = vld [vmem:[%s7272_s27 + $0x6c] sm:$0xe] }
  0x87   : > { %v610_v55 = vrot.slane %v608_v46, 4  ;;  %v583_v18 = vsel %vm7299_vm2, %v578_v48, %v582_v31  ;;  %v2977_v1 = vsel %vm7532_vm6, %v2975_v49, %v2976_v39  ;;  %v614_v54 = vshll.u32 %v253_v35, 16  ;;  %v5683_v35 = vld [vmem:[%s7272_s27 + $0x74] sm:$0x1] }
  0x88   : > { %v5771_v21 = vrot.slane %v5755_v36, 9  ;;  %v593_v59 = vsel %vm7299_vm2, %v588_v7, %v592_v25  ;;  %v5794_v3 = vcombine.low %v2974_v47, %v2977_v1  ;;  %v601_v4 = vor.u32 %v600_v52, %v597_v2 }
  0x89   : > { %v611_v6 = vor.u32 %v610_v55, %v606_v53  ;;  %v5462_v33 = vcombine.low %v583_v18, %v593_v59  ;;  %v616_v9 = vrot.slane %v614_v54, 5  ;;  %v2980_v20 = vrot.slane %v7469_v0, 5  ;;  %v5758_v59 = vld [vmem:[%s7272_s27 + $0x78] sm:$0xe] }
  0x8a   : > { %v2983_v14 = vrot.slane %v7474_v11, 5  ;;  %6473 = vmatmul.mubr.msk.bf16.gmra.mrb[8].mxu0 %vm723_vm3, %v5794_v3  ;;  %v602_v28 = vrot.slane %v601_v4, 4  ;;  %v619_v31 = vshrl.u32 %v7702_v50, 16  ;;  %v622_v40 = vshll.u32 %v7702_v50, 16 }
  0x8b   : > { %v612_v30 = vrot.slane %v611_v6, 4  ;;  %6289 = vmatmul.mubr.msk.bf16.gmra.mrb[24].mxu1 %vm723_vm3, %v5462_v33  ;;  %v2981_v34 = vsel %vm7532_vm6, %v5771_v21, %v2980_v20  ;;  %v2982_v25 = vrot.slane %v2980_v20, 4  ;;  %v628_v0 = vshll.u32 %v7705_v13, 16  ;;  %v7742_v6 = vld [vmem:[%s7272_s27 + $0x7c] sm:$0xf] }
  0x8c   : > { %v632_v11 = vshrl.u32 %v7705_v13, 16  ;;  %v607_v36 = vsel %vm7299_vm2, %v602_v28, %v606_v53  ;;  %v621_v38 = vrot.slane %v619_v31, 4  ;;  %v624_v39 = vrot.slane %v622_v40, 5  ;;  %v7022_v28 = vld [vmem:[%s7272_s27] sm:$0xf] }
  0x8d   : > { %v617_v37 = vsel %vm7299_vm2, %v612_v30, %v616_v9  ;;  %v2984_v44 = vsel %vm7532_vm6, %v2982_v25, %v2983_v14  ;;  %v630_v63 = vrot.slane %v628_v0, 5  ;;  %v638_v49 = vshll.u32 %v254_v16, 16  ;;  %v5688_v14 = vld [vmem:[%s7272_s27 + $0x88] sm:$0xf]  ;;  %v7758_v30 = vld [vmem:[%s7272_s27 + $0x4] sm:$0xf] }
  0x8e   : > { %v5463_v26 = vcombine.low %v607_v36, %v617_v37  ;;  %v634_v46 = vrot.slane %v632_v11, 4  ;;  %v5795_v48 = vcombine.low %v2981_v34, %v2984_v44  ;;  %v625_v47 = vor.u32 %v624_v39, %v621_v38  ;;  %v5689_v40 = vld [vmem:[%s7272_s27 + $0x8c] sm:$0x1]  ;;  %v5759_v34 = vld [vmem:[%s7272_s27 + $0x84] sm:$0xe] }
  0x8f   : > { %v5772_v2 = vrot.slane %v5756_v19, 9  ;;  %v2987_v52 = vrot.slane %v7500_v56, 5  ;;  %v2990_v53 = vrot.slane %v7508_v8, 5  ;;  %v5773_v55 = vrot.slane %v5757_v43, 9  ;;  %v7745_v8 = vld [vmem:[%s7272_s27 + $0x80] sm:$0x1] }
  0x90   : > { %6292 = vmatprep.mubr.msk.bf16.mxu1 %vm723_vm3, %v5463_v26  ;;  %v635_v7 = vor.u32 %v634_v46, %v630_v63  ;;  %6476 = vmatprep.mubr.msk.bf16.mxu0 %vm723_vm3, %v5795_v48  ;;  %v626_v18 = vrot.slane %v625_v47, 4  ;;  %v640_v1 = vrot.slane %v638_v49, 5  ;;  %v2994_v54 = vrot.slane %v5682_v15, 5  ;;  %v5691_v15 = vld [vmem:[%s7272_s27 + $0x94] sm:$0xf] }
  0x91   : > { %v2997_v21 = vrot.slane %v5683_v35, 5  ;;  %v2988_v4 = vsel %vm7532_vm6, %v5772_v2, %v2987_v52  ;;  %v2989_v56 = vrot.slane %v2987_v52, 4  ;;  %v5485_v31 = vcombine.low %v7022_v28, %v7758_v30  ;;  %v5692_v37 = vld [vmem:[%s7272_s27 + $0x98] sm:$0x1]  ;;  %v5760_v38 = vld [vmem:[%s7272_s27 + $0x90] sm:$0xe] }
  0x92   : > { %v636_v3 = vrot.slane %v635_v7, 4  ;;  %v631_v33 = vsel %vm7299_vm2, %v626_v18, %v630_v63  ;;  %v2995_v9 = vsel %vm7532_vm6, %v5773_v55, %v2994_v54  ;;  %v2996_v20 = vrot.slane %v2994_v54, 4  ;;  %v5694_v44 = vld [vmem:[%s7272_s27 + $0xa0] sm:$0xf]  ;;  %v5695_v2 = vld [vmem:[%s7272_s27 + $0xa4] sm:$0x1] }
  0x93   : > { %v2991_v19 = vsel %vm7532_vm6, %v2989_v56, %v2990_v53  ;;  %v5774_v36 = vrot.slane %v5758_v59, 9  ;;  %v3001_v39 = vrot.slane %v7742_v6, 5  ;;  %v3004_v43 = vrot.slane %v7745_v8, 5  ;;  %v7024_v7 = vld [vmem:[%s7272_s27 + $0xc] sm:$0xf] }
  0x94   : > { %v641_v16 = vsel %vm7299_vm2, %v636_v3, %v640_v1  ;;  %v5796_v0 = vcombine.low %v2988_v4, %v2991_v19  ;;  %v2998_v11 = vsel %vm7532_vm6, %v2996_v20, %v2997_v21  ;;  %v5775_v26 = vrot.slane %v5759_v34, 9  ;;  %v7780_v52 = vld [vmem:[%s7272_s27 + $0x10] sm:$0xf]  ;;  %v5761_v1 = vld [vmem:[%s7272_s27 + $0x9c] sm:$0xe] }
  0x95   : > { %v5464_v25 = vcombine.low %v631_v33, %v641_v16  ;;  %v5797_v35 = vcombine.low %v2995_v9, %v2998_v11  ;;  %v3008_v63 = vrot.slane %v5688_v14, 5  ;;  %v3011_v46 = vrot.slane %v5689_v40, 5  ;;  %v7026_v21 = vld [vmem:[%s7272_s27 + $0x18] sm:$0xf]  ;;  %v7790_v59 = vld [vmem:[%s7272_s27 + $0x1c] sm:$0xf] }
  0x96   : > { %6477 = vmatmul.mubr.msk.bf16.gmra.mrb[12].mxu0 %vm723_vm3, %v5796_v0  ;;  %v3002_v48 = vsel %vm7532_vm6, %v5774_v36, %v3001_v39  ;;  %v3003_v47 = vrot.slane %v3001_v39, 4  ;;  %v3015_v49 = vrot.slane %v5691_v15, 5  ;;  %v5486_v53 = vcombine.low %v7024_v7, %v7780_v52  ;;  %v6963_v33 = vld [vmem:[%s9278_s1 + $0x48] sm:$0xff]   ;;  %v5698_v0 = vld [vmem:[%s7272_s27 + $0xb0] sm:$0x1]  ;;  %v7028_v11 = vld [vmem:[%s9278_s1 + $0x40] sm:$0xff]  }
  0x97   : > { %6293 = vmatmul.mubr.msk.bf16.gmra.mrb[28].mxu1 %vm723_vm3, %v5464_v25  ;;  %6480 = vmatprep.mubr.msk.bf16.mxu0 %vm723_vm3, %v5797_v35  ;;  %v3009_v55 = vsel %vm7532_vm6, %v5775_v26, %v3008_v63  ;;  %v3010_v18 = vrot.slane %v3008_v63, 4  ;;  %v5487_v3 = vcombine.low %v7026_v21, %v7790_v59  ;;  %v5776_v4 = vrot.slane %v5760_v38, 9  ;;  %v5697_v40 = vld [vmem:[%s7272_s27 + $0xac] sm:$0xf]  ;;  %v5700_v25 = vld [vmem:[%s7272_s27 + $0xb8] sm:$0xf] }
  0x98   : > { %6304 = vmatprep.mubr.msk.bf16.mxu1 %vm723_vm3, %v5485_v31  ;;  %v3005_v54 = vsel %vm7532_vm6, %v3003_v47, %v3004_v43  ;;  %v3018_v56 = vrot.slane %v5692_v37, 5  ;;  %v3017_v14 = vrot.slane %v3015_v49, 4  ;;  %v3022_v16 = vrot.slane %v5694_v44, 5  ;;  %v5762_v36 = vld [vmem:[%s7272_s27 + $0xa8] sm:$0xe]  ;;  %v6969_v26 = vld [vmem:[%s9278_s1 + $0x50] sm:$0xff]  }
  0x99   : > { %v5798_v9 = vcombine.low %v3002_v48, %v3005_v54  ;;  %v3012_v20 = vsel %vm7532_vm6, %v3010_v18, %v3011_v46  ;;  %v5777_v28 = vrot.slane %v5761_v1, 9  ;;  %v3025_v31 = vrot.slane %v5695_v2, 5  ;;  %v5701_v44 = vld [vmem:[%s7272_s27 + $0xbc] sm:$0x1]  ;;  %v5763_v63 = vld [vmem:[%s7272_s27 + $0xb4] sm:$0xe] }
  0x9a   : > { %v5799_v19 = vcombine.low %v3009_v55, %v3012_v20  ;;  %v3024_v34 = vrot.slane %v3022_v16, 4  ;;  %v3016_v15 = vsel %vm7532_vm6, %v5776_v4, %v3015_v49  ;;  %v3019_v35 = vsel %vm7532_vm6, %v3017_v14, %v3018_v56  ;;  %v7029_v46 = vld [vmem:[%s7272_s27 + $0x24] sm:$0xf]  ;;  %v7824_v48 = vld [vmem:[%s7272_s27 + $0x28] sm:$0xf] }
  0x9b   : > { %v3029_v37 = vrot.slane %v5697_v40, 5  ;;  %v3023_v38 = vsel %vm7532_vm6, %v5777_v28, %v3022_v16  ;;  %v3036_v43 = vrot.slane %v5700_v25, 5  ;;  %v5488_v47 = vcombine.low %v7029_v46, %v7824_v48  ;;  %v7031_v2 = vld [vmem:[%s7272_s27 + $0x30] sm:$0xf]  ;;  %v7829_v7 = vld [vmem:[%s7272_s27 + $0x34] sm:$0xf] }
  0x9c   : > { %v3026_v39 = vsel %vm7532_vm6, %v3024_v34, %v3025_v31  ;;  %v5800_v49 = vcombine.low %v3016_v15, %v3019_v35  ;;  %v5778_v18 = vrot.slane %v5762_v36, 9  ;;  %v3032_v54 = vrot.slane %v5698_v0, 5  ;;  %v5703_v56 = vld [vmem:[%s7272_s27 + $0xc4] sm:$0xf]  ;;  %v5764_v14 = vld [vmem:[%s7272_s27 + $0xc0] sm:$0xe] }
  0x9d   : > { %v5801_v55 = vcombine.low %v3023_v38, %v3026_v39  ;;  %v3031_v1 = vrot.slane %v3029_v37, 4  ;;  %v5779_v21 = vrot.slane %v5763_v63, 9  ;;  %v3039_v4 = vrot.slane %v5701_v44, 5  ;;  %v5704_v31 = vld [vmem:[%s7272_s27 + $0xc8] sm:$0x1]  ;;  %v7853_v40 = vld [vmem:[%s9278_s1 + $0x60] sm:$0xff]  }
  0x9e   : > { %6481 = vmatmul.mubr.msk.bf16.gmra.mrb[16].mxu0 %vm723_vm3, %v5798_v9  ;;  %v6979_v9 = vld [vmem:[%s9278_s1 + $0x58] sm:$0xff]   ;;  %v3043_v16 = vrot.slane %v5703_v56, 5  ;;  %v7857_v25 = vld [vmem:[%s7272_s27 + $0x40] sm:$0xf]  ;;  %v5780_v15 = vrot.slane %v5764_v14, 9  ;;  %v2392_v63 = vshll.u32 %v7742_v6, 16 }
  0x9f   : > { %6305 = vmatmul.mubr.msk.bf16.vlgmr.msra.gmra.mrb[0].mxu1 %vm723_vm3, %v5486_v53  ;;  %6484 = vmatprep.mubr.msk.bf16.mxu0 %vm723_vm3, %v5799_v19  ;;  %v5489_v53 = vcombine.low %v7031_v2, %v7829_v7  ;;  %v3033_v20 = vsel %vm7532_vm6, %v3031_v1, %v3032_v54  ;;  %v3037_v19 = vsel %vm7532_vm6, %v5779_v21, %v3036_v43  ;;  %v7033_v34 = vld [vmem:[%s7272_s27 + $0x3c] sm:$0xf]  ;;  %v7035_v35 = vld [vmem:[%s7272_s27 + $0x48] sm:$0xf]  ;;  %v7862_v36 = vld [vmem:[%s7272_s27 + $0x4c] sm:$0xf] }
  0xa0   : > { %6337 = vmatpush3.bf16.msra.mxu1 %v7028_v11  ;;  %6308 = vmatprep.mubr.msk.bf16.mxu1 %vm723_vm3, %v5487_v3  ;;  %v3038_v3 = vrot.slane %v3036_v43, 4  ;;  %v5490_v0 = vcombine.low %v7033_v34, %v7857_v25  ;;  %v3045_v39 = vrot.slane %v3043_v16, 4  ;;  %v3046_v43 = vrot.slane %v5704_v31, 5  ;;  %v1249_v56 = vld [vmem:[%s7272_s27 + $0x24] sm:$0xe] }
  0xa1   : > { %6338 = vmatprep.subr.bf16.mxu1 %v6963_v33  ;;  %v2396_v46 = vshrl.u32 %v7742_v6, 16  ;;  %v5493_v2 = vcombine.low %v7512_v12, %v7515_v24  ;;  %v7882_v1 = vrot.slane %v2392_v63, 5  ;;  %v1306_v21 = vrot.slane %v7780_v52, 5  ;;  %v1247_v12 = vld [vmem:[%s7272_s27 + $0xc] sm:$0xe] }
  0xa2   : > { %v3040_v28 = vsel %vm7532_vm6, %v3038_v3, %v3039_v4  ;;  %v3047_v44 = vsel %vm7532_vm6, %v3045_v39, %v3046_v43  ;;  %v7038_v24 = vld [vmem:[%s7272_s27 + $0x14] sm:$0x1]  ;;  %v1248_v3 = vld [vmem:[%s7272_s27 + $0x18] sm:$0xe]  ;;  %v1313_v52 = vrot.slane %v7790_v59, 5  ;;  %v2402_v4 = vshll.u32 %v7745_v8, 16 }
  0xa3   : > { %v5803_v38 = vcombine.low %v3037_v19, %v3040_v28  ;;  %9298 = vst [vmem:[#allocation5_spill] sm:$0xff] %v7882_v1  ;;  %v7884_v54 = vrot.slane %v2396_v46, 4  ;;  %v1309_v6 = vrot.slane %v7038_v24, 5  ;;  %v5495_v19 = vcombine.low %v7566_v45, %v7577_v42  ;;  %v6975_v59 = vld [vmem:[%s7272_s27 + $0x30] sm:$0xff]   ;;  %v6981_v8 = vld [vmem:[%s9278_s1 + $0xe8] sm:$0xff]  }
  0xa4   : > { %6339 = vmatpush3.bf16.msra.mxu1 %v6963_v33  ;;  %v3030_v33 = vsel %vm7532_vm6, %v5778_v18, %v3029_v37  ;;  %v5491_v37 = vcombine.low %v7035_v35, %v7862_v36  ;;  %v5523_v31 = vrot.slane %v1248_v3, 9  ;;  %v1250_v34 = vld [vmem:[%s7272_s27 + $0x30] sm:$0xe]  ;;  %v5496_v35 = vcombine.low %v7591_v5, %v7595_v10  ;;  %v5901_v24 = vld [vmem:[%s7272_s27 + $0x18] sm:$0xf] }
  0xa5   : > { %6340 = vmatprep.subr.bf16.mxu1 %v6969_v26  ;;  %v5802_v11 = vcombine.low %v3030_v33, %v3033_v20  ;;  %v5494_v33 = vcombine.low %v7537_v58, %v7549_v17  ;;  %v6973_v20 = vld [vmem:[%s7272_s27 + $0x24] sm:$0xff]   ;;  %v5524_v58 = vrot.slane %v1249_v56, 9  ;;  %v1327_v17 = vrot.slane %v7829_v7, 5 }
  0xa6   : > { %6485 = vmatmul.mubr.msk.bf16.gmra.mrb[20].mxu0 %vm723_vm3, %v5800_v49  ;;  %v5497_v45 = vcombine.low %v7625_v27, %v7628_v32  ;;  %v5498_v39 = vcombine.low %v7650_v62, %v7653_v41  ;;  %v7046_v10 = vld [vmem:[%s7272_s27 + $0x64] sm:$0xf] }
  0xa7   : > { %6309 = vmatmul.mubr.msk.bf16.gmra.mrb[4].mxu1 %vm723_vm3, %v5488_v47  ;;  %6488 = vmatprep.mubr.msk.bf16.mxu0 %vm723_vm3, %v5801_v55  ;;  %v5492_v47 = vcombine.low %v7482_v22, %v7485_v23  ;;  %v7037_v55 = vld [vmem:[%s7272_s27 + $0x8] sm:$0x1]  ;;  %v1246_v22 = vld [vmem:[%s7272_s27] sm:$0xe]  ;;  %v1299_v23 = vrot.slane %v7758_v30, 5 }
  0xa8   : > { %6312 = vmatprep.mubr.msk.bf16.mxu1 %vm723_vm3, %v5489_v53  ;;  %6341 = vmatpush3.bf16.msra.mxu1 %v6969_v26  ;;  %v3044_v26 = vsel %vm7532_vm6, %v5780_v15, %v3043_v16  ;;  %v6970_v53 = vld [vmem:[%s7272_s27 + $0x18] sm:$0xff]   ;;  %v1302_v18 = vrot.slane %v7037_v55, 5  ;;  %v5521_v14 = vrot.slane %v1246_v22, 9  ;;  %v5522_v16 = vrot.slane %v1247_v12, 9  ;;  %v1252_v22 = vld [vmem:[%s7272_s27 + $0x48] sm:$0xe] }
  0xa9   : > { %6342 = vmatprep.subr.bf16.mxu1 %v6979_v9  ;;  %v5804_v49 = vcombine.low %v3044_v26, %v3047_v44  ;;  %v1301_v28 = vrot.slane %v1299_v23, 4  ;;  %v1334_v26 = vrot.slane %v7857_v25, 5  ;;  %v7930_v44 = vrot.slane %v2402_v4, 5  ;;  %v1251_v25 = vld [vmem:[%s7272_s27 + $0x3c] sm:$0xe] }
  0xaa   : > { %v7923_v43 = vsel %vm7532_vm6, %v5521_v14, %v1299_v23  ;;  %v7927_v7 = vsel %vm7532_vm6, %v5522_v16, %v1306_v21  ;;  %v1329_v55 = vrot.slane %v1327_v17, 4  ;;  %v5526_v3 = vrot.slane %v1251_v25, 9  ;;  %v7042_v4 = vld [vmem:[%s7272_s27 + $0x44] sm:$0x1]  ;;  %v6980_v14 = vld [vmem:[%s7272_s27 + $0x48] sm:$0xff]  }
  0xab   : > { %9299 = vst [vmem:[#allocation6_spill] sm:$0xff] %v7930_v44  ;;  %v7936_v63 = vsel %vm7532_vm6, %v1301_v28, %v1302_v18  ;;  %v7041_v18 = vld [vmem:[%s7272_s27 + $0x38] sm:$0x1]  ;;  %v1337_v56 = vrot.slane %v7042_v4, 5  ;;  %v7984_v28 = vld [vmem:[%s7272_s27 + $0x54] sm:$0xe] }
  0xac   : > { %6343 = vmatpush3.bf16.msra.mxu1 %v6979_v9  ;;  %v1320_v9 = vrot.slane %v7824_v48, 5  ;;  %v1308_v48 = vrot.slane %v1306_v21, 4  ;;  %v1330_v21 = vrot.slane %v7041_v18, 5  ;;  %v7043_v25 = vld [vmem:[%s7272_s27 + $0x50] sm:$0x1] }
  0xad   : > { %6376 = vmatprep.subr.bf16.mxu1 %v7853_v40  ;;  %v5904_v18 = vld [vmem:[%s7272_s27 + $0x24] sm:$0xf] }
  0xae   : > { %6489 = vmatmul.mubr.msk.bf16.gmra.mrb[24].mxu0 %vm723_vm3, %v5802_v11  ;;  %v7039_v11 = vld [vmem:[%s7272_s27 + $0x20] sm:$0x1]  ;;  %v1322_v42 = vrot.slane %v1320_v9, 4  ;;  %v7940_v46 = vsel %vm7532_vm6, %v1308_v48, %v1309_v6  ;;  %v7963_v23 = vsel %vm7532_vm6, %v5524_v58, %v1320_v9  ;;  %v5902_v6 = vld [vmem:[%s7272_s27 + $0x1c] sm:$0xf]  ;;  %v7992_v48 = vsel %vm7532_vm6, %v1329_v55, %v1330_v21 }
  0xaf   : > { %6313 = vmatmul.mubr.msk.bf16.gmra.mrb[8].mxu1 %vm723_vm3, %v5490_v0  ;;  %6492 = vmatprep.mubr.msk.bf16.mxu0 %vm723_vm3, %v5803_v38  ;;  %v1315_v0 = vrot.slane %v1313_v52, 4  ;;  %v1316_v15 = vrot.slane %v7039_v11, 5  ;;  %v3815_v58 = vshll.u32 %v5902_v6, 16  ;;  %v5903_v55 = vld [vmem:[%s7272_s27 + $0x20] sm:$0x1]  ;;  %v5528_v21 = vrot.slane %v7984_v28, 9 }
  0xb0   : > { %6316 = vmatprep.mubr.msk.bf16.mxu1 %vm723_vm3, %v5491_v37  ;;  %v7040_v37 = vld [vmem:[%s7272_s27 + $0x2c] sm:$0x1]  ;;  %v6983_v28 = vld [vmem:[%s7272_s27 + $0x54] sm:$0xff]  }
  0xb1   : > { %v1323_v38 = vrot.slane %v7040_v37, 5  ;;  %v8039_v32 = vrot.slane %v3815_v58, 5  ;;  %v5908_v58 = vld [vmem:[%s7272_s27 + $0x34] sm:$0xf] }
  0xb2   : > { %v3863_v9 = vshll.u32 %v5908_v58, 16 }
  0xb3   : > { %v7967_v12 = vsel %vm7532_vm6, %v1322_v42, %v1323_v38  ;;  %v8004_v42 = vsel %vm7532_vm6, %v5526_v3, %v1334_v26 }
  0xb6   : > { %6493 = vmatmul.mubr.msk.bf16.gmra.mrb[28].mxu0 %vm723_vm3, %v5804_v49  ;;  %v6990_v49 = vld [vmem:[%s9278_s1 + $0xf0] sm:$0xff]  }
  0xb7   : > { %6317 = vmatmul.mubr.msk.bf16.gmra.mrb[12].mxu1 %vm723_vm3, %v5492_v47  ;;  %6504 = vmatprep.mubr.msk.bf16.mxu0 %vm723_vm3, %v6970_v53  ;;  %v7944_v47 = vsel %vm7532_vm6, %v5523_v31, %v1313_v52  ;;  %v5525_v53 = vrot.slane %v1250_v34, 9  ;;  %v1336_v52 = vrot.slane %v1334_v26, 4  ;;  %v7995_v31 = vld [vmem:[%s7272_s27 + $0x60] sm:$0xe]  ;;  %v3806_v34 = vshrl.u32 %v5901_v24, 16 }
  0xb8   : > { %6320 = vmatprep.mubr.msk.bf16.mxu1 %vm723_vm3, %v5493_v2  ;;  %v7954_v2 = vsel %vm7532_vm6, %v1315_v0, %v1316_v15  ;;  %v3809_v0 = vshll.u32 %v5901_v24, 16  ;;  %v5527_v15 = vrot.slane %v1252_v22, 9  ;;  %v7044_v22 = vld [vmem:[%s7272_s27 + $0x58] sm:$0xf]  ;;  %v5529_v5 = vrot.slane %v7995_v31, 9  ;;  %v6985_v31 = vld [vmem:[%s7272_s27 + $0x60] sm:$0xff]  }
  0xb9   : > { %v8008_v37 = vsel %vm7532_vm6, %v1336_v52, %v1337_v56  ;;  %v1348_v24 = vrot.slane %v7044_v22, 5  ;;  %v5905_v52 = vld [vmem:[%s7272_s27 + $0x28] sm:$0xf]  ;;  %v3808_v4 = vrot.slane %v3806_v34, 4  ;;  %v7047_v22 = vld [vmem:[%s7272_s27 + $0x70] sm:$0xf] }
  0xba   : > { %v3811_v56 = vrot.slane %v3809_v0, 5  ;;  %v8052_v0 = vld [vmem:[%s9278_s1 + $0x100] sm:$0xff]   ;;  %v7048_v26 = vld [vmem:[%s7272_s27 + $0x68] sm:$0x1] }
  0xbb   : > { %v1358_v11 = vrot.slane %v7048_v26, 5  ;;  %v7049_v26 = vld [vmem:[%s7272_s27 + $0x74] sm:$0x1]  ;;  %v8079_v62 = vsel %vm7532_vm6, %v5528_v21, %v1348_v24 }
  0xbe   : > { %6505 = vmatmul.mubr.msk.bf16.vlgmr.msra.gmra.mrb[0].mxu0 %vm723_vm3, %v6973_v20  ;;  %v6977_v20 = vld [vmem:[%s7272_s27 + $0x3c] sm:$0xff]  }
  0xbf   : > { %6321 = vmatmul.mubr.msk.bf16.gmra.mrb[16].mxu1 %vm723_vm3, %v5494_v33  ;;  %6537 = vmatpush3.bf16.msra.mxu0 %v7664_v51  ;;  %v1341_v33 = vrot.slane %v7862_v36, 5  ;;  %v7988_v36 = vsel %vm7532_vm6, %v5525_v53, %v1327_v17  ;;  %v3819_v17 = vshrl.u32 %v5902_v6, 16  ;;  %v1344_v53 = vrot.slane %v7043_v25, 5  ;;  %v7045_v6 = vld [vmem:[%s7272_s27 + $0x5c] sm:$0x1] }
  0xc0   : > { %6324 = vmatprep.mubr.msk.bf16.mxu1 %vm723_vm3, %v5495_v19  ;;  %6508 = vmatprep.mubr.msk.bf16.mxu0 %vm723_vm3, %v6975_v59  ;;  %v1351_v3 = vrot.slane %v7045_v6, 5  ;;  %v1362_v6 = vrot.slane %v7047_v22, 5  ;;  %v3843_v25 = vshrl.u32 %v5905_v52, 16  ;;  %v5906_v19 = vld [vmem:[%s7272_s27 + $0x2c] sm:$0x1] }
  0xc1   : > { %6538 = vmatprep.subr.bf16.mxu0 %v6981_v8  ;;  %v1343_v38 = vrot.slane %v1341_v33, 4  ;;  %v8037_v27 = vsel %vm7532_vm6, %v5527_v15, %v1341_v33  ;;  %v3830_v33 = vshrl.u32 %v5904_v18, 16  ;;  %v3833_v15 = vshll.u32 %v5904_v18, 16 }
  0xc2   : > { %v3867_v18 = vshrl.u32 %v5908_v58, 16  ;;  %v1256_v58 = vld [vmem:[%s7272_s27 + $0x78] sm:$0xe] }
  0xc3   : > { %6539 = vmatpush3.bf16.msra.mxu0 %v6981_v8  ;;  %v6996_v8 = vld [vmem:[%s9278_s1 + $0xf8] sm:$0xff]   ;;  %v8047_v34 = vsel %vm7532_vm6, %v1343_v38, %v1344_v53  ;;  %v3832_v22 = vrot.slane %v3830_v33, 4  ;;  %v3835_v51 = vrot.slane %v3833_v15, 5  ;;  %v3849_v33 = vshll.u32 %v5906_v19, 16 }
  0xc4   : > { %6540 = vmatprep.subr.bf16.mxu0 %v6990_v49  ;;  %v6989_v15 = vld [vmem:[%s7272_s27 + $0x78] sm:$0xff]  }
  0xc6   : > { %6509 = vmatmul.mubr.msk.bf16.gmra.mrb[4].mxu0 %vm723_vm3, %v6977_v20  ;;  %v5907_v20 = vld [vmem:[%s7272_s27 + $0x30] sm:$0xf] }
  0xc7   : > { %6325 = vmatmul.mubr.msk.bf16.gmra.mrb[20].mxu1 %vm723_vm3, %v5496_v35  ;;  %6512 = vmatprep.mubr.msk.bf16.mxu0 %vm723_vm3, %v6980_v14  ;;  %v1355_v35 = vrot.slane %v7046_v10, 5  ;;  %v8042_v14 = vld [vmem:[%s7272_s27 + $0x6c] sm:$0xe]  ;;  %v3839_v10 = vshll.u32 %v5905_v52, 16  ;;  %v3854_v38 = vshrl.u32 %v5907_v20, 16  ;;  %v3857_v53 = vshll.u32 %v5907_v20, 16 }
  0xc8   : > { %6328 = vmatprep.mubr.msk.bf16.mxu1 %vm723_vm3, %v5497_v45  ;;  %6541 = vmatpush3.bf16.msra.mxu0 %v6990_v49  ;;  %v3821_v45 = vrot.slane %v3819_v17, 4  ;;  %v3825_v49 = vshll.u32 %v5903_v55, 16  ;;  %v1350_v17 = vrot.slane %v1348_v24, 4  ;;  %v3812_v55 = vor.u32 %v3811_v56, %v3808_v4 }
  0xc9   : > { %6542 = vmatprep.subr.bf16.mxu0 %v6996_v8  ;;  %v1357_v30 = vrot.slane %v1355_v35, 4  ;;  %v5530_v52 = vrot.slane %v8042_v14, 9  ;;  %v1365_v4 = vrot.slane %v7049_v26, 5  ;;  %v8069_v56 = vrot.slane %v3839_v10, 5 }
  0xca   : > { %v3822_v59 = vor.u32 %v3821_v45, %v8039_v32  ;;  %v8059_v16 = vrot.slane %v3825_v49, 5  ;;  %v3845_v20 = vrot.slane %v3843_v25, 4  ;;  %v5909_v45 = vld [vmem:[%s7272_s27 + $0x38] sm:$0x1]  ;;  %v9300_v14 = vcombine.low %v7673_v61, %v7680_v60 }
  0xcb   : > { %v8083_v41 = vsel %vm7532_vm6, %v1350_v17, %v1351_v3  ;;  %v3813_v25 = vrot.slane %v3812_v55, 4  ;;  %v8085_v61 = vrot.slane %v3863_v9, 5  ;;  %v3869_v60 = vrot.slane %v3867_v18, 4  ;;  %v6987_v3 = vld [vmem:[%s7272_s27 + $0x6c] sm:$0xff]   ;;  %v7050_v17 = vld [vmem:[%s7272_s27 + $0x7c] sm:$0xf] }
  0xcc   : > { %6543 = vmatpush3.bf16.msra.mxu0 %v6996_v8  ;;  %v1364_v8 = vrot.slane %v1362_v6, 4  ;;  %v3823_v49 = vrot.slane %v3822_v59, 4  ;;  %v8091_v21 = vsel %vm7532_vm6, %v5529_v5, %v1355_v35  ;;  %v3836_v24 = vor.u32 %v3835_v51, %v3832_v22  ;;  %v7051_v22 = vld [vmem:[%s7272_s27 + $0x88] sm:$0xf] }
  0xcd   : > { %6576 = vmatprep.subr.bf16.mxu0 %v8052_v0  ;;  %v3846_v9 = vor.u32 %v3845_v20, %v8069_v56  ;;  %v1369_v10 = vrot.slane %v7050_v17, 5  ;;  %v8102_v5 = vsel %vm7532_vm6, %v1357_v30, %v1358_v11  ;;  %v8106_v51 = vsel %vm7532_vm6, %v5530_v52, %v1362_v6  ;;  %v1257_v11 = vld [vmem:[%s7272_s27 + $0x84] sm:$0xe]  ;;  %v5911_v52 = vld [vmem:[%s7272_s27 + $0x40] sm:$0xf] }
  0xce   : > { %6513 = vmatmul.mubr.msk.bf16.gmra.mrb[8].mxu0 %vm723_vm3, %v6983_v28  ;;  %v3859_v28 = vrot.slane %v3857_v53, 5  ;;  %v8110_v19 = vsel %vm7532_vm6, %v1364_v8, %v1365_v4  ;;  %v5910_v53 = vld [vmem:[%s7272_s27 + $0x3c] sm:$0xf]  ;;  %v3818_v55 = vsel %vm7299_vm2, %v3813_v25, %v8039_v32  ;;  %v3828_v18 = vsel %vm7299_vm2, %v3823_v49, %v8059_v16  ;;  %v7052_v20 = vld [vmem:[%s7272_s27 + $0x80] sm:$0x1] }
  0xcf   : > { %6329 = vmatmul.mubr.msk.bf16.gmra.mrb[24].mxu1 %vm723_vm3, %v5498_v39  ;;  %6516 = vmatprep.mubr.msk.bf16.mxu0 %vm723_vm3, %v6985_v31  ;;  %v3856_v39 = vrot.slane %v3854_v38, 4  ;;  %v3873_v38 = vshll.u32 %v5909_v45, 16  ;;  %v3870_v30 = vor.u32 %v3869_v60, %v8085_v61  ;;  %v1376_v6 = vrot.slane %v7051_v22, 5  ;;  %v6992_v22 = vld [vmem:[%s7272_s27 + $0x90] sm:$0xff]  }
  0xd0   : > { %6332 = vmatprep.mubr.msk.bf16.mxu1 %vm723_vm3, %v9300_v14  ;;  %v3837_v26 = vrot.slane %v3836_v24, 4  ;;  %v3851_v8 = vrot.slane %v3849_v33, 5  ;;  %v5531_v4 = vrot.slane %v1256_v58, 9  ;;  %v1372_v45 = vrot.slane %v7052_v20, 5  ;;  %v6991_v33 = vld [vmem:[%s7272_s27 + $0x84] sm:$0xff]  }
  0xd1   : > { %v3860_v35 = vor.u32 %v3859_v28, %v3856_v39  ;;  %v9301_v32 = vcombine.low %v7702_v50, %v7705_v13  ;;  %v3847_v16 = vrot.slane %v3846_v9, 4  ;;  %v1371_v14 = vrot.slane %v1369_v10, 4  ;;  %v5912_v13 = vld [vmem:[%s7272_s27 + $0x44] sm:$0x1]  ;;  %v7053_v58 = vld [vmem:[%s7272_s27 + $0x8c] sm:$0x1] }
  0xd2   : > { %v3875_v39 = vrot.slane %v3873_v38, 5  ;;  %v3878_v28 = vshrl.u32 %v5910_v53, 16  ;;  %v9302_v25 = vcombine.low %v7923_v43, %v7936_v63  ;;  %v5532_v50 = vrot.slane %v1257_v11, 9  ;;  %v5913_v43 = vld [vmem:[%s7272_s27 + $0x48] sm:$0xf] }
  0xd3   : > { %v3861_v49 = vrot.slane %v3860_v35, 4  ;;  %v3881_v60 = vshll.u32 %v5910_v53, 16  ;;  %v3887_v24 = vshll.u32 %v5911_v52, 16  ;;  %v1378_v9 = vrot.slane %v1376_v6, 4  ;;  %v8149_v11 = vld [vmem:[%s7272_s27 + $0x4c] sm:$0xf] }
  0xd4   : > { %v1379_v17 = vrot.slane %v7053_v58, 5  ;;  %v3891_v38 = vshrl.u32 %v5911_v52, 16  ;;  %v8146_v53 = vsel %vm7532_vm6, %v5531_v4, %v1369_v10  ;;  %v6994_v52 = vld [vmem:[%s9278_s1 + $0x68] sm:$0xff]   ;;  %v8163_v10 = vsel %vm7532_vm6, %v1371_v14, %v1372_v45  ;;  %v8166_v20 = vld [vmem:[%s7272_s27 + $0x58] sm:$0xf] }
  0xd5   : > { %v3880_v4 = vrot.slane %v3878_v28, 4  ;;  %v3897_v14 = vshll.u32 %v5912_v13, 16  ;;  %v1258_v28 = vld [vmem:[%s7272_s27 + $0x90] sm:$0xe]  ;;  %v3902_v58 = vshrl.u32 %v5913_v43, 16  ;;  %v3905_v35 = vshll.u32 %v5913_v43, 16 }
  0xd6   : > { %6517 = vmatmul.mubr.msk.bf16.gmra.mrb[12].mxu0 %vm723_vm3, %v6987_v3  ;;  %v3871_v3 = vrot.slane %v3870_v30, 4  ;;  %v5916_v30 = vld [vmem:[%s7272_s27 + $0x54] sm:$0xf]  ;;  %v8181_v45 = vsel %vm7532_vm6, %v1378_v9, %v1379_v17  ;;  %v5533_v9 = vrot.slane %v1258_v28, 9  ;;  %v5919_v17 = vld [vmem:[%s7272_s27 + $0x60] sm:$0xf] }
  0xd7   : > { %6333 = vmatmul.mubr.msk.bf16.gmra.mrb[28].mxu1 %vm723_vm3, %v9301_v32  ;;  %6520 = vmatprep.mubr.msk.bf16.mxu0 %vm723_vm3, %v6989_v15  ;;  %v8140_v15 = vcombine.low %v3818_v55, %v3828_v18  ;;  %v3842_v55 = vsel %vm7299_vm2, %v3837_v26, %v8069_v56  ;;  %v3852_v18 = vsel %vm7299_vm2, %v3847_v16, %v3851_v8  ;;  %v3883_v56 = vrot.slane %v3881_v60, 5  ;;  %v7055_v63 = vld [vmem:[%s7272_s27 + $0x98] sm:$0x1] }
  0xd8   : > { %6344 = vmatprep.mubr.msk.bf16.mxu1 %vm723_vm3, %v9302_v25  ;;  %v3866_v32 = vsel %vm7299_vm2, %v3861_v49, %v8085_v61  ;;  %v8173_v25 = vsel %vm7532_vm6, %v5532_v50, %v1376_v6  ;;  %v8175_v26 = vrot.slane %v3887_v24, 5  ;;  %v3876_v8 = vsel %vm7299_vm2, %v3871_v3, %v3875_v39  ;;  %v8192_v39 = vld [vmem:[%s7272_s27 + $0x50] sm:$0x1] }
  0xd9   : > { %v3893_v16 = vrot.slane %v3891_v38, 4  ;;  %v3911_v61 = vshll.u32 %v8149_v11, 16  ;;  %v3915_v6 = vshrl.u32 %v8149_v11, 16  ;;  %v9303_v49 = vcombine.low %v7927_v7, %v7940_v46  ;;  %v8207_v38 = vld [vmem:[%s7272_s27 + $0x64] sm:$0xf] }
  0xda   : > { %v3926_v50 = vshrl.u32 %v5916_v30, 16  ;;  %v3929_v13 = vshll.u32 %v5916_v30, 16  ;;  %v3935_v60 = vshll.u32 %v8166_v20, 16  ;;  %v3939_v24 = vshrl.u32 %v8166_v20, 16  ;;  %9305 = vst [vmem:[#allocation7_spill] sm:$0xff] %v8207_v38 }
  0xdb   : > { %v9304_v3 = vcombine.low %v7944_v47, %v7954_v2  ;;  %v8201_v7 = vcombine.low %v3842_v55, %v3852_v18  ;;  %v7000_v47 = vld [vmem:[%s9278_s1 + $0x70] sm:$0xff]   ;;  %v8214_v2 = vcombine.low %v3866_v32, %v3876_v8  ;;  %v3894_v30 = vor.u32 %v3893_v16, %v8175_v26  ;;  %v6995_v18 = vld [vmem:[%s7272_s27 + $0xa8] sm:$0xff]  }
  0xdc   : > { %v8219_v55 = vrot.slane %v3897_v14, 5  ;;  %v3917_v28 = vrot.slane %v3915_v6, 4  ;;  %v3928_v32 = vrot.slane %v3926_v50, 4  ;;  %v3931_v8 = vrot.slane %v3929_v13, 5  ;;  %v7054_v16 = vld [vmem:[%s7272_s27 + $0x94] sm:$0xf] }
  0xdd   : > { %v3941_v46 = vrot.slane %v3939_v24, 4  ;;  %v1383_v14 = vrot.slane %v7054_v16, 5  ;;  %v3950_v6 = vshrl.u32 %v5919_v17, 16  ;;  %v3953_v59 = vshll.u32 %v5919_v17, 16 }
  0xde   : > { %6521 = vmatmul.mubr.msk.bf16.gmra.mrb[16].mxu0 %vm723_vm3, %v6991_v33  ;;  %v3884_v33 = vor.u32 %v3883_v56, %v3880_v4  ;;  %v3904_v4 = vrot.slane %v3902_v58, 4  ;;  %v8222_v56 = vrot.slane %v3911_v61, 5  ;;  %v1386_v58 = vrot.slane %v7055_v63, 5  ;;  %v8235_v61 = vld [vmem:[%s7272_s27 + $0x5c] sm:$0x1] }
  0xdf   : > { %6345 = vmatmul.mubr.msk.bf16.vlgmr.msra.gmra.mrb[0].mxu1 %vm723_vm3, %v9303_v49  ;;  %6524 = vmatprep.mubr.msk.bf16.mxu0 %vm723_vm3, %v6992_v22  ;;  %v3907_v22 = vrot.slane %v3905_v35, 5  ;;  %v8225_v49 = vld [vmem:[%s7272_s27 + $0x9c] sm:$0xe]  ;;  %v3921_v35 = vshll.u32 %v8192_v39, 16  ;;  %9306 = vst [vmem:[#allocation8_spill] sm:$0xff] %v8235_v61  ;;  %v3959_v50 = vshll.u32 %v8207_v38, 16  ;;  %v9307_v17 = vcombine.low %v7963_v23, %v7967_v12 }
  0xe0   : > { %6377 = vmatpush3.bf16.msra.mxu1 %v7853_v40  ;;  %6348 = vmatprep.mubr.msk.bf16.mxu1 %vm723_vm3, %v9304_v3  ;;  %v6993_v40 = vld [vmem:[%s7272_s27 + $0x9c] sm:$0xff]   ;;  %v8227_v3 = vrot.slane %v3935_v60, 5  ;;  %v8229_v43 = vrot.slane %v3884_v33, 4  ;;  %v3963_v13 = vshrl.u32 %v8207_v38, 16  ;;  %v8239_v60 = vrot.slane %v3894_v30, 4 }
  0xe1   : > { %6378 = vmatprep.subr.bf16.mxu1 %v6994_v52  ;;  %v3908_v24 = vor.u32 %v3907_v22, %v3904_v4  ;;  %v3918_v63 = vor.u32 %v3917_v28, %v8222_v56  ;;  %v7056_v33 = vld [vmem:[%s7272_s27 + $0xa0] sm:$0xf]  ;;  %v8253_v30 = vsel %vm7532_vm6, %v5533_v9, %v1383_v14  ;;  %v3932_v31 = vor.u32 %v3931_v8, %v3928_v32  ;;  %v1260_v9 = vld [vmem:[%s7272_s27 + $0xa8] sm:$0xe]  ;;  %v7057_v28 = vld [vmem:[%s7272_s27 + $0xac] sm:$0xf] }
  0xe2   : > { %v1390_v16 = vrot.slane %v7056_v33, 5  ;;  %v3942_v44 = vor.u32 %v3941_v46, %v8227_v3  ;;  %v3945_v4 = vshll.u32 %v8235_v61, 16  ;;  %v9308_v22 = vcombine.low %v7988_v36, %v7992_v48  ;;  %v1261_v61 = vld [vmem:[%s7272_s27 + $0xb4] sm:$0xe] }
  0xe3   : > { %v1385_v23 = vrot.slane %v1383_v14, 4  ;;  %v3923_v12 = vrot.slane %v3921_v35, 5  ;;  %v1397_v32 = vrot.slane %v7057_v28, 5  ;;  %v3952_v46 = vrot.slane %v3950_v6, 4  ;;  %v7058_v35 = vld [vmem:[%s7272_s27 + $0xa4] sm:$0x1] }
  0xe4   : > { %6379 = vmatpush3.bf16.msra.mxu1 %v6994_v52  ;;  %v7002_v52 = vld [vmem:[%s9278_s1 + $0x78] sm:$0xff]   ;;  %v3955_v8 = vrot.slane %v3953_v59, 5  ;;  %v8265_v33 = vrot.slane %v3959_v50, 5  ;;  %v3965_v36 = vrot.slane %v3963_v13, 4  ;;  %v3909_v48 = vrot.slane %v3908_v24, 4  ;;  %v6998_v59 = vld [vmem:[%s7272_s27 + $0xc0] sm:$0xff]  }
  0xe5   : > { %6380 = vmatprep.subr.bf16.mxu1 %v7000_v47  ;;  %v1392_v14 = vrot.slane %v1390_v16, 4  ;;  %v3933_v38 = vrot.slane %v3932_v31, 4  ;;  %v3947_v6 = vrot.slane %v3945_v4, 5  ;;  %v5535_v28 = vrot.slane %v1260_v9, 9 }
  0xe6   : > { %6525 = vmatmul.mubr.msk.bf16.gmra.mrb[20].mxu0 %vm723_vm3, %v6993_v40  ;;  %v5534_v40 = vrot.slane %v8225_v49, 9  ;;  %v6997_v49 = vld [vmem:[%s7272_s27 + $0xb4] sm:$0xff]   ;;  %v3890_v50 = vsel %vm7299_vm2, %v8229_v43, %v8175_v26  ;;  %v3900_v13 = vsel %vm7299_vm2, %v8239_v60, %v8219_v55  ;;  %v1399_v24 = vrot.slane %v1397_v32, 4  ;;  %v5922_v26 = vld [vmem:[%s7272_s27 + $0x6c] sm:$0xf] }
  0xe7   : > { %6349 = vmatmul.mubr.msk.bf16.gmra.mrb[4].mxu1 %vm723_vm3, %v9307_v17  ;;  %6528 = vmatprep.mubr.msk.bf16.mxu0 %vm723_vm3, %v6995_v18  ;;  %v3919_v18 = vrot.slane %v3918_v63, 4  ;;  %v1393_v17 = vrot.slane %v7058_v35, 5  ;;  %v7059_v63 = vld [vmem:[%s7272_s27 + $0xb0] sm:$0x1]  ;;  %v8284_v31 = vsel %vm7532_vm6, %v1385_v23, %v1386_v58  ;;  %v3966_v4 = vor.u32 %v3965_v36, %v8265_v33 }
  0xe8   : > { %6352 = vmatprep.mubr.msk.bf16.mxu1 %vm723_vm3, %v9308_v22  ;;  %6381 = vmatpush3.bf16.msra.mxu1 %v7000_v47  ;;  %v8269_v22 = vld [vmem:[%s7272_s27 + $0x68] sm:$0x1]  ;;  %v3943_v47 = vrot.slane %v3942_v44, 4  ;;  %v1400_v35 = vrot.slane %v7059_v63, 5  ;;  %v3956_v44 = vor.u32 %v3955_v8, %v3952_v46  ;;  %v3914_v43 = vsel %vm7299_vm2, %v3909_v48, %v8222_v56 }
  0xe9   : > { %6382 = vmatprep.subr.bf16.mxu1 %v7002_v52  ;;  %v3969_v9 = vshll.u32 %v8269_v22, 16  ;;  %v3924_v55 = vsel %vm7299_vm2, %v3919_v18, %v3923_v12  ;;  %v8297_v58 = vsel %vm7532_vm6, %v5534_v40, %v1390_v16  ;;  %v8301_v60 = vsel %vm7532_vm6, %v1392_v14, %v1393_v17 }
  0xea   : > { %v9310_v56 = vor.u32 %v7884_v54, %v7882_v1  ;;  %v9312_v16 = vcombine.low %v8004_v42, %v8008_v37  ;;  %v3938_v12 = vsel %vm7299_vm2, %v3933_v38, %v8227_v3  ;;  %v3948_v40 = vsel %vm7299_vm2, %v3943_v47, %v3947_v6  ;;  %v7061_v38 = vld [vmem:[%s7272_s27 + $0xb8] sm:$0xf]  ;;  %v8359_v47 = vld [vmem:[%s7272_s27 + $0x7c] sm:$0xf]  ;;  %v5928_v6 = vld [vmem:[%s7272_s27 + $0x84] sm:$0xf] }
  0xeb   : > { %v8326_v46 = vsel %vm7532_vm6, %v5535_v28, %v1397_v32  ;;  %v9313_v54 = vcombine.low %v8037_v27, %v8047_v34  ;;  %v8335_v42 = vsel %vm7532_vm6, %v1399_v24, %v1400_v35  ;;  %v5536_v37 = vrot.slane %v1261_v61, 9  ;;  %v8339_v32 = vld [vmem:[%s7272_s27 + $0x70] sm:$0xf]  ;;  %9315 = vst [vmem:[#allocation12_spill] sm:$0xff] %v8359_v47  ;;  %v8371_v35 = vld [vmem:[%s7272_s27 + $0x88] sm:$0xf] }
  0xec   : > { %6383 = vmatpush3.bf16.msra.mxu1 %v7002_v52  ;;  %v8306_v52 = vld [vmem:[%s9278_s1 + $0x80] sm:$0xff]   ;;  %v8312_v23 = vrot.slane %v9310_v56, 4  ;;  %v1404_v3 = vrot.slane %v7061_v38, 5  ;;  %9314 = vst [vmem:[#allocation11_spill] sm:$0xff] %v8339_v32  ;;  %v3974_v8 = vshrl.u32 %v5922_v26, 16  ;;  %v8341_v27 = vcombine.low %v3890_v50, %v3900_v13  ;;  %v6999_v28 = vld [vmem:[%s7272_s27 + $0xcc] sm:$0xff]  }
  0xed   : > { %9309 = vst [vmem:[#allocation9_spill] sm:$0xff] %v8306_v52  ;;  %6616 = vmatprep.subr.bf16.mxu1 %v8306_v52  ;;  %v8343_v34 = vrot.slane %v3956_v44, 4  ;;  %v8345_v36 = vrot.slane %v3966_v4, 4  ;;  %v8347_v48 = vrot.slane %v3969_v9, 5  ;;  %v8351_v61 = vcombine.low %v3914_v43, %v3924_v55  ;;  %v8366_v50 = vld [vmem:[%s7272_s27 + $0xbc] sm:$0x1] }
  0xee   : > { %9311 = vst [vmem:[#allocation10_spill] sm:$0xff] %v8312_v23  ;;  %6529 = vmatmul.mubr.msk.bf16.gmra.mrb[24].mxu0 %vm723_vm3, %v6997_v49  ;;  %v8355_v17 = vcombine.low %v3938_v12, %v3948_v40  ;;  %v5925_v49 = vld [vmem:[%s7272_s27 + $0x78] sm:$0xf]  ;;  %v3977_v24 = vshll.u32 %v5922_v26, 16  ;;  %v3983_v63 = vshll.u32 %v8339_v32, 16  ;;  %9316 = vst [vmem:[#allocation13_spill] sm:$0xff] %v8371_v35  ;;  %v8375_v44 = vsel %vm7532_vm6, %v5536_v37, %v1404_v3 }
  0xef   : > { %6353 = vmatmul.mubr.msk.bf16.gmra.mrb[8].mxu1 %vm723_vm3, %v9312_v16  ;;  %6532 = vmatprep.mubr.msk.bf16.mxu0 %vm723_vm3, %v6998_v59  ;;  %v8377_v4 = vrot.slane %v1404_v3, 4  ;;  %v8379_v9 = vrot.slane %v3974_v8, 4  ;;  %v3987_v43 = vshrl.u32 %v8339_v32, 16  ;;  %v5931_v55 = vld [vmem:[%s7272_s27 + $0x90] sm:$0xf]  ;;  %v3998_v16 = vshrl.u32 %v5925_v49, 16 }
  0xf0   : > { %6356 = vmatprep.mubr.msk.bf16.mxu1 %vm723_vm3, %v9313_v54  ;;  %v4001_v12 = vshll.u32 %v5925_v49, 16  ;;  %v8392_v40 = vld [vmem:[%s7272_s27 + $0x94] sm:$0xf]  ;;  %v4007_v37 = vshll.u32 %v8359_v47, 16  ;;  %v4011_v38 = vshrl.u32 %v8359_v47, 16  ;;  %v4022_v3 = vshrl.u32 %v5928_v6, 16 }
  0xf1   : > { %9317 = vst [vmem:[#allocation14_spill] sm:$0xff] %v8392_v40  ;;  %v8395_v54 = vld [vmem:[%s7272_s27 + $0x74] sm:$0x1]  ;;  %v4025_v8 = vshll.u32 %v5928_v6, 16  ;;  %v9319_v59 = vcombine.low %v8079_v62, %v8083_v41  ;;  %v4031_v49 = vshll.u32 %v8371_v35, 16  ;;  %v4035_v14 = vshrl.u32 %v8371_v35, 16 }
  0xf2   : > { %9318 = vst [vmem:[#allocation15_spill] sm:$0xff] %v8395_v54  ;;  %v4046_v26 = vshrl.u32 %v5931_v55, 16  ;;  %v4049_v56 = vshll.u32 %v5931_v55, 16  ;;  %v9320_v18 = vcombine.low %v8091_v21, %v8102_v5  ;;  %v3979_v62 = vrot.slane %v3977_v24, 5  ;;  %v8415_v6 = vld [vmem:[%s7272_s27 + $0x80] sm:$0x1] }
  0xf3   : > { %v8412_v41 = vrot.slane %v3983_v63, 5  ;;  %v3989_v55 = vrot.slane %v3987_v43, 4  ;;  %v3993_v13 = vshll.u32 %v8395_v54, 16  ;;  %v4000_v21 = vrot.slane %v3998_v16, 4  ;;  %v8424_v24 = vld [vmem:[%s7272_s27 + $0x8c] sm:$0x1] }
  0xf4   : > { %v4003_v5 = vrot.slane %v4001_v12, 5  ;;  %v8421_v1 = vrot.slane %v4007_v37, 5  ;;  %v4024_v63 = vrot.slane %v4022_v3, 4  ;;  %v4027_v52 = vrot.slane %v4025_v8, 5  ;;  %v8432_v43 = vld [vmem:[%s7272_s27 + $0x98] sm:$0x1] }
  0xf5   : > { %v8426_v35 = vrot.slane %v4031_v49, 5  ;;  %v4037_v23 = vrot.slane %v4035_v14, 4  ;;  %v4048_v47 = vrot.slane %v4046_v26, 4  ;;  %v4051_v32 = vrot.slane %v4049_v56, 5  ;;  %9322 = vst [vmem:[#allocation17_spill] sm:$0xff] %v8432_v43 }
  0xf6   : > { %6533 = vmatmul.mubr.msk.bf16.gmra.mrb[28].mxu0 %vm723_vm3, %v6999_v28  ;;  %v4055_v28 = vshll.u32 %v8392_v40, 16  ;;  %v3980_v3 = vor.u32 %v3979_v62, %v8379_v9  ;;  %v3990_v8 = vor.u32 %v3989_v55, %v8412_v41  ;;  %v4004_v14 = vor.u32 %v4003_v5, %v4000_v21 }
  0xf7   : > { %6357 = vmatmul.mubr.msk.bf16.gmra.mrb[12].mxu1 %vm723_vm3, %v9319_v59  ;;  %6544 = vmatprep.mubr.msk.bf16.mxu0 %vm723_vm3, %v8140_v15  ;;  %v4059_v59 = vshrl.u32 %v8392_v40, 16  ;;  %v4013_v15 = vrot.slane %v4011_v38, 4  ;;  %v8429_v40 = vld [vmem:[%s7272_s27 + $0xa0] sm:$0xf]  ;;  %v7003_v38 = vld [vmem:[%s9278_s1 + $0x108] sm:$0xff]   ;;  %v4017_v26 = vshll.u32 %v8415_v6, 16  ;;  %v4028_v49 = vor.u32 %v4027_v52, %v4024_v63 }
  0xf8   : > { %6360 = vmatprep.mubr.msk.bf16.mxu1 %vm723_vm3, %v9320_v18  ;;  %v5934_v18 = vld [vmem:[%s7272_s27 + $0x9c] sm:$0xf]  ;;  %9321 = vst [vmem:[#allocation16_spill] sm:$0xff] %v8429_v40  ;;  %v8434_v54 = vrot.slane %v4055_v28, 5  ;;  %v4079_v28 = vshll.u32 %v8429_v40, 16  ;;  %v4038_v9 = vor.u32 %v4037_v23, %v8426_v35  ;;  %v4041_v62 = vshll.u32 %v8424_v24, 16 }
  0xf9   : > { %v4061_v16 = vrot.slane %v4059_v59, 4  ;;  %v4070_v12 = vshrl.u32 %v5934_v18, 16  ;;  %v4073_v37 = vshll.u32 %v5934_v18, 16  ;;  %v4014_v56 = vor.u32 %v4013_v15, %v8421_v1 }
  0xfa   : > { %v4083_v59 = vshrl.u32 %v8429_v40, 16  ;;  %v9323_v18 = vcombine.low %v8106_v51, %v8110_v19  ;;  %v4052_v55 = vor.u32 %v4051_v32, %v4048_v47  ;;  %v4065_v52 = vshll.u32 %v8432_v43, 16  ;;  %v7005_v19 = vld [vmem:[%s9278_s1 + $0x110] sm:$0xff]   ;;  %v5937_v47 = vld [vmem:[%s7272_s27 + $0xa8] sm:$0xf] }
  0xfb   : > { %v9324_v21 = vcombine.low %v8146_v53, %v8163_v10  ;;  %v3995_v51 = vrot.slane %v3993_v13, 5  ;;  %v4072_v23 = vrot.slane %v4070_v12, 4  ;;  %v4075_v5 = vrot.slane %v4073_v37, 5  ;;  %v8469_v40 = vld [vmem:[%s7272_s27 + $0xa4] sm:$0x1] }
  0xfc   : > { %v3991_v32 = vrot.slane %v3990_v8, 4  ;;  %v4005_v53 = vrot.slane %v4004_v14, 4  ;;  %v4019_v10 = vrot.slane %v4017_v26, 5  ;;  %v4015_v13 = vrot.slane %v4014_v56, 4 }
  0xfd   : > { %v4029_v15 = vrot.slane %v4028_v49, 4  ;;  %v8466_v63 = vrot.slane %v4079_v28, 5  ;;  %v4053_v12 = vrot.slane %v4052_v55, 4  ;;  %v4067_v37 = vrot.slane %v4065_v52, 5 }
  0xfe   : > { %6545 = vmatmul.mubr.msk.bf16.vlgmr.msra.gmra.mrb[0].mxu0 %vm723_vm3, %v8201_v7  ;;  %v4062_v7 = vor.u32 %v4061_v16, %v8434_v54  ;;  %v4043_v16 = vrot.slane %v4041_v62, 5  ;;  %v4076_v43 = vor.u32 %v4075_v5, %v4072_v23  ;;  %v4094_v8 = vshrl.u32 %v5937_v47, 16 }
  0xff   : > { %6361 = vmatmul.mubr.msk.bf16.gmra.mrb[16].mxu1 %vm723_vm3, %v9323_v18  ;;  %6577 = vmatpush3.bf16.msra.mxu0 %v8052_v0  ;;  %v3981_v0 = vrot.slane %v3980_v3, 4  ;;  %v4085_v18 = vrot.slane %v4083_v59, 4  ;;  %v8472_v3 = vld [vmem:[%s7272_s27 + $0xac] sm:$0xf]  ;;  %v4097_v14 = vshll.u32 %v5937_v47, 16  ;;  %v9325_v26 = vrot.slane %v8366_v50, 5 }
 0x100   : > { %6364 = vmatprep.mubr.msk.bf16.mxu1 %vm723_vm3, %v9324_v21  ;;  %6548 = vmatprep.mubr.msk.bf16.mxu0 %vm723_vm3, %v8214_v2  ;;  %v4039_v21 = vrot.slane %v4038_v9, 4  ;;  %v4063_v2 = vrot.slane %v4062_v7, 4  ;;  %v4010_v28 = vsel %vm7299_vm2, %v4005_v53, %v8421_v1  ;;  %v4020_v50 = vsel %vm7299_vm2, %v4015_v13, %v4019_v10  ;;  %v7010_v9 = vld [vmem:[%s9278_s1 + $0x118] sm:$0xff]   ;;  %v5998_v47 = vld [vmem:[%s7272_s27 + $0x54] sm:$0xe] }
 0x101   : > { %6578 = vmatprep.subr.bf16.mxu0 %v7003_v38  ;;  %v8479_v56 = vsel %vm7532_vm6, %v8377_v4, %v9325_v26  ;;  %v3986_v49 = vsel %vm7299_vm2, %v3981_v0, %v8412_v41  ;;  %v4034_v4 = vsel %vm7299_vm2, %v4029_v15, %v8426_v35  ;;  %v4086_v59 = vor.u32 %v4085_v18, %v8466_v63 }
 0x102   : > { %v4089_v41 = vshll.u32 %v8469_v40, 16  ;;  %v9326_v1 = vcombine.low %v8173_v25, %v8181_v45  ;;  %v4044_v62 = vsel %vm7299_vm2, %v4039_v21, %v4043_v16  ;;  %v4058_v35 = vsel %vm7299_vm2, %v4053_v12, %v8434_v54  ;;  %v8524_v54 = vld [vmem:[%s7272_s27 + $0xb0] sm:$0x1]  ;;  %v5999_v12 = vld [vmem:[%s7272_s27 + $0x60] sm:$0xe] }
 0x103   : > { %6579 = vmatpush3.bf16.msra.mxu0 %v7003_v38  ;;  %v3996_v38 = vsel %vm7299_vm2, %v3991_v32, %v3995_v51  ;;  %v4103_v55 = vshll.u32 %v8472_v3, 16  ;;  %v4107_v52 = vshrl.u32 %v8472_v3, 16  ;;  %v5997_v51 = vld [vmem:[%s7272_s27 + $0x48] sm:$0xe]  ;;  %v9327_v25 = vcombine.low %v8253_v30, %v8284_v31  ;;  %v5940_v32 = vld [vmem:[%s7272_s27 + $0xb4] sm:$0xf] }
 0x104   : > { %6580 = vmatprep.subr.bf16.mxu0 %v7005_v19  ;;  %v4068_v45 = vsel %vm7299_vm2, %v4063_v2, %v4067_v37  ;;  %v4096_v7 = vrot.slane %v4094_v8, 4  ;;  %v4099_v23 = vrot.slane %v4097_v14, 5  ;;  %v9328_v30 = vsel %vm7299_vm2, %v8345_v36, %v8347_v48  ;;  %v9330_v14 = vld [vmem:[#allocation8_spill] sm:$0xff] }
 0x105   : > { %v9329_v31 = vsel %vm7299_vm2, %v8343_v34, %v8265_v33  ;;  %v5560_v5 = vcombine.low %v8375_v44, %v8479_v56  ;;  %v8540_v0 = vcombine.low %v4010_v28, %v4020_v50  ;;  %v8543_v53 = vcombine.low %v4034_v4, %v4044_v62  ;;  %v8575_v50 = vld [vmem:[%s7272_s27 + $0xb8] sm:$0xf] }
 0x106   : > { %6549 = vmatmul.mubr.msk.bf16.gmra.mrb[4].mxu0 %vm723_vm3, %v8341_v27  ;;  %v8521_v27 = vrot.slane %v4076_v43, 4  ;;  %v8538_v43 = vcombine.low %v3986_v49, %v3996_v38  ;;  %v4087_v10 = vrot.slane %v4086_v59, 4  ;;  %v4091_v36 = vrot.slane %v4089_v41, 5  ;;  %v6000_v49 = vld [vmem:[%s7272_s27 + $0x6c] sm:$0xe] }
 0x107   : > { %6365 = vmatmul.mubr.msk.bf16.gmra.mrb[20].mxu1 %vm723_vm3, %v9326_v1  ;;  %6552 = vmatprep.mubr.msk.bf16.mxu0 %vm723_vm3, %v8351_v61  ;;  %v5963_v61 = vcombine.low %v9329_v31, %v9328_v30  ;;  %v6013_v48 = vrot.slane %v5997_v51, 9  ;;  %v8546_v33 = vcombine.low %v4058_v35, %v4068_v45  ;;  %v8548_v34 = vrot.slane %v4103_v55, 5  ;;  %v5943_v45 = vld [vmem:[%s7272_s27 + $0xc0] sm:$0xf] }
 0x108   : > { %6368 = vmatprep.mubr.msk.bf16.mxu1 %vm723_vm3, %v9327_v25  ;;  %6581 = vmatpush3.bf16.msra.mxu0 %v7005_v19  ;;  %v4109_v13 = vrot.slane %v4107_v52, 4  ;;  %v4113_v15 = vshll.u32 %v8524_v54, 16  ;;  %v4082_v19 = vsel %vm7299_vm2, %v8521_v27, %v8466_v63  ;;  %v4100_v18 = vor.u32 %v4099_v23, %v4096_v7  ;;  %v9335_v52 = vld [vmem:[#allocation15_spill] sm:$0xff] }
 0x109   : > { %6582 = vmatprep.subr.bf16.mxu0 %v7010_v9  ;;  %v4605_v21 = vrot.slane %v8149_v11, 5  ;;  %v4608_v16 = vrot.slane %v8192_v39, 5  ;;  %v4118_v37 = vshrl.u32 %v5940_v32, 16  ;;  %v6014_v2 = vrot.slane %v5998_v47, 9 }
 0x10a   : > { %v4612_v8 = vrot.slane %v8166_v20, 5  ;;  %v4615_v26 = vrot.slane %v9330_v14, 5  ;;  %v4092_v38 = vsel %vm7299_vm2, %v4087_v10, %v4091_v36  ;;  %v4121_v28 = vshll.u32 %v5940_v32, 16  ;;  %v6001_v32 = vld [vmem:[%s7272_s27 + $0x78] sm:$0xe]  ;;  %v7004_v10 = vld [vmem:[%s7272_s27 + $0xc] sm:$0xff]  }
 0x10b   : > { %v8565_v63 = vsel %vm7532_vm6, %v6013_v48, %v4605_v21  ;;  %v4607_v11 = vrot.slane %v4605_v21, 4  ;;  %v9331_v39 = vcombine.low %v8297_v58, %v8301_v60  ;;  %v4110_v20 = vor.u32 %v4109_v13, %v8548_v34  ;;  %v9333_v60 = vld [vmem:[#allocation7_spill] sm:$0xff] }
 0x10c   : > { %6583 = vmatpush3.bf16.msra.mxu0 %v7010_v9  ;;  %v8579_v4 = vsel %vm7532_vm6, %v6014_v2, %v4612_v8  ;;  %v4614_v59 = vrot.slane %v4612_v8, 4  ;;  %v6015_v41 = vrot.slane %v5999_v12, 9  ;;  %v9332_v9 = vcombine.low %v8326_v46, %v8335_v42  ;;  %v9334_v42 = vld [vmem:[#allocation11_spill] sm:$0xff]  ;;  %v8633_v12 = vld [vmem:[%s7272_s27 + $0xc4] sm:$0xf] }
 0x10d   : > { %v8588_v58 = vsel %vm7532_vm6, %v4607_v11, %v4608_v16  ;;  %v4622_v1 = vrot.slane %v8269_v22, 5  ;;  %v6016_v62 = vrot.slane %v6000_v49, 9  ;;  %v4626_v55 = vrot.slane %v9334_v42, 5  ;;  %v8653_v49 = vld [vmem:[%s7272_s27 + $0xbc] sm:$0x1]  ;;  %v9339_v42 = vld [vmem:[#allocation13_spill] sm:$0xff] }
 0x10e   : > { %6553 = vmatmul.mubr.msk.bf16.gmra.mrb[8].mxu0 %vm723_vm3, %v8355_v17  ;;  %v4619_v17 = vrot.slane %v9333_v60, 5  ;;  %v6037_v35 = vcombine.low %v8565_v63, %v8588_v58  ;;  %v8596_v46 = vsel %vm7532_vm6, %v4614_v59, %v4615_v26  ;;  %v4629_v51 = vrot.slane %v9335_v52, 5  ;;  %v6002_v26 = vld [vmem:[%s7272_s27 + $0x84] sm:$0xe]  ;;  %v9338_v59 = vld [vmem:[#allocation10_spill] sm:$0xff]  ;;  %v7006_v52 = vld [vmem:[%s7272_s27 + $0x18] sm:$0xff]  }
 0x10f   : > { %6369 = vmatmul.mubr.msk.bf16.gmra.mrb[24].mxu1 %vm723_vm3, %v9331_v39  ;;  %6556 = vmatprep.mubr.msk.bf16.mxu0 %vm723_vm3, %v5963_v61  ;;  %v4127_v25 = vshll.u32 %v8575_v50, 16  ;;  %v6038_v22 = vcombine.low %v8579_v4, %v8596_v46  ;;  %v8608_v23 = vrot.slane %v4113_v15, 5  ;;  %v4131_v30 = vshrl.u32 %v8575_v50, 16  ;;  %v5684_v15 = vld [vmem:[%s7272_s27 + $0x78] sm:$0xf] }
 0x110   : > { %6372 = vmatprep.mubr.msk.bf16.mxu1 %vm723_vm3, %v9332_v9  ;;  %v8606_v27 = vsel %vm7532_vm6, %v6015_v41, %v4619_v17  ;;  %v4621_v7 = vrot.slane %v4619_v17, 4  ;;  %v8613_v31 = vsel %vm7532_vm6, %v6016_v62, %v4626_v55  ;;  %v4628_v61 = vrot.slane %v4626_v55, 4  ;;  %v7079_v46 = vld [vmem:[%s7272_s27 + $0x8c] sm:$0x1] }
 0x111   : > { %v8617_v36 = vcombine.low %v4082_v19, %v4092_v38  ;;  %v8619_v48 = vrot.slane %v4100_v18, 4  ;;  %v8621_v47 = vrot.slane %v4118_v37, 4  ;;  %v8628_v21 = vrot.slane %v4110_v20, 4 }
 0x112   : > { %v8625_v13 = vsel %vm7532_vm6, %v4621_v7, %v4622_v1  ;;  %v8630_v16 = vrot.slane %v4121_v28, 5  ;;  %v8639_v18 = vsel %vm7532_vm6, %v4628_v61, %v4629_v51  ;;  %v8641_v37 = vrot.slane %v4127_v25, 5  ;;  %v9336_v28 = vld [vmem:[#allocation12_spill] sm:$0xff]  ;;  %v7007_v61 = vld [vmem:[%s7272_s27 + $0x24] sm:$0xff]  }
 0x113   : > { %v6039_v19 = vcombine.low %v8606_v27, %v8625_v13  ;;  %v4142_v2 = vshrl.u32 %v5943_v45, 16  ;;  %v6040_v8 = vcombine.low %v8613_v31, %v8639_v18  ;;  %v6017_v14 = vrot.slane %v6001_v32, 9 }
 0x114   : > { %v4145_v38 = vshll.u32 %v5943_v45, 16  ;;  %v4633_v11 = vrot.slane %v9336_v28, 5  ;;  %v4636_v39 = vrot.slane %v8415_v6, 5  ;;  %v2383_v20 = vshrl.u32 %v5684_v15, 16  ;;  %v5946_v45 = vld [vmem:[%s7272_s27 + $0xcc] sm:$0xf] }
 0x115   : > { %v4151_v44 = vshll.u32 %v8633_v12, 16  ;;  %v4155_v56 = vshrl.u32 %v8633_v12, 16  ;;  %v6018_v17 = vrot.slane %v6002_v26, 9  ;;  %v4137_v1 = vshll.u32 %v8653_v49, 16  ;;  %v6003_v26 = vld [vmem:[%s7272_s27 + $0x90] sm:$0xe] }
 0x116   : > { %6557 = vmatmul.mubr.msk.bf16.gmra.mrb[12].mxu0 %vm723_vm3, %v8538_v43  ;;  %v9337_v43 = vld [vmem:[#allocation6_spill] sm:$0xff]  ;;  %v8668_v6 = vsel %vm7532_vm6, %v6017_v14, %v4633_v11  ;;  %v4635_v9 = vrot.slane %v4633_v11, 4  ;;  %v2385_v60 = vrot.slane %v2383_v20, 4  ;;  %v4640_v55 = vrot.slane %v9339_v42, 5 }
 0x117   : > { %6373 = vmatmul.mubr.msk.bf16.gmra.mrb[28].mxu1 %vm723_vm3, %v5560_v5  ;;  %6560 = vmatprep.mubr.msk.bf16.mxu0 %vm723_vm3, %v8540_v0  ;;  %v2386_v5 = vshll.u32 %v5684_v15, 16  ;;  %v2405_v41 = vsel %vm7299_vm2, %v9338_v59, %v9337_v43  ;;  %v4133_v0 = vrot.slane %v4131_v30, 4  ;;  %v4106_v51 = vsel %vm7299_vm2, %v8619_v48, %v8548_v34 }
 0x118   : > { %6384 = vmatprep.mubr.msk.bf16.mxu1 %vm723_vm3, %v7004_v10  ;;  %v4124_v25 = vor.u32 %v8630_v16, %v8621_v47  ;;  %v8682_v7 = vsel %vm7532_vm6, %v4635_v9, %v4636_v39  ;;  %v4643_v30 = vrot.slane %v8424_v24, 5  ;;  %v4144_v32 = vrot.slane %v4142_v2, 4  ;;  %v8692_v47 = vld [vmem:[%s7272_s27 + $0xd0] sm:$0xf]  ;;  %v9342_v9 = vld [vmem:[#allocation5_spill] sm:$0xff] }
 0x119   : > { %v2388_v62 = vrot.slane %v2386_v5, 5  ;;  %v4147_v10 = vrot.slane %v4145_v38, 5  ;;  %v6041_v15 = vcombine.low %v8668_v6, %v8682_v7  ;;  %v8689_v34 = vrot.slane %v4151_v44, 5  ;;  %v8704_v38 = vld [vmem:[%s7272_s27 + $0xc8] sm:$0x1] }
 0x11a   : > { %v4157_v48 = vrot.slane %v4155_v56, 4  ;;  %v8696_v16 = vsel %vm7532_vm6, %v6018_v17, %v4640_v55  ;;  %v4642_v28 = vrot.slane %v4640_v55, 4  ;;  %v4116_v24 = vsel %vm7299_vm2, %v8628_v21, %v8608_v23  ;;  %v9340_v5 = vld [vmem:[#allocation14_spill] sm:$0xff]  ;;  %v9341_v23 = vld [vmem:[#allocation9_spill] sm:$0xff] }
 0x11b   : > { %v2389_v14 = vor.u32 %v2388_v62, %v2385_v60  ;;  %v4134_v2 = vor.u32 %v4133_v0, %v8641_v37  ;;  %v4166_v11 = vshrl.u32 %v5946_v45, 16  ;;  %v4169_v20 = vshll.u32 %v5946_v45, 16  ;;  %v7063_v17 = vld [vmem:[%s9278_s1 + $0x88] sm:$0xff]  }
 0x11c   : > { %v8711_v44 = vsel %vm7532_vm6, %v4642_v28, %v4643_v30  ;;  %v6019_v56 = vrot.slane %v6003_v26, 9  ;;  %v4647_v43 = vrot.slane %v9340_v5, 5  ;;  %v4175_v21 = vshll.u32 %v8692_v47, 16  ;;  %v9343_v30 = vld [vmem:[#allocation17_spill] sm:$0xff] }
 0x11d   : > { %v2390_v39 = vrot.slane %v2389_v14, 4  ;;  %v4179_v59 = vshrl.u32 %v8692_v47, 16  ;;  %v6042_v60 = vcombine.low %v8696_v16, %v8711_v44  ;;  %v4148_v0 = vor.u32 %v4147_v10, %v4144_v32  ;;  %v7008_v14 = vld [vmem:[%s7272_s27 + $0x30] sm:$0xff]   ;;  %v6004_v10 = vld [vmem:[%s7272_s27 + $0x9c] sm:$0xe] }
 0x11e   : > { %6561 = vmatmul.mubr.msk.bf16.gmra.mrb[16].mxu0 %vm723_vm3, %v8543_v53  ;;  %v4158_v62 = vor.u32 %v4157_v48, %v8689_v34  ;;  %v4161_v42 = vshll.u32 %v8704_v38, 16  ;;  %v8734_v45 = vsel %vm7532_vm6, %v6019_v56, %v4647_v43  ;;  %v5969_v26 = vcombine.low %v4106_v51, %v4116_v24  ;;  %v7009_v5 = vld [vmem:[%s7272_s27 + $0x3c] sm:$0xff]   ;;  %v8741_v48 = vld [vmem:[%s7272_s27 + $0xd4] sm:$0x1]  ;;  %v7085_v16 = vld [vmem:[%s7272_s27 + $0xc4] sm:$0xf] }
 0x11f   : > { %6385 = vmatmul.mubr.msk.bf16.vlgmr.msra.gmra.mrb[0].mxu1 %vm723_vm3, %v7006_v52  ;;  %v2395_v53 = vsel %vm7299_vm2, %v2390_v39, %v9342_v9  ;;  %6564 = vmatprep.mubr.msk.bf16.mxu0 %vm723_vm3, %v8546_v33  ;;  %v4139_v52 = vrot.slane %v4137_v1, 5  ;;  %v4649_v33 = vrot.slane %v4647_v43, 4  ;;  %v4125_v28 = vrot.slane %v4124_v25, 4  ;;  %v7064_v51 = vld [vmem:[%s9278_s1 + $0x90] sm:$0xff]  }
 0x120   : > { %6620 = vmatpush3.bf16.msra.mxu1 %v9341_v23  ;;  %6388 = vmatprep.mubr.msk.bf16.mxu1 %vm723_vm3, %v7007_v61  ;;  %v8730_v55 = vcombine.low %v2395_v53, %v2405_v41  ;;  %v4650_v61 = vrot.slane %v9343_v30, 5  ;;  %v4135_v39 = vrot.slane %v4134_v2, 4  ;;  %v4168_v32 = vrot.slane %v4166_v11, 4  ;;  %v9344_v2 = vld [vmem:[#allocation16_spill] sm:$0xff] }
 0x121   : > { %6617 = vmatprep.subr.bf16.mxu1 %v7063_v17  ;;  %v4171_v41 = vrot.slane %v4169_v20, 5  ;;  %v8743_v23 = vrot.slane %v4175_v21, 5  ;;  %v4181_v1 = vrot.slane %v4179_v59, 4  ;;  %v4149_v43 = vrot.slane %v4148_v0, 4 }
 0x122   : > { %v8747_v56 = vsel %vm7532_vm6, %v4649_v33, %v4650_v61  ;;  %v4159_v9 = vrot.slane %v4158_v62, 4  ;;  %v4163_v53 = vrot.slane %v4161_v42, 5  ;;  %v6020_v24 = vrot.slane %v6004_v10, 9  ;;  %v5993_v62 = vld [vmem:[%s7272_s27 + $0x18] sm:$0xe] }
 0x123   : > { %v6043_v25 = vcombine.low %v8734_v45, %v8747_v56  ;;  %v4654_v11 = vrot.slane %v9344_v2, 5  ;;  %v4130_v20 = vsel %vm7299_vm2, %v4125_v28, %v8641_v37  ;;  %v4140_v21 = vsel %vm7299_vm2, %v4135_v39, %v4139_v52  ;;  %v7065_v33 = vld [vmem:[%s7272_s27 + $0x1c] sm:$0xf]  ;;  %v7011_v28 = vld [vmem:[%s7272_s27 + $0x48] sm:$0xff]  }
 0x124   : > { %6621 = vmatpush3.bf16.msra.mxu1 %v7063_v17  ;;  %v4185_v59 = vshll.u32 %v8741_v48, 16  ;;  %v4657_v17 = vrot.slane %v8469_v40, 5  ;;  %v4172_v0 = vor.u32 %v4171_v41, %v4168_v32  ;;  %v4154_v40 = vsel %vm7299_vm2, %v4149_v43, %v8689_v34  ;;  %v7066_v61 = vld [vmem:[%s9278_s1 + $0x98] sm:$0xff]  }
 0x125   : > { %6618 = vmatprep.subr.bf16.mxu1 %v7064_v51  ;;  %v8771_v37 = vsel %vm7532_vm6, %v6020_v24, %v4654_v11  ;;  %v4656_v42 = vrot.slane %v4654_v11, 4  ;;  %v4164_v52 = vsel %vm7299_vm2, %v4159_v9, %v4163_v53  ;;  %v4577_v30 = vrot.slane %v7065_v33, 5  ;;  %v7067_v9 = vld [vmem:[%s7272_s27 + $0x20] sm:$0x1] }
 0x126   : > { %6565 = vmatmul.mubr.msk.bf16.gmra.mrb[20].mxu0 %vm723_vm3, %v8617_v36  ;;  %v4182_v36 = vor.u32 %v4181_v1, %v8743_v23  ;;  %v5970_v34 = vcombine.low %v4130_v20, %v4140_v21  ;;  %v4187_v39 = vrot.slane %v4185_v59, 5  ;;  %v6009_v32 = vrot.slane %v5993_v62, 9  ;;  %v6006_v20 = vld [vmem:[%s7272_s27 + $0xb4] sm:$0xe] }
 0x127   : > { %6389 = vmatmul.mubr.msk.bf16.gmra.mrb[4].mxu1 %vm723_vm3, %v7008_v14  ;;  %6568 = vmatprep.mubr.msk.bf16.mxu0 %vm723_vm3, %v5969_v26  ;;  %v8784_v14 = vsel %vm7532_vm6, %v4656_v42, %v4657_v17  ;;  %v6005_v26 = vld [vmem:[%s7272_s27 + $0xa8] sm:$0xe]  ;;  %v5971_v41 = vcombine.low %v4154_v40, %v4164_v52  ;;  %v4173_v1 = vrot.slane %v4172_v0, 4  ;;  %v4580_v53 = vrot.slane %v7067_v9, 5  ;;  %v5994_v0 = vld [vmem:[%s7272_s27 + $0x24] sm:$0xe] }
 0x128   : > { %6392 = vmatprep.mubr.msk.bf16.mxu1 %vm723_vm3, %v7009_v5  ;;  %6622 = vmatpush3.bf16.msra.mxu1 %v7064_v51  ;;  %v6044_v10 = vcombine.low %v8771_v37, %v8784_v14  ;;  %v7012_v5 = vld [vmem:[%s7272_s27 + $0x54] sm:$0xff]   ;;  %v4183_v43 = vrot.slane %v4182_v36, 4  ;;  %v4579_v51 = vrot.slane %v4577_v30, 4  ;;  %v6021_v24 = vrot.slane %v6005_v26, 9  ;;  %v7068_v36 = vld [vmem:[%s7272_s27 + $0x28] sm:$0xf] }
 0x129   : > { %6619 = vmatprep.subr.bf16.mxu1 %v7066_v61  ;;  %v4661_v2 = vrot.slane %v8472_v3, 5  ;;  %v4664_v11 = vrot.slane %v8524_v54, 5  ;;  %v4178_v3 = vsel %vm7299_vm2, %v4173_v1, %v8743_v23  ;;  %v4578_v17 = vsel %vm7532_vm6, %v6009_v32, %v4577_v30  ;;  %v7069_v40 = vld [vmem:[%s7272_s27 + $0x34] sm:$0xf]  ;;  %v7070_v32 = vld [vmem:[%s7272_s27 + $0x2c] sm:$0x1] }
 0x12a   : > { %v4188_v54 = vsel %vm7299_vm2, %v4183_v43, %v4187_v39  ;;  %v4584_v62 = vrot.slane %v7068_v36, 5  ;;  %v4581_v42 = vsel %vm7532_vm6, %v4579_v51, %v4580_v53  ;;  %v4591_v52 = vrot.slane %v7069_v40, 5  ;;  %v7014_v1 = vld [vmem:[%s7272_s27 + $0x6c] sm:$0xff]  }
 0x12b   : > { %v8799_v21 = vsel %vm7532_vm6, %v6021_v24, %v4661_v2  ;;  %v4663_v59 = vrot.slane %v4661_v2, 4  ;;  %v6022_v23 = vrot.slane %v6006_v20, 9  ;;  %v4668_v30 = vrot.slane %v8575_v50, 5  ;;  %v7071_v50 = vld [vmem:[%s7272_s27 + $0x38] sm:$0x1] }
 0x12c   : > { %6623 = vmatpush3.bf16.msra.mxu1 %v7066_v61  ;;  %v5995_v61 = vld [vmem:[%s7272_s27 + $0x30] sm:$0xe]  ;;  %v6010_v39 = vrot.slane %v5994_v0, 9  ;;  %v6033_v43 = vcombine.low %v4578_v17, %v4581_v42  ;;  %v4586_v9 = vrot.slane %v4584_v62, 4  ;;  %v4593_v2 = vrot.slane %v4591_v52, 4 }
 0x12d   : > { %v8817_v33 = vsel %vm7532_vm6, %v4663_v59, %v4664_v11  ;;  %v8829_v53 = vsel %vm7532_vm6, %v6022_v23, %v4668_v30  ;;  %v4670_v51 = vrot.slane %v4668_v30, 4  ;;  %v6011_v24 = vrot.slane %v5995_v61, 9  ;;  %v6007_v20 = vld [vmem:[%s7272_s27 + $0xc0] sm:$0xe]  ;;  %v5996_v23 = vld [vmem:[%s7272_s27 + $0x3c] sm:$0xe] }
 0x12e   : > { %6569 = vmatmul.mubr.msk.bf16.gmra.mrb[24].mxu0 %vm723_vm3, %v5970_v34  ;;  %v6045_v26 = vcombine.low %v8799_v21, %v8817_v33  ;;  %v5972_v34 = vcombine.low %v4178_v3, %v4188_v54  ;;  %v4594_v11 = vrot.slane %v7071_v50, 5  ;;  %v4585_v3 = vsel %vm7532_vm6, %v6010_v39, %v4584_v62  ;;  %v7072_v17 = vld [vmem:[%s7272_s27 + $0x40] sm:$0xf]  ;;  %v5681_v62 = vld [vmem:[%s7272_s27 + $0x6c] sm:$0xf] }
 0x12f   : > { %6393 = vmatmul.mubr.msk.bf16.gmra.mrb[8].mxu1 %vm723_vm3, %v7011_v28  ;;  %6572 = vmatprep.mubr.msk.bf16.mxu0 %vm723_vm3, %v5971_v41  ;;  %v7013_v28 = vld [vmem:[%s7272_s27 + $0x60] sm:$0xff]   ;;  %v4671_v41 = vrot.slane %v8653_v49, 5  ;;  %v4598_v0 = vrot.slane %v7072_v17, 5  ;;  %v6023_v36 = vrot.slane %v6007_v20, 9  ;;  %v4592_v42 = vsel %vm7532_vm6, %v6011_v24, %v4591_v52 }
 0x130   : > { %6396 = vmatprep.mubr.msk.bf16.mxu1 %vm723_vm3, %v7012_v5  ;;  %v4587_v5 = vrot.slane %v7070_v32, 5  ;;  %v4595_v40 = vsel %vm7532_vm6, %v4593_v2, %v4594_v11  ;;  %v4675_v61 = vrot.slane %v8633_v12, 5  ;;  %v4678_v30 = vrot.slane %v8704_v38, 5  ;;  %v7074_v11 = vld [vmem:[%s7272_s27 + $0x70] sm:$0xf] }
 0x131   : > { %v8835_v59 = vsel %vm7532_vm6, %v4670_v51, %v4671_v41  ;;  %v7016_v41 = vld [vmem:[%s7272_s27 + $0x84] sm:$0xff]   ;;  %v6035_v52 = vcombine.low %v4592_v42, %v4595_v40  ;;  %v2359_v24 = vshrl.u32 %v5681_v62, 16  ;;  %v2362_v12 = vshll.u32 %v5681_v62, 16 }
 0x132   : > { %v6046_v49 = vcombine.low %v8829_v53, %v8835_v59  ;;  %v4588_v54 = vsel %vm7532_vm6, %v4586_v9, %v4587_v5  ;;  %v8860_v32 = vsel %vm7532_vm6, %v6023_v36, %v4675_v61  ;;  %v4677_v5 = vrot.slane %v4675_v61, 4  ;;  %v7073_v9 = vld [vmem:[%s7272_s27 + $0x44] sm:$0x1] }
 0x133   : > { %v6034_v39 = vcombine.low %v4585_v3, %v4588_v54  ;;  %v4601_v51 = vrot.slane %v7073_v9, 5  ;;  %v2368_v20 = vshll.u32 %v7074_v11, 16  ;;  %v2372_v3 = vshrl.u32 %v7074_v11, 16  ;;  %v5690_v11 = vld [vmem:[%s7272_s27 + $0x90] sm:$0xf] }
 0x134   : > { %v8866_v38 = vsel %vm7532_vm6, %v4677_v5, %v4678_v30  ;;  %v4682_v54 = vrot.slane %v8692_v47, 5  ;;  %v4685_v17 = vrot.slane %v8741_v48, 5  ;;  %v2361_v40 = vrot.slane %v2359_v24, 4  ;;  %v7017_v30 = vld [vmem:[%s7272_s27 + $0x90] sm:$0xff]  }
 0x135   : > { %v6047_v50 = vcombine.low %v8860_v32, %v8866_v38  ;;  %v2370_v62 = vrot.slane %v2368_v20, 5  ;;  %v7019_v20 = vld [vmem:[%s7272_s27 + $0xa8] sm:$0xff]   ;;  %v2431_v63 = vshrl.u32 %v5690_v11, 16  ;;  %v2434_v58 = vshll.u32 %v5690_v11, 16  ;;  %v7021_v11 = vld [vmem:[%s7272_s27 + $0xc0] sm:$0xff]  }
 0x136   : > { %6573 = vmatmul.mubr.msk.bf16.gmra.mrb[28].mxu0 %vm723_vm3, %v5972_v34  ;;  %v7015_v34 = vld [vmem:[%s7272_s27 + $0x78] sm:$0xff]   ;;  %v4684_v47 = vrot.slane %v4682_v54, 4  ;;  %v2536_v44 = vshll.u32 %v7085_v16, 16 }
 0x137   : > { %6397 = vmatmul.mubr.msk.bf16.gmra.mrb[12].mxu1 %vm723_vm3, %v7013_v28  ;;  %6584 = vmatprep.mubr.msk.bf16.mxu0 %vm723_vm3, %v6033_v43  ;;  %v6008_v28 = vld [vmem:[%s7272_s27 + $0xcc] sm:$0xe]  ;;  %v4600_v43 = vrot.slane %v4598_v0, 4 }
 0x138   : > { %6400 = vmatprep.mubr.msk.bf16.mxu1 %vm723_vm3, %v7014_v1  ;;  %v6012_v1 = vrot.slane %v5996_v23, 9  ;;  %v6024_v2 = vrot.slane %v6008_v28, 9  ;;  %v2364_v23 = vrot.slane %v2362_v12, 5  ;;  %v2374_v28 = vrot.slane %v2372_v3, 4 }
 0x139   : > { %v4602_v42 = vsel %vm7532_vm6, %v4600_v43, %v4601_v51  ;;  %v7076_v51 = vld [vmem:[%s7272_s27 + $0x88] sm:$0xf]  ;;  %v2538_v45 = vrot.slane %v2536_v44, 5 }
 0x13a   : > { %v4599_v36 = vsel %vm7532_vm6, %v6012_v1, %v4598_v0  ;;  %v8883_v61 = vsel %vm7532_vm6, %v6024_v2, %v4682_v54  ;;  %v7018_v0 = vld [vmem:[%s7272_s27 + $0x9c] sm:$0xff]   ;;  %v7075_v1 = vld [vmem:[%s7272_s27 + $0x74] sm:$0x1]  ;;  %v2416_v24 = vshll.u32 %v7076_v51, 16  ;;  %v2420_v12 = vshrl.u32 %v7076_v51, 16 }
 0x13b   : > { %v6036_v48 = vcombine.low %v4599_v36, %v4602_v42  ;;  %v2378_v43 = vshll.u32 %v7075_v1, 16  ;;  %v5693_v42 = vld [vmem:[%s7272_s27 + $0x9c] sm:$0xf]  ;;  %v7078_v1 = vld [vmem:[%s7272_s27 + $0xa0] sm:$0xf] }
 0x13d   : > { %v2380_v54 = vrot.slane %v2378_v43, 5  ;;  %v2468_v43 = vshrl.u32 %v7078_v1, 16 }
 0x13e   : > { %6585 = vmatmul.mubr.msk.bf16.vlgmr.msra.gmra.mrb[0].mxu0 %vm723_vm3, %v6034_v39  ;;  %v5687_v39 = vld [vmem:[%s7272_s27 + $0x84] sm:$0xf] }
 0x13f   : > { %6401 = vmatmul.mubr.msk.bf16.gmra.mrb[16].mxu1 %vm723_vm3, %v7015_v34  ;;  %6588 = vmatprep.mubr.msk.bf16.mxu0 %vm723_vm3, %v6035_v52  ;;  %v8888_v34 = vsel %vm7532_vm6, %v4684_v47, %v4685_v17  ;;  %v2375_v52 = vor.u32 %v2374_v28, %v2370_v62  ;;  %v2407_v57 = vshrl.u32 %v5687_v39, 16  ;;  %v2410_v9 = vshll.u32 %v5687_v39, 16 }
 0x140   : > { %6404 = vmatprep.mubr.msk.bf16.mxu1 %vm723_vm3, %v7016_v41  ;;  %v6048_v5 = vcombine.low %v8883_v61, %v8888_v34  ;;  %v2365_v41 = vor.u32 %v2364_v23, %v2361_v40  ;;  %v7020_v40 = vld [vmem:[%s7272_s27 + $0xb4] sm:$0xff]   ;;  %v8907_v23 = vrot.slane %v2416_v24, 5  ;;  %v2422_v47 = vrot.slane %v2420_v12, 4 }
 0x141   : > { %v2376_v3 = vrot.slane %v2375_v52, 4  ;;  %v2409_v17 = vrot.slane %v2407_v57, 4  ;;  %v2412_v36 = vrot.slane %v2410_v9, 5  ;;  %v2458_v39 = vshll.u32 %v5693_v42, 16 }
 0x142   : > { %v2366_v2 = vrot.slane %v2365_v41, 4  ;;  %v2423_v4 = vor.u32 %v2422_v47, %v8907_v23  ;;  %v2433_v57 = vrot.slane %v2431_v63, 4  ;;  %v2436_v9 = vrot.slane %v2434_v58, 5  ;;  %v7081_v58 = vld [vmem:[%s7272_s27 + $0xa4] sm:$0x1] }
 0x143   : > { %v2381_v41 = vsel %vm7299_vm2, %v2376_v3, %v2380_v54  ;;  %v2413_v52 = vor.u32 %v2412_v36, %v2409_v17  ;;  %v5696_v3 = vld [vmem:[%s7272_s27 + $0xa8] sm:$0xf] }
 0x144   : > { %v2424_v54 = vrot.slane %v2423_v4, 4  ;;  %v2437_v36 = vor.u32 %v2436_v9, %v2433_v57  ;;  %v7083_v4 = vld [vmem:[%s7272_s27 + $0xb8] sm:$0xf] }
 0x145   : > { %v2414_v27 = vrot.slane %v2413_v52, 4 }
 0x146   : > { %6589 = vmatmul.mubr.msk.bf16.gmra.mrb[4].mxu0 %vm723_vm3, %v6036_v48  ;;  %v2438_v18 = vrot.slane %v2437_v36, 4 }
 0x147   : > { %6405 = vmatmul.mubr.msk.bf16.gmra.mrb[20].mxu1 %vm723_vm3, %v7017_v30  ;;  %6592 = vmatprep.mubr.msk.bf16.mxu0 %vm723_vm3, %v6037_v35  ;;  %v2371_v35 = vsel %vm7299_vm2, %v2366_v2, %v2370_v62  ;;  %v7077_v30 = vld [vmem:[%s7272_s27 + $0x94] sm:$0xf]  ;;  %v2464_v62 = vshll.u32 %v7078_v1, 16  ;;  %v2460_v2 = vrot.slane %v2458_v39, 5  ;;  %v7082_v39 = vld [vmem:[%s7272_s27 + $0xac] sm:$0xf]  ;;  %v2419_v1 = vsel %vm7299_vm2, %v2414_v27, %v8907_v23 }
 0x148   : > { %6408 = vmatprep.mubr.msk.bf16.mxu1 %vm723_vm3, %v7018_v0  ;;  %v2440_v48 = vshll.u32 %v7077_v30, 16  ;;  %v2444_v28 = vshrl.u32 %v7077_v30, 16  ;;  %v2455_v0 = vshrl.u32 %v5693_v42, 16  ;;  %v7080_v42 = vld [vmem:[%s7272_s27 + $0x98] sm:$0x1]  ;;  %v2474_v30 = vshll.u32 %v7081_v58, 16 }
 0x149   : > { %v8930_v13 = vrot.slane %v2464_v62, 5  ;;  %v2492_v52 = vshrl.u32 %v7082_v39, 16  ;;  %v2540_v58 = vshrl.u32 %v7085_v16, 16 }
 0x14a   : > { %v8927_v51 = vrot.slane %v2440_v48, 5  ;;  %v2446_v24 = vrot.slane %v2444_v28, 4  ;;  %v2457_v12 = vrot.slane %v2455_v0, 4  ;;  %v2479_v48 = vshrl.u32 %v5696_v3, 16  ;;  %v5699_v28 = vld [vmem:[%s7272_s27 + $0xb4] sm:$0xf] }
 0x14b   : > { %v2482_v0 = vshll.u32 %v5696_v3, 16  ;;  %v2503_v62 = vshrl.u32 %v5699_v28, 16  ;;  %v2476_v6 = vrot.slane %v2474_v30, 5  ;;  %v2494_v23 = vrot.slane %v2492_v52, 4  ;;  %v5702_v3 = vld [vmem:[%s7272_s27 + $0xc0] sm:$0xf] }
 0x14c   : > { %v2447_v47 = vor.u32 %v2446_v24, %v8927_v51  ;;  %v2461_v63 = vor.u32 %v2460_v2, %v2457_v12  ;;  %v2481_v7 = vrot.slane %v2479_v48, 4  ;;  %v7086_v48 = vld [vmem:[%s7272_s27 + $0xbc] sm:$0x1]  ;;  %v2542_v56 = vrot.slane %v2540_v58, 4 }
 0x14d   : > { %v2484_v24 = vrot.slane %v2482_v0, 5 }
 0x14e   : > { %6593 = vmatmul.mubr.msk.bf16.gmra.mrb[8].mxu0 %vm723_vm3, %v6038_v22  ;;  %v2426_v22 = vshll.u32 %v7079_v46, 16  ;;  %v2512_v46 = vshll.u32 %v7083_v4, 16  ;;  %v2448_v57 = vrot.slane %v2447_v47, 4  ;;  %v2462_v9 = vrot.slane %v2461_v63, 4  ;;  %v7084_v47 = vld [vmem:[%s7272_s27 + $0xb0] sm:$0x1] }
 0x14f   : > { %6409 = vmatmul.mubr.msk.bf16.gmra.mrb[24].mxu1 %vm723_vm3, %v7019_v20  ;;  %6596 = vmatprep.mubr.msk.bf16.mxu0 %vm723_vm3, %v6039_v19  ;;  %v5721_v20 = vcombine.low %v2371_v35, %v2381_v41  ;;  %v2470_v19 = vrot.slane %v2468_v43, 4  ;;  %v2488_v41 = vshll.u32 %v7082_v39, 16  ;;  %v2506_v43 = vshll.u32 %v5699_v28, 16 }
 0x150   : > { %6412 = vmatprep.mubr.msk.bf16.mxu1 %vm723_vm3, %v7020_v40  ;;  %v2428_v17 = vrot.slane %v2426_v22, 5  ;;  %v2450_v40 = vshll.u32 %v7080_v42, 16  ;;  %v2516_v22 = vshrl.u32 %v7083_v4, 16  ;;  %v2514_v27 = vrot.slane %v2512_v46, 5 }
 0x151   : > { %v2471_v35 = vor.u32 %v2470_v19, %v8930_v13  ;;  %v2490_v12 = vrot.slane %v2488_v41, 5  ;;  %v2467_v36 = vsel %vm7299_vm2, %v2462_v9, %v8930_v13  ;;  %v2498_v63 = vshll.u32 %v7084_v47, 16 }
 0x152   : > { %v2429_v31 = vsel %vm7299_vm2, %v2424_v54, %v2428_v17  ;;  %v2518_v19 = vrot.slane %v2516_v22, 4  ;;  %v2443_v54 = vsel %vm7299_vm2, %v2438_v18, %v8927_v51  ;;  %v2485_v51 = vor.u32 %v2484_v24, %v2481_v7  ;;  %v7087_v22 = vld [vmem:[%s7272_s27 + $0xc8] sm:$0x1] }
 0x153   : > { %v5723_v2 = vcombine.low %v2419_v1, %v2429_v31  ;;  %v2530_v13 = vshll.u32 %v5702_v3, 16  ;;  %v2522_v28 = vshll.u32 %v7086_v48, 16  ;;  %v2500_v52 = vrot.slane %v2498_v63, 5 }
 0x154   : > { %v2519_v30 = vor.u32 %v2518_v19, %v2514_v27  ;;  %v2486_v39 = vrot.slane %v2485_v51, 4  ;;  %v2543_v46 = vor.u32 %v2542_v56, %v2538_v45 }
 0x155   : > { %v2532_v31 = vrot.slane %v2530_v13, 5 }
 0x156   : > { %6597 = vmatmul.mubr.msk.bf16.gmra.mrb[12].mxu0 %vm723_vm3, %v6040_v8  ;;  %v2452_v8 = vrot.slane %v2450_v40, 5  ;;  %v2495_v40 = vor.u32 %v2494_v23, %v2490_v12  ;;  %v2520_v18 = vrot.slane %v2519_v30, 4  ;;  %v2544_v7 = vrot.slane %v2543_v46, 4 }
 0x157   : > { %6413 = vmatmul.mubr.msk.bf16.gmra.mrb[28].mxu1 %vm723_vm3, %v7021_v11  ;;  %6600 = vmatprep.mubr.msk.bf16.mxu0 %vm723_vm3, %v6041_v15  ;;  %v2472_v15 = vrot.slane %v2471_v35, 4  ;;  %v2505_v11 = vrot.slane %v2503_v62, 4  ;;  %v2491_v62 = vsel %vm7299_vm2, %v2486_v39, %v2490_v12 }
 0x158   : > { %6440 = vmatprep.mubr.msk.bf16.mxu1 %vm723_vm3, %v5721_v20  ;;  %v2508_v20 = vrot.slane %v2506_v43, 5  ;;  %v2453_v17 = vsel %vm7299_vm2, %v2448_v57, %v2452_v8  ;;  %v2496_v41 = vrot.slane %v2495_v40, 4  ;;  %v2524_v8 = vrot.slane %v2522_v28, 5 }
 0x159   : > { %v2477_v42 = vsel %vm7299_vm2, %v2472_v15, %v2476_v6  ;;  %v5724_v35 = vcombine.low %v2443_v54, %v2453_v17  ;;  %v2546_v57 = vshll.u32 %v7087_v22, 16  ;;  %v9037_v54 = vld [vmem:[%s9279_s2] ss:$0 sm:$0xff] }
 0x15a   : > { %v5725_v0 = vcombine.low %v2467_v36, %v2477_v42  ;;  %v2501_v43 = vsel %vm7299_vm2, %v2496_v41, %v2500_v52  ;;  %v2525_v14 = vsel %vm7299_vm2, %v2520_v18, %v2524_v8 }
 0x15b   : > { %v2548_v21 = vrot.slane %v2546_v57, 5 }
 0x15e   : > { %6601 = vmatmul.mubr.msk.bf16.gmra.mrb[16].mxu0 %vm723_vm3, %v6042_v60  ;;  %v2509_v60 = vor.u32 %v2508_v20, %v2505_v11 }
 0x15f   : > { %6441 = vmatmul.mubr.msk.bf16.vlgmr.msra.gmra.mrb[16].mxu1 %vm723_vm3, %v8730_v55  ;;  %6604 = vmatprep.mubr.msk.bf16.mxu0 %vm723_vm3, %v6043_v25  ;;  %v2527_v55 = vshrl.u32 %v5702_v3, 16 }
 0x160   : > { %6444 = vmatprep.mubr.msk.bf16.mxu1 %vm723_vm3, %v5723_v2  ;;  %v2510_v25 = vrot.slane %v2509_v60, 4 }
 0x161   : > { %v2529_v1 = vrot.slane %v2527_v55, 4 }
 0x162   : > { %v2515_v37 = vsel %vm7299_vm2, %v2510_v25, %v2514_v27 }
 0x163   : > { %v2533_v4 = vor.u32 %v2532_v31, %v2529_v1  ;;  %v5727_v9 = vcombine.low %v2515_v37, %v2525_v14 }
 0x165   : > { %v2534_v6 = vrot.slane %v2533_v4, 4 }
 0x166   : > { %6605 = vmatmul.mubr.msk.bf16.gmra.mrb[20].mxu0 %vm723_vm3, %v6044_v10  ;;  %v5726_v10 = vcombine.low %v2491_v62, %v2501_v43 }
 0x167   : > { %6445 = vmatmul.mubr.msk.bf16.gmra.mrb[20].mxu1 %vm723_vm3, %v5724_v35  ;;  %6608 = vmatprep.mubr.msk.bf16.mxu0 %vm723_vm3, %v6045_v26  ;;  %v2539_v33 = vsel %vm7299_vm2, %v2534_v6, %v2538_v45  ;;  %v2549_v26 = vsel %vm7299_vm2, %v2544_v7, %v2548_v21 }
 0x168   : > { %6448 = vmatprep.mubr.msk.bf16.mxu1 %vm723_vm3, %v5725_v0  ;;  %v5728_v15 = vcombine.low %v2539_v33, %v2549_v26 }
 0x16e   : > { %6609 = vmatmul.mubr.msk.bf16.gmra.mrb[24].mxu0 %vm723_vm3, %v6046_v49 }
 0x16f   : > { %6449 = vmatmul.mubr.msk.bf16.gmra.mrb[24].mxu1 %vm723_vm3, %v5726_v10  ;;  %6612 = vmatprep.mubr.msk.bf16.mxu0 %vm723_vm3, %v6047_v50 }
 0x170   : > { %6452 = vmatprep.mubr.msk.bf16.mxu1 %vm723_vm3, %v5727_v9 }
 0x176   : > { %6613 = vmatmul.mubr.msk.bf16.gmra.mrb[28].mxu0 %vm723_vm3, %v6048_v5  ;;  %v5096_v5 = vlaneseq }
 0x177   : > { %6453 = vmatmul.mubr.msk.bf16.gmra.mrb[28].mxu1 %vm723_vm3, %v5728_v15 }
 0x178   : > { %v5097_v19 = vshrl.u32 %v5096_v5, 7 }
 0x17a   : > { %v5098_v40 = vadd.s32 8, %v5097_v19  ;;  %v5103_v60 = vand.u32 1, %v5097_v19 }
 0x17c   : > { %v5110_v28 = vand.u32 1, %v5098_v40  ;;  %vm9043_vm7 = vcmp.eq.s32.totalorder %v5103_v60, 0 }
 0x17e   : > { %vm9047_vm9 = vcmp.eq.s32.totalorder %v5110_v28, 0 }
 0x1f2   : > { %v6386_v53 = vpop.f32.mrb[0].mxu1 }
 0x1f3   : > { %v1959_v59 = vpop.f32.mrb[1].mxu1 }
 0x1f4   : > { %v6387_v49 = vpop.f32.mrb[2].mxu1 }
 0x1f5   : > { %v1962_v32 = vpop.f32.mrb[3].mxu1 }
 0x1fa   : > { %v6390_v38 = vpop.f32.mrb[4].mxu1 }
 0x1fb   : > { %v1975_v50 = vpop.f32.mrb[5].mxu1 }
 0x1fc   : > { %v6391_v24 = vpop.f32.mrb[6].mxu1 }
 0x1fd   : > { %v1978_v12 = vpop.f32.mrb[7].mxu1 }
 0x202   : > { %v9018_v23 = vpop.f32.mrb[8].mxu1 }
 0x203   : > { %v9020_v29 = vpop.f32.mrb[9].mxu1 }
 0x204   : > { %v9022_v2 = vpop.f32.mrb[10].mxu1 }
 0x205   : > { %v9024_v11 = vpop.f32.mrb[11].mxu1 }
 0x20a   : > { %v9026_v20 = vpop.f32.mrb[12].mxu1 }
 0x20b   : > { %v9028_v61 = vpop.f32.mrb[13].mxu1 }
 0x20c   : > { %v9030_v34 = vpop.f32.mrb[14].mxu1 }
 0x20d   : > { %v9032_v27 = vpop.f32.mrb[15].mxu1 }
 0x211   : > { %v6586_v3 = vpop.f32.mrb[0].mxu0 }
 0x212   : > { %v6624_v17 = vadd.f32 %v6586_v3, %v6386_v53  ;;  %v4850_v36 = vpop.f32.mrb[1].mxu0 }
 0x213   : > { %v6625_v42 = vadd.f32 %v4850_v36, %v1959_v59  ;;  %v6587_v51 = vpop.f32.mrb[2].mxu0 }
 0x214   : > { %v5018_v47 = vadd.f32 %v6624_v17, %v9037_v54  ;;  %v6626_v63 = vadd.f32 %v6587_v51, %v6387_v49  ;;  %v4853_v55 = vpop.f32.mrb[3].mxu0 }
 0x215   : > { %v5016_v13 = vadd.f32 %v6625_v42, %v9037_v54  ;;  %v6627_v16 = vadd.f32 %v4853_v55, %v1962_v32 }
 0x216   : > { %v5050_v44 = vmax.f32 %v5018_v47, 0.0  ;;  %v5019_v58 = vadd.f32 %v6626_v63, %v9037_v54 }
 0x217   : > { %v5048_v30 = vmax.f32 %v5016_v13, 0.0  ;;  %v5017_v48 = vadd.f32 %v6627_v16, %v9037_v54 }
 0x218   : > { %v5051_v35 = vmax.f32 %v5019_v58, 0.0 }
 0x219   : > { %v5080_v0 = vadd.f32 %v5050_v44, %v5048_v30  ;;  %v5049_v39 = vmax.f32 %v5017_v48, 0.0  ;;  %v6590_v41 = vpop.f32.mrb[4].mxu0 }
 0x21a   : > { %v6628_v1 = vadd.f32 %v6590_v41, %v6390_v38  ;;  %v4866_v31 = vpop.f32.mrb[5].mxu0 }
 0x21b   : > { %v5081_v45 = vadd.f32 %v5051_v35, %v5049_v39  ;;  %v6629_v25 = vadd.f32 %v4866_v31, %v1975_v50  ;;  %v6591_v18 = vpop.f32.mrb[6].mxu0  ;;  %v5142_v8 = vrot.slane %v5080_v0, 1  ;;  %v5215_v62 = vrot.slane %v5080_v0, 7 }
 0x21c   : > { %v5022_v43 = vadd.f32 %v6628_v1, %v9037_v54  ;;  %v6630_v4 = vadd.f32 %v6591_v18, %v6391_v24  ;;  %v4869_v46 = vpop.f32.mrb[7].mxu0 }
 0x21d   : > { %v5143_v22 = vrot.slane %v5081_v45, 1  ;;  %v5198_v57 = vrot.slane %v5081_v45, 7  ;;  %v5020_v37 = vadd.f32 %v6629_v25, %v9037_v54  ;;  %v6631_v14 = vadd.f32 %v4869_v46, %v1978_v12 }
 0x21e   : > { %v5054_v10 = vmax.f32 %v5022_v43, 0.0  ;;  %v5023_v9 = vadd.f32 %v6630_v4, %v9037_v54 }
 0x21f   : > { %v5144_v6 = vsel %vm5141_vm8, %v5142_v8, %v5143_v22  ;;  %v5190_v7 = vsel %vm5141_vm8, %v5143_v22, %v5142_v8  ;;  %v5216_v21 = vsel %vm5214_vm10, %v5215_v62, %v5198_v57  ;;  %v5247_v33 = vsel %vm5214_vm10, %v5198_v57, %v5215_v62 }
 0x220   : > { %v5255_v26 = vsel %vm9043_vm7, %v5144_v6, %v5247_v33  ;;  %v5256_v15 = vsel %vm9047_vm9, %v5190_v7, %v5216_v21  ;;  %v5052_v53 = vmax.f32 %v5020_v37, 0.0  ;;  %v5055_v32 = vmax.f32 %v5023_v9, 0.0 }
 0x221   : > { %v5271_v59 = vadd.f32 %v5255_v26, %v5080_v0  ;;  %v5272_v49 = vadd.f32 %v5256_v15, %v5081_v45  ;;  %v5021_v38 = vadd.f32 %v6631_v14, %v9037_v54  ;;  %v6594_v50 = vpop.f32.mrb[8].mxu0 }
 0x222   : > { %v5082_v24 = vadd.f32 %v5054_v10, %v5052_v53  ;;  %v6632_v12 = vadd.f32 %v6594_v50, %v9018_v23  ;;  %v4882_v5 = vpop.f32.mrb[9].mxu0 }
 0x223   : > { %v5287_v19 = vmul.f32 0.25, %v5271_v59  ;;  %v5288_v3 = vmul.f32 0.25, %v5272_v49  ;;  %v5053_v17 = vmax.f32 %v5021_v38, 0.0  ;;  %v6633_v36 = vadd.f32 %v4882_v5, %v9020_v29  ;;  %v6595_v42 = vpop.f32.mrb[10].mxu0 }
 0x224   : > { %v5026_v51 = vadd.f32 %v6632_v12, %v9037_v54  ;;  %v6634_v40 = vadd.f32 %v6595_v42, %v9022_v2  ;;  %v4885_v47 = vpop.f32.mrb[11].mxu0  ;;  %v5145_v63 = vrot.slane %v5082_v24, 1  ;;  %v5217_v55 = vrot.slane %v5082_v24, 7 }
 0x225   : > { %5303 = vst.msk [vmem:[%s9070_s8] sm:$0xff] %vm723_vm3, %v5287_v19  ;;  %5304 = vst.msk [vmem:[%s9070_s8 + $0x8] sm:$0xff] %vm723_vm3, %v5288_v3  ;;  %v5083_v23 = vadd.f32 %v5055_v32, %v5053_v17  ;;  %v5024_v29 = vadd.f32 %v6633_v36, %v9037_v54  ;;  %v6635_v2 = vadd.f32 %v4885_v47, %v9024_v11 }
 0x226   : > { %5305 = vst.msk [vmem:[%s9070_s8 + $0x10] sm:$0xff] %vm723_vm3, %v5287_v19  ;;  %5306 = vst.msk [vmem:[%s9070_s8 + $0x18] sm:$0xff] %vm723_vm3, %v5288_v3  ;;  %v5058_v13 = vmax.f32 %v5026_v51, 0.0  ;;  %v5027_v16 = vadd.f32 %v6634_v40, %v9037_v54 }
 0x227   : > { %v5146_v44 = vrot.slane %v5083_v23, 1  ;;  %v5199_v58 = vrot.slane %v5083_v23, 7  ;;  %v5056_v60 = vmax.f32 %v5024_v29, 0.0  ;;  %v5025_v30 = vadd.f32 %v6635_v2, %v9037_v54 }
 0x228   : > { %v5059_v48 = vmax.f32 %v5027_v16, 0.0 }
 0x229   : > { %v5147_v28 = vsel %vm5141_vm8, %v5145_v63, %v5146_v44  ;;  %v5191_v35 = vsel %vm5141_vm8, %v5146_v44, %v5145_v63  ;;  %v5218_v0 = vsel %vm5214_vm10, %v5217_v55, %v5199_v58  ;;  %v5248_v39 = vsel %vm5214_vm10, %v5199_v58, %v5217_v55  ;;  %v6598_v11 = vpop.f32.mrb[12].mxu0 }
 0x22a   : > { %v5257_v41 = vsel %vm9043_vm7, %v5147_v28, %v5248_v39  ;;  %v5258_v1 = vsel %vm9047_vm9, %v5191_v35, %v5218_v0  ;;  %v5084_v31 = vadd.f32 %v5058_v13, %v5056_v60  ;;  %v5057_v45 = vmax.f32 %v5025_v30, 0.0  ;;  %v4898_v25 = vpop.f32.mrb[13].mxu0 }
 0x22b   : > { %v5273_v18 = vadd.f32 %v5257_v41, %v5082_v24  ;;  %v5274_v8 = vadd.f32 %v5258_v1, %v5083_v23  ;;  %v6636_v62 = vadd.f32 %v6598_v11, %v9026_v20  ;;  %v6637_v43 = vadd.f32 %v4898_v25, %v9028_v61  ;;  %v6599_v4 = vpop.f32.mrb[14].mxu0 }
 0x22c   : > { %v5148_v46 = vrot.slane %v5084_v31, 1  ;;  %v5219_v22 = vrot.slane %v5084_v31, 7  ;;  %v5085_v57 = vadd.f32 %v5059_v48, %v5057_v45  ;;  %v6638_v37 = vadd.f32 %v6599_v4, %v9030_v34  ;;  %v4901_v14 = vpop.f32.mrb[15].mxu0 }
 0x22d   : > { %v5289_v10 = vmul.f32 0.25, %v5273_v18  ;;  %v5290_v9 = vmul.f32 0.25, %v5274_v8  ;;  %v5030_v6 = vadd.f32 %v6636_v62, %v9037_v54  ;;  %v5028_v7 = vadd.f32 %v6637_v43, %v9037_v54 }
 0x22e   : > { %v5149_v20 = vrot.slane %v5085_v57, 1  ;;  %v5200_v21 = vrot.slane %v5085_v57, 7  ;;  %v5031_v61 = vadd.f32 %v6638_v37, %v9037_v54  ;;  %v6639_v33 = vadd.f32 %v4901_v14, %v9032_v27 }
 0x22f   : > { %5307 = vst.msk [vmem:[%s9070_s8 + $0x20] sm:$0xff] %vm723_vm3, %v5289_v10  ;;  %5308 = vst.msk [vmem:[%s9070_s8 + $0x28] sm:$0xff] %vm723_vm3, %v5290_v9  ;;  %v5062_v34 = vmax.f32 %v5030_v6, 0.0  ;;  %v5060_v26 = vmax.f32 %v5028_v7, 0.0 }
 0x230   : > { %5309 = vst.msk [vmem:[%s9070_s8 + $0x30] sm:$0xff] %vm723_vm3, %v5289_v10  ;;  %5310 = vst.msk [vmem:[%s9070_s8 + $0x38] sm:$0xff] %vm723_vm3, %v5290_v9  ;;  %v5150_v15 = vsel %vm5141_vm8, %v5148_v46, %v5149_v20  ;;  %v5192_v53 = vsel %vm5141_vm8, %v5149_v20, %v5148_v46  ;;  %v5220_v59 = vsel %vm5214_vm10, %v5219_v22, %v5200_v21  ;;  %v5063_v50 = vmax.f32 %v5031_v61, 0.0 }
 0x231   : > { %v5249_v49 = vsel %vm5214_vm10, %v5200_v21, %v5219_v22  ;;  %v5260_v32 = vsel %vm9047_vm9, %v5192_v53, %v5220_v59  ;;  %v5086_v38 = vadd.f32 %v5062_v34, %v5060_v26  ;;  %v6602_v12 = vpop.f32.mrb[16].mxu0  ;;  %v5029_v3 = vadd.f32 %v6639_v33, %v9037_v54 }
 0x232   : > { %v5259_v27 = vsel %vm9043_vm7, %v5150_v15, %v5249_v49  ;;  %v6442_v24 = vpop.f32.mrb[16].mxu1  ;;  %v5276_v19 = vadd.f32 %v5260_v32, %v5085_v57  ;;  %v4914_v42 = vpop.f32.mrb[17].mxu0 }
 0x233   : > { %v5275_v5 = vadd.f32 %v5259_v27, %v5084_v31  ;;  %v6640_v17 = vadd.f32 %v6602_v12, %v6442_v24  ;;  %v2777_v36 = vpop.f32.mrb[17].mxu1  ;;  %v6603_v47 = vpop.f32.mrb[18].mxu0  ;;  %v5061_v2 = vmax.f32 %v5029_v3, 0.0  ;;  %v5151_v0 = vrot.slane %v5086_v38, 1 }
 0x234   : > { %v6641_v51 = vadd.f32 %v4914_v42, %v2777_v36  ;;  %v6443_v40 = vpop.f32.mrb[18].mxu1  ;;  %v5292_v29 = vmul.f32 0.25, %v5276_v19  ;;  %v4917_v13 = vpop.f32.mrb[19].mxu0  ;;  %v5221_v39 = vrot.slane %v5086_v38, 7 }
 0x235   : > { %v5291_v23 = vmul.f32 0.25, %v5275_v5  ;;  %v5034_v63 = vadd.f32 %v6640_v17, %v9037_v54  ;;  %v2780_v55 = vpop.f32.mrb[19].mxu1  ;;  %v6642_v44 = vadd.f32 %v6603_v47, %v6443_v40  ;;  %v5087_v60 = vadd.f32 %v5063_v50, %v5061_v2 }
 0x236   : > { %v5032_v16 = vadd.f32 %v6641_v51, %v9037_v54  ;;  %v6643_v58 = vadd.f32 %v4917_v13, %v2780_v55  ;;  %5312 = vst.msk [vmem:[%s9070_s8 + $0x48] sm:$0xff] %vm723_vm3, %v5292_v29  ;;  %5314 = vst.msk [vmem:[%s9070_s8 + $0x58] sm:$0xff] %vm723_vm3, %v5292_v29 }
 0x237   : > { %5311 = vst.msk [vmem:[%s9070_s8 + $0x40] sm:$0xff] %vm723_vm3, %v5291_v23  ;;  %5313 = vst.msk [vmem:[%s9070_s8 + $0x50] sm:$0xff] %vm723_vm3, %v5291_v23  ;;  %v5066_v30 = vmax.f32 %v5034_v63, 0.0  ;;  %v5035_v28 = vadd.f32 %v6642_v44, %v9037_v54  ;;  %v5152_v11 = vrot.slane %v5087_v60, 1  ;;  %v5201_v41 = vrot.slane %v5087_v60, 7 }
 0x238   : > { %v5064_v48 = vmax.f32 %v5032_v16, 0.0  ;;  %v5033_v35 = vadd.f32 %v6643_v58, %v9037_v54 }
 0x239   : > { %v5067_v31 = vmax.f32 %v5035_v28, 0.0  ;;  %v6606_v18 = vpop.f32.mrb[20].mxu0  ;;  %v5153_v8 = vsel %vm5141_vm8, %v5151_v0, %v5152_v11  ;;  %v5193_v62 = vsel %vm5141_vm8, %v5152_v11, %v5151_v0  ;;  %v5222_v43 = vsel %vm5214_vm10, %v5221_v39, %v5201_v41 }
 0x23a   : > { %v5088_v1 = vadd.f32 %v5066_v30, %v5064_v48  ;;  %v5065_v45 = vmax.f32 %v5033_v35, 0.0  ;;  %v6446_v25 = vpop.f32.mrb[20].mxu1  ;;  %v5250_v4 = vsel %vm5214_vm10, %v5201_v41, %v5221_v39  ;;  %v4930_v22 = vpop.f32.mrb[21].mxu0  ;;  %v5262_v37 = vsel %vm9047_vm9, %v5193_v62, %v5222_v43 }
 0x23b   : > { %v2793_v46 = vpop.f32.mrb[21].mxu1  ;;  %v5261_v57 = vsel %vm9043_vm7, %v5153_v8, %v5250_v4  ;;  %v6607_v9 = vpop.f32.mrb[22].mxu0  ;;  %v5278_v7 = vadd.f32 %v5262_v37, %v5087_v60  ;;  %v6644_v21 = vadd.f32 %v6606_v18, %v6446_v25 }
 0x23c   : > { %v5154_v14 = vrot.slane %v5088_v1, 1  ;;  %v6447_v10 = vpop.f32.mrb[22].mxu1  ;;  %v5277_v6 = vadd.f32 %v5261_v57, %v5086_v38  ;;  %v5089_v20 = vadd.f32 %v5067_v31, %v5065_v45  ;;  %v4933_v33 = vpop.f32.mrb[23].mxu0  ;;  %v5223_v34 = vrot.slane %v5088_v1, 7 }
 0x23d   : > { %v2796_v61 = vpop.f32.mrb[23].mxu1  ;;  %v6645_v26 = vadd.f32 %v4930_v22, %v2793_v46  ;;  %v6646_v15 = vadd.f32 %v6607_v9, %v6447_v10  ;;  %v5294_v49 = vmul.f32 0.25, %v5278_v7  ;;  %v5038_v50 = vadd.f32 %v6644_v21, %v9037_v54 }
 0x23e   : > { %v6647_v53 = vadd.f32 %v4933_v33, %v2796_v61  ;;  %v5293_v59 = vmul.f32 0.25, %v5277_v6  ;;  %v5155_v27 = vrot.slane %v5089_v20, 1  ;;  %v5202_v32 = vrot.slane %v5089_v20, 7 }
 0x23f   : > { %v5036_v38 = vadd.f32 %v6645_v26, %v9037_v54  ;;  %v5039_v24 = vadd.f32 %v6646_v15, %v9037_v54  ;;  %5316 = vst.msk [vmem:[%s9070_s8 + $0x68] sm:$0xff] %vm723_vm3, %v5294_v49  ;;  %5318 = vst.msk [vmem:[%s9070_s8 + $0x78] sm:$0xff] %vm723_vm3, %v5294_v49  ;;  %v5070_v51 = vmax.f32 %v5038_v50, 0.0 }
 0x240   : > { %v5037_v12 = vadd.f32 %v6647_v53, %v9037_v54  ;;  %5315 = vst.msk [vmem:[%s9070_s8 + $0x60] sm:$0xff] %vm723_vm3, %v5293_v59  ;;  %5317 = vst.msk [vmem:[%s9070_s8 + $0x70] sm:$0xff] %vm723_vm3, %v5293_v59  ;;  %v5156_v5 = vsel %vm5141_vm8, %v5154_v14, %v5155_v27  ;;  %v5194_v19 = vsel %vm5141_vm8, %v5155_v27, %v5154_v14 }
 0x241   : > { %v5224_v3 = vsel %vm5214_vm10, %v5223_v34, %v5202_v32  ;;  %v5251_v17 = vsel %vm5214_vm10, %v5202_v32, %v5223_v34  ;;  %v5068_v40 = vmax.f32 %v5036_v38, 0.0  ;;  %v6610_v23 = vpop.f32.mrb[24].mxu0  ;;  %v5071_v63 = vmax.f32 %v5039_v24, 0.0 }
 0x242   : > { %v5263_v36 = vsel %vm9043_vm7, %v5156_v5, %v5251_v17  ;;  %v5264_v42 = vsel %vm9047_vm9, %v5194_v19, %v5224_v3  ;;  %v6450_v47 = vpop.f32.mrb[24].mxu1  ;;  %v5069_v55 = vmax.f32 %v5037_v12, 0.0  ;;  %v4946_v16 = vpop.f32.mrb[25].mxu0 }
 0x243   : > { %v5279_v29 = vadd.f32 %v5263_v36, %v5088_v1  ;;  %v5280_v2 = vadd.f32 %v5264_v42, %v5089_v20  ;;  %v2809_v13 = vpop.f32.mrb[25].mxu1  ;;  %v5090_v44 = vadd.f32 %v5070_v51, %v5068_v40  ;;  %v6648_v58 = vadd.f32 %v6610_v23, %v6450_v47  ;;  %v6611_v48 = vpop.f32.mrb[26].mxu0 }
 0x244   : > { %v6649_v60 = vadd.f32 %v4946_v16, %v2809_v13  ;;  %v6451_v30 = vpop.f32.mrb[26].mxu1  ;;  %v5091_v0 = vadd.f32 %v5071_v63, %v5069_v55  ;;  %v4949_v41 = vpop.f32.mrb[27].mxu0 }
 0x245   : > { %v5295_v28 = vmul.f32 0.25, %v5279_v29  ;;  %v5296_v35 = vmul.f32 0.25, %v5280_v2  ;;  %v6650_v39 = vadd.f32 %v6611_v48, %v6451_v30  ;;  %v2812_v11 = vpop.f32.mrb[27].mxu1  ;;  %v5157_v1 = vrot.slane %v5090_v44, 1 }
 0x246   : > { %v5225_v31 = vrot.slane %v5090_v44, 7  ;;  %v5042_v45 = vadd.f32 %v6648_v58, %v9037_v54  ;;  %v5040_v25 = vadd.f32 %v6649_v60, %v9037_v54  ;;  %v5158_v18 = vrot.slane %v5091_v0, 1 }
 0x247   : > { %5319 = vst.msk [vmem:[%s9070_s8 + $0x80] sm:$0xff] %vm723_vm3, %v5295_v28  ;;  %5320 = vst.msk [vmem:[%s9070_s8 + $0x88] sm:$0xff] %vm723_vm3, %v5296_v35  ;;  %v5203_v8 = vrot.slane %v5091_v0, 7  ;;  %v5043_v62 = vadd.f32 %v6650_v39, %v9037_v54  ;;  %v6651_v43 = vadd.f32 %v4949_v41, %v2812_v11 }
 0x248   : > { %5321 = vst.msk [vmem:[%s9070_s8 + $0x90] sm:$0xff] %vm723_vm3, %v5295_v28  ;;  %5322 = vst.msk [vmem:[%s9070_s8 + $0x98] sm:$0xff] %vm723_vm3, %v5296_v35  ;;  %v5074_v4 = vmax.f32 %v5042_v45, 0.0  ;;  %v5072_v46 = vmax.f32 %v5040_v25, 0.0  ;;  %v5159_v22 = vsel %vm5141_vm8, %v5157_v1, %v5158_v18  ;;  %v5195_v57 = vsel %vm5141_vm8, %v5158_v18, %v5157_v1 }
 0x249   : > { %v5226_v37 = vsel %vm5214_vm10, %v5225_v31, %v5203_v8  ;;  %v5252_v14 = vsel %vm5214_vm10, %v5203_v8, %v5225_v31  ;;  %v5075_v7 = vmax.f32 %v5043_v62, 0.0  ;;  %v6614_v21 = vpop.f32.mrb[28].mxu0  ;;  %v5041_v34 = vadd.f32 %v6651_v43, %v9037_v54 }
 0x24a   : > { %v5265_v10 = vsel %vm9043_vm7, %v5159_v22, %v5252_v14  ;;  %v5266_v9 = vsel %vm9047_vm9, %v5195_v57, %v5226_v37  ;;  %v5092_v6 = vadd.f32 %v5074_v4, %v5072_v46  ;;  %v6454_v20 = vpop.f32.mrb[28].mxu1  ;;  %v4962_v53 = vpop.f32.mrb[29].mxu0 }
 0x24b   : > { %v5281_v61 = vadd.f32 %v5265_v10, %v5090_v44  ;;  %v5282_v33 = vadd.f32 %v5266_v9, %v5091_v0  ;;  %v6652_v26 = vadd.f32 %v6614_v21, %v6454_v20  ;;  %v2825_v15 = vpop.f32.mrb[29].mxu1  ;;  %v6615_v27 = vpop.f32.mrb[30].mxu0  ;;  %v5073_v38 = vmax.f32 %v5041_v34, 0.0 }
 0x24c   : > { %v6653_v59 = vadd.f32 %v4962_v53, %v2825_v15  ;;  %v6455_v49 = vpop.f32.mrb[30].mxu1  ;;  %v4965_v5 = vpop.f32.mrb[31].mxu0  ;;  %v5160_v23 = vrot.slane %v5092_v6, 1  ;;  %v5227_v29 = vrot.slane %v5092_v6, 7 }
 0x24d   : > { %v5297_v32 = vmul.f32 0.25, %v5281_v61  ;;  %v5298_v50 = vmul.f32 0.25, %v5282_v33  ;;  %v5046_v24 = vadd.f32 %v6652_v26, %v9037_v54  ;;  %v2828_v12 = vpop.f32.mrb[31].mxu1  ;;  %v6654_v3 = vadd.f32 %v6615_v27, %v6455_v49 }
 0x24e   : > { %v5044_v19 = vadd.f32 %v6653_v59, %v9037_v54  ;;  %v6655_v17 = vadd.f32 %v4965_v5, %v2828_v12  ;;  %v5093_v36 = vadd.f32 %v5075_v7, %v5073_v38 }
 0x24f   : > { %5323 = vst.msk [vmem:[%s9070_s8 + $0xa0] sm:$0xff] %vm723_vm3, %v5297_v32  ;;  %5324 = vst.msk [vmem:[%s9070_s8 + $0xa8] sm:$0xff] %vm723_vm3, %v5298_v50  ;;  %v5078_v42 = vmax.f32 %v5046_v24, 0.0  ;;  %v5047_v40 = vadd.f32 %v6654_v3, %v9037_v54 }
 0x250   : > { %5325 = vst.msk [vmem:[%s9070_s8 + $0xb0] sm:$0xff] %vm723_vm3, %v5297_v32  ;;  %5326 = vst.msk [vmem:[%s9070_s8 + $0xb8] sm:$0xff] %vm723_vm3, %v5298_v50  ;;  %v5076_v51 = vmax.f32 %v5044_v19, 0.0  ;;  %v5045_v47 = vadd.f32 %v6655_v17, %v9037_v54  ;;  %v5161_v2 = vrot.slane %v5093_v36, 1  ;;  %v5204_v63 = vrot.slane %v5093_v36, 7 }
 0x251   : > { %v5079_v13 = vmax.f32 %v5047_v40, 0.0 }
 0x252   : > { %v5094_v55 = vadd.f32 %v5078_v42, %v5076_v51  ;;  %v5077_v16 = vmax.f32 %v5045_v47, 0.0  ;;  %v5162_v44 = vsel %vm5141_vm8, %v5160_v23, %v5161_v2  ;;  %v5196_v58 = vsel %vm5141_vm8, %v5161_v2, %v5160_v23 }
 0x253   : > { %v5228_v60 = vsel %vm5214_vm10, %v5227_v29, %v5204_v63  ;;  %v5253_v30 = vsel %vm5214_vm10, %v5204_v63, %v5227_v29 }
 0x254   : > { %v5267_v54 = vsel %vm9043_vm7, %v5162_v44, %v5253_v30  ;;  %v5268_v48 = vsel %vm9047_vm9, %v5196_v58, %v5228_v60  ;;  %v5095_v0 = vadd.f32 %v5079_v13, %v5077_v16  ;;  %v5163_v39 = vrot.slane %v5094_v55, 1 }
 0x255   : > { %v5283_v28 = vadd.f32 %v5267_v54, %v5092_v6  ;;  %v5284_v35 = vadd.f32 %v5268_v48, %v5093_v36  ;;  %v5229_v11 = vrot.slane %v5094_v55, 7 }
 0x256   : > { %v5164_v31 = vrot.slane %v5095_v0, 1  ;;  %v5205_v45 = vrot.slane %v5095_v0, 7 }
 0x257   : > { %v5299_v41 = vmul.f32 0.25, %v5283_v28  ;;  %v5300_v1 = vmul.f32 0.25, %v5284_v35 }
 0x258   : > { %v5165_v25 = vsel %vm5141_vm8, %v5163_v39, %v5164_v31  ;;  %v5197_v18 = vsel %vm5141_vm8, %v5164_v31, %v5163_v39  ;;  %v5230_v8 = vsel %vm5214_vm10, %v5229_v11, %v5205_v45  ;;  %v5254_v62 = vsel %vm5214_vm10, %v5205_v45, %v5229_v11 }
 0x259   : > { %5327 = vst.msk [vmem:[%s9070_s8 + $0xc0] sm:$0xff] %vm723_vm3, %v5299_v41  ;;  %5328 = vst.msk [vmem:[%s9070_s8 + $0xc8] sm:$0xff] %vm723_vm3, %v5300_v1  ;;  %v5269_v43 = vsel %vm9043_vm7, %v5165_v25, %v5254_v62  ;;  %v5270_v4 = vsel %vm9047_vm9, %v5197_v18, %v5230_v8 }
 0x25a   : > { %5329 = vst.msk [vmem:[%s9070_s8 + $0xd0] sm:$0xff] %vm723_vm3, %v5299_v41  ;;  %5330 = vst.msk [vmem:[%s9070_s8 + $0xd8] sm:$0xff] %vm723_vm3, %v5300_v1  ;;  %v5285_v46 = vadd.f32 %v5269_v43, %v5094_v55  ;;  %v5286_v22 = vadd.f32 %v5270_v4, %v5095_v0 }
 0x25c   : > { %v5301_v57 = vmul.f32 0.25, %v5285_v46  ;;  %v5302_v37 = vmul.f32 0.25, %v5286_v22 }
 0x25e   : > { %5331 = vst.msk [vmem:[%s9070_s8 + $0xe0] sm:$0xff] %vm723_vm3, %v5301_v57  ;;  %5332 = vst.msk [vmem:[%s9070_s8 + $0xe8] sm:$0xff] %vm723_vm3, %v5302_v37 }
 0x25f   : > { %5333 = vst.msk [vmem:[%s9070_s8 + $0xf0] sm:$0xff] %vm723_vm3, %v5301_v57  ;;  %5334 = vst.msk [vmem:[%s9070_s8 + $0xf8] sm:$0xff] %vm723_vm3, %v5302_v37 }
 0x260   : > { %7101 = shalt.err (!%p7098_p5)
}
 0x261   : > { %s7102_s29 = scalar_lea.hbm %s9217_s19, 4096  ;;  %s7106_s27 = scalar_lea.hbm %s9280_s3, 8192 }
 0x262   : > { %p7103_p6 = scmp.ne.s32.totalorder %s9217_s19, %s7102_s29  ;;  %p7107_p10 = scmp.lt.u32.totalorder %s9217_s19, %s9280_s3 }
 0x263   : > { %p7108_p11 = scmp.lt.u32.totalorder %s7106_s27, %s7102_s29  ;;  %p7110_p13 = scmp.lt.u32.totalorder %s7102_s29, %s9217_s19 }
 0x264   : > { %p7104_p7 = pnand %p7103_p6, %p7231_p4 }
 0x265   : > { %p7109_p12 = por %p7108_p11, %p7107_p10 }
 0x266   : > { %p7105_p9 = pneg %p7104_p7 }
 0x267   : > { %p7111_p0 = por %p7110_p13, %p7109_p12 }
 0x269   : > { %p7112_p1 = pnand %p7111_p0, %p7105_p9 }
 0x26b   : > { %7115 = shalt.err (!%p7112_p1)
}
 0x26c   : > { %s7169_s7 = smov 128   ;;  %s7170_s8 = smov 8  }
 0x26d   : > { %6881 = dma.vmem_to_hbm [thread:$0]  (%p7231_p4), %s9219_s10, 4096, %s9217_s19, %s9231_s15, %s7169_s7, %s7169_s7, %s7170_s8  }
 0x26e PF: > { %p6887_p2 = scmp.ge.s32.totalorder %s7166_s17, 2  ;;  %s5367_s9 = sand.u32 1, %s7146_s12  }
 0x26f   : > { %s5368_s11 = scalar_lea.sflag [#allocation3], %s5367_s9 }
 0x270   : > { %p6884_p3 = pnand %p6887_p2, %p7238_p8 }
 0x272   : > { %7141 = dma.done.wait (!%p6884_p3), %s5368_s11, 4096  }
 0x273   : > { %7143 = vsyncadd (!%p6884_p3), %s5368_s11, 4294963200  ;;  %s16_s17 = sadd.s32 1, %s7166_s17   ;;  %s9349_s12 = smov %s7150_s13 }
 0x274   : > { %p13_p5 = scmp.ge.s32.totalorder %s16_s17, 4   ;;  %s9350_s13 = smov %s7154_s14 }
 0x275   : > { %s9351_s14 = smov %s7244_s25  ;;  %s9352_s15 = smov %s7162_s16 }
 0x276   : > { %s9353_s16 = smov %s9355_s20  ;;  %15 = sbr.rel (!%p13_p5) target bundleno = 4 (0x4), region = 77 }
 0x27d   :  { %5373 = vsyncpa [#allocation3], 1 }
 0x27e   :  { %5375 = vsyncpa [#allocation3 + $0x1], 1 }

</bundles_post_ra>
